<compile_context>
chip_gen: v6e
topology: v6e:2x2x1
jax: 0.10.0
libtpu: 0.0.40
codegen_flags: <defaults>
</compile_context>

<pallas_src>
import functools

import jax
import jax.numpy as jnp
import numpy as np
from jax.experimental import pallas as pl
from jax.experimental.pallas import tpu as pltpu

# ----------------------------- model hyper-params -----------------------------
NODE_N = 16
DCT_N = 10
IN_LEN = 3 * DCT_N          # 30
HIDDEN = 64                 # hidden_dim (kept small; module default is 256)
BASE_DIM = 64
Z_DIM = 64
BASE_NUM = 10               # base_num_p1
MMH = 10                    # multi_modal_head
HEAD_H = 64                 # hidden width of mean/logvar heads
BN_EPS = 1e-5


# ----------------------------- fused Pallas kernel -----------------------------
def _make_fused_kernel(b, n, hidden, z_dim):
    """Kernel closure over static sizes (batch b, nodes n, hidden, z_dim)."""

    def kernel(x_ref, eps_ref, wexp_ref, rsel_ref, ssum_ref,
               g0w_ref, g0att_ref, g0s_ref, g0t_ref,
               gw_ref, gatt_ref, gs_ref, gt_ref,
               wb_hbm_ref, sb_ref, tb_ref,
               hw1_ref, hs1_ref, ht1_ref, hw2_ref, hb2_ref,
               z_ref, mean_ref, logvar_ref,
               h_scr, flat_scr, wb_vmem, wb_sem):

        # Kick off the big bases-weight DMA immediately; it overlaps with the encoder.
        wb_cp = pltpu.make_async_copy(wb_hbm_ref, wb_vmem, wb_sem)
        wb_cp.start()

        def gcb(x, w, att, scale, shift):
            # x: (n*b, in_feat), node-major rows (row = node*b + batch)
            feat = jnp.dot(x, w, preferred_element_type=jnp.float32)       # (n*b, H)
            out = jnp.dot(att, feat, preferred_element_type=jnp.float32)   # kron(att^T, I_b)
            return jnp.tanh(out * scale + shift)                           # bias folded into shift

        # ---- condition_enc: GraphConvBlock + 2x ResGCB --------------------------------
        h = gcb(x_ref[...], g0w_ref[...], g0att_ref[...], g0s_ref[...], g0t_ref[...])
        for blk in range(2):                                  # two ResGCB blocks
            i0, i1 = 2 * blk, 2 * blk + 1
            mid = gcb(h, gw_ref[i0], gatt_ref[i0], gs_ref[i0], gt_ref[i0])
            h = gcb(mid, gw_ref[i1], gatt_ref[i1], gs_ref[i1], gt_ref[i1]) + h

        # ---- flatten to (b, n*hidden)  ==  condition_enced.view(b, -1) ----------------
        h_scr[...] = h
        for node in range(n):
            flat_scr[:, node * hidden:(node + 1) * hidden] = h_scr[node * b:(node + 1) * b, :]

        # ---- bases_p1: Linear + folded BN + Tanh ---------------------------------------
        wb_cp.wait()                                                         # DMA now hidden
        y = jnp.dot(flat_scr[...], wb_vmem[...],
                    preferred_element_type=jnp.float32)                      # (b, base_num*base_dim)
        t_bases = jnp.tanh(y * sb_ref[...] + tb_ref[...])

        # ---- repeat_interleave + many_weights blending (no materialized repeat) -------
        # t_rep[r] = t_bases[r // mmh]     via (b*mmh, b) one-hot selector
        t_rep = jnp.dot(rsel_ref[...], t_bases, preferred_element_type=jnp.float32)
        prod = wexp_ref[...] * t_rep                                         # lane-dense weights
        # blended[r, d] = sum_p prod[r, p*base_dim + d]   via summing matrix
        blended = jnp.dot(prod, ssum_ref[...], preferred_element_type=jnp.float32)  # (b*mmh, base_dim)

        # ---- mean / logvar heads (lane-concatenated) + reparameterization --------------
        h1 = jnp.dot(blended, hw1_ref[...], preferred_element_type=jnp.float32)
        h1 = jnp.tanh(h1 * hs1_ref[...] + ht1_ref[...])                      # (b*mmh, 2*HEAD_H)
        out2 = jnp.dot(h1, hw2_ref[...], preferred_element_type=jnp.float32) + hb2_ref[...]
        mean = out2[:, :z_dim]
        logvar = out2[:, z_dim:2 * z_dim]
        mean_ref[...] = mean
        logvar_ref[...] = logvar
        z_ref[...] = jnp.exp(0.5 * logvar) * eps_ref[...] + mean

    return kernel


def _full_spec(shape):
    nd = len(shape)
    return pl.BlockSpec(tuple(shape), lambda i, _nd=nd: (0,) * _nd)


# ----------------------------- forward (single pallas_call) --------------------
@functools.partial(jax.jit, static_argnums=(4,))
def diverse_sampling_forward(params, condition, repeated_eps, many_weights,
                             multi_modal_head=MMH):
    b, n, in_len = condition.shape
    hidden = params["gcb0"]["w"].shape[1]
    base_dim = BASE_DIM
    base_num = params["bases"]["w"].shape[1] // base_dim
    z_dim = params["mean"]["w2"].shape[1]
    mmh = multi_modal_head
    b2 = b * mmh
    rows = n * b

    eye_b = jnp.eye(b, dtype=jnp.float32)

    # GCB params reorganized for the node-major (n*b, feat) layout, bias folded into the
    # BN shift (cheap JAX glue on tiny tensors).
    def prep_gcb(p):
        shift_f = p["bias"] * p["scale"] + p["shift"]        # (n, H)
        return dict(
            w=p["w"],
            att=jnp.kron(p["att_t"], eye_b),                 # (n*b, n*b) block att^T
            scale=jnp.repeat(p["scale"], b, axis=0),         # (n*b, H) folded BN
            shift=jnp.repeat(shift_f, b, axis=0))            # (n*b, H) BN shift + bias

    g0 = prep_gcb(params["gcb0"])
    hid = [prep_gcb(params[k]) for k in ("res1_a", "res1_b", "res2_a", "res2_b")]
    gw = jnp.stack([p["w"] for p in hid])                    # (4, H, H)
    gatt = jnp.stack([p["att"] for p in hid])                # (4, n*b, n*b)
    gs = jnp.stack([p["scale"] for p in hid])                # (4, n*b, H)
    gt = jnp.stack([p["shift"] for p in hid])                # (4, n*b, H)

    # node-major flattened condition: row = node*b + batch
    x_nm = jnp.transpose(condition, (1, 0, 2)).reshape(rows, in_len)

    # lane-dense blend weights: wexp[r, p*base_dim + d] = many_weights[r, 0, p]
    w_dense = many_weights[:, 0, :]                                         # (b2, base_num)
    wexp = jnp.repeat(w_dense, base_dim, axis=1)                            # (b2, base_num*base_dim)
    # repeat_interleave selector and per-base summing matrix (replace jnp.repeat / reshape)
    rsel = jnp.repeat(eye_b, mmh, axis=0)                                   # (b2, b)
    ssum = jnp.tile(jnp.eye(base_dim, dtype=jnp.float32), (base_num, 1))    # (base_num*base_dim, base_dim)

    # bases: fold linear bias into BN shift
    pbs = params["bases"]
    sb = pbs["scale"]                                                       # (1, base_num*base_dim)
    tb_f = pbs["b"] * pbs["scale"] + pbs["shift"]

    # concatenated / block-diagonal head params (mean | logvar), bias folded into shift
    pm, pv = params["mean"], params["logvar"]
    w1c = jnp.concatenate([pm["w1"], pv["w1"]], axis=1)                     # (base_dim, 2*HEAD_H)
    s1c = jnp.concatenate([pm["scale"], pv["scale"]], axis=1)
    b1c = jnp.concatenate([pm["b1"], pv["b1"]], axis=1)
    t1c = jnp.concatenate([pm["shift"], pv["shift"]], axis=1)
    t1f = b1c * s1c + t1c                                                   # folded bias+BN shift
    hh = pm["w2"].shape[0]
    w2blk = jnp.zeros((2 * hh, 2 * z_dim), jnp.float32)
    w2blk = w2blk.at[:hh, :z_dim].set(pm["w2"]).at[hh:, z_dim:].set(pv["w2"])
    b2c = jnp.concatenate([pm["b2"], pv["b2"]], axis=1)

    kernel = _make_fused_kernel(b, n, hidden, z_dim)

    args = [x_nm, repeated_eps, wexp, rsel, ssum,
            g0["w"], g0["att"], g0["scale"], g0["shift"],
            gw, gatt, gs, gt,
            pbs["w"], sb, tb_f,
            w1c, s1c, t1f, w2blk, b2c]
    WB_IDX = 13                                  # bases weight stays in HBM, manual DMA

    in_specs = []
    for idx, a in enumerate(args):
        if idx == WB_IDX:
            in_specs.append(pl.BlockSpec(memory_space=pl.ANY))
        else:
            in_specs.append(_full_spec(a.shape))

    out_shapes = tuple(jax.ShapeDtypeStruct((b2, z_dim), jnp.float32) for _ in range(3))
    z, mean, logvar = pl.pallas_call(
        kernel,
        out_shape=out_shapes,
        grid=(1,),
        in_specs=in_specs,
        out_specs=tuple(_full_spec((b2, z_dim)) for _ in range(3)),
        scratch_shapes=[pltpu.VMEM((rows, hidden), jnp.float32),             # enc output (node-major)
                        pltpu.VMEM((b, n * hidden), jnp.float32),            # flattened view
                        pltpu.VMEM((n * hidden, base_num * base_dim), jnp.float32),  # bases weight
                        pltpu.SemaphoreType.DMA(())],
        compiler_params=pltpu.CompilerParams(dimension_semantics=("arbitrary",)),
    )(*args)
    return z, mean, logvar


# ----------------------------- deterministic params ----------------------------
def _bn_fold(key, num_features):
    k1, k2, k3, k4 = jax.random.split(key, 4)
    gamma = 1.0 + 0.1 * jax.random.normal(k1, (num_features,), jnp.float32)
    beta = 0.1 * jax.random.normal(k2, (num_features,), jnp.float32)
    rmean = 0.1 * jax.random.normal(k3, (num_features,), jnp.float32)
    rvar = 1.0 + 0.1 * jnp.abs(jax.random.normal(k4, (num_features,), jnp.float32))
    scale = gamma / jnp.sqrt(rvar + BN_EPS)
    shift = beta - rmean * scale
    return scale, shift


def _make_gcb(key, in_len, out_len, n):
    k = jax.random.split(key, 4)
    w = 0.1 * jax.random.normal(k[0], (in_len, out_len), jnp.float32)
    att = jnp.eye(n, dtype=jnp.float32) + 0.1 * jax.random.normal(k[1], (n, n), jnp.float32)
    bias = 0.05 * jax.random.normal(k[2], (1, out_len), jnp.float32)
    scale, shift = _bn_fold(k[3], n * out_len)
    return dict(w=w, att_t=att.T, bias=bias,
                scale=scale.reshape(n, out_len), shift=shift.reshape(n, out_len))


def _make_lin_bn(key, in_dim, out_dim):
    k = jax.random.split(key, 3)
    w = 0.05 * jax.random.normal(k[0], (in_dim, out_dim), jnp.float32)
    b = 0.05 * jax.random.normal(k[1], (1, out_dim), jnp.float32)
    scale, shift = _bn_fold(k[2], out_dim)
    return dict(w=w, b=b, scale=scale.reshape(1, out_dim), shift=shift.reshape(1, out_dim))


def _make_head(key, in_dim, z_dim):
    k = jax.random.split(key, 2)
    p = _make_lin_bn(k[0], in_dim, HEAD_H)
    w2 = 0.1 * jax.random.normal(jax.random.fold_in(k[1], 0), (HEAD_H, z_dim), jnp.float32)
    b2 = 0.05 * jax.random.normal(jax.random.fold_in(k[1], 1), (1, z_dim), jnp.float32)
    return dict(w1=p["w"], b1=p["b"], scale=p["scale"], shift=p["shift"], w2=w2, b2=b2)


def init_params(key):
    ks = jax.random.split(key, 9)
    return dict(
        gcb0=_make_gcb(ks[0], IN_LEN, HIDDEN, NODE_N),
        res1_a=_make_gcb(ks[1], HIDDEN, HIDDEN, NODE_N),
        res1_b=_make_gcb(ks[2], HIDDEN, HIDDEN, NODE_N),
        res2_a=_make_gcb(ks[3], HIDDEN, HIDDEN, NODE_N),
        res2_b=_make_gcb(ks[4], HIDDEN, HIDDEN, NODE_N),
        bases=_make_lin_bn(ks[5], NODE_N * HIDDEN, BASE_NUM * BASE_DIM),
        mean=_make_head(ks[6], BASE_DIM, Z_DIM),
        logvar=_make_head(ks[7], BASE_DIM, Z_DIM),
    )


# ----------------------------- pure-JAX reference ------------------------------
def _ref_gcb(x, p, res=None):
    feat = jnp.einsum("bni,io->bno", x, p["w"])
    out = jnp.einsum("jn,bnl->bjl", p["att_t"], feat) + p["bias"][None]
    out = out * p["scale"][None] + p["shift"][None]
    out = jnp.tanh(out)
    return out if res is None else out + res


def _ref_forward(params, condition, eps, many_weights, mmh):
    b = condition.shape[0]
    h = _ref_gcb(condition, params["gcb0"])
    h = _ref_gcb(_ref_gcb(h, params["res1_a"]), params["res1_b"], res=h)
    h = _ref_gcb(_ref_gcb(h, params["res2_a"]), params["res2_b"], res=h)
    pb = params["bases"]
    bases = jnp.tanh((h.reshape(b, -1) @ pb["w"] + pb["b"]) * pb["scale"] + pb["shift"])
    bases = bases.reshape(b, BASE_NUM, BASE_DIM)
    rep = jnp.repeat(bases, mmh, axis=0)
    blended = jnp.matmul(many_weights, rep)[:, 0, :]

    def head(x, p):
        h1 = jnp.tanh((x @ p["w1"] + p["b1"]) * p["scale"] + p["shift"])
        return h1 @ p["w2"] + p["b2"]

    mean = head(blended, params["mean"])
    logvar = head(blended, params["logvar"])
    z = jnp.exp(0.5 * logvar) * eps + mean
    return z, mean, logvar


# ----------------------------- main ---------------------------------------------
if __name__ == "__main__":
    b = 2
    key = jax.random.PRNGKey(0)
    kp, kc, ke, kw = jax.random.split(key, 4)

    params = init_params(kp)
    condition = 0.5 * jax.random.normal(kc, (b, NODE_N, IN_LEN), jnp.float32)        # [b, 16, 3*dct_n]
    repeated_eps = jax.random.normal(ke, (b * MMH, Z_DIM), jnp.float32)               # [b*h, 64]
    many_weights = jax.nn.softmax(
        jax.random.normal(kw, (b * MMH, 1, BASE_NUM), jnp.float32), axis=-1)          # [b*h, 1, 10]

    z, mean, logvar = diverse_sampling_forward(params, condition, repeated_eps,
                                               many_weights, MMH)
    jax.block_until_ready((z, mean, logvar))

    # correctness check vs pure-JAX reference
    zr, mr, lr = _ref_forward(params, condition, repeated_eps, many_weights, MMH)
    assert z.shape == (b * MMH, Z_DIM) and mean.shape == z.shape and logvar.shape == z.shape
    assert np.allclose(np.asarray(z), np.asarray(zr), atol=1e-2, rtol=1e-2)
    assert np.allclose(np.asarray(mean), np.asarray(mr), atol=1e-2, rtol=1e-2)
    assert np.allclose(np.asarray(logvar), np.asarray(lr), atol=1e-2, rtol=1e-2)

    print("KERNEL_OK")
</pallas_src>

<mosaic_0001>
module attributes {stable_mosaic.version = 11 : i64} {
  func.func @kernel(%arg0: i32, %arg1: memref<32x30xf32, #tpu.memory_space<vmem>>, %arg2: memref<20x64xf32, #tpu.memory_space<vmem>>, %arg3: memref<20x640xf32, #tpu.memory_space<vmem>>, %arg4: memref<20x2xf32, #tpu.memory_space<vmem>>, %arg5: memref<640x64xf32, #tpu.memory_space<vmem>>, %arg6: memref<30x64xf32, #tpu.memory_space<vmem>>, %arg7: memref<32x32xf32, #tpu.memory_space<vmem>>, %arg8: memref<32x64xf32, #tpu.memory_space<vmem>>, %arg9: memref<32x64xf32, #tpu.memory_space<vmem>>, %arg10: memref<4x64x64xf32, #tpu.memory_space<vmem>>, %arg11: memref<4x32x32xf32, #tpu.memory_space<vmem>>, %arg12: memref<4x32x64xf32, #tpu.memory_space<vmem>>, %arg13: memref<4x32x64xf32, #tpu.memory_space<vmem>>, %arg14: memref<1024x640xf32, #tpu.memory_space<any>>, %arg15: memref<1x640xf32, #tpu.memory_space<vmem>>, %arg16: memref<1x640xf32, #tpu.memory_space<vmem>>, %arg17: memref<64x128xf32, #tpu.memory_space<vmem>>, %arg18: memref<1x128xf32, #tpu.memory_space<vmem>>, %arg19: memref<1x128xf32, #tpu.memory_space<vmem>>, %arg20: memref<128x128xf32, #tpu.memory_space<vmem>>, %arg21: memref<1x128xf32, #tpu.memory_space<vmem>>, %arg22: memref<20x64xf32, #tpu.memory_space<vmem>>, %arg23: memref<20x64xf32, #tpu.memory_space<vmem>>, %arg24: memref<20x64xf32, #tpu.memory_space<vmem>>, %arg25: memref<32x64xf32, #tpu.memory_space<vmem>>, %arg26: memref<2x1024xf32, #tpu.memory_space<vmem>>, %arg27: memref<1024x640xf32, #tpu.memory_space<vmem>>, %arg28: memref<!tpu.dma_semaphore, #tpu.memory_space<semaphore_mem>>) attributes {dimension_semantics = [#tpu.dimension_semantics<arbitrary>], iteration_bounds = array<i64: 1>, scalar_prefetch = 0 : i64, scratch_operands = 4 : i64, tpu.core_type = #tpu.core_type<tc>, window_params = [{pipeline_mode = #tpu.pipeline_mode<synchronous>, transform_indices = @transform_0, window_bounds = array<i64: 32, 30>}, {pipeline_mode = #tpu.pipeline_mode<synchronous>, transform_indices = @transform_1, window_bounds = array<i64: 20, 64>}, {pipeline_mode = #tpu.pipeline_mode<synchronous>, transform_indices = @transform_2, window_bounds = array<i64: 20, 640>}, {pipeline_mode = #tpu.pipeline_mode<synchronous>, transform_indices = @transform_3, window_bounds = array<i64: 20, 2>}, {pipeline_mode = #tpu.pipeline_mode<synchronous>, transform_indices = @transform_4, window_bounds = array<i64: 640, 64>}, {pipeline_mode = #tpu.pipeline_mode<synchronous>, transform_indices = @transform_5, window_bounds = array<i64: 30, 64>}, {pipeline_mode = #tpu.pipeline_mode<synchronous>, transform_indices = @transform_6, window_bounds = array<i64: 32, 32>}, {pipeline_mode = #tpu.pipeline_mode<synchronous>, transform_indices = @transform_7, window_bounds = array<i64: 32, 64>}, {pipeline_mode = #tpu.pipeline_mode<synchronous>, transform_indices = @transform_8, window_bounds = array<i64: 32, 64>}, {pipeline_mode = #tpu.pipeline_mode<synchronous>, transform_indices = @transform_9, window_bounds = array<i64: 4, 64, 64>}, {pipeline_mode = #tpu.pipeline_mode<synchronous>, transform_indices = @transform_10, window_bounds = array<i64: 4, 32, 32>}, {pipeline_mode = #tpu.pipeline_mode<synchronous>, transform_indices = @transform_11, window_bounds = array<i64: 4, 32, 64>}, {pipeline_mode = #tpu.pipeline_mode<synchronous>, transform_indices = @transform_12, window_bounds = array<i64: 4, 32, 64>}, {}, {pipeline_mode = #tpu.pipeline_mode<synchronous>, transform_indices = @transform_14, window_bounds = array<i64: 1, 640>}, {pipeline_mode = #tpu.pipeline_mode<synchronous>, transform_indices = @transform_15, window_bounds = array<i64: 1, 640>}, {pipeline_mode = #tpu.pipeline_mode<synchronous>, transform_indices = @transform_16, window_bounds = array<i64: 64, 128>}, {pipeline_mode = #tpu.pipeline_mode<synchronous>, transform_indices = @transform_17, window_bounds = array<i64: 1, 128>}, {pipeline_mode = #tpu.pipeline_mode<synchronous>, transform_indices = @transform_18, window_bounds = array<i64: 1, 128>}, {pipeline_mode = #tpu.pipeline_mode<synchronous>, transform_indices = @transform_19, window_bounds = array<i64: 128, 128>}, {pipeline_mode = #tpu.pipeline_mode<synchronous>, transform_indices = @transform_20, window_bounds = array<i64: 1, 128>}, {pipeline_mode = #tpu.pipeline_mode<synchronous>, transform_indices = @transform_21, window_bounds = array<i64: 20, 64>}, {pipeline_mode = #tpu.pipeline_mode<synchronous>, transform_indices = @transform_22, window_bounds = array<i64: 20, 64>}, {pipeline_mode = #tpu.pipeline_mode<synchronous>, transform_indices = @transform_23, window_bounds = array<i64: 20, 64>}]} {
    tpu.enqueue_dma source(%arg14 : memref<1024x640xf32, #tpu.memory_space<any>>) target(%arg27 : memref<1024x640xf32, #tpu.memory_space<vmem>>) target_semaphore(%arg28 : memref<!tpu.dma_semaphore, #tpu.memory_space<semaphore_mem>>)
    %c0 = arith.constant 0 : index
    %c0_0 = arith.constant 0 : index
    %0 = vector.load %arg1[%c0, %c0_0] : memref<32x30xf32, #tpu.memory_space<vmem>>, vector<32x30xf32>
    %c0_1 = arith.constant 0 : index
    %c0_2 = arith.constant 0 : index
    %1 = vector.load %arg6[%c0_1, %c0_2] : memref<30x64xf32, #tpu.memory_space<vmem>>, vector<30x64xf32>
    %c0_3 = arith.constant 0 : index
    %c0_4 = arith.constant 0 : index
    %2 = vector.load %arg7[%c0_3, %c0_4] : memref<32x32xf32, #tpu.memory_space<vmem>>, vector<32x32xf32>
    %c0_5 = arith.constant 0 : index
    %c0_6 = arith.constant 0 : index
    %3 = vector.load %arg8[%c0_5, %c0_6] : memref<32x64xf32, #tpu.memory_space<vmem>>, vector<32x64xf32>
    %c0_7 = arith.constant 0 : index
    %c0_8 = arith.constant 0 : index
    %4 = vector.load %arg9[%c0_7, %c0_8] : memref<32x64xf32, #tpu.memory_space<vmem>>, vector<32x64xf32>
    %cst = arith.constant dense<0.000000e+00> : vector<32x64xf32>
    %5 = tpu.matmul %0, %1, %cst {dimension_numbers = #tpu.dot_dimension_numbers<[1], [0], [0], [1], [0, 0, 1, 1], [], []>} : vector<32x30xf32>, vector<30x64xf32>, vector<32x64xf32> -> vector<32x64xf32>
    %cst_9 = arith.constant dense<0.000000e+00> : vector<32x64xf32>
    %6 = tpu.matmul %2, %5, %cst_9 {dimension_numbers = #tpu.dot_dimension_numbers<[1], [0], [0], [1], [0, 0, 1, 1], [], []>} : vector<32x32xf32>, vector<32x64xf32>, vector<32x64xf32> -> vector<32x64xf32>
    %7 = arith.mulf %6, %3 : vector<32x64xf32>
    %8 = arith.addf %7, %4 : vector<32x64xf32>
    %9 = math.tanh %8 : vector<32x64xf32>
    %c0_10 = arith.constant 0 : index
    %c0_11 = arith.constant 0 : index
    %c0_12 = arith.constant 0 : index
    %10 = vector.load %arg10[%c0_10, %c0_11, %c0_12] : memref<4x64x64xf32, #tpu.memory_space<vmem>>, vector<1x64x64xf32>
    %11 = vector.shape_cast %10 : vector<1x64x64xf32> to vector<64x64xf32>
    %c0_13 = arith.constant 0 : index
    %c0_14 = arith.constant 0 : index
    %c0_15 = arith.constant 0 : index
    %12 = vector.load %arg11[%c0_13, %c0_14, %c0_15] : memref<4x32x32xf32, #tpu.memory_space<vmem>>, vector<1x32x32xf32>
    %13 = vector.shape_cast %12 : vector<1x32x32xf32> to vector<32x32xf32>
    %c0_16 = arith.constant 0 : index
    %c0_17 = arith.constant 0 : index
    %c0_18 = arith.constant 0 : index
    %14 = vector.load %arg12[%c0_16, %c0_17, %c0_18] : memref<4x32x64xf32, #tpu.memory_space<vmem>>, vector<1x32x64xf32>
    %15 = vector.shape_cast %14 : vector<1x32x64xf32> to vector<32x64xf32>
    %c0_19 = arith.constant 0 : index
    %c0_20 = arith.constant 0 : index
    %c0_21 = arith.constant 0 : index
    %16 = vector.load %arg13[%c0_19, %c0_20, %c0_21] : memref<4x32x64xf32, #tpu.memory_space<vmem>>, vector<1x32x64xf32>
    %17 = vector.shape_cast %16 : vector<1x32x64xf32> to vector<32x64xf32>
    %cst_22 = arith.constant dense<0.000000e+00> : vector<32x64xf32>
    %18 = tpu.matmul %9, %11, %cst_22 {dimension_numbers = #tpu.dot_dimension_numbers<[1], [0], [0], [1], [0, 0, 1, 1], [], []>} : vector<32x64xf32>, vector<64x64xf32>, vector<32x64xf32> -> vector<32x64xf32>
    %cst_23 = arith.constant dense<0.000000e+00> : vector<32x64xf32>
    %19 = tpu.matmul %13, %18, %cst_23 {dimension_numbers = #tpu.dot_dimension_numbers<[1], [0], [0], [1], [0, 0, 1, 1], [], []>} : vector<32x32xf32>, vector<32x64xf32>, vector<32x64xf32> -> vector<32x64xf32>
    %20 = arith.mulf %19, %15 : vector<32x64xf32>
    %21 = arith.addf %20, %17 : vector<32x64xf32>
    %22 = math.tanh %21 : vector<32x64xf32>
    %c1 = arith.constant 1 : index
    %c0_24 = arith.constant 0 : index
    %c0_25 = arith.constant 0 : index
    %23 = vector.load %arg10[%c1, %c0_24, %c0_25] : memref<4x64x64xf32, #tpu.memory_space<vmem>>, vector<1x64x64xf32>
    %24 = vector.shape_cast %23 : vector<1x64x64xf32> to vector<64x64xf32>
    %c1_26 = arith.constant 1 : index
    %c0_27 = arith.constant 0 : index
    %c0_28 = arith.constant 0 : index
    %25 = vector.load %arg11[%c1_26, %c0_27, %c0_28] : memref<4x32x32xf32, #tpu.memory_space<vmem>>, vector<1x32x32xf32>
    %26 = vector.shape_cast %25 : vector<1x32x32xf32> to vector<32x32xf32>
    %c1_29 = arith.constant 1 : index
    %c0_30 = arith.constant 0 : index
    %c0_31 = arith.constant 0 : index
    %27 = vector.load %arg12[%c1_29, %c0_30, %c0_31] : memref<4x32x64xf32, #tpu.memory_space<vmem>>, vector<1x32x64xf32>
    %28 = vector.shape_cast %27 : vector<1x32x64xf32> to vector<32x64xf32>
    %c1_32 = arith.constant 1 : index
    %c0_33 = arith.constant 0 : index
    %c0_34 = arith.constant 0 : index
    %29 = vector.load %arg13[%c1_32, %c0_33, %c0_34] : memref<4x32x64xf32, #tpu.memory_space<vmem>>, vector<1x32x64xf32>
    %30 = vector.shape_cast %29 : vector<1x32x64xf32> to vector<32x64xf32>
    %cst_35 = arith.constant dense<0.000000e+00> : vector<32x64xf32>
    %31 = tpu.matmul %22, %24, %cst_35 {dimension_numbers = #tpu.dot_dimension_numbers<[1], [0], [0], [1], [0, 0, 1, 1], [], []>} : vector<32x64xf32>, vector<64x64xf32>, vector<32x64xf32> -> vector<32x64xf32>
    %cst_36 = arith.constant dense<0.000000e+00> : vector<32x64xf32>
    %32 = tpu.matmul %26, %31, %cst_36 {dimension_numbers = #tpu.dot_dimension_numbers<[1], [0], [0], [1], [0, 0, 1, 1], [], []>} : vector<32x32xf32>, vector<32x64xf32>, vector<32x64xf32> -> vector<32x64xf32>
    %33 = arith.mulf %32, %28 : vector<32x64xf32>
    %34 = arith.addf %33, %30 : vector<32x64xf32>
    %35 = math.tanh %34 : vector<32x64xf32>
    %36 = arith.addf %35, %9 : vector<32x64xf32>
    %c2 = arith.constant 2 : index
    %c0_37 = arith.constant 0 : index
    %c0_38 = arith.constant 0 : index
    %37 = vector.load %arg10[%c2, %c0_37, %c0_38] : memref<4x64x64xf32, #tpu.memory_space<vmem>>, vector<1x64x64xf32>
    %38 = vector.shape_cast %37 : vector<1x64x64xf32> to vector<64x64xf32>
    %c2_39 = arith.constant 2 : index
    %c0_40 = arith.constant 0 : index
    %c0_41 = arith.constant 0 : index
    %39 = vector.load %arg11[%c2_39, %c0_40, %c0_41] : memref<4x32x32xf32, #tpu.memory_space<vmem>>, vector<1x32x32xf32>
    %40 = vector.shape_cast %39 : vector<1x32x32xf32> to vector<32x32xf32>
    %c2_42 = arith.constant 2 : index
    %c0_43 = arith.constant 0 : index
    %c0_44 = arith.constant 0 : index
    %41 = vector.load %arg12[%c2_42, %c0_43, %c0_44] : memref<4x32x64xf32, #tpu.memory_space<vmem>>, vector<1x32x64xf32>
    %42 = vector.shape_cast %41 : vector<1x32x64xf32> to vector<32x64xf32>
    %c2_45 = arith.constant 2 : index
    %c0_46 = arith.constant 0 : index
    %c0_47 = arith.constant 0 : index
    %43 = vector.load %arg13[%c2_45, %c0_46, %c0_47] : memref<4x32x64xf32, #tpu.memory_space<vmem>>, vector<1x32x64xf32>
    %44 = vector.shape_cast %43 : vector<1x32x64xf32> to vector<32x64xf32>
    %cst_48 = arith.constant dense<0.000000e+00> : vector<32x64xf32>
    %45 = tpu.matmul %36, %38, %cst_48 {dimension_numbers = #tpu.dot_dimension_numbers<[1], [0], [0], [1], [0, 0, 1, 1], [], []>} : vector<32x64xf32>, vector<64x64xf32>, vector<32x64xf32> -> vector<32x64xf32>
    %cst_49 = arith.constant dense<0.000000e+00> : vector<32x64xf32>
    %46 = tpu.matmul %40, %45, %cst_49 {dimension_numbers = #tpu.dot_dimension_numbers<[1], [0], [0], [1], [0, 0, 1, 1], [], []>} : vector<32x32xf32>, vector<32x64xf32>, vector<32x64xf32> -> vector<32x64xf32>
    %47 = arith.mulf %46, %42 : vector<32x64xf32>
    %48 = arith.addf %47, %44 : vector<32x64xf32>
    %49 = math.tanh %48 : vector<32x64xf32>
    %c3 = arith.constant 3 : index
    %c0_50 = arith.constant 0 : index
    %c0_51 = arith.constant 0 : index
    %50 = vector.load %arg10[%c3, %c0_50, %c0_51] : memref<4x64x64xf32, #tpu.memory_space<vmem>>, vector<1x64x64xf32>
    %51 = vector.shape_cast %50 : vector<1x64x64xf32> to vector<64x64xf32>
    %c3_52 = arith.constant 3 : index
    %c0_53 = arith.constant 0 : index
    %c0_54 = arith.constant 0 : index
    %52 = vector.load %arg11[%c3_52, %c0_53, %c0_54] : memref<4x32x32xf32, #tpu.memory_space<vmem>>, vector<1x32x32xf32>
    %53 = vector.shape_cast %52 : vector<1x32x32xf32> to vector<32x32xf32>
    %c3_55 = arith.constant 3 : index
    %c0_56 = arith.constant 0 : index
    %c0_57 = arith.constant 0 : index
    %54 = vector.load %arg12[%c3_55, %c0_56, %c0_57] : memref<4x32x64xf32, #tpu.memory_space<vmem>>, vector<1x32x64xf32>
    %55 = vector.shape_cast %54 : vector<1x32x64xf32> to vector<32x64xf32>
    %c3_58 = arith.constant 3 : index
    %c0_59 = arith.constant 0 : index
    %c0_60 = arith.constant 0 : index
    %56 = vector.load %arg13[%c3_58, %c0_59, %c0_60] : memref<4x32x64xf32, #tpu.memory_space<vmem>>, vector<1x32x64xf32>
    %57 = vector.shape_cast %56 : vector<1x32x64xf32> to vector<32x64xf32>
    %cst_61 = arith.constant dense<0.000000e+00> : vector<32x64xf32>
    %58 = tpu.matmul %49, %51, %cst_61 {dimension_numbers = #tpu.dot_dimension_numbers<[1], [0], [0], [1], [0, 0, 1, 1], [], []>} : vector<32x64xf32>, vector<64x64xf32>, vector<32x64xf32> -> vector<32x64xf32>
    %cst_62 = arith.constant dense<0.000000e+00> : vector<32x64xf32>
    %59 = tpu.matmul %53, %58, %cst_62 {dimension_numbers = #tpu.dot_dimension_numbers<[1], [0], [0], [1], [0, 0, 1, 1], [], []>} : vector<32x32xf32>, vector<32x64xf32>, vector<32x64xf32> -> vector<32x64xf32>
    %60 = arith.mulf %59, %55 : vector<32x64xf32>
    %61 = arith.addf %60, %57 : vector<32x64xf32>
    %62 = math.tanh %61 : vector<32x64xf32>
    %63 = arith.addf %62, %36 : vector<32x64xf32>
    %c0_63 = arith.constant 0 : index
    %c0_64 = arith.constant 0 : index
    %64 = vector.load %arg25[%c0_63, %c0_64] : memref<32x64xf32, #tpu.memory_space<vmem>>, vector<32x64xf32>
    tpu.vector_store %arg25[%c0_63, %c0_64], %63 {strides = array<i32>} : memref<32x64xf32, #tpu.memory_space<vmem>>, vector<32x64xf32>,
    %c0_65 = arith.constant 0 : index
    %c0_66 = arith.constant 0 : index
    %65 = vector.load %arg25[%c0_65, %c0_66] : memref<32x64xf32, #tpu.memory_space<vmem>>, vector<2x64xf32>
    %c0_67 = arith.constant 0 : index
    %c0_68 = arith.constant 0 : index
    %66 = vector.load %arg26[%c0_67, %c0_68] : memref<2x1024xf32, #tpu.memory_space<vmem>>, vector<2x64xf32>
    tpu.vector_store %arg26[%c0_67, %c0_68], %65 {strides = array<i32>} : memref<2x1024xf32, #tpu.memory_space<vmem>>, vector<2x64xf32>,
    %c2_69 = arith.constant 2 : index
    %c0_70 = arith.constant 0 : index
    %67 = vector.load %arg25[%c2_69, %c0_70] : memref<32x64xf32, #tpu.memory_space<vmem>>, vector<2x64xf32>
    %c0_71 = arith.constant 0 : index
    %c64 = arith.constant 64 : index
    %68 = vector.load %arg26[%c0_71, %c64] : memref<2x1024xf32, #tpu.memory_space<vmem>>, vector<2x64xf32>
    tpu.vector_store %arg26[%c0_71, %c64], %67 {strides = array<i32>} : memref<2x1024xf32, #tpu.memory_space<vmem>>, vector<2x64xf32>,
    %c4 = arith.constant 4 : index
    %c0_72 = arith.constant 0 : index
    %69 = vector.load %arg25[%c4, %c0_72] : memref<32x64xf32, #tpu.memory_space<vmem>>, vector<2x64xf32>
    %c0_73 = arith.constant 0 : index
    %c128 = arith.constant 128 : index
    %70 = vector.load %arg26[%c0_73, %c128] : memref<2x1024xf32, #tpu.memory_space<vmem>>, vector<2x64xf32>
    tpu.vector_store %arg26[%c0_73, %c128], %69 {strides = array<i32>} : memref<2x1024xf32, #tpu.memory_space<vmem>>, vector<2x64xf32>,
    %c6 = arith.constant 6 : index
    %c0_74 = arith.constant 0 : index
    %71 = vector.load %arg25[%c6, %c0_74] : memref<32x64xf32, #tpu.memory_space<vmem>>, vector<2x64xf32>
    %c0_75 = arith.constant 0 : index
    %c192 = arith.constant 192 : index
    %72 = vector.load %arg26[%c0_75, %c192] : memref<2x1024xf32, #tpu.memory_space<vmem>>, vector<2x64xf32>
    tpu.vector_store %arg26[%c0_75, %c192], %71 {strides = array<i32>} : memref<2x1024xf32, #tpu.memory_space<vmem>>, vector<2x64xf32>,
    %c8 = arith.constant 8 : index
    %c0_76 = arith.constant 0 : index
    %73 = vector.load %arg25[%c8, %c0_76] : memref<32x64xf32, #tpu.memory_space<vmem>>, vector<2x64xf32>
    %c0_77 = arith.constant 0 : index
    %c256 = arith.constant 256 : index
    %74 = vector.load %arg26[%c0_77, %c256] : memref<2x1024xf32, #tpu.memory_space<vmem>>, vector<2x64xf32>
    tpu.vector_store %arg26[%c0_77, %c256], %73 {strides = array<i32>} : memref<2x1024xf32, #tpu.memory_space<vmem>>, vector<2x64xf32>,
    %c10 = arith.constant 10 : index
    %c0_78 = arith.constant 0 : index
    %75 = vector.load %arg25[%c10, %c0_78] : memref<32x64xf32, #tpu.memory_space<vmem>>, vector<2x64xf32>
    %c0_79 = arith.constant 0 : index
    %c320 = arith.constant 320 : index
    %76 = vector.load %arg26[%c0_79, %c320] : memref<2x1024xf32, #tpu.memory_space<vmem>>, vector<2x64xf32>
    tpu.vector_store %arg26[%c0_79, %c320], %75 {strides = array<i32>} : memref<2x1024xf32, #tpu.memory_space<vmem>>, vector<2x64xf32>,
    %c12 = arith.constant 12 : index
    %c0_80 = arith.constant 0 : index
    %77 = vector.load %arg25[%c12, %c0_80] : memref<32x64xf32, #tpu.memory_space<vmem>>, vector<2x64xf32>
    %c0_81 = arith.constant 0 : index
    %c384 = arith.constant 384 : index
    %78 = vector.load %arg26[%c0_81, %c384] : memref<2x1024xf32, #tpu.memory_space<vmem>>, vector<2x64xf32>
    tpu.vector_store %arg26[%c0_81, %c384], %77 {strides = array<i32>} : memref<2x1024xf32, #tpu.memory_space<vmem>>, vector<2x64xf32>,
    %c14 = arith.constant 14 : index
    %c0_82 = arith.constant 0 : index
    %79 = vector.load %arg25[%c14, %c0_82] : memref<32x64xf32, #tpu.memory_space<vmem>>, vector<2x64xf32>
    %c0_83 = arith.constant 0 : index
    %c448 = arith.constant 448 : index
    %80 = vector.load %arg26[%c0_83, %c448] : memref<2x1024xf32, #tpu.memory_space<vmem>>, vector<2x64xf32>
    tpu.vector_store %arg26[%c0_83, %c448], %79 {strides = array<i32>} : memref<2x1024xf32, #tpu.memory_space<vmem>>, vector<2x64xf32>,
    %c16 = arith.constant 16 : index
    %c0_84 = arith.constant 0 : index
    %81 = vector.load %arg25[%c16, %c0_84] : memref<32x64xf32, #tpu.memory_space<vmem>>, vector<2x64xf32>
    %c0_85 = arith.constant 0 : index
    %c512 = arith.constant 512 : index
    %82 = vector.load %arg26[%c0_85, %c512] : memref<2x1024xf32, #tpu.memory_space<vmem>>, vector<2x64xf32>
    tpu.vector_store %arg26[%c0_85, %c512], %81 {strides = array<i32>} : memref<2x1024xf32, #tpu.memory_space<vmem>>, vector<2x64xf32>,
    %c18 = arith.constant 18 : index
    %c0_86 = arith.constant 0 : index
    %83 = vector.load %arg25[%c18, %c0_86] : memref<32x64xf32, #tpu.memory_space<vmem>>, vector<2x64xf32>
    %c0_87 = arith.constant 0 : index
    %c576 = arith.constant 576 : index
    %84 = vector.load %arg26[%c0_87, %c576] : memref<2x1024xf32, #tpu.memory_space<vmem>>, vector<2x64xf32>
    tpu.vector_store %arg26[%c0_87, %c576], %83 {strides = array<i32>} : memref<2x1024xf32, #tpu.memory_space<vmem>>, vector<2x64xf32>,
    %c20 = arith.constant 20 : index
    %c0_88 = arith.constant 0 : index
    %85 = vector.load %arg25[%c20, %c0_88] : memref<32x64xf32, #tpu.memory_space<vmem>>, vector<2x64xf32>
    %c0_89 = arith.constant 0 : index
    %c640 = arith.constant 640 : index
    %86 = vector.load %arg26[%c0_89, %c640] : memref<2x1024xf32, #tpu.memory_space<vmem>>, vector<2x64xf32>
    tpu.vector_store %arg26[%c0_89, %c640], %85 {strides = array<i32>} : memref<2x1024xf32, #tpu.memory_space<vmem>>, vector<2x64xf32>,
    %c22 = arith.constant 22 : index
    %c0_90 = arith.constant 0 : index
    %87 = vector.load %arg25[%c22, %c0_90] : memref<32x64xf32, #tpu.memory_space<vmem>>, vector<2x64xf32>
    %c0_91 = arith.constant 0 : index
    %c704 = arith.constant 704 : index
    %88 = vector.load %arg26[%c0_91, %c704] : memref<2x1024xf32, #tpu.memory_space<vmem>>, vector<2x64xf32>
    tpu.vector_store %arg26[%c0_91, %c704], %87 {strides = array<i32>} : memref<2x1024xf32, #tpu.memory_space<vmem>>, vector<2x64xf32>,
    %c24 = arith.constant 24 : index
    %c0_92 = arith.constant 0 : index
    %89 = vector.load %arg25[%c24, %c0_92] : memref<32x64xf32, #tpu.memory_space<vmem>>, vector<2x64xf32>
    %c0_93 = arith.constant 0 : index
    %c768 = arith.constant 768 : index
    %90 = vector.load %arg26[%c0_93, %c768] : memref<2x1024xf32, #tpu.memory_space<vmem>>, vector<2x64xf32>
    tpu.vector_store %arg26[%c0_93, %c768], %89 {strides = array<i32>} : memref<2x1024xf32, #tpu.memory_space<vmem>>, vector<2x64xf32>,
    %c26 = arith.constant 26 : index
    %c0_94 = arith.constant 0 : index
    %91 = vector.load %arg25[%c26, %c0_94] : memref<32x64xf32, #tpu.memory_space<vmem>>, vector<2x64xf32>
    %c0_95 = arith.constant 0 : index
    %c832 = arith.constant 832 : index
    %92 = vector.load %arg26[%c0_95, %c832] : memref<2x1024xf32, #tpu.memory_space<vmem>>, vector<2x64xf32>
    tpu.vector_store %arg26[%c0_95, %c832], %91 {strides = array<i32>} : memref<2x1024xf32, #tpu.memory_space<vmem>>, vector<2x64xf32>,
    %c28 = arith.constant 28 : index
    %c0_96 = arith.constant 0 : index
    %93 = vector.load %arg25[%c28, %c0_96] : memref<32x64xf32, #tpu.memory_space<vmem>>, vector<2x64xf32>
    %c0_97 = arith.constant 0 : index
    %c896 = arith.constant 896 : index
    %94 = vector.load %arg26[%c0_97, %c896] : memref<2x1024xf32, #tpu.memory_space<vmem>>, vector<2x64xf32>
    tpu.vector_store %arg26[%c0_97, %c896], %93 {strides = array<i32>} : memref<2x1024xf32, #tpu.memory_space<vmem>>, vector<2x64xf32>,
    %c30 = arith.constant 30 : index
    %c0_98 = arith.constant 0 : index
    %95 = vector.load %arg25[%c30, %c0_98] : memref<32x64xf32, #tpu.memory_space<vmem>>, vector<2x64xf32>
    %c0_99 = arith.constant 0 : index
    %c960 = arith.constant 960 : index
    %96 = vector.load %arg26[%c0_99, %c960] : memref<2x1024xf32, #tpu.memory_space<vmem>>, vector<2x64xf32>
    tpu.vector_store %arg26[%c0_99, %c960], %95 {strides = array<i32>} : memref<2x1024xf32, #tpu.memory_space<vmem>>, vector<2x64xf32>,
    tpu.wait_dma2 semaphore(%arg28 : memref<!tpu.dma_semaphore, #tpu.memory_space<semaphore_mem>>) src(%arg14 : memref<1024x640xf32, #tpu.memory_space<any>>) dst(%arg27 : memref<1024x640xf32, #tpu.memory_space<vmem>>)
    %c0_100 = arith.constant 0 : index
    %c0_101 = arith.constant 0 : index
    %97 = vector.load %arg26[%c0_100, %c0_101] : memref<2x1024xf32, #tpu.memory_space<vmem>>, vector<2x1024xf32>
    %c0_102 = arith.constant 0 : index
    %c0_103 = arith.constant 0 : index
    %98 = vector.load %arg27[%c0_102, %c0_103] : memref<1024x640xf32, #tpu.memory_space<vmem>>, vector<1024x640xf32>
    %cst_104 = arith.constant dense<0.000000e+00> : vector<2x640xf32>
    %99 = tpu.matmul %97, %98, %cst_104 {dimension_numbers = #tpu.dot_dimension_numbers<[1], [0], [0], [1], [0, 0, 1, 1], [], []>} : vector<2x1024xf32>, vector<1024x640xf32>, vector<2x640xf32> -> vector<2x640xf32>
    %c0_105 = arith.constant 0 : index
    %c0_106 = arith.constant 0 : index
    %100 = vector.load %arg15[%c0_105, %c0_106] : memref<1x640xf32, #tpu.memory_space<vmem>>, vector<1x640xf32>
    %101 = vector.broadcast %100 : vector<1x640xf32> to vector<2x640xf32>
    %102 = arith.mulf %99, %101 : vector<2x640xf32>
    %c0_107 = arith.constant 0 : index
    %c0_108 = arith.constant 0 : index
    %103 = vector.load %arg16[%c0_107, %c0_108] : memref<1x640xf32, #tpu.memory_space<vmem>>, vector<1x640xf32>
    %104 = vector.broadcast %103 : vector<1x640xf32> to vector<2x640xf32>
    %105 = arith.addf %102, %104 : vector<2x640xf32>
    %106 = math.tanh %105 : vector<2x640xf32>
    %c0_109 = arith.constant 0 : index
    %c0_110 = arith.constant 0 : index
    %107 = vector.load %arg4[%c0_109, %c0_110] : memref<20x2xf32, #tpu.memory_space<vmem>>, vector<20x2xf32>
    %cst_111 = arith.constant dense<0.000000e+00> : vector<20x640xf32>
    %108 = tpu.matmul %107, %106, %cst_111 {dimension_numbers = #tpu.dot_dimension_numbers<[1], [0], [0], [1], [0, 0, 1, 1], [], []>} : vector<20x2xf32>, vector<2x640xf32>, vector<20x640xf32> -> vector<20x640xf32>
    %c0_112 = arith.constant 0 : index
    %c0_113 = arith.constant 0 : index
    %109 = vector.load %arg3[%c0_112, %c0_113] : memref<20x640xf32, #tpu.memory_space<vmem>>, vector<20x640xf32>
    %110 = arith.mulf %109, %108 : vector<20x640xf32>
    %c0_114 = arith.constant 0 : index
    %c0_115 = arith.constant 0 : index
    %111 = vector.load %arg5[%c0_114, %c0_115] : memref<640x64xf32, #tpu.memory_space<vmem>>, vector<640x64xf32>
    %cst_116 = arith.constant dense<0.000000e+00> : vector<20x64xf32>
    %112 = tpu.matmul %110, %111, %cst_116 {dimension_numbers = #tpu.dot_dimension_numbers<[1], [0], [0], [1], [0, 0, 1, 1], [], []>} : vector<20x640xf32>, vector<640x64xf32>, vector<20x64xf32> -> vector<20x64xf32>
    %c0_117 = arith.constant 0 : index
    %c0_118 = arith.constant 0 : index
    %113 = vector.load %arg17[%c0_117, %c0_118] : memref<64x128xf32, #tpu.memory_space<vmem>>, vector<64x128xf32>
    %cst_119 = arith.constant dense<0.000000e+00> : vector<20x128xf32>
    %114 = tpu.matmul %112, %113, %cst_119 {dimension_numbers = #tpu.dot_dimension_numbers<[1], [0], [0], [1], [0, 0, 1, 1], [], []>} : vector<20x64xf32>, vector<64x128xf32>, vector<20x128xf32> -> vector<20x128xf32>
    %c0_120 = arith.constant 0 : index
    %c0_121 = arith.constant 0 : index
    %115 = vector.load %arg18[%c0_120, %c0_121] : memref<1x128xf32, #tpu.memory_space<vmem>>, vector<1x128xf32>
    %116 = vector.broadcast %115 : vector<1x128xf32> to vector<20x128xf32>
    %117 = arith.mulf %114, %116 : vector<20x128xf32>
    %c0_122 = arith.constant 0 : index
    %c0_123 = arith.constant 0 : index
    %118 = vector.load %arg19[%c0_122, %c0_123] : memref<1x128xf32, #tpu.memory_space<vmem>>, vector<1x128xf32>
    %119 = vector.broadcast %118 : vector<1x128xf32> to vector<20x128xf32>
    %120 = arith.addf %117, %119 : vector<20x128xf32>
    %121 = math.tanh %120 : vector<20x128xf32>
    %c0_124 = arith.constant 0 : index
    %c0_125 = arith.constant 0 : index
    %122 = vector.load %arg20[%c0_124, %c0_125] : memref<128x128xf32, #tpu.memory_space<vmem>>, vector<128x128xf32>
    %cst_126 = arith.constant dense<0.000000e+00> : vector<20x128xf32>
    %123 = tpu.matmul %121, %122, %cst_126 {dimension_numbers = #tpu.dot_dimension_numbers<[1], [0], [0], [1], [0, 0, 1, 1], [], []>} : vector<20x128xf32>, vector<128x128xf32>, vector<20x128xf32> -> vector<20x128xf32>
    %c0_127 = arith.constant 0 : index
    %c0_128 = arith.constant 0 : index
    %124 = vector.load %arg21[%c0_127, %c0_128] : memref<1x128xf32, #tpu.memory_space<vmem>>, vector<1x128xf32>
    %125 = vector.broadcast %124 : vector<1x128xf32> to vector<20x128xf32>
    %126 = arith.addf %123, %125 : vector<20x128xf32>
    %127 = vector.extract_strided_slice %126 {offsets = [0, 0], sizes = [20, 64], strides = [1, 1]} : vector<20x128xf32> to vector<20x64xf32>
    %128 = vector.extract_strided_slice %126 {offsets = [0, 64], sizes = [20, 64], strides = [1, 1]} : vector<20x128xf32> to vector<20x64xf32>
    %c0_129 = arith.constant 0 : index
    %c0_130 = arith.constant 0 : index
    %129 = vector.load %arg23[%c0_129, %c0_130] : memref<20x64xf32, #tpu.memory_space<vmem>>, vector<20x64xf32>
    tpu.vector_store %arg23[%c0_129, %c0_130], %127 {strides = array<i32>} : memref<20x64xf32, #tpu.memory_space<vmem>>, vector<20x64xf32>,
    %c0_131 = arith.constant 0 : index
    %c0_132 = arith.constant 0 : index
    %130 = vector.load %arg24[%c0_131, %c0_132] : memref<20x64xf32, #tpu.memory_space<vmem>>, vector<20x64xf32>
    tpu.vector_store %arg24[%c0_131, %c0_132], %128 {strides = array<i32>} : memref<20x64xf32, #tpu.memory_space<vmem>>, vector<20x64xf32>,
    %cst_133 = arith.constant 5.000000e-01 : f32
    %131 = vector.broadcast %cst_133 : f32 to vector<20x64xf32>
    %132 = arith.mulf %131, %128 : vector<20x64xf32>
    %133 = math.exp %132 : vector<20x64xf32>
    %c0_134 = arith.constant 0 : index
    %c0_135 = arith.constant 0 : index
    %134 = vector.load %arg2[%c0_134, %c0_135] : memref<20x64xf32, #tpu.memory_space<vmem>>, vector<20x64xf32>
    %135 = arith.mulf %133, %134 : vector<20x64xf32>
    %136 = arith.addf %135, %127 : vector<20x64xf32>
    %c0_136 = arith.constant 0 : index
    %c0_137 = arith.constant 0 : index
    %137 = vector.load %arg22[%c0_136, %c0_137] : memref<20x64xf32, #tpu.memory_space<vmem>>, vector<20x64xf32>
    tpu.vector_store %arg22[%c0_136, %c0_137], %136 {strides = array<i32>} : memref<20x64xf32, #tpu.memory_space<vmem>>, vector<20x64xf32>,
    return
  }
  func.func @transform_0(%arg0: i32) -> (i32, i32) {
    %c0_i32 = arith.constant 0 : i32
    %c0_i32_0 = arith.constant 0 : i32
    %c0_i32_1 = arith.constant 0 : i32
    return %c0_i32, %c0_i32_0 : i32, i32
  }
  func.func @transform_1(%arg0: i32) -> (i32, i32) {
    %c0_i32 = arith.constant 0 : i32
    %c0_i32_0 = arith.constant 0 : i32
    %c0_i32_1 = arith.constant 0 : i32
    return %c0_i32, %c0_i32_0 : i32, i32
  }
  func.func @transform_2(%arg0: i32) -> (i32, i32) {
    %c0_i32 = arith.constant 0 : i32
    %c0_i32_0 = arith.constant 0 : i32
    %c0_i32_1 = arith.constant 0 : i32
    return %c0_i32, %c0_i32_0 : i32, i32
  }
  func.func @transform_3(%arg0: i32) -> (i32, i32) {
    %c0_i32 = arith.constant 0 : i32
    %c0_i32_0 = arith.constant 0 : i32
    %c0_i32_1 = arith.constant 0 : i32
    return %c0_i32, %c0_i32_0 : i32, i32
  }
  func.func @transform_4(%arg0: i32) -> (i32, i32) {
    %c0_i32 = arith.constant 0 : i32
    %c0_i32_0 = arith.constant 0 : i32
    %c0_i32_1 = arith.constant 0 : i32
    return %c0_i32, %c0_i32_0 : i32, i32
  }
  func.func @transform_5(%arg0: i32) -> (i32, i32) {
    %c0_i32 = arith.constant 0 : i32
    %c0_i32_0 = arith.constant 0 : i32
    %c0_i32_1 = arith.constant 0 : i32
    return %c0_i32, %c0_i32_0 : i32, i32
  }
  func.func @transform_6(%arg0: i32) -> (i32, i32) {
    %c0_i32 = arith.constant 0 : i32
    %c0_i32_0 = arith.constant 0 : i32
    %c0_i32_1 = arith.constant 0 : i32
    return %c0_i32, %c0_i32_0 : i32, i32
  }
  func.func @transform_7(%arg0: i32) -> (i32, i32) {
    %c0_i32 = arith.constant 0 : i32
    %c0_i32_0 = arith.constant 0 : i32
    %c0_i32_1 = arith.constant 0 : i32
    return %c0_i32, %c0_i32_0 : i32, i32
  }
  func.func @transform_8(%arg0: i32) -> (i32, i32) {
    %c0_i32 = arith.constant 0 : i32
    %c0_i32_0 = arith.constant 0 : i32
    %c0_i32_1 = arith.constant 0 : i32
    return %c0_i32, %c0_i32_0 : i32, i32
  }
  func.func @transform_9(%arg0: i32) -> (i32, i32, i32) {
    %c0_i32 = arith.constant 0 : i32
    %c0_i32_0 = arith.constant 0 : i32
    %c0_i32_1 = arith.constant 0 : i32
    %c0_i32_2 = arith.constant 0 : i32
    return %c0_i32, %c0_i32_0, %c0_i32_1 : i32, i32, i32
  }
  func.func @transform_10(%arg0: i32) -> (i32, i32, i32) {
    %c0_i32 = arith.constant 0 : i32
    %c0_i32_0 = arith.constant 0 : i32
    %c0_i32_1 = arith.constant 0 : i32
    %c0_i32_2 = arith.constant 0 : i32
    return %c0_i32, %c0_i32_0, %c0_i32_1 : i32, i32, i32
  }
  func.func @transform_11(%arg0: i32) -> (i32, i32, i32) {
    %c0_i32 = arith.constant 0 : i32
    %c0_i32_0 = arith.constant 0 : i32
    %c0_i32_1 = arith.constant 0 : i32
    %c0_i32_2 = arith.constant 0 : i32
    return %c0_i32, %c0_i32_0, %c0_i32_1 : i32, i32, i32
  }
  func.func @transform_12(%arg0: i32) -> (i32, i32, i32) {
    %c0_i32 = arith.constant 0 : i32
    %c0_i32_0 = arith.constant 0 : i32
    %c0_i32_1 = arith.constant 0 : i32
    %c0_i32_2 = arith.constant 0 : i32
    return %c0_i32, %c0_i32_0, %c0_i32_1 : i32, i32, i32
  }
  func.func @transform_14(%arg0: i32) -> (i32, i32) {
    %c0_i32 = arith.constant 0 : i32
    %c0_i32_0 = arith.constant 0 : i32
    %c0_i32_1 = arith.constant 0 : i32
    return %c0_i32, %c0_i32_0 : i32, i32
  }
  func.func @transform_15(%arg0: i32) -> (i32, i32) {
    %c0_i32 = arith.constant 0 : i32
    %c0_i32_0 = arith.constant 0 : i32
    %c0_i32_1 = arith.constant 0 : i32
    return %c0_i32, %c0_i32_0 : i32, i32
  }
  func.func @transform_16(%arg0: i32) -> (i32, i32) {
    %c0_i32 = arith.constant 0 : i32
    %c0_i32_0 = arith.constant 0 : i32
    %c0_i32_1 = arith.constant 0 : i32
    return %c0_i32, %c0_i32_0 : i32, i32
  }
  func.func @transform_17(%arg0: i32) -> (i32, i32) {
    %c0_i32 = arith.constant 0 : i32
    %c0_i32_0 = arith.constant 0 : i32
    %c0_i32_1 = arith.constant 0 : i32
    return %c0_i32, %c0_i32_0 : i32, i32
  }
  func.func @transform_18(%arg0: i32) -> (i32, i32) {
    %c0_i32 = arith.constant 0 : i32
    %c0_i32_0 = arith.constant 0 : i32
    %c0_i32_1 = arith.constant 0 : i32
    return %c0_i32, %c0_i32_0 : i32, i32
  }
  func.func @transform_19(%arg0: i32) -> (i32, i32) {
    %c0_i32 = arith.constant 0 : i32
    %c0_i32_0 = arith.constant 0 : i32
    %c0_i32_1 = arith.constant 0 : i32
    return %c0_i32, %c0_i32_0 : i32, i32
  }
  func.func @transform_20(%arg0: i32) -> (i32, i32) {
    %c0_i32 = arith.constant 0 : i32
    %c0_i32_0 = arith.constant 0 : i32
    %c0_i32_1 = arith.constant 0 : i32
    return %c0_i32, %c0_i32_0 : i32, i32
  }
  func.func @transform_21(%arg0: i32) -> (i32, i32) {
    %c0_i32 = arith.constant 0 : i32
    %c0_i32_0 = arith.constant 0 : i32
    %c0_i32_1 = arith.constant 0 : i32
    return %c0_i32, %c0_i32_0 : i32, i32
  }
  func.func @transform_22(%arg0: i32) -> (i32, i32) {
    %c0_i32 = arith.constant 0 : i32
    %c0_i32_0 = arith.constant 0 : i32
    %c0_i32_1 = arith.constant 0 : i32
    return %c0_i32, %c0_i32_0 : i32, i32
  }
  func.func @transform_23(%arg0: i32) -> (i32, i32) {
    %c0_i32 = arith.constant 0 : i32
    %c0_i32_0 = arith.constant 0 : i32
    %c0_i32_1 = arith.constant 0 : i32
    return %c0_i32, %c0_i32_0 : i32, i32
  }
}

</mosaic_0001>

<bundles_post_ra>
// kernel: diverse_sampling_forward.1
= control target key start
LH: loop header
LB: loop body
LE: loop exit
PB: predicated region body
PF: predicated region fallthrough
CT: control target
= control target key end

     0   :  { %s11159_s0 = inlined_call_operand.vmem [shape: f32[32,30], index: 0, kind: input, shape index: {}]   ;;  %s11160_s1 = inlined_call_operand.vmem [shape: f32[20,64], index: 1, kind: input, shape index: {}]   ;;  %s11161_s2 = inlined_call_operand.vmem [shape: f32[20,640], index: 2, kind: input, shape index: {}]   ;;  %s11162_s3 = inlined_call_operand.vmem [shape: f32[20,2], index: 3, kind: input, shape index: {}]   ;;  %s11163_s4 = inlined_call_operand.vmem [shape: f32[640,64], index: 4, kind: input, shape index: {}]   ;;  %s11164_s5 = inlined_call_operand.vmem [shape: f32[30,64], index: 5, kind: input, shape index: {}]   ;;  %s11165_s6 = inlined_call_operand.vmem [shape: f32[32,32], index: 6, kind: input, shape index: {}]   ;;  %s11166_s7 = inlined_call_operand.vmem [shape: f32[32,64], index: 7, kind: input, shape index: {}]   ;;  %s11167_s8 = inlined_call_operand.vmem [shape: f32[32,64], index: 8, kind: input, shape index: {}]   ;;  %s11168_s9 = inlined_call_operand.vmem [shape: f32[4,64,64], index: 9, kind: input, shape index: {}]   ;;  %s11169_s10 = inlined_call_operand.vmem [shape: f32[4,32,32], index: 10, kind: input, shape index: {}]   ;;  %s11170_s11 = inlined_call_operand.vmem [shape: f32[4,32,64], index: 11, kind: input, shape index: {}]   ;;  %s11171_s12 = inlined_call_operand.vmem [shape: f32[4,32,64], index: 12, kind: input, shape index: {}]   ;;  %s11172_s13 = inlined_call_operand.vmem [shape: f32[1024,640], index: 13, kind: input, shape index: {}]   ;;  %s11173_s14 = inlined_call_operand.vmem [shape: f32[1,640], index: 14, kind: input, shape index: {}]   ;;  %s11174_s15 = inlined_call_operand.vmem [shape: f32[1,640], index: 15, kind: input, shape index: {}]   ;;  %s11175_s16 = inlined_call_operand.vmem [shape: f32[64,128], index: 16, kind: input, shape index: {}]   ;;  %s11176_s17 = inlined_call_operand.vmem [shape: f32[1,128], index: 17, kind: input, shape index: {}]   ;;  %s11177_s18 = inlined_call_operand.vmem [shape: f32[1,128], index: 18, kind: input, shape index: {}]   ;;  %s11178_s19 = inlined_call_operand.vmem [shape: f32[128,128], index: 19, kind: input, shape index: {}]   ;;  %s11179_s20 = inlined_call_operand.vmem [shape: f32[1,128], index: 20, kind: input, shape index: {}]   ;;  %s11180_s21 = inlined_call_operand.hbm [shape: f32[20,64], index: 21, kind: output, shape index: {0}]   ;;  %s11181_s22 = inlined_call_operand.hbm [shape: f32[20,64], index: 22, kind: output, shape index: {1}]   ;;  %s11182_s23 = inlined_call_operand.hbm [shape: f32[20,64], index: 23, kind: output, shape index: {2}]  }
   0x1   :  { %11191 = sst [smem:[#allocation612_spill]] %s11159_s0 }
   0x2   :  { %11192 = sst [smem:[#allocation613_spill]] %s11160_s1 }
   0x3   :  { %11193 = sst [smem:[#allocation614_spill]] %s11161_s2 }
   0x4   :  { %11194 = sst [smem:[#allocation615_spill]] %s11162_s3 }
   0x5   :  { %11195 = sst [smem:[#allocation616_spill]] %s11163_s4 }
   0x6   :  { %11196 = sst [smem:[#allocation617_spill]] %s11164_s5 }
   0x7   :  { %11197 = sst [smem:[#allocation618_spill]] %s11165_s6 }
   0x8   :  { %11198 = sst [smem:[#allocation619_spill]] %s11166_s7 }
   0x9   :  { %29 = vsyncpa [#allocation7], 0 }
   0xa   :  { %30 = vsyncpa [#allocation9], 0  ;;  %v6317_v0 = vld [vmem:[%s11172_s13] sm:$0xff]  ;;  %v6322_v1 = vld [vmem:[%s11172_s13 + $0x8] sm:$0xff] }
   0xb   :  { %11199 = vst [vmem:[#allocation15_spill] sm:$0xff] %v6317_v0  ;;  %11200 = vst [vmem:[#allocation16_spill] sm:$0xff] %v6322_v1  ;;  %v6327_v2 = vld [vmem:[%s11172_s13 + $0x10] sm:$0xff]  ;;  %v6332_v3 = vld [vmem:[%s11172_s13 + $0x18] sm:$0xff] }
   0xc   :  { %11201 = vst [vmem:[#allocation17_spill] sm:$0xff] %v6327_v2  ;;  %11202 = vst [vmem:[#allocation18_spill] sm:$0xff] %v6332_v3  ;;  %v6337_v4 = vld [vmem:[%s11172_s13 + $0x20] sm:$0xff]  ;;  %v6342_v5 = vld [vmem:[%s11172_s13 + $0x28] sm:$0xff] }
   0xd   :  { %11203 = vst [vmem:[#allocation19_spill] sm:$0xff] %v6337_v4  ;;  %11204 = vst [vmem:[#allocation20_spill] sm:$0xff] %v6342_v5  ;;  %v6347_v6 = vld [vmem:[%s11172_s13 + $0x30] sm:$0xff]  ;;  %v6352_v7 = vld [vmem:[%s11172_s13 + $0x38] sm:$0xff] }
   0xe   :  { %11205 = vst [vmem:[#allocation21_spill] sm:$0xff] %v6347_v6  ;;  %11206 = vst [vmem:[#allocation22_spill] sm:$0xff] %v6352_v7  ;;  %v6357_v8 = vld [vmem:[%s11172_s13 + $0x40] sm:$0xff]  ;;  %v6362_v9 = vld [vmem:[%s11172_s13 + $0x48] sm:$0xff] }
   0xf   :  { %11207 = vst [vmem:[#allocation23_spill] sm:$0xff] %v6357_v8  ;;  %11208 = vst [vmem:[#allocation24_spill] sm:$0xff] %v6362_v9  ;;  %v6367_v10 = vld [vmem:[%s11172_s13 + $0x50] sm:$0xff]  ;;  %v6372_v11 = vld [vmem:[%s11172_s13 + $0x58] sm:$0xff] }
  0x10   :  { %11209 = vst [vmem:[#allocation25_spill] sm:$0xff] %v6367_v10  ;;  %11210 = vst [vmem:[#allocation26_spill] sm:$0xff] %v6372_v11  ;;  %v6377_v12 = vld [vmem:[%s11172_s13 + $0x60] sm:$0xff]  ;;  %v6382_v13 = vld [vmem:[%s11172_s13 + $0x68] sm:$0xff] }
  0x11   :  { %11211 = vst [vmem:[#allocation27_spill] sm:$0xff] %v6377_v12  ;;  %11212 = vst [vmem:[#allocation28_spill] sm:$0xff] %v6382_v13  ;;  %v6387_v14 = vld [vmem:[%s11172_s13 + $0x70] sm:$0xff]  ;;  %v6392_v15 = vld [vmem:[%s11172_s13 + $0x78] sm:$0xff] }
  0x12   :  { %11213 = vst [vmem:[#allocation29_spill] sm:$0xff] %v6387_v14  ;;  %11214 = vst [vmem:[#allocation30_spill] sm:$0xff] %v6392_v15  ;;  %v6397_v16 = vld [vmem:[%s11172_s13 + $0x80] sm:$0xff]  ;;  %v6402_v17 = vld [vmem:[%s11172_s13 + $0x88] sm:$0xff] }
  0x13   :  { %11215 = vst [vmem:[#allocation31_spill] sm:$0xff] %v6397_v16  ;;  %11216 = vst [vmem:[#allocation32_spill] sm:$0xff] %v6402_v17  ;;  %v6407_v18 = vld [vmem:[%s11172_s13 + $0x90] sm:$0xff]  ;;  %v6412_v19 = vld [vmem:[%s11172_s13 + $0x98] sm:$0xff] }
  0x14   :  { %11217 = vst [vmem:[#allocation33_spill] sm:$0xff] %v6407_v18  ;;  %11218 = vst [vmem:[#allocation34_spill] sm:$0xff] %v6412_v19  ;;  %v6417_v20 = vld [vmem:[%s11172_s13 + $0xa0] sm:$0xff]  ;;  %v6422_v21 = vld [vmem:[%s11172_s13 + $0xa8] sm:$0xff] }
  0x15   :  { %11219 = vst [vmem:[#allocation35_spill] sm:$0xff] %v6417_v20  ;;  %11220 = vst [vmem:[#allocation36_spill] sm:$0xff] %v6422_v21  ;;  %v6427_v22 = vld [vmem:[%s11172_s13 + $0xb0] sm:$0xff]  ;;  %v6432_v23 = vld [vmem:[%s11172_s13 + $0xb8] sm:$0xff] }
  0x16   :  { %11221 = vst [vmem:[#allocation37_spill] sm:$0xff] %v6427_v22  ;;  %11222 = vst [vmem:[#allocation38_spill] sm:$0xff] %v6432_v23  ;;  %v6437_v24 = vld [vmem:[%s11172_s13 + $0xc0] sm:$0xff]  ;;  %v6442_v25 = vld [vmem:[%s11172_s13 + $0xc8] sm:$0xff] }
  0x17   :  { %11223 = vst [vmem:[#allocation39_spill] sm:$0xff] %v6437_v24  ;;  %v6447_v26 = vld [vmem:[%s11172_s13 + $0xd0] sm:$0xff]  ;;  %v6452_v27 = vld [vmem:[%s11172_s13 + $0xd8] sm:$0xff]  ;;  %v6457_v28 = vld [vmem:[%s11172_s13 + $0xe0] sm:$0xff] }
  0x18   :  { %11224 = vst [vmem:[#allocation40_spill] sm:$0xff] %v6452_v27  ;;  %11225 = vst [vmem:[#allocation41_spill] sm:$0xff] %v6457_v28  ;;  %v6462_v29 = vld [vmem:[%s11172_s13 + $0xe8] sm:$0xff]  ;;  %v6467_v30 = vld [vmem:[%s11172_s13 + $0xf0] sm:$0xff] }
  0x19   :  { %11226 = vst [vmem:[#allocation42_spill] sm:$0xff] %v6462_v29  ;;  %v6472_v31 = vld [vmem:[%s11172_s13 + $0xf8] sm:$0xff]  ;;  %v6477_v32 = vld [vmem:[%s11172_s13 + $0x100] sm:$0xff]  ;;  %v6482_v33 = vld [vmem:[%s11172_s13 + $0x108] sm:$0xff] }
  0x1a   :  { %11227 = vst [vmem:[#allocation43_spill] sm:$0xff] %v6477_v32  ;;  %11228 = vst [vmem:[#allocation44_spill] sm:$0xff] %v6482_v33  ;;  %v6487_v34 = vld [vmem:[%s11172_s13 + $0x110] sm:$0xff]  ;;  %v6492_v35 = vld [vmem:[%s11172_s13 + $0x118] sm:$0xff] }
  0x1b   :  { %11229 = vst [vmem:[#allocation45_spill] sm:$0xff] %v6487_v34  ;;  %v6497_v36 = vld [vmem:[%s11172_s13 + $0x120] sm:$0xff]  ;;  %v6502_v37 = vld [vmem:[%s11172_s13 + $0x128] sm:$0xff]  ;;  %v6507_v38 = vld [vmem:[%s11172_s13 + $0x130] sm:$0xff] }
  0x1c   :  { %11230 = vst [vmem:[#allocation46_spill] sm:$0xff] %v6502_v37  ;;  %11231 = vst [vmem:[#allocation47_spill] sm:$0xff] %v6507_v38  ;;  %v6512_v39 = vld [vmem:[%s11172_s13 + $0x138] sm:$0xff]  ;;  %v6517_v40 = vld [vmem:[%s11172_s13 + $0x140] sm:$0xff] }
  0x1d   :  { %11232 = vst [vmem:[#allocation48_spill] sm:$0xff] %v6512_v39  ;;  %v6522_v41 = vld [vmem:[%s11172_s13 + $0x148] sm:$0xff]  ;;  %v6527_v42 = vld [vmem:[%s11172_s13 + $0x150] sm:$0xff]  ;;  %v6532_v43 = vld [vmem:[%s11172_s13 + $0x158] sm:$0xff] }
  0x1e   :  { %11233 = vst [vmem:[#allocation49_spill] sm:$0xff] %v6527_v42  ;;  %11234 = vst [vmem:[#allocation50_spill] sm:$0xff] %v6532_v43  ;;  %v6537_v44 = vld [vmem:[%s11172_s13 + $0x160] sm:$0xff]  ;;  %v6542_v45 = vld [vmem:[%s11172_s13 + $0x168] sm:$0xff] }
  0x1f   :  { %11235 = vst [vmem:[#allocation51_spill] sm:$0xff] %v6537_v44  ;;  %v6547_v46 = vld [vmem:[%s11172_s13 + $0x170] sm:$0xff]  ;;  %v6552_v47 = vld [vmem:[%s11172_s13 + $0x178] sm:$0xff]  ;;  %v6557_v48 = vld [vmem:[%s11172_s13 + $0x180] sm:$0xff] }
  0x20   :  { %11236 = vst [vmem:[#allocation52_spill] sm:$0xff] %v6552_v47  ;;  %11237 = vst [vmem:[#allocation53_spill] sm:$0xff] %v6557_v48  ;;  %v6562_v49 = vld [vmem:[%s11172_s13 + $0x188] sm:$0xff]  ;;  %v6567_v50 = vld [vmem:[%s11172_s13 + $0x190] sm:$0xff] }
  0x21   :  { %11238 = vst [vmem:[#allocation54_spill] sm:$0xff] %v6562_v49  ;;  %v6572_v51 = vld [vmem:[%s11172_s13 + $0x198] sm:$0xff]  ;;  %v6577_v52 = vld [vmem:[%s11172_s13 + $0x1a0] sm:$0xff]  ;;  %v6582_v53 = vld [vmem:[%s11172_s13 + $0x1a8] sm:$0xff] }
  0x22   :  { %11239 = vst [vmem:[#allocation55_spill] sm:$0xff] %v6577_v52  ;;  %11240 = vst [vmem:[#allocation56_spill] sm:$0xff] %v6582_v53  ;;  %v6587_v54 = vld [vmem:[%s11172_s13 + $0x1b0] sm:$0xff]  ;;  %v6592_v55 = vld [vmem:[%s11172_s13 + $0x1b8] sm:$0xff] }
  0x23   :  { %11241 = vst [vmem:[#allocation57_spill] sm:$0xff] %v6587_v54  ;;  %v6597_v56 = vld [vmem:[%s11172_s13 + $0x1c0] sm:$0xff]  ;;  %v6602_v57 = vld [vmem:[%s11172_s13 + $0x1c8] sm:$0xff]  ;;  %v6607_v58 = vld [vmem:[%s11172_s13 + $0x1d0] sm:$0xff] }
  0x24   :  { %11242 = vst [vmem:[#allocation58_spill] sm:$0xff] %v6602_v57  ;;  %11243 = vst [vmem:[#allocation59_spill] sm:$0xff] %v6607_v58  ;;  %v6612_v59 = vld [vmem:[%s11172_s13 + $0x1d8] sm:$0xff]  ;;  %v6617_v60 = vld [vmem:[%s11172_s13 + $0x1e0] sm:$0xff] }
  0x25   :  { %11244 = vst [vmem:[#allocation60_spill] sm:$0xff] %v6612_v59  ;;  %v6622_v61 = vld [vmem:[%s11172_s13 + $0x1e8] sm:$0xff]  ;;  %v6627_v62 = vld [vmem:[%s11172_s13 + $0x1f0] sm:$0xff]  ;;  %v6632_v63 = vld [vmem:[%s11172_s13 + $0x1f8] sm:$0xff] }
  0x26   :  { %11245 = vst [vmem:[#allocation61_spill] sm:$0xff] %v6627_v62  ;;  %11246 = vst [vmem:[#allocation62_spill] sm:$0xff] %v6632_v63  ;;  %v6637_v4 = vld [vmem:[%s11172_s13 + $0x200] sm:$0xff]  ;;  %v6642_v9 = vld [vmem:[%s11172_s13 + $0x208] sm:$0xff] }
  0x27   :  { %11247 = vst [vmem:[#allocation63_spill] sm:$0xff] %v6637_v4  ;;  %v6647_v14 = vld [vmem:[%s11172_s13 + $0x210] sm:$0xff]  ;;  %v6652_v19 = vld [vmem:[%s11172_s13 + $0x218] sm:$0xff]  ;;  %v6657_v24 = vld [vmem:[%s11172_s13 + $0x220] sm:$0xff] }
  0x28   :  { %11248 = vst [vmem:[#allocation64_spill] sm:$0xff] %v6652_v19  ;;  %11249 = vst [vmem:[#allocation65_spill] sm:$0xff] %v6657_v24  ;;  %v6662_v29 = vld [vmem:[%s11172_s13 + $0x228] sm:$0xff]  ;;  %v6667_v34 = vld [vmem:[%s11172_s13 + $0x230] sm:$0xff] }
  0x29   :  { %11250 = vst [vmem:[#allocation66_spill] sm:$0xff] %v6662_v29  ;;  %v6672_v39 = vld [vmem:[%s11172_s13 + $0x238] sm:$0xff]  ;;  %v6677_v44 = vld [vmem:[%s11172_s13 + $0x240] sm:$0xff]  ;;  %v6682_v49 = vld [vmem:[%s11172_s13 + $0x248] sm:$0xff] }
  0x2a   :  { %11251 = vst [vmem:[#allocation67_spill] sm:$0xff] %v6677_v44  ;;  %11252 = vst [vmem:[#allocation68_spill] sm:$0xff] %v6682_v49  ;;  %v6687_v54 = vld [vmem:[%s11172_s13 + $0x250] sm:$0xff]  ;;  %v6692_v59 = vld [vmem:[%s11172_s13 + $0x258] sm:$0xff] }
  0x2b   :  { %11253 = vst [vmem:[#allocation69_spill] sm:$0xff] %v6687_v54  ;;  %v6697_v4 = vld [vmem:[%s11172_s13 + $0x260] sm:$0xff]  ;;  %v6702_v29 = vld [vmem:[%s11172_s13 + $0x268] sm:$0xff]  ;;  %v6707_v2 = vld [vmem:[%s11172_s13 + $0x270] sm:$0xff] }
  0x2c   :  { %11254 = vst [vmem:[#allocation70_spill] sm:$0xff] %v6702_v29  ;;  %11255 = vst [vmem:[#allocation71_spill] sm:$0xff] %v6707_v2  ;;  %v6712_v54 = vld [vmem:[%s11172_s13 + $0x278] sm:$0xff]  ;;  %v6717_v3 = vld [vmem:[%s11172_s13 + $0x280] sm:$0xff] }
  0x2d   :  { %11256 = vst [vmem:[#allocation72_spill] sm:$0xff] %v6712_v54  ;;  %11257 = vst [vmem:[#allocation73_spill] sm:$0xff] %v6717_v3  ;;  %v6722_v7 = vld [vmem:[%s11172_s13 + $0x288] sm:$0xff]  ;;  %v6727_v8 = vld [vmem:[%s11172_s13 + $0x290] sm:$0xff] }
  0x2e   :  { %11258 = vst [vmem:[#allocation74_spill] sm:$0xff] %v6722_v7  ;;  %11259 = vst [vmem:[#allocation75_spill] sm:$0xff] %v6727_v8  ;;  %v6732_v12 = vld [vmem:[%s11172_s13 + $0x298] sm:$0xff]  ;;  %v6737_v54 = vld [vmem:[%s11172_s13 + $0x2a0] sm:$0xff] }
  0x2f   :  { %11260 = vst [vmem:[#allocation76_spill] sm:$0xff] %v6732_v12  ;;  %11261 = vst [vmem:[#allocation77_spill] sm:$0xff] %v6737_v54  ;;  %v6742_v13 = vld [vmem:[%s11172_s13 + $0x2a8] sm:$0xff]  ;;  %v6747_v17 = vld [vmem:[%s11172_s13 + $0x2b0] sm:$0xff] }
  0x30   :  { %11262 = vst [vmem:[#allocation78_spill] sm:$0xff] %v6742_v13  ;;  %11263 = vst [vmem:[#allocation79_spill] sm:$0xff] %v6747_v17  ;;  %v6752_v8 = vld [vmem:[%s11172_s13 + $0x2b8] sm:$0xff]  ;;  %v6757_v12 = vld [vmem:[%s11172_s13 + $0x2c0] sm:$0xff] }
  0x31   :  { %11264 = vst [vmem:[#allocation80_spill] sm:$0xff] %v6752_v8  ;;  %11265 = vst [vmem:[#allocation81_spill] sm:$0xff] %v6757_v12  ;;  %v6762_v54 = vld [vmem:[%s11172_s13 + $0x2c8] sm:$0xff]  ;;  %v6767_v18 = vld [vmem:[%s11172_s13 + $0x2d0] sm:$0xff] }
  0x32   :  { %11266 = vst [vmem:[#allocation82_spill] sm:$0xff] %v6762_v54  ;;  %11267 = vst [vmem:[#allocation83_spill] sm:$0xff] %v6767_v18  ;;  %v6772_v22 = vld [vmem:[%s11172_s13 + $0x2d8] sm:$0xff]  ;;  %v6777_v8 = vld [vmem:[%s11172_s13 + $0x2e0] sm:$0xff] }
  0x33   :  { %11268 = vst [vmem:[#allocation84_spill] sm:$0xff] %v6772_v22  ;;  %11269 = vst [vmem:[#allocation85_spill] sm:$0xff] %v6777_v8  ;;  %v6782_v12 = vld [vmem:[%s11172_s13 + $0x2e8] sm:$0xff]  ;;  %v6787_v54 = vld [vmem:[%s11172_s13 + $0x2f0] sm:$0xff] }
  0x34   :  { %11270 = vst [vmem:[#allocation86_spill] sm:$0xff] %v6782_v12  ;;  %11271 = vst [vmem:[#allocation87_spill] sm:$0xff] %v6787_v54  ;;  %v6792_v23 = vld [vmem:[%s11172_s13 + $0x2f8] sm:$0xff]  ;;  %v6797_v27 = vld [vmem:[%s11172_s13 + $0x300] sm:$0xff] }
  0x35   :  { %11272 = vst [vmem:[#allocation88_spill] sm:$0xff] %v6792_v23  ;;  %11273 = vst [vmem:[#allocation89_spill] sm:$0xff] %v6797_v27  ;;  %v6802_v8 = vld [vmem:[%s11172_s13 + $0x308] sm:$0xff]  ;;  %v6807_v12 = vld [vmem:[%s11172_s13 + $0x310] sm:$0xff] }
  0x36   :  { %11274 = vst [vmem:[#allocation90_spill] sm:$0xff] %v6802_v8  ;;  %11275 = vst [vmem:[#allocation91_spill] sm:$0xff] %v6807_v12  ;;  %v6812_v54 = vld [vmem:[%s11172_s13 + $0x318] sm:$0xff]  ;;  %v6817_v28 = vld [vmem:[%s11172_s13 + $0x320] sm:$0xff] }
  0x37   :  { %11276 = vst [vmem:[#allocation92_spill] sm:$0xff] %v6812_v54  ;;  %11277 = vst [vmem:[#allocation93_spill] sm:$0xff] %v6817_v28  ;;  %v6822_v32 = vld [vmem:[%s11172_s13 + $0x328] sm:$0xff]  ;;  %v6827_v8 = vld [vmem:[%s11172_s13 + $0x330] sm:$0xff] }
  0x38   :  { %11278 = vst [vmem:[#allocation94_spill] sm:$0xff] %v6822_v32  ;;  %11279 = vst [vmem:[#allocation95_spill] sm:$0xff] %v6827_v8  ;;  %v6832_v12 = vld [vmem:[%s11172_s13 + $0x338] sm:$0xff]  ;;  %v6837_v54 = vld [vmem:[%s11172_s13 + $0x340] sm:$0xff] }
  0x39   :  { %11280 = vst [vmem:[#allocation96_spill] sm:$0xff] %v6832_v12  ;;  %11281 = vst [vmem:[#allocation97_spill] sm:$0xff] %v6837_v54  ;;  %v6842_v33 = vld [vmem:[%s11172_s13 + $0x348] sm:$0xff]  ;;  %v6847_v37 = vld [vmem:[%s11172_s13 + $0x350] sm:$0xff] }
  0x3a   :  { %11282 = vst [vmem:[#allocation98_spill] sm:$0xff] %v6842_v33  ;;  %11283 = vst [vmem:[#allocation99_spill] sm:$0xff] %v6847_v37  ;;  %v6852_v8 = vld [vmem:[%s11172_s13 + $0x358] sm:$0xff]  ;;  %v6857_v12 = vld [vmem:[%s11172_s13 + $0x360] sm:$0xff] }
  0x3b   :  { %11284 = vst [vmem:[#allocation100_spill] sm:$0xff] %v6852_v8  ;;  %11285 = vst [vmem:[#allocation101_spill] sm:$0xff] %v6857_v12  ;;  %v6862_v54 = vld [vmem:[%s11172_s13 + $0x368] sm:$0xff]  ;;  %v6867_v38 = vld [vmem:[%s11172_s13 + $0x370] sm:$0xff] }
  0x3c   :  { %11286 = vst [vmem:[#allocation102_spill] sm:$0xff] %v6862_v54  ;;  %11287 = vst [vmem:[#allocation103_spill] sm:$0xff] %v6867_v38  ;;  %v6872_v42 = vld [vmem:[%s11172_s13 + $0x378] sm:$0xff]  ;;  %v6877_v8 = vld [vmem:[%s11172_s13 + $0x380] sm:$0xff] }
  0x3d   :  { %11288 = vst [vmem:[#allocation104_spill] sm:$0xff] %v6872_v42  ;;  %11289 = vst [vmem:[#allocation105_spill] sm:$0xff] %v6877_v8  ;;  %v6882_v12 = vld [vmem:[%s11172_s13 + $0x388] sm:$0xff]  ;;  %v6887_v54 = vld [vmem:[%s11172_s13 + $0x390] sm:$0xff] }
  0x3e   :  { %11290 = vst [vmem:[#allocation106_spill] sm:$0xff] %v6882_v12  ;;  %11291 = vst [vmem:[#allocation107_spill] sm:$0xff] %v6887_v54  ;;  %v6892_v43 = vld [vmem:[%s11172_s13 + $0x398] sm:$0xff]  ;;  %v6897_v47 = vld [vmem:[%s11172_s13 + $0x3a0] sm:$0xff] }
  0x3f   :  { %11292 = vst [vmem:[#allocation108_spill] sm:$0xff] %v6892_v43  ;;  %11293 = vst [vmem:[#allocation109_spill] sm:$0xff] %v6897_v47  ;;  %v6902_v8 = vld [vmem:[%s11172_s13 + $0x3a8] sm:$0xff]  ;;  %v6907_v12 = vld [vmem:[%s11172_s13 + $0x3b0] sm:$0xff] }
  0x40   :  { %11294 = vst [vmem:[#allocation110_spill] sm:$0xff] %v6902_v8  ;;  %11295 = vst [vmem:[#allocation111_spill] sm:$0xff] %v6907_v12  ;;  %v6912_v54 = vld [vmem:[%s11172_s13 + $0x3b8] sm:$0xff]  ;;  %v6917_v48 = vld [vmem:[%s11172_s13 + $0x3c0] sm:$0xff] }
  0x41   :  { %11296 = vst [vmem:[#allocation112_spill] sm:$0xff] %v6912_v54  ;;  %11297 = vst [vmem:[#allocation113_spill] sm:$0xff] %v6917_v48  ;;  %v6922_v52 = vld [vmem:[%s11172_s13 + $0x3c8] sm:$0xff]  ;;  %v6927_v8 = vld [vmem:[%s11172_s13 + $0x3d0] sm:$0xff] }
  0x42   :  { %11298 = vst [vmem:[#allocation114_spill] sm:$0xff] %v6922_v52  ;;  %11299 = vst [vmem:[#allocation115_spill] sm:$0xff] %v6927_v8  ;;  %v6932_v12 = vld [vmem:[%s11172_s13 + $0x3d8] sm:$0xff]  ;;  %v6937_v54 = vld [vmem:[%s11172_s13 + $0x3e0] sm:$0xff] }
  0x43   :  { %11300 = vst [vmem:[#allocation116_spill] sm:$0xff] %v6932_v12  ;;  %11301 = vst [vmem:[#allocation117_spill] sm:$0xff] %v6937_v54  ;;  %v6942_v53 = vld [vmem:[%s11172_s13 + $0x3e8] sm:$0xff]  ;;  %v6947_v57 = vld [vmem:[%s11172_s13 + $0x3f0] sm:$0xff] }
  0x44   :  { %11302 = vst [vmem:[#allocation118_spill] sm:$0xff] %v6942_v53  ;;  %11303 = vst [vmem:[#allocation119_spill] sm:$0xff] %v6947_v57  ;;  %v6952_v8 = vld [vmem:[%s11172_s13 + $0x3f8] sm:$0xff]  ;;  %v6957_v12 = vld [vmem:[%s11172_s13 + $0x400] sm:$0xff] }
  0x45   :  { %11304 = vst [vmem:[#allocation120_spill] sm:$0xff] %v6952_v8  ;;  %11305 = vst [vmem:[#allocation121_spill] sm:$0xff] %v6957_v12  ;;  %v6962_v54 = vld [vmem:[%s11172_s13 + $0x408] sm:$0xff]  ;;  %v6967_v58 = vld [vmem:[%s11172_s13 + $0x410] sm:$0xff] }
  0x46   :  { %11306 = vst [vmem:[#allocation122_spill] sm:$0xff] %v6962_v54  ;;  %11307 = vst [vmem:[#allocation123_spill] sm:$0xff] %v6967_v58  ;;  %v6972_v62 = vld [vmem:[%s11172_s13 + $0x418] sm:$0xff]  ;;  %v6977_v8 = vld [vmem:[%s11172_s13 + $0x420] sm:$0xff] }
  0x47   :  { %11308 = vst [vmem:[#allocation124_spill] sm:$0xff] %v6972_v62  ;;  %11309 = vst [vmem:[#allocation125_spill] sm:$0xff] %v6977_v8  ;;  %v6982_v12 = vld [vmem:[%s11172_s13 + $0x428] sm:$0xff]  ;;  %v6987_v54 = vld [vmem:[%s11172_s13 + $0x430] sm:$0xff] }
  0x48   :  { %11310 = vst [vmem:[#allocation126_spill] sm:$0xff] %v6982_v12  ;;  %11311 = vst [vmem:[#allocation127_spill] sm:$0xff] %v6987_v54  ;;  %v6992_v63 = vld [vmem:[%s11172_s13 + $0x438] sm:$0xff]  ;;  %v6997_v19 = vld [vmem:[%s11172_s13 + $0x440] sm:$0xff] }
  0x49   :  { %11312 = vst [vmem:[#allocation128_spill] sm:$0xff] %v6992_v63  ;;  %11313 = vst [vmem:[#allocation129_spill] sm:$0xff] %v6997_v19  ;;  %v7002_v8 = vld [vmem:[%s11172_s13 + $0x448] sm:$0xff]  ;;  %v7007_v12 = vld [vmem:[%s11172_s13 + $0x450] sm:$0xff] }
  0x4a   :  { %11314 = vst [vmem:[#allocation130_spill] sm:$0xff] %v7002_v8  ;;  %11315 = vst [vmem:[#allocation131_spill] sm:$0xff] %v7007_v12  ;;  %v7012_v54 = vld [vmem:[%s11172_s13 + $0x458] sm:$0xff]  ;;  %v7017_v24 = vld [vmem:[%s11172_s13 + $0x460] sm:$0xff] }
  0x4b   :  { %11316 = vst [vmem:[#allocation132_spill] sm:$0xff] %v7012_v54  ;;  %11317 = vst [vmem:[#allocation133_spill] sm:$0xff] %v7017_v24  ;;  %v7022_v44 = vld [vmem:[%s11172_s13 + $0x468] sm:$0xff]  ;;  %v7027_v8 = vld [vmem:[%s11172_s13 + $0x470] sm:$0xff] }
  0x4c   :  { %11318 = vst [vmem:[#allocation134_spill] sm:$0xff] %v7022_v44  ;;  %11319 = vst [vmem:[#allocation135_spill] sm:$0xff] %v7027_v8  ;;  %v7032_v12 = vld [vmem:[%s11172_s13 + $0x478] sm:$0xff]  ;;  %v7037_v54 = vld [vmem:[%s11172_s13 + $0x480] sm:$0xff] }
  0x4d   :  { %11320 = vst [vmem:[#allocation136_spill] sm:$0xff] %v7032_v12  ;;  %11321 = vst [vmem:[#allocation137_spill] sm:$0xff] %v7037_v54  ;;  %v7042_v49 = vld [vmem:[%s11172_s13 + $0x488] sm:$0xff]  ;;  %v7047_v29 = vld [vmem:[%s11172_s13 + $0x490] sm:$0xff] }
  0x4e   :  { %11322 = vst [vmem:[#allocation138_spill] sm:$0xff] %v7042_v49  ;;  %11323 = vst [vmem:[#allocation139_spill] sm:$0xff] %v7047_v29  ;;  %v7052_v8 = vld [vmem:[%s11172_s13 + $0x498] sm:$0xff]  ;;  %v7057_v12 = vld [vmem:[%s11172_s13 + $0x4a0] sm:$0xff] }
  0x4f   :  { %11324 = vst [vmem:[#allocation140_spill] sm:$0xff] %v7052_v8  ;;  %11325 = vst [vmem:[#allocation141_spill] sm:$0xff] %v7057_v12  ;;  %v7062_v54 = vld [vmem:[%s11172_s13 + $0x4a8] sm:$0xff]  ;;  %v7067_v2 = vld [vmem:[%s11172_s13 + $0x4b0] sm:$0xff] }
  0x50   :  { %11326 = vst [vmem:[#allocation142_spill] sm:$0xff] %v7062_v54  ;;  %11327 = vst [vmem:[#allocation143_spill] sm:$0xff] %v7067_v2  ;;  %v7072_v3 = vld [vmem:[%s11172_s13 + $0x4b8] sm:$0xff]  ;;  %v7077_v8 = vld [vmem:[%s11172_s13 + $0x4c0] sm:$0xff] }
  0x51   :  { %11328 = vst [vmem:[#allocation144_spill] sm:$0xff] %v7072_v3  ;;  %11329 = vst [vmem:[#allocation145_spill] sm:$0xff] %v7077_v8  ;;  %v7082_v12 = vld [vmem:[%s11172_s13 + $0x4c8] sm:$0xff]  ;;  %v7087_v54 = vld [vmem:[%s11172_s13 + $0x4d0] sm:$0xff] }
  0x52   :  { %11330 = vst [vmem:[#allocation146_spill] sm:$0xff] %v7082_v12  ;;  %11331 = vst [vmem:[#allocation147_spill] sm:$0xff] %v7087_v54  ;;  %v7092_v7 = vld [vmem:[%s11172_s13 + $0x4d8] sm:$0xff]  ;;  %v7097_v13 = vld [vmem:[%s11172_s13 + $0x4e0] sm:$0xff] }
  0x53   :  { %11332 = vst [vmem:[#allocation148_spill] sm:$0xff] %v7092_v7  ;;  %11333 = vst [vmem:[#allocation149_spill] sm:$0xff] %v7097_v13  ;;  %v7102_v8 = vld [vmem:[%s11172_s13 + $0x4e8] sm:$0xff]  ;;  %v7107_v12 = vld [vmem:[%s11172_s13 + $0x4f0] sm:$0xff] }
  0x54   :  { %11334 = vst [vmem:[#allocation150_spill] sm:$0xff] %v7102_v8  ;;  %11335 = vst [vmem:[#allocation151_spill] sm:$0xff] %v7107_v12  ;;  %v7112_v54 = vld [vmem:[%s11172_s13 + $0x4f8] sm:$0xff]  ;;  %v7117_v17 = vld [vmem:[%s11172_s13 + $0x500] sm:$0xff] }
  0x55   :  { %11336 = vst [vmem:[#allocation152_spill] sm:$0xff] %v7112_v54  ;;  %11337 = vst [vmem:[#allocation153_spill] sm:$0xff] %v7117_v17  ;;  %v7122_v18 = vld [vmem:[%s11172_s13 + $0x508] sm:$0xff]  ;;  %v7127_v8 = vld [vmem:[%s11172_s13 + $0x510] sm:$0xff] }
  0x56   :  { %11338 = vst [vmem:[#allocation154_spill] sm:$0xff] %v7122_v18  ;;  %11339 = vst [vmem:[#allocation155_spill] sm:$0xff] %v7127_v8  ;;  %v7132_v12 = vld [vmem:[%s11172_s13 + $0x518] sm:$0xff]  ;;  %v7137_v54 = vld [vmem:[%s11172_s13 + $0x520] sm:$0xff] }
  0x57   :  { %11340 = vst [vmem:[#allocation156_spill] sm:$0xff] %v7132_v12  ;;  %11341 = vst [vmem:[#allocation157_spill] sm:$0xff] %v7137_v54  ;;  %v7142_v22 = vld [vmem:[%s11172_s13 + $0x528] sm:$0xff]  ;;  %v7147_v23 = vld [vmem:[%s11172_s13 + $0x530] sm:$0xff] }
  0x58   :  { %11342 = vst [vmem:[#allocation158_spill] sm:$0xff] %v7142_v22  ;;  %11343 = vst [vmem:[#allocation159_spill] sm:$0xff] %v7147_v23  ;;  %v7152_v8 = vld [vmem:[%s11172_s13 + $0x538] sm:$0xff]  ;;  %v7157_v12 = vld [vmem:[%s11172_s13 + $0x540] sm:$0xff] }
  0x59   :  { %11344 = vst [vmem:[#allocation160_spill] sm:$0xff] %v7152_v8  ;;  %11345 = vst [vmem:[#allocation161_spill] sm:$0xff] %v7157_v12  ;;  %v7162_v54 = vld [vmem:[%s11172_s13 + $0x548] sm:$0xff]  ;;  %v7167_v27 = vld [vmem:[%s11172_s13 + $0x550] sm:$0xff] }
  0x5a   :  { %11346 = vst [vmem:[#allocation162_spill] sm:$0xff] %v7162_v54  ;;  %11347 = vst [vmem:[#allocation163_spill] sm:$0xff] %v7167_v27  ;;  %v7172_v28 = vld [vmem:[%s11172_s13 + $0x558] sm:$0xff]  ;;  %v7177_v8 = vld [vmem:[%s11172_s13 + $0x560] sm:$0xff] }
  0x5b   :  { %11348 = vst [vmem:[#allocation164_spill] sm:$0xff] %v7172_v28  ;;  %11349 = vst [vmem:[#allocation165_spill] sm:$0xff] %v7177_v8  ;;  %v7182_v12 = vld [vmem:[%s11172_s13 + $0x568] sm:$0xff]  ;;  %v7187_v54 = vld [vmem:[%s11172_s13 + $0x570] sm:$0xff] }
  0x5c   :  { %11350 = vst [vmem:[#allocation166_spill] sm:$0xff] %v7182_v12  ;;  %11351 = vst [vmem:[#allocation167_spill] sm:$0xff] %v7187_v54  ;;  %v7192_v32 = vld [vmem:[%s11172_s13 + $0x578] sm:$0xff]  ;;  %v7197_v33 = vld [vmem:[%s11172_s13 + $0x580] sm:$0xff] }
  0x5d   :  { %11352 = vst [vmem:[#allocation168_spill] sm:$0xff] %v7192_v32  ;;  %11353 = vst [vmem:[#allocation169_spill] sm:$0xff] %v7197_v33  ;;  %v7202_v8 = vld [vmem:[%s11172_s13 + $0x588] sm:$0xff]  ;;  %v7207_v12 = vld [vmem:[%s11172_s13 + $0x590] sm:$0xff] }
  0x5e   :  { %11354 = vst [vmem:[#allocation170_spill] sm:$0xff] %v7202_v8  ;;  %11355 = vst [vmem:[#allocation171_spill] sm:$0xff] %v7207_v12  ;;  %v7212_v54 = vld [vmem:[%s11172_s13 + $0x598] sm:$0xff]  ;;  %v7217_v37 = vld [vmem:[%s11172_s13 + $0x5a0] sm:$0xff] }
  0x5f   :  { %11356 = vst [vmem:[#allocation172_spill] sm:$0xff] %v7212_v54  ;;  %11357 = vst [vmem:[#allocation173_spill] sm:$0xff] %v7217_v37  ;;  %v7222_v38 = vld [vmem:[%s11172_s13 + $0x5a8] sm:$0xff]  ;;  %v7227_v8 = vld [vmem:[%s11172_s13 + $0x5b0] sm:$0xff] }
  0x60   :  { %11358 = vst [vmem:[#allocation174_spill] sm:$0xff] %v7222_v38  ;;  %11359 = vst [vmem:[#allocation175_spill] sm:$0xff] %v7227_v8  ;;  %v7232_v12 = vld [vmem:[%s11172_s13 + $0x5b8] sm:$0xff]  ;;  %v7237_v54 = vld [vmem:[%s11172_s13 + $0x5c0] sm:$0xff] }
  0x61   :  { %11360 = vst [vmem:[#allocation176_spill] sm:$0xff] %v7232_v12  ;;  %11361 = vst [vmem:[#allocation177_spill] sm:$0xff] %v7237_v54  ;;  %v7242_v42 = vld [vmem:[%s11172_s13 + $0x5c8] sm:$0xff]  ;;  %v7247_v43 = vld [vmem:[%s11172_s13 + $0x5d0] sm:$0xff] }
  0x62   :  { %11362 = vst [vmem:[#allocation178_spill] sm:$0xff] %v7242_v42  ;;  %v7252_v8 = vld [vmem:[%s11172_s13 + $0x5d8] sm:$0xff]  ;;  %v7257_v12 = vld [vmem:[%s11172_s13 + $0x5e0] sm:$0xff]  ;;  %v7262_v54 = vld [vmem:[%s11172_s13 + $0x5e8] sm:$0xff] }
  0x63   :  { %11363 = vst [vmem:[#allocation179_spill] sm:$0xff] %v7252_v8  ;;  %11364 = vst [vmem:[#allocation180_spill] sm:$0xff] %v7257_v12  ;;  %v7267_v47 = vld [vmem:[%s11172_s13 + $0x5f0] sm:$0xff]  ;;  %v7272_v48 = vld [vmem:[%s11172_s13 + $0x5f8] sm:$0xff] }
  0x64   :  { %11365 = vst [vmem:[#allocation181_spill] sm:$0xff] %v7262_v54  ;;  %v7277_v8 = vld [vmem:[%s11172_s13 + $0x600] sm:$0xff]  ;;  %v7282_v12 = vld [vmem:[%s11172_s13 + $0x608] sm:$0xff]  ;;  %v7287_v54 = vld [vmem:[%s11172_s13 + $0x610] sm:$0xff] }
  0x65   :  { %11366 = vst [vmem:[#allocation182_spill] sm:$0xff] %v7277_v8  ;;  %11367 = vst [vmem:[#allocation183_spill] sm:$0xff] %v7282_v12  ;;  %v7292_v52 = vld [vmem:[%s11172_s13 + $0x618] sm:$0xff]  ;;  %v7297_v53 = vld [vmem:[%s11172_s13 + $0x620] sm:$0xff] }
  0x66   :  { %11368 = vst [vmem:[#allocation184_spill] sm:$0xff] %v7287_v54  ;;  %v7302_v8 = vld [vmem:[%s11172_s13 + $0x628] sm:$0xff]  ;;  %v7307_v12 = vld [vmem:[%s11172_s13 + $0x630] sm:$0xff]  ;;  %v7312_v54 = vld [vmem:[%s11172_s13 + $0x638] sm:$0xff] }
  0x67   :  { %11369 = vst [vmem:[#allocation185_spill] sm:$0xff] %v7302_v8  ;;  %11370 = vst [vmem:[#allocation186_spill] sm:$0xff] %v7307_v12  ;;  %v7317_v57 = vld [vmem:[%s11172_s13 + $0x640] sm:$0xff]  ;;  %v7322_v58 = vld [vmem:[%s11172_s13 + $0x648] sm:$0xff] }
  0x68   :  { %11371 = vst [vmem:[#allocation187_spill] sm:$0xff] %v7312_v54  ;;  %v7327_v8 = vld [vmem:[%s11172_s13 + $0x650] sm:$0xff]  ;;  %v7332_v12 = vld [vmem:[%s11172_s13 + $0x658] sm:$0xff]  ;;  %v7337_v54 = vld [vmem:[%s11172_s13 + $0x660] sm:$0xff] }
  0x69   :  { %11372 = vst [vmem:[#allocation188_spill] sm:$0xff] %v7327_v8  ;;  %11373 = vst [vmem:[#allocation189_spill] sm:$0xff] %v7332_v12  ;;  %v7342_v62 = vld [vmem:[%s11172_s13 + $0x668] sm:$0xff]  ;;  %v7347_v63 = vld [vmem:[%s11172_s13 + $0x670] sm:$0xff] }
  0x6a   :  { %11374 = vst [vmem:[#allocation190_spill] sm:$0xff] %v7337_v54  ;;  %v7352_v8 = vld [vmem:[%s11172_s13 + $0x678] sm:$0xff]  ;;  %v7357_v12 = vld [vmem:[%s11172_s13 + $0x680] sm:$0xff]  ;;  %v7362_v54 = vld [vmem:[%s11172_s13 + $0x688] sm:$0xff] }
  0x6b   :  { %11375 = vst [vmem:[#allocation191_spill] sm:$0xff] %v7352_v8  ;;  %11376 = vst [vmem:[#allocation192_spill] sm:$0xff] %v7357_v12  ;;  %v7367_v19 = vld [vmem:[%s11172_s13 + $0x690] sm:$0xff]  ;;  %v7372_v24 = vld [vmem:[%s11172_s13 + $0x698] sm:$0xff] }
  0x6c   :  { %11377 = vst [vmem:[#allocation193_spill] sm:$0xff] %v7362_v54  ;;  %v7377_v8 = vld [vmem:[%s11172_s13 + $0x6a0] sm:$0xff]  ;;  %v7382_v12 = vld [vmem:[%s11172_s13 + $0x6a8] sm:$0xff]  ;;  %v7387_v54 = vld [vmem:[%s11172_s13 + $0x6b0] sm:$0xff] }
  0x6d   :  { %11378 = vst [vmem:[#allocation194_spill] sm:$0xff] %v7377_v8  ;;  %11379 = vst [vmem:[#allocation195_spill] sm:$0xff] %v7382_v12  ;;  %v7392_v44 = vld [vmem:[%s11172_s13 + $0x6b8] sm:$0xff]  ;;  %v7397_v49 = vld [vmem:[%s11172_s13 + $0x6c0] sm:$0xff] }
  0x6e   :  { %11380 = vst [vmem:[#allocation196_spill] sm:$0xff] %v7387_v54  ;;  %v7402_v8 = vld [vmem:[%s11172_s13 + $0x6c8] sm:$0xff]  ;;  %v7407_v12 = vld [vmem:[%s11172_s13 + $0x6d0] sm:$0xff]  ;;  %v7412_v54 = vld [vmem:[%s11172_s13 + $0x6d8] sm:$0xff] }
  0x6f   :  { %11381 = vst [vmem:[#allocation197_spill] sm:$0xff] %v7402_v8  ;;  %11382 = vst [vmem:[#allocation198_spill] sm:$0xff] %v7407_v12  ;;  %v7417_v29 = vld [vmem:[%s11172_s13 + $0x6e0] sm:$0xff]  ;;  %v7422_v2 = vld [vmem:[%s11172_s13 + $0x6e8] sm:$0xff] }
  0x70   :  { %11383 = vst [vmem:[#allocation199_spill] sm:$0xff] %v7412_v54  ;;  %v7427_v8 = vld [vmem:[%s11172_s13 + $0x6f0] sm:$0xff]  ;;  %v7432_v12 = vld [vmem:[%s11172_s13 + $0x6f8] sm:$0xff]  ;;  %v7437_v54 = vld [vmem:[%s11172_s13 + $0x700] sm:$0xff] }
  0x71   :  { %11384 = vst [vmem:[#allocation200_spill] sm:$0xff] %v7427_v8  ;;  %11385 = vst [vmem:[#allocation201_spill] sm:$0xff] %v7432_v12  ;;  %v7442_v3 = vld [vmem:[%s11172_s13 + $0x708] sm:$0xff]  ;;  %v7447_v7 = vld [vmem:[%s11172_s13 + $0x710] sm:$0xff] }
  0x72   :  { %11386 = vst [vmem:[#allocation202_spill] sm:$0xff] %v7437_v54  ;;  %v7452_v8 = vld [vmem:[%s11172_s13 + $0x718] sm:$0xff]  ;;  %v7457_v12 = vld [vmem:[%s11172_s13 + $0x720] sm:$0xff]  ;;  %v7462_v54 = vld [vmem:[%s11172_s13 + $0x728] sm:$0xff] }
  0x73   :  { %11387 = vst [vmem:[#allocation203_spill] sm:$0xff] %v7452_v8  ;;  %11388 = vst [vmem:[#allocation204_spill] sm:$0xff] %v7457_v12  ;;  %v7467_v13 = vld [vmem:[%s11172_s13 + $0x730] sm:$0xff]  ;;  %v7472_v17 = vld [vmem:[%s11172_s13 + $0x738] sm:$0xff] }
  0x74   :  { %11389 = vst [vmem:[#allocation205_spill] sm:$0xff] %v7462_v54  ;;  %v7477_v8 = vld [vmem:[%s11172_s13 + $0x740] sm:$0xff]  ;;  %v7482_v12 = vld [vmem:[%s11172_s13 + $0x748] sm:$0xff]  ;;  %v7487_v54 = vld [vmem:[%s11172_s13 + $0x750] sm:$0xff] }
  0x75   :  { %11390 = vst [vmem:[#allocation206_spill] sm:$0xff] %v7477_v8  ;;  %11391 = vst [vmem:[#allocation207_spill] sm:$0xff] %v7482_v12  ;;  %v7492_v0 = vld [vmem:[%s11172_s13 + $0x758] sm:$0xff]  ;;  %v7497_v18 = vld [vmem:[%s11172_s13 + $0x760] sm:$0xff] }
  0x76   :  { %11392 = vst [vmem:[#allocation208_spill] sm:$0xff] %v7487_v54  ;;  %v7502_v8 = vld [vmem:[%s11172_s13 + $0x768] sm:$0xff]  ;;  %v7507_v12 = vld [vmem:[%s11172_s13 + $0x770] sm:$0xff]  ;;  %v7512_v54 = vld [vmem:[%s11172_s13 + $0x778] sm:$0xff] }
  0x77   :  { %11393 = vst [vmem:[#allocation209_spill] sm:$0xff] %v7502_v8  ;;  %11394 = vst [vmem:[#allocation210_spill] sm:$0xff] %v7507_v12  ;;  %v7517_v1 = vld [vmem:[%s11172_s13 + $0x780] sm:$0xff]  ;;  %v7522_v22 = vld [vmem:[%s11172_s13 + $0x788] sm:$0xff] }
  0x78   :  { %11395 = vst [vmem:[#allocation211_spill] sm:$0xff] %v7512_v54  ;;  %11396 = vst [vmem:[#allocation212_spill] sm:$0xff] %v7517_v1  ;;  %v7527_v8 = vld [vmem:[%s11172_s13 + $0x790] sm:$0xff]  ;;  %v7532_v12 = vld [vmem:[%s11172_s13 + $0x798] sm:$0xff] }
  0x79   :  { %11397 = vst [vmem:[#allocation213_spill] sm:$0xff] %v7522_v22  ;;  %11398 = vst [vmem:[#allocation214_spill] sm:$0xff] %v7527_v8  ;;  %v7537_v54 = vld [vmem:[%s11172_s13 + $0x7a0] sm:$0xff]  ;;  %v7542_v1 = vld [vmem:[%s11172_s13 + $0x7a8] sm:$0xff] }
  0x7a   :  { %11399 = vst [vmem:[#allocation215_spill] sm:$0xff] %v7532_v12  ;;  %11400 = vst [vmem:[#allocation216_spill] sm:$0xff] %v7537_v54  ;;  %v7547_v22 = vld [vmem:[%s11172_s13 + $0x7b0] sm:$0xff]  ;;  %v7552_v8 = vld [vmem:[%s11172_s13 + $0x7b8] sm:$0xff] }
  0x7b   :  { %11401 = vst [vmem:[#allocation217_spill] sm:$0xff] %v7542_v1  ;;  %11402 = vst [vmem:[#allocation218_spill] sm:$0xff] %v7547_v22  ;;  %v7557_v12 = vld [vmem:[%s11172_s13 + $0x7c0] sm:$0xff]  ;;  %v7562_v54 = vld [vmem:[%s11172_s13 + $0x7c8] sm:$0xff] }
  0x7c   :  { %11403 = vst [vmem:[#allocation219_spill] sm:$0xff] %v7552_v8  ;;  %11404 = vst [vmem:[#allocation220_spill] sm:$0xff] %v7557_v12  ;;  %v7567_v1 = vld [vmem:[%s11172_s13 + $0x7d0] sm:$0xff]  ;;  %v7572_v22 = vld [vmem:[%s11172_s13 + $0x7d8] sm:$0xff] }
  0x7d   :  { %11405 = vst [vmem:[#allocation221_spill] sm:$0xff] %v7562_v54  ;;  %11406 = vst [vmem:[#allocation222_spill] sm:$0xff] %v7567_v1  ;;  %v7577_v8 = vld [vmem:[%s11172_s13 + $0x7e0] sm:$0xff]  ;;  %v7582_v12 = vld [vmem:[%s11172_s13 + $0x7e8] sm:$0xff] }
  0x7e   :  { %11407 = vst [vmem:[#allocation223_spill] sm:$0xff] %v7572_v22  ;;  %11408 = vst [vmem:[#allocation224_spill] sm:$0xff] %v7577_v8  ;;  %v7587_v54 = vld [vmem:[%s11172_s13 + $0x7f0] sm:$0xff]  ;;  %v7592_v1 = vld [vmem:[%s11172_s13 + $0x7f8] sm:$0xff] }
  0x7f   :  { %11409 = vst [vmem:[#allocation225_spill] sm:$0xff] %v7582_v12  ;;  %11410 = vst [vmem:[#allocation226_spill] sm:$0xff] %v7587_v54  ;;  %v7597_v22 = vld [vmem:[%s11172_s13 + $0x800] sm:$0xff]  ;;  %v7602_v8 = vld [vmem:[%s11172_s13 + $0x808] sm:$0xff] }
  0x80   :  { %11411 = vst [vmem:[#allocation227_spill] sm:$0xff] %v7592_v1  ;;  %11412 = vst [vmem:[#allocation228_spill] sm:$0xff] %v7597_v22  ;;  %v7607_v12 = vld [vmem:[%s11172_s13 + $0x810] sm:$0xff]  ;;  %v7612_v54 = vld [vmem:[%s11172_s13 + $0x818] sm:$0xff] }
  0x81   :  { %11413 = vst [vmem:[#allocation229_spill] sm:$0xff] %v7602_v8  ;;  %11414 = vst [vmem:[#allocation230_spill] sm:$0xff] %v7607_v12  ;;  %v7617_v1 = vld [vmem:[%s11172_s13 + $0x820] sm:$0xff]  ;;  %v7622_v22 = vld [vmem:[%s11172_s13 + $0x828] sm:$0xff] }
  0x82   :  { %11415 = vst [vmem:[#allocation231_spill] sm:$0xff] %v7612_v54  ;;  %11416 = vst [vmem:[#allocation232_spill] sm:$0xff] %v7617_v1  ;;  %v7627_v8 = vld [vmem:[%s11172_s13 + $0x830] sm:$0xff]  ;;  %v7632_v12 = vld [vmem:[%s11172_s13 + $0x838] sm:$0xff] }
  0x83   :  { %11417 = vst [vmem:[#allocation233_spill] sm:$0xff] %v7622_v22  ;;  %11418 = vst [vmem:[#allocation234_spill] sm:$0xff] %v7627_v8  ;;  %v7637_v54 = vld [vmem:[%s11172_s13 + $0x840] sm:$0xff]  ;;  %v7642_v1 = vld [vmem:[%s11172_s13 + $0x848] sm:$0xff] }
  0x84   :  { %11419 = vst [vmem:[#allocation235_spill] sm:$0xff] %v7632_v12  ;;  %11420 = vst [vmem:[#allocation236_spill] sm:$0xff] %v7637_v54  ;;  %v7647_v22 = vld [vmem:[%s11172_s13 + $0x850] sm:$0xff]  ;;  %v7652_v8 = vld [vmem:[%s11172_s13 + $0x858] sm:$0xff] }
  0x85   :  { %11421 = vst [vmem:[#allocation237_spill] sm:$0xff] %v7642_v1  ;;  %11422 = vst [vmem:[#allocation238_spill] sm:$0xff] %v7647_v22  ;;  %v7657_v12 = vld [vmem:[%s11172_s13 + $0x860] sm:$0xff]  ;;  %v7662_v54 = vld [vmem:[%s11172_s13 + $0x868] sm:$0xff] }
  0x86   :  { %11423 = vst [vmem:[#allocation239_spill] sm:$0xff] %v7652_v8  ;;  %11424 = vst [vmem:[#allocation240_spill] sm:$0xff] %v7657_v12  ;;  %v7667_v1 = vld [vmem:[%s11172_s13 + $0x870] sm:$0xff]  ;;  %v7672_v22 = vld [vmem:[%s11172_s13 + $0x878] sm:$0xff] }
  0x87   :  { %11425 = vst [vmem:[#allocation241_spill] sm:$0xff] %v7662_v54  ;;  %11426 = vst [vmem:[#allocation242_spill] sm:$0xff] %v7667_v1  ;;  %v7677_v8 = vld [vmem:[%s11172_s13 + $0x880] sm:$0xff]  ;;  %v7682_v12 = vld [vmem:[%s11172_s13 + $0x888] sm:$0xff] }
  0x88   :  { %11427 = vst [vmem:[#allocation243_spill] sm:$0xff] %v7672_v22  ;;  %11428 = vst [vmem:[#allocation244_spill] sm:$0xff] %v7677_v8  ;;  %v7687_v54 = vld [vmem:[%s11172_s13 + $0x890] sm:$0xff]  ;;  %v7692_v1 = vld [vmem:[%s11172_s13 + $0x898] sm:$0xff] }
  0x89   :  { %11429 = vst [vmem:[#allocation245_spill] sm:$0xff] %v7682_v12  ;;  %11430 = vst [vmem:[#allocation246_spill] sm:$0xff] %v7687_v54  ;;  %v7697_v22 = vld [vmem:[%s11172_s13 + $0x8a0] sm:$0xff]  ;;  %v7702_v8 = vld [vmem:[%s11172_s13 + $0x8a8] sm:$0xff] }
  0x8a   :  { %11431 = vst [vmem:[#allocation247_spill] sm:$0xff] %v7692_v1  ;;  %11432 = vst [vmem:[#allocation248_spill] sm:$0xff] %v7697_v22  ;;  %v7707_v12 = vld [vmem:[%s11172_s13 + $0x8b0] sm:$0xff]  ;;  %v7712_v54 = vld [vmem:[%s11172_s13 + $0x8b8] sm:$0xff] }
  0x8b   :  { %11433 = vst [vmem:[#allocation249_spill] sm:$0xff] %v7702_v8  ;;  %11434 = vst [vmem:[#allocation250_spill] sm:$0xff] %v7707_v12  ;;  %v7717_v1 = vld [vmem:[%s11172_s13 + $0x8c0] sm:$0xff]  ;;  %v7722_v22 = vld [vmem:[%s11172_s13 + $0x8c8] sm:$0xff] }
  0x8c   :  { %11435 = vst [vmem:[#allocation251_spill] sm:$0xff] %v7712_v54  ;;  %11436 = vst [vmem:[#allocation252_spill] sm:$0xff] %v7717_v1  ;;  %v7727_v8 = vld [vmem:[%s11172_s13 + $0x8d0] sm:$0xff]  ;;  %v7732_v12 = vld [vmem:[%s11172_s13 + $0x8d8] sm:$0xff] }
  0x8d   :  { %11437 = vst [vmem:[#allocation253_spill] sm:$0xff] %v7722_v22  ;;  %11438 = vst [vmem:[#allocation254_spill] sm:$0xff] %v7727_v8  ;;  %v7737_v54 = vld [vmem:[%s11172_s13 + $0x8e0] sm:$0xff]  ;;  %v7742_v1 = vld [vmem:[%s11172_s13 + $0x8e8] sm:$0xff] }
  0x8e   :  { %11439 = vst [vmem:[#allocation255_spill] sm:$0xff] %v7732_v12  ;;  %11440 = vst [vmem:[#allocation256_spill] sm:$0xff] %v7737_v54  ;;  %v7747_v22 = vld [vmem:[%s11172_s13 + $0x8f0] sm:$0xff]  ;;  %v7752_v8 = vld [vmem:[%s11172_s13 + $0x8f8] sm:$0xff] }
  0x8f   :  { %11441 = vst [vmem:[#allocation257_spill] sm:$0xff] %v7742_v1  ;;  %11442 = vst [vmem:[#allocation258_spill] sm:$0xff] %v7747_v22  ;;  %v7757_v12 = vld [vmem:[%s11172_s13 + $0x900] sm:$0xff]  ;;  %v7762_v54 = vld [vmem:[%s11172_s13 + $0x908] sm:$0xff] }
  0x90   :  { %11443 = vst [vmem:[#allocation259_spill] sm:$0xff] %v7752_v8  ;;  %11444 = vst [vmem:[#allocation260_spill] sm:$0xff] %v7757_v12  ;;  %v7767_v1 = vld [vmem:[%s11172_s13 + $0x910] sm:$0xff]  ;;  %v7772_v22 = vld [vmem:[%s11172_s13 + $0x918] sm:$0xff] }
  0x91   :  { %11445 = vst [vmem:[#allocation261_spill] sm:$0xff] %v7762_v54  ;;  %11446 = vst [vmem:[#allocation262_spill] sm:$0xff] %v7767_v1  ;;  %v7777_v8 = vld [vmem:[%s11172_s13 + $0x920] sm:$0xff]  ;;  %v7782_v12 = vld [vmem:[%s11172_s13 + $0x928] sm:$0xff] }
  0x92   :  { %11447 = vst [vmem:[#allocation263_spill] sm:$0xff] %v7772_v22  ;;  %11448 = vst [vmem:[#allocation264_spill] sm:$0xff] %v7777_v8  ;;  %v7787_v54 = vld [vmem:[%s11172_s13 + $0x930] sm:$0xff]  ;;  %v7792_v1 = vld [vmem:[%s11172_s13 + $0x938] sm:$0xff] }
  0x93   :  { %11449 = vst [vmem:[#allocation265_spill] sm:$0xff] %v7782_v12  ;;  %11450 = vst [vmem:[#allocation266_spill] sm:$0xff] %v7787_v54  ;;  %v7797_v22 = vld [vmem:[%s11172_s13 + $0x940] sm:$0xff]  ;;  %v7802_v8 = vld [vmem:[%s11172_s13 + $0x948] sm:$0xff] }
  0x94   :  { %11451 = vst [vmem:[#allocation267_spill] sm:$0xff] %v7792_v1  ;;  %11452 = vst [vmem:[#allocation268_spill] sm:$0xff] %v7797_v22  ;;  %v7807_v12 = vld [vmem:[%s11172_s13 + $0x950] sm:$0xff]  ;;  %v7812_v54 = vld [vmem:[%s11172_s13 + $0x958] sm:$0xff] }
  0x95   :  { %11453 = vst [vmem:[#allocation269_spill] sm:$0xff] %v7802_v8  ;;  %11454 = vst [vmem:[#allocation270_spill] sm:$0xff] %v7807_v12  ;;  %v7817_v1 = vld [vmem:[%s11172_s13 + $0x960] sm:$0xff]  ;;  %v7822_v22 = vld [vmem:[%s11172_s13 + $0x968] sm:$0xff] }
  0x96   :  { %11455 = vst [vmem:[#allocation271_spill] sm:$0xff] %v7812_v54  ;;  %11456 = vst [vmem:[#allocation272_spill] sm:$0xff] %v7817_v1  ;;  %v7827_v8 = vld [vmem:[%s11172_s13 + $0x970] sm:$0xff]  ;;  %v7832_v12 = vld [vmem:[%s11172_s13 + $0x978] sm:$0xff] }
  0x97   :  { %11457 = vst [vmem:[#allocation273_spill] sm:$0xff] %v7822_v22  ;;  %11458 = vst [vmem:[#allocation274_spill] sm:$0xff] %v7827_v8  ;;  %v7837_v54 = vld [vmem:[%s11172_s13 + $0x980] sm:$0xff]  ;;  %v7842_v1 = vld [vmem:[%s11172_s13 + $0x988] sm:$0xff] }
  0x98   :  { %11459 = vst [vmem:[#allocation275_spill] sm:$0xff] %v7832_v12  ;;  %11460 = vst [vmem:[#allocation276_spill] sm:$0xff] %v7837_v54  ;;  %v7847_v22 = vld [vmem:[%s11172_s13 + $0x990] sm:$0xff]  ;;  %v7852_v8 = vld [vmem:[%s11172_s13 + $0x998] sm:$0xff] }
  0x99   :  { %11461 = vst [vmem:[#allocation277_spill] sm:$0xff] %v7842_v1  ;;  %11462 = vst [vmem:[#allocation278_spill] sm:$0xff] %v7847_v22  ;;  %v7857_v12 = vld [vmem:[%s11172_s13 + $0x9a0] sm:$0xff]  ;;  %v7862_v54 = vld [vmem:[%s11172_s13 + $0x9a8] sm:$0xff] }
  0x9a   :  { %11463 = vst [vmem:[#allocation279_spill] sm:$0xff] %v7852_v8  ;;  %11464 = vst [vmem:[#allocation280_spill] sm:$0xff] %v7857_v12  ;;  %v7867_v1 = vld [vmem:[%s11172_s13 + $0x9b0] sm:$0xff]  ;;  %v7872_v22 = vld [vmem:[%s11172_s13 + $0x9b8] sm:$0xff] }
  0x9b   :  { %11465 = vst [vmem:[#allocation281_spill] sm:$0xff] %v7862_v54  ;;  %11466 = vst [vmem:[#allocation282_spill] sm:$0xff] %v7867_v1  ;;  %v7877_v8 = vld [vmem:[%s11172_s13 + $0x9c0] sm:$0xff]  ;;  %v7882_v12 = vld [vmem:[%s11172_s13 + $0x9c8] sm:$0xff] }
  0x9c   :  { %11467 = vst [vmem:[#allocation283_spill] sm:$0xff] %v7872_v22  ;;  %11468 = vst [vmem:[#allocation284_spill] sm:$0xff] %v7877_v8  ;;  %v7887_v54 = vld [vmem:[%s11172_s13 + $0x9d0] sm:$0xff]  ;;  %v7892_v1 = vld [vmem:[%s11172_s13 + $0x9d8] sm:$0xff] }
  0x9d   :  { %11469 = vst [vmem:[#allocation285_spill] sm:$0xff] %v7882_v12  ;;  %11470 = vst [vmem:[#allocation286_spill] sm:$0xff] %v7887_v54  ;;  %v7897_v22 = vld [vmem:[%s11172_s13 + $0x9e0] sm:$0xff]  ;;  %v7902_v8 = vld [vmem:[%s11172_s13 + $0x9e8] sm:$0xff] }
  0x9e   :  { %11471 = vst [vmem:[#allocation287_spill] sm:$0xff] %v7892_v1  ;;  %11472 = vst [vmem:[#allocation288_spill] sm:$0xff] %v7897_v22  ;;  %v7907_v12 = vld [vmem:[%s11172_s13 + $0x9f0] sm:$0xff]  ;;  %v7912_v54 = vld [vmem:[%s11172_s13 + $0x9f8] sm:$0xff] }
  0x9f   :  { %11473 = vst [vmem:[#allocation289_spill] sm:$0xff] %v7902_v8  ;;  %11474 = vst [vmem:[#allocation290_spill] sm:$0xff] %v7907_v12  ;;  %v7917_v1 = vld [vmem:[%s11172_s13 + $0xa00] sm:$0xff]  ;;  %v7922_v22 = vld [vmem:[%s11172_s13 + $0xa08] sm:$0xff] }
  0xa0   :  { %11475 = vst [vmem:[#allocation291_spill] sm:$0xff] %v7912_v54  ;;  %11476 = vst [vmem:[#allocation292_spill] sm:$0xff] %v7917_v1  ;;  %v7927_v8 = vld [vmem:[%s11172_s13 + $0xa10] sm:$0xff]  ;;  %v7932_v12 = vld [vmem:[%s11172_s13 + $0xa18] sm:$0xff] }
  0xa1   :  { %11477 = vst [vmem:[#allocation293_spill] sm:$0xff] %v7922_v22  ;;  %11478 = vst [vmem:[#allocation294_spill] sm:$0xff] %v7927_v8  ;;  %v7937_v54 = vld [vmem:[%s11172_s13 + $0xa20] sm:$0xff]  ;;  %v7942_v1 = vld [vmem:[%s11172_s13 + $0xa28] sm:$0xff] }
  0xa2   :  { %11479 = vst [vmem:[#allocation295_spill] sm:$0xff] %v7932_v12  ;;  %11480 = vst [vmem:[#allocation296_spill] sm:$0xff] %v7937_v54  ;;  %v7947_v22 = vld [vmem:[%s11172_s13 + $0xa30] sm:$0xff]  ;;  %v7952_v8 = vld [vmem:[%s11172_s13 + $0xa38] sm:$0xff] }
  0xa3   :  { %11481 = vst [vmem:[#allocation297_spill] sm:$0xff] %v7942_v1  ;;  %11482 = vst [vmem:[#allocation298_spill] sm:$0xff] %v7947_v22  ;;  %v7957_v12 = vld [vmem:[%s11172_s13 + $0xa40] sm:$0xff]  ;;  %v7962_v54 = vld [vmem:[%s11172_s13 + $0xa48] sm:$0xff] }
  0xa4   :  { %11483 = vst [vmem:[#allocation299_spill] sm:$0xff] %v7952_v8  ;;  %11484 = vst [vmem:[#allocation300_spill] sm:$0xff] %v7957_v12  ;;  %v7967_v1 = vld [vmem:[%s11172_s13 + $0xa50] sm:$0xff]  ;;  %v7972_v22 = vld [vmem:[%s11172_s13 + $0xa58] sm:$0xff] }
  0xa5   :  { %11485 = vst [vmem:[#allocation301_spill] sm:$0xff] %v7962_v54  ;;  %11486 = vst [vmem:[#allocation302_spill] sm:$0xff] %v7967_v1  ;;  %v7977_v8 = vld [vmem:[%s11172_s13 + $0xa60] sm:$0xff]  ;;  %v7982_v12 = vld [vmem:[%s11172_s13 + $0xa68] sm:$0xff] }
  0xa6   :  { %11487 = vst [vmem:[#allocation303_spill] sm:$0xff] %v7972_v22  ;;  %11488 = vst [vmem:[#allocation304_spill] sm:$0xff] %v7977_v8  ;;  %v7987_v54 = vld [vmem:[%s11172_s13 + $0xa70] sm:$0xff]  ;;  %v7992_v1 = vld [vmem:[%s11172_s13 + $0xa78] sm:$0xff] }
  0xa7   :  { %11489 = vst [vmem:[#allocation305_spill] sm:$0xff] %v7982_v12  ;;  %11490 = vst [vmem:[#allocation306_spill] sm:$0xff] %v7987_v54  ;;  %v7997_v22 = vld [vmem:[%s11172_s13 + $0xa80] sm:$0xff]  ;;  %v8002_v8 = vld [vmem:[%s11172_s13 + $0xa88] sm:$0xff] }
  0xa8   :  { %11491 = vst [vmem:[#allocation307_spill] sm:$0xff] %v7992_v1  ;;  %11492 = vst [vmem:[#allocation308_spill] sm:$0xff] %v7997_v22  ;;  %v8007_v12 = vld [vmem:[%s11172_s13 + $0xa90] sm:$0xff]  ;;  %v8012_v54 = vld [vmem:[%s11172_s13 + $0xa98] sm:$0xff] }
  0xa9   :  { %11493 = vst [vmem:[#allocation309_spill] sm:$0xff] %v8002_v8  ;;  %11494 = vst [vmem:[#allocation310_spill] sm:$0xff] %v8007_v12  ;;  %v8017_v1 = vld [vmem:[%s11172_s13 + $0xaa0] sm:$0xff]  ;;  %v8022_v22 = vld [vmem:[%s11172_s13 + $0xaa8] sm:$0xff] }
  0xaa   :  { %11495 = vst [vmem:[#allocation311_spill] sm:$0xff] %v8012_v54  ;;  %11496 = vst [vmem:[#allocation312_spill] sm:$0xff] %v8017_v1  ;;  %v8027_v8 = vld [vmem:[%s11172_s13 + $0xab0] sm:$0xff]  ;;  %v8032_v12 = vld [vmem:[%s11172_s13 + $0xab8] sm:$0xff] }
  0xab   :  { %11497 = vst [vmem:[#allocation313_spill] sm:$0xff] %v8022_v22  ;;  %11498 = vst [vmem:[#allocation314_spill] sm:$0xff] %v8027_v8  ;;  %v8037_v54 = vld [vmem:[%s11172_s13 + $0xac0] sm:$0xff]  ;;  %v8042_v1 = vld [vmem:[%s11172_s13 + $0xac8] sm:$0xff] }
  0xac   :  { %11499 = vst [vmem:[#allocation315_spill] sm:$0xff] %v8032_v12  ;;  %11500 = vst [vmem:[#allocation316_spill] sm:$0xff] %v8037_v54  ;;  %v8047_v22 = vld [vmem:[%s11172_s13 + $0xad0] sm:$0xff]  ;;  %v8052_v8 = vld [vmem:[%s11172_s13 + $0xad8] sm:$0xff] }
  0xad   :  { %11501 = vst [vmem:[#allocation317_spill] sm:$0xff] %v8042_v1  ;;  %11502 = vst [vmem:[#allocation318_spill] sm:$0xff] %v8047_v22  ;;  %v8057_v12 = vld [vmem:[%s11172_s13 + $0xae0] sm:$0xff]  ;;  %v8062_v54 = vld [vmem:[%s11172_s13 + $0xae8] sm:$0xff] }
  0xae   :  { %11503 = vst [vmem:[#allocation319_spill] sm:$0xff] %v8052_v8  ;;  %11504 = vst [vmem:[#allocation320_spill] sm:$0xff] %v8057_v12  ;;  %v8067_v1 = vld [vmem:[%s11172_s13 + $0xaf0] sm:$0xff]  ;;  %v8072_v22 = vld [vmem:[%s11172_s13 + $0xaf8] sm:$0xff] }
  0xaf   :  { %11505 = vst [vmem:[#allocation321_spill] sm:$0xff] %v8062_v54  ;;  %11506 = vst [vmem:[#allocation322_spill] sm:$0xff] %v8067_v1  ;;  %v8077_v8 = vld [vmem:[%s11172_s13 + $0xb00] sm:$0xff]  ;;  %v8082_v12 = vld [vmem:[%s11172_s13 + $0xb08] sm:$0xff] }
  0xb0   :  { %11507 = vst [vmem:[#allocation323_spill] sm:$0xff] %v8072_v22  ;;  %11508 = vst [vmem:[#allocation324_spill] sm:$0xff] %v8077_v8  ;;  %v8087_v54 = vld [vmem:[%s11172_s13 + $0xb10] sm:$0xff]  ;;  %v8092_v1 = vld [vmem:[%s11172_s13 + $0xb18] sm:$0xff] }
  0xb1   :  { %11509 = vst [vmem:[#allocation325_spill] sm:$0xff] %v8082_v12  ;;  %11510 = vst [vmem:[#allocation326_spill] sm:$0xff] %v8087_v54  ;;  %v8097_v22 = vld [vmem:[%s11172_s13 + $0xb20] sm:$0xff]  ;;  %v8102_v8 = vld [vmem:[%s11172_s13 + $0xb28] sm:$0xff] }
  0xb2   :  { %11511 = vst [vmem:[#allocation327_spill] sm:$0xff] %v8092_v1  ;;  %11512 = vst [vmem:[#allocation328_spill] sm:$0xff] %v8097_v22  ;;  %v8107_v12 = vld [vmem:[%s11172_s13 + $0xb30] sm:$0xff]  ;;  %v8112_v54 = vld [vmem:[%s11172_s13 + $0xb38] sm:$0xff] }
  0xb3   :  { %11513 = vst [vmem:[#allocation329_spill] sm:$0xff] %v8102_v8  ;;  %11514 = vst [vmem:[#allocation330_spill] sm:$0xff] %v8107_v12  ;;  %v8117_v1 = vld [vmem:[%s11172_s13 + $0xb40] sm:$0xff]  ;;  %v8122_v22 = vld [vmem:[%s11172_s13 + $0xb48] sm:$0xff] }
  0xb4   :  { %11515 = vst [vmem:[#allocation331_spill] sm:$0xff] %v8112_v54  ;;  %11516 = vst [vmem:[#allocation332_spill] sm:$0xff] %v8117_v1  ;;  %v8127_v8 = vld [vmem:[%s11172_s13 + $0xb50] sm:$0xff]  ;;  %v8132_v12 = vld [vmem:[%s11172_s13 + $0xb58] sm:$0xff] }
  0xb5   :  { %11517 = vst [vmem:[#allocation333_spill] sm:$0xff] %v8122_v22  ;;  %11518 = vst [vmem:[#allocation334_spill] sm:$0xff] %v8127_v8  ;;  %v8137_v54 = vld [vmem:[%s11172_s13 + $0xb60] sm:$0xff]  ;;  %v8142_v1 = vld [vmem:[%s11172_s13 + $0xb68] sm:$0xff] }
  0xb6   :  { %11519 = vst [vmem:[#allocation335_spill] sm:$0xff] %v8132_v12  ;;  %11520 = vst [vmem:[#allocation336_spill] sm:$0xff] %v8137_v54  ;;  %v8147_v22 = vld [vmem:[%s11172_s13 + $0xb70] sm:$0xff]  ;;  %v8152_v8 = vld [vmem:[%s11172_s13 + $0xb78] sm:$0xff] }
  0xb7   :  { %11521 = vst [vmem:[#allocation337_spill] sm:$0xff] %v8142_v1  ;;  %11522 = vst [vmem:[#allocation338_spill] sm:$0xff] %v8147_v22  ;;  %v8157_v12 = vld [vmem:[%s11172_s13 + $0xb80] sm:$0xff]  ;;  %v8162_v54 = vld [vmem:[%s11172_s13 + $0xb88] sm:$0xff] }
  0xb8   :  { %11523 = vst [vmem:[#allocation339_spill] sm:$0xff] %v8152_v8  ;;  %11524 = vst [vmem:[#allocation340_spill] sm:$0xff] %v8157_v12  ;;  %v8167_v1 = vld [vmem:[%s11172_s13 + $0xb90] sm:$0xff]  ;;  %v8172_v22 = vld [vmem:[%s11172_s13 + $0xb98] sm:$0xff] }
  0xb9   :  { %11525 = vst [vmem:[#allocation341_spill] sm:$0xff] %v8162_v54  ;;  %11526 = vst [vmem:[#allocation342_spill] sm:$0xff] %v8167_v1  ;;  %v8177_v8 = vld [vmem:[%s11172_s13 + $0xba0] sm:$0xff]  ;;  %v8182_v12 = vld [vmem:[%s11172_s13 + $0xba8] sm:$0xff] }
  0xba   :  { %11527 = vst [vmem:[#allocation343_spill] sm:$0xff] %v8172_v22  ;;  %11528 = vst [vmem:[#allocation344_spill] sm:$0xff] %v8177_v8  ;;  %v8187_v54 = vld [vmem:[%s11172_s13 + $0xbb0] sm:$0xff]  ;;  %v8192_v1 = vld [vmem:[%s11172_s13 + $0xbb8] sm:$0xff] }
  0xbb   :  { %11529 = vst [vmem:[#allocation345_spill] sm:$0xff] %v8182_v12  ;;  %11530 = vst [vmem:[#allocation346_spill] sm:$0xff] %v8187_v54  ;;  %v8197_v22 = vld [vmem:[%s11172_s13 + $0xbc0] sm:$0xff]  ;;  %v8202_v8 = vld [vmem:[%s11172_s13 + $0xbc8] sm:$0xff] }
  0xbc   :  { %11531 = vst [vmem:[#allocation347_spill] sm:$0xff] %v8192_v1  ;;  %11532 = vst [vmem:[#allocation348_spill] sm:$0xff] %v8197_v22  ;;  %v8207_v12 = vld [vmem:[%s11172_s13 + $0xbd0] sm:$0xff]  ;;  %v8212_v54 = vld [vmem:[%s11172_s13 + $0xbd8] sm:$0xff] }
  0xbd   :  { %11533 = vst [vmem:[#allocation349_spill] sm:$0xff] %v8202_v8  ;;  %11534 = vst [vmem:[#allocation350_spill] sm:$0xff] %v8207_v12  ;;  %v8217_v1 = vld [vmem:[%s11172_s13 + $0xbe0] sm:$0xff]  ;;  %v8222_v22 = vld [vmem:[%s11172_s13 + $0xbe8] sm:$0xff] }
  0xbe   :  { %11535 = vst [vmem:[#allocation351_spill] sm:$0xff] %v8212_v54  ;;  %11536 = vst [vmem:[#allocation352_spill] sm:$0xff] %v8217_v1  ;;  %v8227_v8 = vld [vmem:[%s11172_s13 + $0xbf0] sm:$0xff]  ;;  %v8232_v12 = vld [vmem:[%s11172_s13 + $0xbf8] sm:$0xff] }
  0xbf   :  { %11537 = vst [vmem:[#allocation353_spill] sm:$0xff] %v8222_v22  ;;  %11538 = vst [vmem:[#allocation354_spill] sm:$0xff] %v8227_v8  ;;  %v8237_v54 = vld [vmem:[%s11172_s13 + $0xc00] sm:$0xff]  ;;  %v8242_v1 = vld [vmem:[%s11172_s13 + $0xc08] sm:$0xff] }
  0xc0   :  { %11539 = vst [vmem:[#allocation355_spill] sm:$0xff] %v8232_v12  ;;  %11540 = vst [vmem:[#allocation356_spill] sm:$0xff] %v8237_v54  ;;  %v8247_v22 = vld [vmem:[%s11172_s13 + $0xc10] sm:$0xff]  ;;  %v8252_v8 = vld [vmem:[%s11172_s13 + $0xc18] sm:$0xff] }
  0xc1   :  { %11541 = vst [vmem:[#allocation357_spill] sm:$0xff] %v8242_v1  ;;  %11542 = vst [vmem:[#allocation358_spill] sm:$0xff] %v8247_v22  ;;  %v8257_v12 = vld [vmem:[%s11172_s13 + $0xc20] sm:$0xff]  ;;  %v8262_v54 = vld [vmem:[%s11172_s13 + $0xc28] sm:$0xff] }
  0xc2   :  { %11543 = vst [vmem:[#allocation359_spill] sm:$0xff] %v8252_v8  ;;  %11544 = vst [vmem:[#allocation360_spill] sm:$0xff] %v8257_v12  ;;  %v8267_v1 = vld [vmem:[%s11172_s13 + $0xc30] sm:$0xff]  ;;  %v8272_v22 = vld [vmem:[%s11172_s13 + $0xc38] sm:$0xff] }
  0xc3   :  { %11545 = vst [vmem:[#allocation361_spill] sm:$0xff] %v8262_v54  ;;  %11546 = vst [vmem:[#allocation362_spill] sm:$0xff] %v8267_v1  ;;  %v8277_v8 = vld [vmem:[%s11172_s13 + $0xc40] sm:$0xff]  ;;  %v8282_v12 = vld [vmem:[%s11172_s13 + $0xc48] sm:$0xff] }
  0xc4   :  { %11547 = vst [vmem:[#allocation363_spill] sm:$0xff] %v8272_v22  ;;  %11548 = vst [vmem:[#allocation364_spill] sm:$0xff] %v8277_v8  ;;  %v8287_v54 = vld [vmem:[%s11172_s13 + $0xc50] sm:$0xff]  ;;  %v8292_v1 = vld [vmem:[%s11172_s13 + $0xc58] sm:$0xff] }
  0xc5   :  { %11549 = vst [vmem:[#allocation365_spill] sm:$0xff] %v8282_v12  ;;  %11550 = vst [vmem:[#allocation366_spill] sm:$0xff] %v8287_v54  ;;  %v8297_v22 = vld [vmem:[%s11172_s13 + $0xc60] sm:$0xff]  ;;  %v8302_v8 = vld [vmem:[%s11172_s13 + $0xc68] sm:$0xff] }
  0xc6   :  { %11551 = vst [vmem:[#allocation367_spill] sm:$0xff] %v8292_v1  ;;  %11552 = vst [vmem:[#allocation368_spill] sm:$0xff] %v8297_v22  ;;  %v8307_v12 = vld [vmem:[%s11172_s13 + $0xc70] sm:$0xff]  ;;  %v8312_v54 = vld [vmem:[%s11172_s13 + $0xc78] sm:$0xff] }
  0xc7   :  { %11553 = vst [vmem:[#allocation369_spill] sm:$0xff] %v8302_v8  ;;  %11554 = vst [vmem:[#allocation370_spill] sm:$0xff] %v8307_v12  ;;  %v8317_v1 = vld [vmem:[%s11172_s13 + $0xc80] sm:$0xff]  ;;  %v8322_v22 = vld [vmem:[%s11172_s13 + $0xc88] sm:$0xff] }
  0xc8   :  { %11555 = vst [vmem:[#allocation371_spill] sm:$0xff] %v8312_v54  ;;  %11556 = vst [vmem:[#allocation372_spill] sm:$0xff] %v8317_v1  ;;  %v8327_v8 = vld [vmem:[%s11172_s13 + $0xc90] sm:$0xff]  ;;  %v8332_v12 = vld [vmem:[%s11172_s13 + $0xc98] sm:$0xff] }
  0xc9   :  { %11557 = vst [vmem:[#allocation373_spill] sm:$0xff] %v8322_v22  ;;  %11558 = vst [vmem:[#allocation374_spill] sm:$0xff] %v8327_v8  ;;  %v8337_v54 = vld [vmem:[%s11172_s13 + $0xca0] sm:$0xff]  ;;  %v8342_v1 = vld [vmem:[%s11172_s13 + $0xca8] sm:$0xff] }
  0xca   :  { %11559 = vst [vmem:[#allocation375_spill] sm:$0xff] %v8332_v12  ;;  %11560 = vst [vmem:[#allocation376_spill] sm:$0xff] %v8337_v54  ;;  %v8347_v22 = vld [vmem:[%s11172_s13 + $0xcb0] sm:$0xff]  ;;  %v8352_v8 = vld [vmem:[%s11172_s13 + $0xcb8] sm:$0xff] }
  0xcb   :  { %11561 = vst [vmem:[#allocation377_spill] sm:$0xff] %v8342_v1  ;;  %11562 = vst [vmem:[#allocation378_spill] sm:$0xff] %v8347_v22  ;;  %v8357_v12 = vld [vmem:[%s11172_s13 + $0xcc0] sm:$0xff]  ;;  %v8362_v54 = vld [vmem:[%s11172_s13 + $0xcc8] sm:$0xff] }
  0xcc   :  { %11563 = vst [vmem:[#allocation379_spill] sm:$0xff] %v8352_v8  ;;  %11564 = vst [vmem:[#allocation380_spill] sm:$0xff] %v8357_v12  ;;  %v8367_v1 = vld [vmem:[%s11172_s13 + $0xcd0] sm:$0xff]  ;;  %v8372_v22 = vld [vmem:[%s11172_s13 + $0xcd8] sm:$0xff] }
  0xcd   :  { %11565 = vst [vmem:[#allocation381_spill] sm:$0xff] %v8362_v54  ;;  %11566 = vst [vmem:[#allocation382_spill] sm:$0xff] %v8367_v1  ;;  %v8377_v8 = vld [vmem:[%s11172_s13 + $0xce0] sm:$0xff]  ;;  %v8382_v12 = vld [vmem:[%s11172_s13 + $0xce8] sm:$0xff] }
  0xce   :  { %11567 = vst [vmem:[#allocation383_spill] sm:$0xff] %v8372_v22  ;;  %11568 = vst [vmem:[#allocation384_spill] sm:$0xff] %v8377_v8  ;;  %v8387_v54 = vld [vmem:[%s11172_s13 + $0xcf0] sm:$0xff]  ;;  %v8392_v1 = vld [vmem:[%s11172_s13 + $0xcf8] sm:$0xff] }
  0xcf   :  { %11569 = vst [vmem:[#allocation385_spill] sm:$0xff] %v8382_v12  ;;  %11570 = vst [vmem:[#allocation386_spill] sm:$0xff] %v8387_v54  ;;  %v8397_v22 = vld [vmem:[%s11172_s13 + $0xd00] sm:$0xff]  ;;  %v8402_v8 = vld [vmem:[%s11172_s13 + $0xd08] sm:$0xff] }
  0xd0   :  { %11571 = vst [vmem:[#allocation387_spill] sm:$0xff] %v8392_v1  ;;  %11572 = vst [vmem:[#allocation388_spill] sm:$0xff] %v8397_v22  ;;  %v8407_v12 = vld [vmem:[%s11172_s13 + $0xd10] sm:$0xff]  ;;  %v8412_v54 = vld [vmem:[%s11172_s13 + $0xd18] sm:$0xff] }
  0xd1   :  { %11573 = vst [vmem:[#allocation389_spill] sm:$0xff] %v8402_v8  ;;  %11574 = vst [vmem:[#allocation390_spill] sm:$0xff] %v8407_v12  ;;  %v8417_v1 = vld [vmem:[%s11172_s13 + $0xd20] sm:$0xff]  ;;  %v8422_v22 = vld [vmem:[%s11172_s13 + $0xd28] sm:$0xff] }
  0xd2   :  { %11575 = vst [vmem:[#allocation391_spill] sm:$0xff] %v8412_v54  ;;  %11576 = vst [vmem:[#allocation392_spill] sm:$0xff] %v8417_v1  ;;  %v8427_v8 = vld [vmem:[%s11172_s13 + $0xd30] sm:$0xff]  ;;  %v8432_v12 = vld [vmem:[%s11172_s13 + $0xd38] sm:$0xff] }
  0xd3   :  { %11577 = vst [vmem:[#allocation393_spill] sm:$0xff] %v8422_v22  ;;  %11578 = vst [vmem:[#allocation394_spill] sm:$0xff] %v8427_v8  ;;  %v8437_v54 = vld [vmem:[%s11172_s13 + $0xd40] sm:$0xff]  ;;  %v8442_v1 = vld [vmem:[%s11172_s13 + $0xd48] sm:$0xff] }
  0xd4   :  { %11579 = vst [vmem:[#allocation395_spill] sm:$0xff] %v8432_v12  ;;  %11580 = vst [vmem:[#allocation396_spill] sm:$0xff] %v8437_v54  ;;  %v8447_v22 = vld [vmem:[%s11172_s13 + $0xd50] sm:$0xff]  ;;  %v8452_v8 = vld [vmem:[%s11172_s13 + $0xd58] sm:$0xff] }
  0xd5   :  { %11581 = vst [vmem:[#allocation397_spill] sm:$0xff] %v8442_v1  ;;  %11582 = vst [vmem:[#allocation398_spill] sm:$0xff] %v8447_v22  ;;  %v8457_v12 = vld [vmem:[%s11172_s13 + $0xd60] sm:$0xff]  ;;  %v8462_v54 = vld [vmem:[%s11172_s13 + $0xd68] sm:$0xff] }
  0xd6   :  { %11583 = vst [vmem:[#allocation399_spill] sm:$0xff] %v8452_v8  ;;  %11584 = vst [vmem:[#allocation400_spill] sm:$0xff] %v8457_v12  ;;  %v8467_v1 = vld [vmem:[%s11172_s13 + $0xd70] sm:$0xff]  ;;  %v8472_v22 = vld [vmem:[%s11172_s13 + $0xd78] sm:$0xff] }
  0xd7   :  { %11585 = vst [vmem:[#allocation401_spill] sm:$0xff] %v8462_v54  ;;  %11586 = vst [vmem:[#allocation402_spill] sm:$0xff] %v8467_v1  ;;  %v8477_v8 = vld [vmem:[%s11172_s13 + $0xd80] sm:$0xff]  ;;  %v8482_v12 = vld [vmem:[%s11172_s13 + $0xd88] sm:$0xff] }
  0xd8   :  { %11587 = vst [vmem:[#allocation403_spill] sm:$0xff] %v8472_v22  ;;  %11588 = vst [vmem:[#allocation404_spill] sm:$0xff] %v8477_v8  ;;  %v8487_v54 = vld [vmem:[%s11172_s13 + $0xd90] sm:$0xff]  ;;  %v8492_v1 = vld [vmem:[%s11172_s13 + $0xd98] sm:$0xff] }
  0xd9   :  { %11589 = vst [vmem:[#allocation405_spill] sm:$0xff] %v8482_v12  ;;  %11590 = vst [vmem:[#allocation406_spill] sm:$0xff] %v8487_v54  ;;  %v8497_v22 = vld [vmem:[%s11172_s13 + $0xda0] sm:$0xff]  ;;  %v8502_v8 = vld [vmem:[%s11172_s13 + $0xda8] sm:$0xff] }
  0xda   :  { %11591 = vst [vmem:[#allocation407_spill] sm:$0xff] %v8492_v1  ;;  %11592 = vst [vmem:[#allocation408_spill] sm:$0xff] %v8497_v22  ;;  %v8507_v12 = vld [vmem:[%s11172_s13 + $0xdb0] sm:$0xff]  ;;  %v8512_v54 = vld [vmem:[%s11172_s13 + $0xdb8] sm:$0xff] }
  0xdb   :  { %11593 = vst [vmem:[#allocation409_spill] sm:$0xff] %v8502_v8  ;;  %11594 = vst [vmem:[#allocation410_spill] sm:$0xff] %v8507_v12  ;;  %v8517_v1 = vld [vmem:[%s11172_s13 + $0xdc0] sm:$0xff]  ;;  %v8522_v22 = vld [vmem:[%s11172_s13 + $0xdc8] sm:$0xff] }
  0xdc   :  { %11595 = vst [vmem:[#allocation411_spill] sm:$0xff] %v8512_v54  ;;  %11596 = vst [vmem:[#allocation412_spill] sm:$0xff] %v8517_v1  ;;  %v8527_v8 = vld [vmem:[%s11172_s13 + $0xdd0] sm:$0xff]  ;;  %v8532_v12 = vld [vmem:[%s11172_s13 + $0xdd8] sm:$0xff] }
  0xdd   :  { %11597 = vst [vmem:[#allocation413_spill] sm:$0xff] %v8522_v22  ;;  %11598 = vst [vmem:[#allocation414_spill] sm:$0xff] %v8527_v8  ;;  %v8537_v54 = vld [vmem:[%s11172_s13 + $0xde0] sm:$0xff]  ;;  %v8542_v1 = vld [vmem:[%s11172_s13 + $0xde8] sm:$0xff] }
  0xde   :  { %11599 = vst [vmem:[#allocation415_spill] sm:$0xff] %v8532_v12  ;;  %11600 = vst [vmem:[#allocation416_spill] sm:$0xff] %v8537_v54  ;;  %v8547_v22 = vld [vmem:[%s11172_s13 + $0xdf0] sm:$0xff]  ;;  %v8552_v8 = vld [vmem:[%s11172_s13 + $0xdf8] sm:$0xff] }
  0xdf   :  { %11601 = vst [vmem:[#allocation417_spill] sm:$0xff] %v8542_v1  ;;  %11602 = vst [vmem:[#allocation418_spill] sm:$0xff] %v8547_v22  ;;  %v8557_v12 = vld [vmem:[%s11172_s13 + $0xe00] sm:$0xff]  ;;  %v8562_v54 = vld [vmem:[%s11172_s13 + $0xe08] sm:$0xff] }
  0xe0   :  { %11603 = vst [vmem:[#allocation419_spill] sm:$0xff] %v8552_v8  ;;  %11604 = vst [vmem:[#allocation420_spill] sm:$0xff] %v8557_v12  ;;  %v8567_v1 = vld [vmem:[%s11172_s13 + $0xe10] sm:$0xff]  ;;  %v8572_v22 = vld [vmem:[%s11172_s13 + $0xe18] sm:$0xff] }
  0xe1   :  { %11605 = vst [vmem:[#allocation421_spill] sm:$0xff] %v8562_v54  ;;  %11606 = vst [vmem:[#allocation422_spill] sm:$0xff] %v8567_v1  ;;  %v8577_v8 = vld [vmem:[%s11172_s13 + $0xe20] sm:$0xff]  ;;  %v8582_v12 = vld [vmem:[%s11172_s13 + $0xe28] sm:$0xff] }
  0xe2   :  { %11607 = vst [vmem:[#allocation423_spill] sm:$0xff] %v8572_v22  ;;  %11608 = vst [vmem:[#allocation424_spill] sm:$0xff] %v8577_v8  ;;  %v8587_v54 = vld [vmem:[%s11172_s13 + $0xe30] sm:$0xff]  ;;  %v8592_v1 = vld [vmem:[%s11172_s13 + $0xe38] sm:$0xff] }
  0xe3   :  { %11609 = vst [vmem:[#allocation425_spill] sm:$0xff] %v8582_v12  ;;  %11610 = vst [vmem:[#allocation426_spill] sm:$0xff] %v8587_v54  ;;  %v8597_v22 = vld [vmem:[%s11172_s13 + $0xe40] sm:$0xff]  ;;  %v8602_v8 = vld [vmem:[%s11172_s13 + $0xe48] sm:$0xff] }
  0xe4   :  { %11611 = vst [vmem:[#allocation427_spill] sm:$0xff] %v8592_v1  ;;  %11612 = vst [vmem:[#allocation428_spill] sm:$0xff] %v8597_v22  ;;  %v8607_v12 = vld [vmem:[%s11172_s13 + $0xe50] sm:$0xff]  ;;  %v8612_v54 = vld [vmem:[%s11172_s13 + $0xe58] sm:$0xff] }
  0xe5   :  { %11613 = vst [vmem:[#allocation429_spill] sm:$0xff] %v8602_v8  ;;  %11614 = vst [vmem:[#allocation430_spill] sm:$0xff] %v8607_v12  ;;  %v8617_v1 = vld [vmem:[%s11172_s13 + $0xe60] sm:$0xff]  ;;  %v8622_v22 = vld [vmem:[%s11172_s13 + $0xe68] sm:$0xff] }
  0xe6   :  { %11615 = vst [vmem:[#allocation431_spill] sm:$0xff] %v8612_v54  ;;  %11616 = vst [vmem:[#allocation432_spill] sm:$0xff] %v8617_v1  ;;  %v8627_v8 = vld [vmem:[%s11172_s13 + $0xe70] sm:$0xff]  ;;  %v8632_v12 = vld [vmem:[%s11172_s13 + $0xe78] sm:$0xff] }
  0xe7   :  { %11617 = vst [vmem:[#allocation433_spill] sm:$0xff] %v8622_v22  ;;  %11618 = vst [vmem:[#allocation434_spill] sm:$0xff] %v8627_v8  ;;  %v8637_v54 = vld [vmem:[%s11172_s13 + $0xe80] sm:$0xff]  ;;  %v8642_v1 = vld [vmem:[%s11172_s13 + $0xe88] sm:$0xff] }
  0xe8   :  { %11619 = vst [vmem:[#allocation435_spill] sm:$0xff] %v8632_v12  ;;  %11620 = vst [vmem:[#allocation436_spill] sm:$0xff] %v8637_v54  ;;  %v8647_v22 = vld [vmem:[%s11172_s13 + $0xe90] sm:$0xff]  ;;  %v8652_v8 = vld [vmem:[%s11172_s13 + $0xe98] sm:$0xff] }
  0xe9   :  { %11621 = vst [vmem:[#allocation437_spill] sm:$0xff] %v8642_v1  ;;  %11622 = vst [vmem:[#allocation438_spill] sm:$0xff] %v8647_v22  ;;  %v8657_v12 = vld [vmem:[%s11172_s13 + $0xea0] sm:$0xff]  ;;  %v8662_v54 = vld [vmem:[%s11172_s13 + $0xea8] sm:$0xff] }
  0xea   :  { %11623 = vst [vmem:[#allocation439_spill] sm:$0xff] %v8652_v8  ;;  %11624 = vst [vmem:[#allocation440_spill] sm:$0xff] %v8657_v12  ;;  %v8667_v1 = vld [vmem:[%s11172_s13 + $0xeb0] sm:$0xff]  ;;  %v8672_v22 = vld [vmem:[%s11172_s13 + $0xeb8] sm:$0xff] }
  0xeb   :  { %11625 = vst [vmem:[#allocation441_spill] sm:$0xff] %v8662_v54  ;;  %11626 = vst [vmem:[#allocation442_spill] sm:$0xff] %v8667_v1  ;;  %v8677_v8 = vld [vmem:[%s11172_s13 + $0xec0] sm:$0xff]  ;;  %v8682_v12 = vld [vmem:[%s11172_s13 + $0xec8] sm:$0xff] }
  0xec   :  { %11627 = vst [vmem:[#allocation443_spill] sm:$0xff] %v8672_v22  ;;  %11628 = vst [vmem:[#allocation444_spill] sm:$0xff] %v8677_v8  ;;  %v8687_v54 = vld [vmem:[%s11172_s13 + $0xed0] sm:$0xff]  ;;  %v8692_v1 = vld [vmem:[%s11172_s13 + $0xed8] sm:$0xff] }
  0xed   :  { %11629 = vst [vmem:[#allocation445_spill] sm:$0xff] %v8682_v12  ;;  %11630 = vst [vmem:[#allocation446_spill] sm:$0xff] %v8687_v54  ;;  %v8697_v22 = vld [vmem:[%s11172_s13 + $0xee0] sm:$0xff]  ;;  %v8702_v8 = vld [vmem:[%s11172_s13 + $0xee8] sm:$0xff] }
  0xee   :  { %11631 = vst [vmem:[#allocation447_spill] sm:$0xff] %v8692_v1  ;;  %11632 = vst [vmem:[#allocation448_spill] sm:$0xff] %v8697_v22  ;;  %v8707_v12 = vld [vmem:[%s11172_s13 + $0xef0] sm:$0xff]  ;;  %v8712_v54 = vld [vmem:[%s11172_s13 + $0xef8] sm:$0xff] }
  0xef   :  { %11633 = vst [vmem:[#allocation449_spill] sm:$0xff] %v8702_v8  ;;  %11634 = vst [vmem:[#allocation450_spill] sm:$0xff] %v8707_v12  ;;  %v8717_v1 = vld [vmem:[%s11172_s13 + $0xf00] sm:$0xff]  ;;  %v8722_v22 = vld [vmem:[%s11172_s13 + $0xf08] sm:$0xff] }
  0xf0   :  { %11635 = vst [vmem:[#allocation451_spill] sm:$0xff] %v8712_v54  ;;  %11636 = vst [vmem:[#allocation452_spill] sm:$0xff] %v8717_v1  ;;  %v8727_v8 = vld [vmem:[%s11172_s13 + $0xf10] sm:$0xff]  ;;  %v8732_v12 = vld [vmem:[%s11172_s13 + $0xf18] sm:$0xff] }
  0xf1   :  { %11637 = vst [vmem:[#allocation453_spill] sm:$0xff] %v8722_v22  ;;  %11638 = vst [vmem:[#allocation454_spill] sm:$0xff] %v8727_v8  ;;  %v8737_v54 = vld [vmem:[%s11172_s13 + $0xf20] sm:$0xff]  ;;  %v8742_v1 = vld [vmem:[%s11172_s13 + $0xf28] sm:$0xff] }
  0xf2   :  { %11639 = vst [vmem:[#allocation455_spill] sm:$0xff] %v8732_v12  ;;  %11640 = vst [vmem:[#allocation456_spill] sm:$0xff] %v8737_v54  ;;  %v8747_v22 = vld [vmem:[%s11172_s13 + $0xf30] sm:$0xff]  ;;  %v8752_v8 = vld [vmem:[%s11172_s13 + $0xf38] sm:$0xff] }
  0xf3   :  { %11641 = vst [vmem:[#allocation457_spill] sm:$0xff] %v8742_v1  ;;  %11642 = vst [vmem:[#allocation458_spill] sm:$0xff] %v8747_v22  ;;  %v8757_v12 = vld [vmem:[%s11172_s13 + $0xf40] sm:$0xff]  ;;  %v8762_v54 = vld [vmem:[%s11172_s13 + $0xf48] sm:$0xff] }
  0xf4   :  { %11643 = vst [vmem:[#allocation459_spill] sm:$0xff] %v8752_v8  ;;  %11644 = vst [vmem:[#allocation460_spill] sm:$0xff] %v8757_v12  ;;  %v8767_v1 = vld [vmem:[%s11172_s13 + $0xf50] sm:$0xff]  ;;  %v8772_v22 = vld [vmem:[%s11172_s13 + $0xf58] sm:$0xff] }
  0xf5   :  { %11645 = vst [vmem:[#allocation461_spill] sm:$0xff] %v8762_v54  ;;  %11646 = vst [vmem:[#allocation462_spill] sm:$0xff] %v8767_v1  ;;  %v8777_v8 = vld [vmem:[%s11172_s13 + $0xf60] sm:$0xff]  ;;  %v8782_v12 = vld [vmem:[%s11172_s13 + $0xf68] sm:$0xff] }
  0xf6   :  { %11647 = vst [vmem:[#allocation463_spill] sm:$0xff] %v8772_v22  ;;  %11648 = vst [vmem:[#allocation464_spill] sm:$0xff] %v8777_v8  ;;  %v8787_v54 = vld [vmem:[%s11172_s13 + $0xf70] sm:$0xff]  ;;  %v8792_v1 = vld [vmem:[%s11172_s13 + $0xf78] sm:$0xff] }
  0xf7   :  { %11649 = vst [vmem:[#allocation465_spill] sm:$0xff] %v8782_v12  ;;  %11650 = vst [vmem:[#allocation466_spill] sm:$0xff] %v8787_v54  ;;  %v8797_v22 = vld [vmem:[%s11172_s13 + $0xf80] sm:$0xff]  ;;  %v8802_v8 = vld [vmem:[%s11172_s13 + $0xf88] sm:$0xff] }
  0xf8   :  { %11651 = vst [vmem:[#allocation467_spill] sm:$0xff] %v8792_v1  ;;  %11652 = vst [vmem:[#allocation468_spill] sm:$0xff] %v8797_v22  ;;  %v8807_v12 = vld [vmem:[%s11172_s13 + $0xf90] sm:$0xff]  ;;  %v8812_v54 = vld [vmem:[%s11172_s13 + $0xf98] sm:$0xff] }
  0xf9   :  { %11653 = vst [vmem:[#allocation469_spill] sm:$0xff] %v8802_v8  ;;  %11654 = vst [vmem:[#allocation470_spill] sm:$0xff] %v8807_v12  ;;  %v8817_v1 = vld [vmem:[%s11172_s13 + $0xfa0] sm:$0xff]  ;;  %v8822_v22 = vld [vmem:[%s11172_s13 + $0xfa8] sm:$0xff] }
  0xfa   :  { %11655 = vst [vmem:[#allocation471_spill] sm:$0xff] %v8812_v54  ;;  %11656 = vst [vmem:[#allocation472_spill] sm:$0xff] %v8817_v1  ;;  %v8827_v8 = vld [vmem:[%s11172_s13 + $0xfb0] sm:$0xff]  ;;  %v8832_v12 = vld [vmem:[%s11172_s13 + $0xfb8] sm:$0xff] }
  0xfb   :  { %11657 = vst [vmem:[#allocation473_spill] sm:$0xff] %v8822_v22  ;;  %11658 = vst [vmem:[#allocation474_spill] sm:$0xff] %v8827_v8  ;;  %v8837_v54 = vld [vmem:[%s11172_s13 + $0xfc0] sm:$0xff]  ;;  %v8842_v1 = vld [vmem:[%s11172_s13 + $0xfc8] sm:$0xff] }
  0xfc   :  { %11659 = vst [vmem:[#allocation475_spill] sm:$0xff] %v8832_v12  ;;  %11660 = vst [vmem:[#allocation476_spill] sm:$0xff] %v8837_v54  ;;  %v8847_v22 = vld [vmem:[%s11172_s13 + $0xfd0] sm:$0xff]  ;;  %v8852_v8 = vld [vmem:[%s11172_s13 + $0xfd8] sm:$0xff] }
  0xfd   :  { %11661 = vst [vmem:[#allocation477_spill] sm:$0xff] %v8842_v1  ;;  %11662 = vst [vmem:[#allocation478_spill] sm:$0xff] %v8847_v22  ;;  %v8857_v12 = vld [vmem:[%s11172_s13 + $0xfe0] sm:$0xff]  ;;  %v8862_v54 = vld [vmem:[%s11172_s13 + $0xfe8] sm:$0xff] }
  0xfe   :  { %11663 = vst [vmem:[#allocation479_spill] sm:$0xff] %v8852_v8  ;;  %11664 = vst [vmem:[#allocation480_spill] sm:$0xff] %v8857_v12  ;;  %v8867_v1 = vld [vmem:[%s11172_s13 + $0xff0] sm:$0xff]  ;;  %v8872_v22 = vld [vmem:[%s11172_s13 + $0xff8] sm:$0xff] }
  0xff   :  { %11665 = vst [vmem:[#allocation481_spill] sm:$0xff] %v8862_v54  ;;  %11666 = vst [vmem:[#allocation482_spill] sm:$0xff] %v8867_v1  ;;  %v8877_v8 = vld [vmem:[%s11172_s13 + $0x1000] sm:$0xff]  ;;  %v8882_v12 = vld [vmem:[%s11172_s13 + $0x1008] sm:$0xff] }
 0x100   :  { %11667 = vst [vmem:[#allocation483_spill] sm:$0xff] %v8872_v22  ;;  %11668 = vst [vmem:[#allocation484_spill] sm:$0xff] %v8877_v8  ;;  %v8887_v54 = vld [vmem:[%s11172_s13 + $0x1010] sm:$0xff]  ;;  %v8892_v1 = vld [vmem:[%s11172_s13 + $0x1018] sm:$0xff] }
 0x101   :  { %11669 = vst [vmem:[#allocation485_spill] sm:$0xff] %v8882_v12  ;;  %11670 = vst [vmem:[#allocation486_spill] sm:$0xff] %v8887_v54  ;;  %v8897_v22 = vld [vmem:[%s11172_s13 + $0x1020] sm:$0xff]  ;;  %v8902_v8 = vld [vmem:[%s11172_s13 + $0x1028] sm:$0xff] }
 0x102   :  { %11671 = vst [vmem:[#allocation487_spill] sm:$0xff] %v8892_v1  ;;  %11672 = vst [vmem:[#allocation488_spill] sm:$0xff] %v8897_v22  ;;  %v8907_v12 = vld [vmem:[%s11172_s13 + $0x1030] sm:$0xff]  ;;  %v8912_v54 = vld [vmem:[%s11172_s13 + $0x1038] sm:$0xff] }
 0x103   :  { %11673 = vst [vmem:[#allocation489_spill] sm:$0xff] %v8902_v8  ;;  %11674 = vst [vmem:[#allocation490_spill] sm:$0xff] %v8907_v12  ;;  %v8917_v1 = vld [vmem:[%s11172_s13 + $0x1040] sm:$0xff]  ;;  %v8922_v22 = vld [vmem:[%s11172_s13 + $0x1048] sm:$0xff] }
 0x104   :  { %11675 = vst [vmem:[#allocation491_spill] sm:$0xff] %v8912_v54  ;;  %11676 = vst [vmem:[#allocation492_spill] sm:$0xff] %v8917_v1  ;;  %v8927_v8 = vld [vmem:[%s11172_s13 + $0x1050] sm:$0xff]  ;;  %v8932_v12 = vld [vmem:[%s11172_s13 + $0x1058] sm:$0xff] }
 0x105   :  { %11677 = vst [vmem:[#allocation493_spill] sm:$0xff] %v8922_v22  ;;  %11678 = vst [vmem:[#allocation494_spill] sm:$0xff] %v8927_v8  ;;  %v8937_v54 = vld [vmem:[%s11172_s13 + $0x1060] sm:$0xff]  ;;  %v8942_v1 = vld [vmem:[%s11172_s13 + $0x1068] sm:$0xff] }
 0x106   :  { %11679 = vst [vmem:[#allocation495_spill] sm:$0xff] %v8932_v12  ;;  %11680 = vst [vmem:[#allocation496_spill] sm:$0xff] %v8937_v54  ;;  %v8947_v22 = vld [vmem:[%s11172_s13 + $0x1070] sm:$0xff]  ;;  %v8952_v8 = vld [vmem:[%s11172_s13 + $0x1078] sm:$0xff] }
 0x107   :  { %11681 = vst [vmem:[#allocation497_spill] sm:$0xff] %v8942_v1  ;;  %11682 = vst [vmem:[#allocation498_spill] sm:$0xff] %v8947_v22  ;;  %v8957_v12 = vld [vmem:[%s11172_s13 + $0x1080] sm:$0xff]  ;;  %v8962_v54 = vld [vmem:[%s11172_s13 + $0x1088] sm:$0xff] }
 0x108   :  { %11683 = vst [vmem:[#allocation499_spill] sm:$0xff] %v8952_v8  ;;  %11684 = vst [vmem:[#allocation500_spill] sm:$0xff] %v8957_v12  ;;  %v8967_v1 = vld [vmem:[%s11172_s13 + $0x1090] sm:$0xff]  ;;  %v8972_v22 = vld [vmem:[%s11172_s13 + $0x1098] sm:$0xff] }
 0x109   :  { %11685 = vst [vmem:[#allocation501_spill] sm:$0xff] %v8962_v54  ;;  %11686 = vst [vmem:[#allocation502_spill] sm:$0xff] %v8967_v1  ;;  %v8977_v8 = vld [vmem:[%s11172_s13 + $0x10a0] sm:$0xff]  ;;  %v8982_v12 = vld [vmem:[%s11172_s13 + $0x10a8] sm:$0xff] }
 0x10a   :  { %11687 = vst [vmem:[#allocation503_spill] sm:$0xff] %v8972_v22  ;;  %11688 = vst [vmem:[#allocation504_spill] sm:$0xff] %v8977_v8  ;;  %v8987_v54 = vld [vmem:[%s11172_s13 + $0x10b0] sm:$0xff]  ;;  %v8992_v1 = vld [vmem:[%s11172_s13 + $0x10b8] sm:$0xff] }
 0x10b   :  { %11689 = vst [vmem:[#allocation505_spill] sm:$0xff] %v8982_v12  ;;  %11690 = vst [vmem:[#allocation506_spill] sm:$0xff] %v8987_v54  ;;  %v8997_v22 = vld [vmem:[%s11172_s13 + $0x10c0] sm:$0xff]  ;;  %v9002_v8 = vld [vmem:[%s11172_s13 + $0x10c8] sm:$0xff] }
 0x10c   :  { %11691 = vst [vmem:[#allocation507_spill] sm:$0xff] %v8992_v1  ;;  %11692 = vst [vmem:[#allocation508_spill] sm:$0xff] %v8997_v22  ;;  %v9007_v12 = vld [vmem:[%s11172_s13 + $0x10d0] sm:$0xff]  ;;  %v9012_v54 = vld [vmem:[%s11172_s13 + $0x10d8] sm:$0xff] }
 0x10d   :  { %11693 = vst [vmem:[#allocation509_spill] sm:$0xff] %v9002_v8  ;;  %11694 = vst [vmem:[#allocation510_spill] sm:$0xff] %v9007_v12  ;;  %v9017_v1 = vld [vmem:[%s11172_s13 + $0x10e0] sm:$0xff]  ;;  %v9022_v22 = vld [vmem:[%s11172_s13 + $0x10e8] sm:$0xff] }
 0x10e   :  { %11695 = vst [vmem:[#allocation511_spill] sm:$0xff] %v9012_v54  ;;  %11696 = vst [vmem:[#allocation512_spill] sm:$0xff] %v9017_v1  ;;  %v9027_v8 = vld [vmem:[%s11172_s13 + $0x10f0] sm:$0xff]  ;;  %v9032_v12 = vld [vmem:[%s11172_s13 + $0x10f8] sm:$0xff] }
 0x10f   :  { %11697 = vst [vmem:[#allocation513_spill] sm:$0xff] %v9022_v22  ;;  %11698 = vst [vmem:[#allocation514_spill] sm:$0xff] %v9027_v8  ;;  %v9037_v54 = vld [vmem:[%s11172_s13 + $0x1100] sm:$0xff]  ;;  %v9042_v1 = vld [vmem:[%s11172_s13 + $0x1108] sm:$0xff] }
 0x110   :  { %11699 = vst [vmem:[#allocation515_spill] sm:$0xff] %v9032_v12  ;;  %11700 = vst [vmem:[#allocation516_spill] sm:$0xff] %v9037_v54  ;;  %v9047_v22 = vld [vmem:[%s11172_s13 + $0x1110] sm:$0xff]  ;;  %v9052_v8 = vld [vmem:[%s11172_s13 + $0x1118] sm:$0xff] }
 0x111   :  { %11701 = vst [vmem:[#allocation517_spill] sm:$0xff] %v9042_v1  ;;  %11702 = vst [vmem:[#allocation518_spill] sm:$0xff] %v9047_v22  ;;  %v9057_v12 = vld [vmem:[%s11172_s13 + $0x1120] sm:$0xff]  ;;  %v9062_v54 = vld [vmem:[%s11172_s13 + $0x1128] sm:$0xff] }
 0x112   :  { %11703 = vst [vmem:[#allocation519_spill] sm:$0xff] %v9052_v8  ;;  %11704 = vst [vmem:[#allocation520_spill] sm:$0xff] %v9057_v12  ;;  %v9067_v1 = vld [vmem:[%s11172_s13 + $0x1130] sm:$0xff]  ;;  %v9072_v22 = vld [vmem:[%s11172_s13 + $0x1138] sm:$0xff] }
 0x113   :  { %11705 = vst [vmem:[#allocation521_spill] sm:$0xff] %v9062_v54  ;;  %11706 = vst [vmem:[#allocation522_spill] sm:$0xff] %v9067_v1  ;;  %v9077_v8 = vld [vmem:[%s11172_s13 + $0x1140] sm:$0xff]  ;;  %v9082_v12 = vld [vmem:[%s11172_s13 + $0x1148] sm:$0xff] }
 0x114   :  { %11707 = vst [vmem:[#allocation523_spill] sm:$0xff] %v9072_v22  ;;  %11708 = vst [vmem:[#allocation524_spill] sm:$0xff] %v9077_v8  ;;  %v9087_v54 = vld [vmem:[%s11172_s13 + $0x1150] sm:$0xff]  ;;  %v9092_v1 = vld [vmem:[%s11172_s13 + $0x1158] sm:$0xff] }
 0x115   :  { %11709 = vst [vmem:[#allocation525_spill] sm:$0xff] %v9082_v12  ;;  %11710 = vst [vmem:[#allocation526_spill] sm:$0xff] %v9087_v54  ;;  %v9097_v22 = vld [vmem:[%s11172_s13 + $0x1160] sm:$0xff]  ;;  %v9102_v8 = vld [vmem:[%s11172_s13 + $0x1168] sm:$0xff] }
 0x116   :  { %11711 = vst [vmem:[#allocation527_spill] sm:$0xff] %v9092_v1  ;;  %11712 = vst [vmem:[#allocation528_spill] sm:$0xff] %v9097_v22  ;;  %v9107_v12 = vld [vmem:[%s11172_s13 + $0x1170] sm:$0xff]  ;;  %v9112_v54 = vld [vmem:[%s11172_s13 + $0x1178] sm:$0xff] }
 0x117   :  { %11713 = vst [vmem:[#allocation529_spill] sm:$0xff] %v9102_v8  ;;  %11714 = vst [vmem:[#allocation530_spill] sm:$0xff] %v9107_v12  ;;  %v9117_v1 = vld [vmem:[%s11172_s13 + $0x1180] sm:$0xff]  ;;  %v9122_v22 = vld [vmem:[%s11172_s13 + $0x1188] sm:$0xff] }
 0x118   :  { %11715 = vst [vmem:[#allocation531_spill] sm:$0xff] %v9112_v54  ;;  %11716 = vst [vmem:[#allocation532_spill] sm:$0xff] %v9117_v1  ;;  %v9127_v8 = vld [vmem:[%s11172_s13 + $0x1190] sm:$0xff]  ;;  %v9132_v12 = vld [vmem:[%s11172_s13 + $0x1198] sm:$0xff] }
 0x119   :  { %11717 = vst [vmem:[#allocation533_spill] sm:$0xff] %v9122_v22  ;;  %11718 = vst [vmem:[#allocation534_spill] sm:$0xff] %v9127_v8  ;;  %v9137_v54 = vld [vmem:[%s11172_s13 + $0x11a0] sm:$0xff]  ;;  %v9142_v1 = vld [vmem:[%s11172_s13 + $0x11a8] sm:$0xff] }
 0x11a   :  { %11719 = vst [vmem:[#allocation535_spill] sm:$0xff] %v9132_v12  ;;  %11720 = vst [vmem:[#allocation536_spill] sm:$0xff] %v9137_v54  ;;  %v9147_v22 = vld [vmem:[%s11172_s13 + $0x11b0] sm:$0xff]  ;;  %v9152_v8 = vld [vmem:[%s11172_s13 + $0x11b8] sm:$0xff] }
 0x11b   :  { %11721 = vst [vmem:[#allocation537_spill] sm:$0xff] %v9142_v1  ;;  %11722 = vst [vmem:[#allocation538_spill] sm:$0xff] %v9147_v22  ;;  %v9157_v12 = vld [vmem:[%s11172_s13 + $0x11c0] sm:$0xff]  ;;  %v9162_v54 = vld [vmem:[%s11172_s13 + $0x11c8] sm:$0xff] }
 0x11c   :  { %11723 = vst [vmem:[#allocation539_spill] sm:$0xff] %v9152_v8  ;;  %11724 = vst [vmem:[#allocation540_spill] sm:$0xff] %v9157_v12  ;;  %v9167_v1 = vld [vmem:[%s11172_s13 + $0x11d0] sm:$0xff]  ;;  %v9172_v22 = vld [vmem:[%s11172_s13 + $0x11d8] sm:$0xff] }
 0x11d   :  { %11725 = vst [vmem:[#allocation541_spill] sm:$0xff] %v9162_v54  ;;  %11726 = vst [vmem:[#allocation542_spill] sm:$0xff] %v9167_v1  ;;  %v9177_v8 = vld [vmem:[%s11172_s13 + $0x11e0] sm:$0xff]  ;;  %v9182_v12 = vld [vmem:[%s11172_s13 + $0x11e8] sm:$0xff] }
 0x11e   :  { %11727 = vst [vmem:[#allocation543_spill] sm:$0xff] %v9172_v22  ;;  %11728 = vst [vmem:[#allocation544_spill] sm:$0xff] %v9177_v8  ;;  %v9187_v54 = vld [vmem:[%s11172_s13 + $0x11f0] sm:$0xff]  ;;  %v9192_v1 = vld [vmem:[%s11172_s13 + $0x11f8] sm:$0xff] }
 0x11f   :  { %11729 = vst [vmem:[#allocation545_spill] sm:$0xff] %v9182_v12  ;;  %11730 = vst [vmem:[#allocation546_spill] sm:$0xff] %v9187_v54  ;;  %v9197_v22 = vld [vmem:[%s11172_s13 + $0x1200] sm:$0xff]  ;;  %v9202_v8 = vld [vmem:[%s11172_s13 + $0x1208] sm:$0xff] }
 0x120   :  { %11731 = vst [vmem:[#allocation547_spill] sm:$0xff] %v9192_v1  ;;  %11732 = vst [vmem:[#allocation548_spill] sm:$0xff] %v9197_v22  ;;  %v9207_v12 = vld [vmem:[%s11172_s13 + $0x1210] sm:$0xff]  ;;  %v9212_v54 = vld [vmem:[%s11172_s13 + $0x1218] sm:$0xff] }
 0x121   :  { %11733 = vst [vmem:[#allocation549_spill] sm:$0xff] %v9202_v8  ;;  %11734 = vst [vmem:[#allocation550_spill] sm:$0xff] %v9207_v12  ;;  %v9217_v1 = vld [vmem:[%s11172_s13 + $0x1220] sm:$0xff]  ;;  %v9222_v22 = vld [vmem:[%s11172_s13 + $0x1228] sm:$0xff] }
 0x122   :  { %11735 = vst [vmem:[#allocation551_spill] sm:$0xff] %v9212_v54  ;;  %11736 = vst [vmem:[#allocation552_spill] sm:$0xff] %v9217_v1  ;;  %v9227_v8 = vld [vmem:[%s11172_s13 + $0x1230] sm:$0xff]  ;;  %v9232_v12 = vld [vmem:[%s11172_s13 + $0x1238] sm:$0xff] }
 0x123   :  { %11737 = vst [vmem:[#allocation553_spill] sm:$0xff] %v9222_v22  ;;  %11738 = vst [vmem:[#allocation554_spill] sm:$0xff] %v9227_v8  ;;  %v9237_v54 = vld [vmem:[%s11172_s13 + $0x1240] sm:$0xff]  ;;  %v9242_v1 = vld [vmem:[%s11172_s13 + $0x1248] sm:$0xff] }
 0x124   :  { %11739 = vst [vmem:[#allocation555_spill] sm:$0xff] %v9232_v12  ;;  %11740 = vst [vmem:[#allocation556_spill] sm:$0xff] %v9237_v54  ;;  %v9247_v22 = vld [vmem:[%s11172_s13 + $0x1250] sm:$0xff]  ;;  %v9252_v8 = vld [vmem:[%s11172_s13 + $0x1258] sm:$0xff] }
 0x125   :  { %11741 = vst [vmem:[#allocation557_spill] sm:$0xff] %v9242_v1  ;;  %11742 = vst [vmem:[#allocation558_spill] sm:$0xff] %v9247_v22  ;;  %v9257_v12 = vld [vmem:[%s11172_s13 + $0x1260] sm:$0xff]  ;;  %v9262_v54 = vld [vmem:[%s11172_s13 + $0x1268] sm:$0xff] }
 0x126   :  { %11743 = vst [vmem:[#allocation559_spill] sm:$0xff] %v9252_v8  ;;  %11744 = vst [vmem:[#allocation560_spill] sm:$0xff] %v9257_v12  ;;  %v9267_v1 = vld [vmem:[%s11172_s13 + $0x1270] sm:$0xff]  ;;  %v9272_v22 = vld [vmem:[%s11172_s13 + $0x1278] sm:$0xff] }
 0x127   :  { %11745 = vst [vmem:[#allocation561_spill] sm:$0xff] %v9262_v54  ;;  %11746 = vst [vmem:[#allocation562_spill] sm:$0xff] %v9267_v1  ;;  %v9277_v8 = vld [vmem:[%s11172_s13 + $0x1280] sm:$0xff]  ;;  %v9282_v12 = vld [vmem:[%s11172_s13 + $0x1288] sm:$0xff] }
 0x128   :  { %11747 = vst [vmem:[#allocation563_spill] sm:$0xff] %v9272_v22  ;;  %11748 = vst [vmem:[#allocation564_spill] sm:$0xff] %v9277_v8  ;;  %v9287_v54 = vld [vmem:[%s11172_s13 + $0x1290] sm:$0xff]  ;;  %v9292_v1 = vld [vmem:[%s11172_s13 + $0x1298] sm:$0xff] }
 0x129   :  { %11749 = vst [vmem:[#allocation565_spill] sm:$0xff] %v9282_v12  ;;  %11750 = vst [vmem:[#allocation566_spill] sm:$0xff] %v9287_v54  ;;  %v9297_v22 = vld [vmem:[%s11172_s13 + $0x12a0] sm:$0xff]  ;;  %v9302_v8 = vld [vmem:[%s11172_s13 + $0x12a8] sm:$0xff] }
 0x12a   :  { %11751 = vst [vmem:[#allocation567_spill] sm:$0xff] %v9292_v1  ;;  %11752 = vst [vmem:[#allocation568_spill] sm:$0xff] %v9297_v22  ;;  %v9307_v12 = vld [vmem:[%s11172_s13 + $0x12b0] sm:$0xff]  ;;  %v9312_v54 = vld [vmem:[%s11172_s13 + $0x12b8] sm:$0xff] }
 0x12b   :  { %11753 = vst [vmem:[#allocation569_spill] sm:$0xff] %v9302_v8  ;;  %11754 = vst [vmem:[#allocation570_spill] sm:$0xff] %v9307_v12  ;;  %v9317_v1 = vld [vmem:[%s11172_s13 + $0x12c0] sm:$0xff]  ;;  %v9322_v22 = vld [vmem:[%s11172_s13 + $0x12c8] sm:$0xff] }
 0x12c   :  { %11755 = vst [vmem:[#allocation571_spill] sm:$0xff] %v9312_v54  ;;  %11756 = vst [vmem:[#allocation572_spill] sm:$0xff] %v9317_v1  ;;  %v9327_v8 = vld [vmem:[%s11172_s13 + $0x12d0] sm:$0xff]  ;;  %v9332_v12 = vld [vmem:[%s11172_s13 + $0x12d8] sm:$0xff] }
 0x12d   :  { %11757 = vst [vmem:[#allocation573_spill] sm:$0xff] %v9322_v22  ;;  %11758 = vst [vmem:[#allocation574_spill] sm:$0xff] %v9327_v8  ;;  %v9337_v54 = vld [vmem:[%s11172_s13 + $0x12e0] sm:$0xff]  ;;  %v9342_v1 = vld [vmem:[%s11172_s13 + $0x12e8] sm:$0xff] }
 0x12e   :  { %11759 = vst [vmem:[#allocation575_spill] sm:$0xff] %v9332_v12  ;;  %11760 = vst [vmem:[#allocation576_spill] sm:$0xff] %v9337_v54  ;;  %v9347_v22 = vld [vmem:[%s11172_s13 + $0x12f0] sm:$0xff]  ;;  %v9352_v8 = vld [vmem:[%s11172_s13 + $0x12f8] sm:$0xff] }
 0x12f   :  { %11761 = vst [vmem:[#allocation577_spill] sm:$0xff] %v9342_v1  ;;  %11762 = vst [vmem:[#allocation578_spill] sm:$0xff] %v9347_v22  ;;  %v9357_v12 = vld [vmem:[%s11172_s13 + $0x1300] sm:$0xff]  ;;  %v9362_v54 = vld [vmem:[%s11172_s13 + $0x1308] sm:$0xff] }
 0x130   :  { %11763 = vst [vmem:[#allocation579_spill] sm:$0xff] %v9352_v8  ;;  %11764 = vst [vmem:[#allocation580_spill] sm:$0xff] %v9357_v12  ;;  %v9367_v1 = vld [vmem:[%s11172_s13 + $0x1310] sm:$0xff]  ;;  %v9372_v22 = vld [vmem:[%s11172_s13 + $0x1318] sm:$0xff] }
 0x131   :  { %11765 = vst [vmem:[#allocation581_spill] sm:$0xff] %v9362_v54  ;;  %11766 = vst [vmem:[#allocation582_spill] sm:$0xff] %v9367_v1  ;;  %v9377_v8 = vld [vmem:[%s11172_s13 + $0x1320] sm:$0xff]  ;;  %v9382_v12 = vld [vmem:[%s11172_s13 + $0x1328] sm:$0xff] }
 0x132   :  { %11767 = vst [vmem:[#allocation583_spill] sm:$0xff] %v9372_v22  ;;  %11768 = vst [vmem:[#allocation584_spill] sm:$0xff] %v9377_v8  ;;  %v9387_v54 = vld [vmem:[%s11172_s13 + $0x1330] sm:$0xff]  ;;  %v9392_v1 = vld [vmem:[%s11172_s13 + $0x1338] sm:$0xff] }
 0x133   :  { %11769 = vst [vmem:[#allocation585_spill] sm:$0xff] %v9382_v12  ;;  %11770 = vst [vmem:[#allocation586_spill] sm:$0xff] %v9387_v54  ;;  %v9397_v22 = vld [vmem:[%s11172_s13 + $0x1340] sm:$0xff]  ;;  %v9402_v8 = vld [vmem:[%s11172_s13 + $0x1348] sm:$0xff] }
 0x134   :  { %11771 = vst [vmem:[#allocation587_spill] sm:$0xff] %v9392_v1  ;;  %11772 = vst [vmem:[#allocation588_spill] sm:$0xff] %v9397_v22  ;;  %v9407_v12 = vld [vmem:[%s11172_s13 + $0x1350] sm:$0xff]  ;;  %v9412_v54 = vld [vmem:[%s11172_s13 + $0x1358] sm:$0xff] }
 0x135   :  { %11773 = vst [vmem:[#allocation589_spill] sm:$0xff] %v9402_v8  ;;  %11774 = vst [vmem:[#allocation590_spill] sm:$0xff] %v9407_v12  ;;  %v9417_v1 = vld [vmem:[%s11172_s13 + $0x1360] sm:$0xff]  ;;  %v9422_v22 = vld [vmem:[%s11172_s13 + $0x1368] sm:$0xff] }
 0x136   :  { %11775 = vst [vmem:[#allocation591_spill] sm:$0xff] %v9412_v54  ;;  %11776 = vst [vmem:[#allocation592_spill] sm:$0xff] %v9417_v1  ;;  %v9427_v8 = vld [vmem:[%s11172_s13 + $0x1370] sm:$0xff]  ;;  %v9432_v12 = vld [vmem:[%s11172_s13 + $0x1378] sm:$0xff] }
 0x137   :  { %11777 = vst [vmem:[#allocation593_spill] sm:$0xff] %v9422_v22  ;;  %11778 = vst [vmem:[#allocation594_spill] sm:$0xff] %v9427_v8  ;;  %v9437_v54 = vld [vmem:[%s11172_s13 + $0x1380] sm:$0xff]  ;;  %v9442_v1 = vld [vmem:[%s11172_s13 + $0x1388] sm:$0xff] }
 0x138   :  { %11779 = vst [vmem:[#allocation595_spill] sm:$0xff] %v9432_v12  ;;  %11780 = vst [vmem:[#allocation596_spill] sm:$0xff] %v9437_v54  ;;  %v9447_v22 = vld [vmem:[%s11172_s13 + $0x1390] sm:$0xff]  ;;  %v9452_v8 = vld [vmem:[%s11172_s13 + $0x1398] sm:$0xff] }
 0x139   :  { %11781 = vst [vmem:[#allocation597_spill] sm:$0xff] %v9442_v1  ;;  %11782 = vst [vmem:[#allocation598_spill] sm:$0xff] %v9447_v22  ;;  %v9457_v12 = vld [vmem:[%s11172_s13 + $0x13a0] sm:$0xff]  ;;  %v9462_v54 = vld [vmem:[%s11172_s13 + $0x13a8] sm:$0xff] }
 0x13a   :  { %11783 = vst [vmem:[#allocation599_spill] sm:$0xff] %v9452_v8  ;;  %11784 = vst [vmem:[#allocation600_spill] sm:$0xff] %v9457_v12  ;;  %v9467_v1 = vld [vmem:[%s11172_s13 + $0x13b0] sm:$0xff]  ;;  %v9472_v22 = vld [vmem:[%s11172_s13 + $0x13b8] sm:$0xff] }
 0x13b   :  { %11785 = vst [vmem:[#allocation601_spill] sm:$0xff] %v9462_v54  ;;  %11786 = vst [vmem:[#allocation602_spill] sm:$0xff] %v9467_v1  ;;  %v9477_v8 = vld [vmem:[%s11172_s13 + $0x13c0] sm:$0xff]  ;;  %v9482_v12 = vld [vmem:[%s11172_s13 + $0x13c8] sm:$0xff] }
 0x13c   :  { %11787 = vst [vmem:[#allocation603_spill] sm:$0xff] %v9472_v22  ;;  %11788 = vst [vmem:[#allocation604_spill] sm:$0xff] %v9477_v8  ;;  %v9487_v54 = vld [vmem:[%s11172_s13 + $0x13d0] sm:$0xff]  ;;  %v9492_v1 = vld [vmem:[%s11172_s13 + $0x13d8] sm:$0xff] }
 0x13d   :  { %11789 = vst [vmem:[#allocation605_spill] sm:$0xff] %v9482_v12  ;;  %11790 = vst [vmem:[#allocation606_spill] sm:$0xff] %v9487_v54  ;;  %v9497_v22 = vld [vmem:[%s11172_s13 + $0x13e0] sm:$0xff]  ;;  %v9502_v8 = vld [vmem:[%s11172_s13 + $0x13e8] sm:$0xff] }
 0x13e   :  { %11791 = vst [vmem:[#allocation607_spill] sm:$0xff] %v9492_v1  ;;  %11792 = vst [vmem:[#allocation608_spill] sm:$0xff] %v9497_v22  ;;  %v9507_v12 = vld [vmem:[%s11172_s13 + $0x13f0] sm:$0xff]  ;;  %v9512_v54 = vld [vmem:[%s11172_s13 + $0x13f8] sm:$0xff] }
 0x13f   :  { %11793 = vst [vmem:[#allocation609_spill] sm:$0xff] %v9502_v8  ;;  %11794 = vst [vmem:[#allocation610_spill] sm:$0xff] %v9507_v12 }
 0x140   :  { %11795 = vst [vmem:[#allocation611_spill] sm:$0xff] %v9512_v54 }
 0x141   :  { %1391 = vsyncadd [#allocation5], 81920  ;;  %s11796_s2 = sld [smem:[#allocation617_spill]]  ;;  %vm1425_vm0 = vcmask 1045504   ;;  %vm1412_vm1 = vcmask 244736   ;;  %vm1514_vm2 = vcmask 261120  }
 0x142   :  { %s11797_s29 = sld [smem:[#allocation612_spill]]  ;;  %v1410_v15 = vld [vmem:[%s11167_s8 + $0x10] sm:$0xff]  ;;  %vm1644_vm3 = vcmask 523264   ;;  %vm2554_vm4 = vcmask 517120   ;;  %vm2568_vm5 = vcmask 1041920  }
 0x143   :  { %s11798_s27 = sld [smem:[#allocation618_spill]]  ;;  %v1642_v20 = vld [vmem:[%s11171_s12 + $0x10] sm:$0xff] }
 0x144   :  { %s11799_s24 = sld [smem:[#allocation619_spill]] }
 0x147   :  { %v1399_v1 = vld [vmem:[%s11796_s2 + $0x18] sm:$0x3f]  ;;  %v1398_v8 = vld [vmem:[%s11796_s2 + $0x10] sm:$0xff]  ;;  %v1397_v54 = vld [vmem:[%s11796_s2 + $0x8] sm:$0xff] }
 0x148   :  { %5756 = vmatprep.subr.msk.mxu0 %vm1425_vm0, %v1399_v1  ;;  %v1392_v12 = vld [vmem:[%s11797_s29] sm:$0xff]  ;;  %v1393_v5 = vld [vmem:[%s11797_s29 + $0x8] sm:$0xff] }
 0x149   :  { %5757 = vmatpush3.msk.msra.mxu0 %vm1425_vm0, %v1399_v1  ;;  %5764 = vmatprep.mubr.msk.f32.mxu0 %vm1412_vm1, %v1392_v12  ;;  %v1396_v22 = vld [vmem:[%s11796_s2] sm:$0xff]  ;;  %v1394_v1 = vld [vmem:[%s11797_s29 + $0x10] sm:$0xff] }
 0x14a   :  { %5758 = vmatprep.subr.mxu0 %v1398_v8  ;;  %v1400_v12 = vld [vmem:[%s11798_s27] sm:$0xff]  ;;  %v1406_v11 = vld [vmem:[%s11799_s24 + $0x10] sm:$0xff] }
 0x14b   :  { %5759 = vmatpush3.msra.mxu0 %v1398_v8  ;;  %v1395_v8 = vld [vmem:[%s11797_s29 + $0x18] sm:$0xff]  ;;  %5778 = vmatprep.mubr.msk.f32.mxu1 %vm1514_vm2, %v1400_v12 }
 0x14c   :  { %5760 = vmatprep.subr.mxu0 %v1397_v54  ;;  %v1403_v12 = vld [vmem:[%s11798_s27 + $0x18] sm:$0xff] }
 0x14d   :  { %5761 = vmatpush3.msra.mxu0 %v1397_v54 }
 0x14e   :  { %5762 = vmatprep.subr.mxu0 %v1396_v22 }
 0x14f   :  { %5763 = vmatpush3.msra.mxu0 %v1396_v22 }
 0x150   :  { %5765 = vmatmul.mubr.msk.f32.vlgmr.msra.gmra.mxu0 %vm1412_vm1, %v1393_v5 }
 0x151   :  { %5767 = vmatprep.mubr.msk.f32.mxu0 %vm1412_vm1, %v1394_v1  ;;  %v1401_v1 = vld [vmem:[%s11798_s27 + $0x8] sm:$0xff] }
 0x154   :  { %5768 = vmatmul.mubr.msk.f32.gmra.mxu0 %vm1412_vm1, %v1395_v8  ;;  %v1402_v8 = vld [vmem:[%s11798_s27 + $0x10] sm:$0xff] }
 0x210   :  { %v5766_v54 = vpop.f32.mrf.mxu0 }
 0x212   :  { %v1495_v23 = vpop.f32.mrf.mxu0 }
 0x214   :  { %v5769_v22 = vpop.f32.mrf.mxu0 }
 0x215   :  { %5770 = vmatprep.subr.mxu1 %v5769_v22 }
 0x216   :  { %v1505_v5 = vpop.f32.mrf.mxu0  ;;  %5771 = vmatpush3.msra.mxu1 %v5769_v22  ;;  %v1629_v22 = vld [vmem:[%s11168_s9 + $0x28] sm:$0xff] }
 0x217   :  { %5772 = vmatprep.subr.mxu1 %v1505_v5 }
 0x218   :  { %5773 = vmatpush3.msra.mxu1 %v1505_v5  ;;  %v1628_v5 = vld [vmem:[%s11168_s9 + $0x20] sm:$0xff] }
 0x219   :  { %5774 = vmatprep.subr.mxu1 %v5766_v54 }
 0x21a   :  { %5775 = vmatpush3.msra.mxu1 %v5766_v54  ;;  %v1631_v54 = vld [vmem:[%s11168_s9 + $0x38] sm:$0xff] }
 0x21b   :  { %5776 = vmatprep.subr.mxu1 %v1495_v23 }
 0x21c   :  { %5777 = vmatpush3.msra.mxu1 %v1495_v23  ;;  %v1630_v23 = vld [vmem:[%s11168_s9 + $0x30] sm:$0xff] }
 0x21d   :  { %5779 = vmatmul.mubr.msk.f32.vlgmr.msra.gmra.mxu1 %vm1514_vm2, %v1401_v1  ;;  %5784 = vmatprep.subr.mxu1 %v1631_v54  ;;  %v1627_v1 = vld [vmem:[%s11168_s9 + $0x18] sm:$0xff] }
 0x21e   :  { %5781 = vmatprep.mubr.msk.f32.mxu1 %vm1514_vm2, %v1402_v8  ;;  %5785 = vmatpush3.msra.mxu1 %v1631_v54  ;;  %v1626_v8 = vld [vmem:[%s11168_s9 + $0x10] sm:$0xff]  ;;  %v1624_v54 = vld [vmem:[%s11168_s9] sm:$0xff] }
 0x21f   :  { %5786 = vmatprep.subr.mxu1 %v1630_v23 }
 0x220   :  { %5787 = vmatpush3.msra.mxu1 %v1630_v23  ;;  %v1405_v23 = vld [vmem:[%s11799_s24 + $0x8] sm:$0xff] }
 0x221   :  { %5782 = vmatmul.mubr.msk.f32.gmra.mxu1 %vm1514_vm2, %v1403_v12  ;;  %5788 = vmatprep.subr.mxu1 %v1629_v22  ;;  %v1625_v12 = vld [vmem:[%s11168_s9 + $0x8] sm:$0xff] }
 0x222   :  { %5789 = vmatpush3.msra.mxu1 %v1629_v22 }
 0x223   :  { %5790 = vmatprep.subr.mxu1 %v1628_v5 }
 0x224   :  { %5791 = vmatpush3.msra.mxu1 %v1628_v5  ;;  %v1404_v5 = vld [vmem:[%s11799_s24] sm:$0xff] }
 0x225   :  { %5792 = vmatprep.subr.mxu1 %v1627_v1 }
 0x226   :  { %5793 = vmatpush3.msra.mxu1 %v1627_v1  ;;  %v1409_v1 = vld [vmem:[%s11167_s8 + $0x8] sm:$0xff] }
 0x227   :  { %5794 = vmatprep.subr.mxu1 %v1626_v8 }
 0x228   :  { %5795 = vmatpush3.msra.mxu1 %v1626_v8 }
 0x229   :  { %5796 = vmatprep.subr.mxu1 %v1625_v12 }
 0x22a   :  { %5797 = vmatpush3.msra.mxu1 %v1625_v12  ;;  %v1408_v12 = vld [vmem:[%s11167_s8] sm:$0xff] }
 0x22b   :  { %5798 = vmatprep.subr.mxu1 %v1624_v54 }
 0x22c   :  { %5799 = vmatpush3.msra.mxu1 %v1624_v54  ;;  %v1407_v54 = vld [vmem:[%s11799_s24 + $0x18] sm:$0xff] }
 0x2dd   :  { %v5780_v22 = vpop.f32.mrf.mxu1 }
 0x2de   :  { %v1613_v8 = vmul.f32 %v5780_v22, %v1405_v23  ;;  %v1411_v23 = vld [vmem:[%s11167_s8 + $0x18] sm:$0xff] }
 0x2df   :  { %v1593_v6 = vpop.f32.mrf.mxu1 }
 0x2e0   :  { %v1612_v27 = vmul.f32 %v1593_v6, %v1404_v5  ;;  %v1617_v10 = vadd.f32 %v1613_v8, %v1409_v1  ;;  %v1633_v8 = vld [vmem:[%s11169_s10 + $0x8] sm:$0xff] }
 0x2e1   :  { %v5783_v28 = vpop.f32.mrf.mxu1 }
 0x2e2   :  { %v1616_v32 = vadd.f32 %v1612_v27, %v1408_v12  ;;  %v1615_v22 = vmul.f32 %v5783_v28, %v1407_v54  ;;  %v1634_v12 = vld [vmem:[%s11169_s10 + $0x10] sm:$0xff]  ;;  %v1635_v54 = vld [vmem:[%s11169_s10 + $0x18] sm:$0xff] }
 0x2e3   :  { %v1603_v33 = vpop.f32.mrf.mxu1 }
 0x2e4   :  { %6055 = vtanh.f32 %v1616_v32  ;;  %v1614_v16 = vmul.f32 %v1603_v33, %v1406_v11  ;;  %v1619_v6 = vadd.f32 %v1615_v22, %v1411_v23  ;;  %v5279_v23 = vld [vmem:[%s11168_s9 + $0x78] sm:$0xff]  ;;  %v5278_v22 = vld [vmem:[%s11168_s9 + $0x70] sm:$0xff] }
 0x2e5   :  { %6057 = vtanh.f32 %v1617_v10  ;;  %v1632_v10 = vld [vmem:[%s11169_s10] sm:$0xff] }
 0x2e6   :  { %v1618_v5 = vadd.f32 %v1614_v16, %v1410_v15 }
 0x2e8   :  { %6059 = vtanh.f32 %v1618_v5  ;;  %v5276_v5 = vld [vmem:[%s11168_s9 + $0x60] sm:$0xff] }
 0x2e9   :  { %6061 = vtanh.f32 %v1619_v6  ;;  %v5277_v6 = vld [vmem:[%s11168_s9 + $0x68] sm:$0xff] }
 0x2f1   :  { %v9606_v1 = vpop.eup %6055 }
 0x2f2   :  { %v9608_v27 = vpop.eup %6057  ;;  %5800 = vmatprep.mubr.msk.f32.mxu1 %vm1644_vm3, %v9606_v1 }
 0x2f3   :  { %5801 = vmatmul.mubr.msk.f32.vlgmr.msra.gmra.mxu1 %vm1644_vm3, %v9608_v27 }
 0x2f5   :  { %v9614_v28 = vpop.eup %6059 }
 0x2f6   :  { %v9616_v32 = vpop.eup %6061  ;;  %5803 = vmatprep.mubr.msk.f32.mxu1 %vm1644_vm3, %v9614_v28 }
 0x2f7   :  { %5804 = vmatmul.mubr.msk.f32.gmra.mxu1 %vm1644_vm3, %v9616_v32 }
 0x2f8   :  { %5814 = vmatprep.mubr.msk.f32.mxu1 %vm1514_vm2, %v1632_v10  ;;  %v5275_v10 = vld [vmem:[%s11168_s9 + $0x58] sm:$0xff] }
 0x3b3   :  { %v5802_v11 = vpop.f32.mrf.mxu1 }
 0x3b5   :  { %v1723_v15 = vpop.f32.mrf.mxu1 }
 0x3b7   :  { %v5805_v16 = vpop.f32.mrf.mxu1 }
 0x3b8   :  { %5806 = vmatprep.subr.mxu1 %v5805_v16 }
 0x3b9   :  { %v1733_v33 = vpop.f32.mrf.mxu1  ;;  %5807 = vmatpush3.msra.mxu1 %v5805_v16  ;;  %v5272_v16 = vld [vmem:[%s11168_s9 + $0x40] sm:$0xff] }
 0x3ba   :  { %5808 = vmatprep.subr.mxu1 %v1733_v33 }
 0x3bb   :  { %5809 = vmatpush3.msra.mxu1 %v1733_v33  ;;  %v1637_v33 = vld [vmem:[%s11170_s11 + $0x8] sm:$0xff] }
 0x3bc   :  { %5810 = vmatprep.subr.mxu1 %v5802_v11 }
 0x3bd   :  { %5811 = vmatpush3.msra.mxu1 %v5802_v11  ;;  %v5274_v11 = vld [vmem:[%s11168_s9 + $0x50] sm:$0xff] }
 0x3be   :  { %5812 = vmatprep.subr.mxu1 %v1723_v15 }
 0x3bf   :  { %5813 = vmatpush3.msra.mxu1 %v1723_v15  ;;  %v5273_v15 = vld [vmem:[%s11168_s9 + $0x48] sm:$0xff] }
 0x3c0   :  { %5815 = vmatmul.mubr.msk.f32.vlgmr.msra.gmra.mxu1 %vm1514_vm2, %v1633_v8  ;;  %5820 = vmatprep.subr.mxu1 %v5279_v23 }
 0x3c1   :  { %5817 = vmatprep.mubr.msk.f32.mxu1 %vm1514_vm2, %v1634_v12  ;;  %5821 = vmatpush3.msra.mxu1 %v5279_v23  ;;  %v1636_v12 = vld [vmem:[%s11170_s11] sm:$0xff] }
 0x3c2   :  { %5822 = vmatprep.subr.mxu1 %v5278_v22 }
 0x3c3   :  { %5823 = vmatpush3.msra.mxu1 %v5278_v22  ;;  %v1640_v22 = vld [vmem:[%s11171_s12] sm:$0xff] }
 0x3c4   :  { %5818 = vmatmul.mubr.msk.f32.gmra.mxu1 %vm1514_vm2, %v1635_v54  ;;  %5824 = vmatprep.subr.mxu1 %v5277_v6  ;;  %v1641_v54 = vld [vmem:[%s11171_s12 + $0x8] sm:$0xff] }
 0x3c5   :  { %5825 = vmatpush3.msra.mxu1 %v5277_v6 }
 0x3c6   :  { %5826 = vmatprep.subr.mxu1 %v5276_v5 }
 0x3c7   :  { %5827 = vmatpush3.msra.mxu1 %v5276_v5  ;;  %v1639_v5 = vld [vmem:[%s11170_s11 + $0x18] sm:$0xff] }
 0x3c8   :  { %5828 = vmatprep.subr.mxu1 %v5275_v10 }
 0x3c9   :  { %5829 = vmatpush3.msra.mxu1 %v5275_v10 }
 0x3ca   :  { %5830 = vmatprep.subr.mxu1 %v5274_v11 }
 0x3cb   :  { %5831 = vmatpush3.msra.mxu1 %v5274_v11 }
 0x3cc   :  { %5832 = vmatprep.subr.mxu1 %v5273_v15 }
 0x3cd   :  { %5833 = vmatpush3.msra.mxu1 %v5273_v15 }
 0x3ce   :  { %5834 = vmatprep.subr.mxu1 %v5272_v16 }
 0x3cf   :  { %5835 = vmatpush3.msra.mxu1 %v5272_v16  ;;  %v1638_v16 = vld [vmem:[%s11170_s11 + $0x10] sm:$0xff] }
 0x480   :  { %v5816_v8 = vpop.f32.mrf.mxu1 }
 0x481   :  { %v1840_v23 = vmul.f32 %v5816_v8, %v1637_v33  ;;  %v1643_v33 = vld [vmem:[%s11171_s12 + $0x18] sm:$0xff] }
 0x482   :  { %v1820_v6 = vpop.f32.mrf.mxu1 }
 0x483   :  { %v1839_v10 = vmul.f32 %v1820_v6, %v1636_v12  ;;  %v1844_v11 = vadd.f32 %v1840_v23, %v1641_v54 }
 0x484   :  { %v5819_v15 = vpop.f32.mrf.mxu1 }
 0x485   :  { %v1843_v37 = vadd.f32 %v1839_v10, %v1640_v22  ;;  %v1842_v8 = vmul.f32 %v5819_v15, %v1639_v5  ;;  %v5282_v15 = vld [vmem:[%s11169_s10 + $0x30] sm:$0xff] }
 0x486   :  { %v1830_v38 = vpop.f32.mrf.mxu1 }
 0x487   :  { %6063 = vtanh.f32 %v1843_v37  ;;  %v1841_v21 = vmul.f32 %v1830_v38, %v1638_v16  ;;  %v1846_v12 = vadd.f32 %v1842_v8, %v1643_v33  ;;  %v5280_v37 = vld [vmem:[%s11169_s10 + $0x20] sm:$0xff]  ;;  %v5283_v16 = vld [vmem:[%s11169_s10 + $0x38] sm:$0xff]  ;;  %v5306_v8 = vld [vmem:[%s11168_s9 + $0xb0] sm:$0xff] }
 0x488   :  { %6065 = vtanh.f32 %v1844_v11  ;;  %5850 = vmatprep.mubr.msk.f32.mxu0 %vm1514_vm2, %v5280_v37  ;;  %v5281_v11 = vld [vmem:[%s11169_s10 + $0x28] sm:$0xff]  ;;  %v5307_v33 = vld [vmem:[%s11168_s9 + $0xb8] sm:$0xff] }
 0x489   :  { %v1845_v54 = vadd.f32 %v1841_v21, %v1642_v20  ;;  %v5285_v37 = vld [vmem:[%s11170_s11 + $0x28] sm:$0xff] }
 0x48b   :  { %6067 = vtanh.f32 %v1845_v54  ;;  %v5304_v54 = vld [vmem:[%s11168_s9 + $0xa0] sm:$0xff] }
 0x48c   :  { %6069 = vtanh.f32 %v1846_v12  ;;  %v5305_v12 = vld [vmem:[%s11168_s9 + $0xa8] sm:$0xff] }
 0x494   :  { %v6064_v23 = vpop.eup %6063 }
 0x495   :  { %v6066_v6 = vpop.eup %6065  ;;  %5836 = vmatprep.mubr.msk.f32.mxu1 %vm1644_vm3, %v6064_v23  ;;  %v5303_v23 = vld [vmem:[%s11168_s9 + $0x98] sm:$0xff] }
 0x496   :  { %5837 = vmatmul.mubr.msk.f32.vlgmr.msra.gmra.mxu1 %vm1644_vm3, %v6066_v6  ;;  %v5302_v6 = vld [vmem:[%s11168_s9 + $0x90] sm:$0xff] }
 0x498   :  { %v6068_v22 = vpop.eup %6067 }
 0x499   :  { %v6070_v5 = vpop.eup %6069  ;;  %5839 = vmatprep.mubr.msk.f32.mxu1 %vm1644_vm3, %v6068_v22  ;;  %v5301_v22 = vld [vmem:[%s11168_s9 + $0x88] sm:$0xff] }
 0x49a   :  { %5840 = vmatmul.mubr.msk.f32.gmra.mxu1 %vm1644_vm3, %v6070_v5  ;;  %v5300_v5 = vld [vmem:[%s11168_s9 + $0x80] sm:$0xff] }
 0x556   :  { %v5838_v20 = vpop.f32.mrf.mxu1 }
 0x558   :  { %v1953_v21 = vpop.f32.mrf.mxu1 }
 0x55a   :  { %v5841_v38 = vpop.f32.mrf.mxu1 }
 0x55b   :  { %5842 = vmatprep.subr.mxu0 %v5841_v38 }
 0x55c   :  { %v1963_v10 = vpop.f32.mrf.mxu1  ;;  %5843 = vmatpush3.msra.mxu0 %v5841_v38  ;;  %v5284_v38 = vld [vmem:[%s11170_s11 + $0x20] sm:$0xff] }
 0x55d   :  { %5844 = vmatprep.subr.mxu0 %v1963_v10 }
 0x55e   :  { %5845 = vmatpush3.msra.mxu0 %v1963_v10 }
 0x55f   :  { %5846 = vmatprep.subr.mxu0 %v5838_v20 }
 0x560   :  { %5847 = vmatpush3.msra.mxu0 %v5838_v20  ;;  %v5289_v20 = vld [vmem:[%s11171_s12 + $0x28] sm:$0xff] }
 0x561   :  { %5848 = vmatprep.subr.mxu0 %v1953_v21 }
 0x562   :  { %5849 = vmatpush3.msra.mxu0 %v1953_v21 }
 0x563   :  { %5851 = vmatmul.mubr.msk.f32.vlgmr.msra.gmra.mxu0 %vm1514_vm2, %v5281_v11  ;;  %5856 = vmatprep.subr.mxu0 %v5307_v33  ;;  %v5288_v11 = vld [vmem:[%s11171_s12 + $0x20] sm:$0xff] }
 0x564   :  { %5853 = vmatprep.mubr.msk.f32.mxu0 %vm1514_vm2, %v5282_v15  ;;  %5857 = vmatpush3.msra.mxu0 %v5307_v33 }
 0x565   :  { %5858 = vmatprep.subr.mxu0 %v5306_v8 }
 0x566   :  { %5859 = vmatpush3.msra.mxu0 %v5306_v8 }
 0x567   :  { %5854 = vmatmul.mubr.msk.f32.gmra.mxu0 %vm1514_vm2, %v5283_v16  ;;  %5860 = vmatprep.subr.mxu0 %v5305_v12  ;;  %v5287_v16 = vld [vmem:[%s11170_s11 + $0x38] sm:$0xff] }
 0x568   :  { %5861 = vmatpush3.msra.mxu0 %v5305_v12  ;;  %v5291_v12 = vld [vmem:[%s11171_s12 + $0x38] sm:$0xff] }
 0x569   :  { %5862 = vmatprep.subr.mxu0 %v5304_v54 }
 0x56a   :  { %5863 = vmatpush3.msra.mxu0 %v5304_v54 }
 0x56b   :  { %5864 = vmatprep.subr.mxu0 %v5303_v23 }
 0x56c   :  { %5865 = vmatpush3.msra.mxu0 %v5303_v23  ;;  %v5286_v23 = vld [vmem:[%s11170_s11 + $0x30] sm:$0xff] }
 0x56d   :  { %5866 = vmatprep.subr.mxu0 %v5302_v6 }
 0x56e   :  { %5867 = vmatpush3.msra.mxu0 %v5302_v6 }
 0x56f   :  { %5868 = vmatprep.subr.mxu0 %v5301_v22 }
 0x570   :  { %5869 = vmatpush3.msra.mxu0 %v5301_v22 }
 0x571   :  { %5870 = vmatprep.subr.mxu0 %v5300_v5 }
 0x572   :  { %5871 = vmatpush3.msra.mxu0 %v5300_v5  ;;  %v5290_v5 = vld [vmem:[%s11171_s12 + $0x30] sm:$0xff] }
 0x623   :  { %v5852_v21 = vpop.f32.mrf.mxu0 }
 0x624   :  { %v2070_v10 = vmul.f32 %v5852_v21, %v5285_v37 }
 0x625   :  { %v2050_v15 = vpop.f32.mrf.mxu0 }
 0x626   :  { %v2074_v33 = vadd.f32 %v5289_v20, %v2070_v10  ;;  %v2069_v8 = vmul.f32 %v5284_v38, %v2050_v15 }
 0x627   :  { %v5855_v54 = vpop.f32.mrf.mxu0 }
 0x628   :  { %v2073_v6 = vadd.f32 %v5288_v11, %v2069_v8  ;;  %v2072_v22 = vmul.f32 %v5855_v54, %v5287_v16  ;;  %6071 = vtanh.f32 %v2074_v33 }
 0x629   :  { %v2060_v37 = vpop.f32.mrf.mxu0 }
 0x62a   :  { %6073 = vtanh.f32 %v2073_v6  ;;  %v2076_v20 = vadd.f32 %v5291_v12, %v2072_v22  ;;  %v2071_v21 = vmul.f32 %v5286_v23, %v2060_v37  ;;  %v5310_v6 = vld [vmem:[%s11169_s10 + $0x50] sm:$0xff]  ;;  %v5311_v22 = vld [vmem:[%s11169_s10 + $0x58] sm:$0xff] }
 0x62b   :  { %v5334_v37 = vld [vmem:[%s11168_s9 + $0xf0] sm:$0xff] }
 0x62c   :  { %v2075_v38 = vadd.f32 %v5290_v5, %v2071_v21  ;;  %6075 = vtanh.f32 %v2076_v20  ;;  %v5335_v5 = vld [vmem:[%s11168_s9 + $0xf8] sm:$0xff]  ;;  %v5333_v20 = vld [vmem:[%s11168_s9 + $0xe8] sm:$0xff]  ;;  %v5332_v21 = vld [vmem:[%s11168_s9 + $0xe0] sm:$0xff] }
 0x62e   :  { %6077 = vtanh.f32 %v2075_v38  ;;  %v5331_v38 = vld [vmem:[%s11168_s9 + $0xd8] sm:$0xff] }
 0x635   :  { %v6072_v10 = vpop.eup %6071 }
 0x636   :  { %v9758_v11 = vadd.f32 %v6072_v10, %v9608_v27  ;;  %v5330_v10 = vld [vmem:[%s11168_s9 + $0xd0] sm:$0xff] }
 0x637   :  { %v6074_v15 = vpop.eup %6073 }
 0x638   :  { %v9755_v42 = vadd.f32 %v6074_v15, %v9606_v1  ;;  %v5308_v1 = vld [vmem:[%s11169_s10 + $0x40] sm:$0xff]  ;;  %v5329_v15 = vld [vmem:[%s11168_s9 + $0xc8] sm:$0xff] }
 0x639   :  { %v6076_v16 = vpop.eup %6075  ;;  %5886 = vmatprep.mubr.msk.f32.mxu1 %vm1514_vm2, %v5308_v1 }
 0x63a   :  { %5872 = vmatprep.mubr.msk.f32.mxu0 %vm1644_vm3, %v9755_v42  ;;  %v9768_v12 = vadd.f32 %v6076_v16, %v9616_v32  ;;  %v5309_v32 = vld [vmem:[%s11169_s10 + $0x48] sm:$0xff]  ;;  %v5328_v16 = vld [vmem:[%s11168_s9 + $0xc0] sm:$0xff] }
 0x63b   :  { %v6078_v33 = vpop.eup %6077  ;;  %5873 = vmatmul.mubr.msk.f32.vlgmr.msra.gmra.mxu0 %vm1644_vm3, %v9758_v11 }
 0x63c   :  { %v9765_v8 = vadd.f32 %v6078_v33, %v9614_v28  ;;  %v5313_v33 = vld [vmem:[%s11170_s11 + $0x48] sm:$0xff] }
 0x63e   :  { %5875 = vmatprep.mubr.msk.f32.mxu0 %vm1644_vm3, %v9765_v8 }
 0x63f   :  { %5876 = vmatmul.mubr.msk.f32.gmra.mxu0 %vm1644_vm3, %v9768_v12 }
 0x6fb   :  { %v5874_v27 = vpop.f32.mrf.mxu0 }
 0x6fd   :  { %v2187_v54 = vpop.f32.mrf.mxu0 }
 0x6ff   :  { %v5877_v23 = vpop.f32.mrf.mxu0 }
 0x700   :  { %5878 = vmatprep.subr.mxu1 %v5877_v23 }
 0x701   :  { %v2197_v28 = vpop.f32.mrf.mxu0  ;;  %5879 = vmatpush3.msra.mxu1 %v5877_v23 }
 0x702   :  { %5880 = vmatprep.subr.mxu1 %v2197_v28 }
 0x703   :  { %5881 = vmatpush3.msra.mxu1 %v2197_v28  ;;  %v5316_v28 = vld [vmem:[%s11171_s12 + $0x40] sm:$0xff] }
 0x704   :  { %5882 = vmatprep.subr.mxu1 %v5874_v27 }
 0x705   :  { %5883 = vmatpush3.msra.mxu1 %v5874_v27  ;;  %v5312_v27 = vld [vmem:[%s11170_s11 + $0x40] sm:$0xff] }
 0x706   :  { %5884 = vmatprep.subr.mxu1 %v2187_v54 }
 0x707   :  { %5885 = vmatpush3.msra.mxu1 %v2187_v54  ;;  %v5317_v54 = vld [vmem:[%s11171_s12 + $0x48] sm:$0xff] }
 0x708   :  { %5887 = vmatmul.mubr.msk.f32.vlgmr.msra.gmra.mxu1 %vm1514_vm2, %v5309_v32  ;;  %5892 = vmatprep.subr.mxu1 %v5335_v5 }
 0x709   :  { %5889 = vmatprep.mubr.msk.f32.mxu1 %vm1514_vm2, %v5310_v6  ;;  %5893 = vmatpush3.msra.mxu1 %v5335_v5  ;;  %v5315_v6 = vld [vmem:[%s11170_s11 + $0x58] sm:$0xff] }
 0x70a   :  { %5894 = vmatprep.subr.mxu1 %v5334_v37 }
 0x70b   :  { %5895 = vmatpush3.msra.mxu1 %v5334_v37 }
 0x70c   :  { %5890 = vmatmul.mubr.msk.f32.gmra.mxu1 %vm1514_vm2, %v5311_v22  ;;  %5896 = vmatprep.subr.mxu1 %v5333_v20 }
 0x70d   :  { %5897 = vmatpush3.msra.mxu1 %v5333_v20  ;;  %v5314_v20 = vld [vmem:[%s11170_s11 + $0x50] sm:$0xff] }
 0x70e   :  { %5898 = vmatprep.subr.mxu1 %v5332_v21 }
 0x70f   :  { %5899 = vmatpush3.msra.mxu1 %v5332_v21 }
 0x710   :  { %5900 = vmatprep.subr.mxu1 %v5331_v38 }
 0x711   :  { %5901 = vmatpush3.msra.mxu1 %v5331_v38  ;;  %v5319_v38 = vld [vmem:[%s11171_s12 + $0x58] sm:$0xff] }
 0x712   :  { %5902 = vmatprep.subr.mxu1 %v5330_v10 }
 0x713   :  { %5903 = vmatpush3.msra.mxu1 %v5330_v10 }
 0x714   :  { %5904 = vmatprep.subr.mxu1 %v5329_v15 }
 0x715   :  { %5905 = vmatpush3.msra.mxu1 %v5329_v15  ;;  %v5318_v15 = vld [vmem:[%s11171_s12 + $0x50] sm:$0xff] }
 0x716   :  { %5906 = vmatprep.subr.mxu1 %v5328_v16 }
 0x717   :  { %5907 = vmatpush3.msra.mxu1 %v5328_v16 }
 0x718   :  { %3436 = vmatprep.subr.mxu1 %v7497_v18 }
 0x7c8   :  { %v5888_v1 = vpop.f32.mrf.mxu1 }
 0x7c9   :  { %v2304_v23 = vmul.f32 %v5888_v1, %v5313_v33 }
 0x7ca   :  { %v2284_v32 = vpop.f32.mrf.mxu1 }
 0x7cb   :  { %v2303_v22 = vmul.f32 %v5312_v27, %v2284_v32  ;;  %v2308_v5 = vadd.f32 %v5317_v54, %v2304_v23 }
 0x7cc   :  { %v5891_v37 = vpop.f32.mrf.mxu1 }
 0x7cd   :  { %v2307_v21 = vadd.f32 %v5316_v28, %v2303_v22  ;;  %v2306_v10 = vmul.f32 %v5891_v37, %v5315_v6  ;;  %v5336_v6 = vld [vmem:[%s11169_s10 + $0x60] sm:$0xff] }
 0x7ce   :  { %v2294_v16 = vpop.f32.mrf.mxu1  ;;  %5922 = vmatprep.mubr.msk.f32.mxu0 %vm1514_vm2, %v5336_v6 }
 0x7cf   :  { %6079 = vtanh.f32 %v2307_v21  ;;  %v2305_v33 = vmul.f32 %v5314_v20, %v2294_v16  ;;  %v2310_v1 = vadd.f32 %v5319_v38, %v2306_v10  ;;  %v5337_v21 = vld [vmem:[%s11169_s10 + $0x68] sm:$0xff]  ;;  %v5338_v38 = vld [vmem:[%s11169_s10 + $0x70] sm:$0xff]  ;;  %v5339_v10 = vld [vmem:[%s11169_s10 + $0x78] sm:$0xff] }
 0x7d0   :  { %6081 = vtanh.f32 %v2308_v5  ;;  %v5345_v16 = vld [vmem:[%s11171_s12 + $0x68] sm:$0xff] }
 0x7d1   :  { %v2309_v27 = vadd.f32 %v5318_v15, %v2305_v33  ;;  %v5341_v15 = vld [vmem:[%s11170_s11 + $0x68] sm:$0xff] }
 0x7d3   :  { %6083 = vtanh.f32 %v2309_v27 }
 0x7d4   :  { %6085 = vtanh.f32 %v2310_v1  ;;  %v5340_v1 = vld [vmem:[%s11170_s11 + $0x60] sm:$0xff] }
 0x7dc   :  { %v6080_v54 = vpop.eup %6079 }
 0x7dd   :  { %v6082_v23 = vpop.eup %6081  ;;  %5908 = vmatprep.mubr.msk.f32.mxu1 %vm1644_vm3, %v6080_v54  ;;  %v5344_v54 = vld [vmem:[%s11171_s12 + $0x60] sm:$0xff] }
 0x7de   :  { %5909 = vmatmul.mubr.msk.f32.vlgmr.msra.gmra.mxu1 %vm1644_vm3, %v6082_v23 }
 0x7e0   :  { %v6084_v28 = vpop.eup %6083 }
 0x7e1   :  { %v6086_v32 = vpop.eup %6085  ;;  %5911 = vmatprep.mubr.msk.f32.mxu1 %vm1644_vm3, %v6084_v28  ;;  %v5343_v28 = vld [vmem:[%s11170_s11 + $0x78] sm:$0xff] }
 0x7e2   :  { %5912 = vmatmul.mubr.msk.f32.gmra.mxu1 %vm1644_vm3, %v6086_v32 }
 0x89e   :  { %v5910_v22 = vpop.f32.mrf.mxu1 }
 0x8a0   :  { %v2417_v5 = vpop.f32.mrf.mxu1 }
 0x8a2   :  { %v5913_v37 = vpop.f32.mrf.mxu1 }
 0x8a3   :  { %5914 = vmatprep.subr.mxu0 %v5913_v37 }
 0x8a4   :  { %v2427_v20 = vpop.f32.mrf.mxu1  ;;  %5915 = vmatpush3.msra.mxu0 %v5913_v37  ;;  %v5342_v37 = vld [vmem:[%s11170_s11 + $0x70] sm:$0xff]  ;;  %s6185_s11 = smov 64  }
 0x8a5   :  { %5916 = vmatprep.subr.mxu0 %v2427_v20 }
 0x8a6   :  { %5917 = vmatpush3.msra.mxu0 %v2427_v20 }
 0x8a7   :  { %5918 = vmatprep.subr.mxu0 %v5910_v22 }
 0x8a8   :  { %5919 = vmatpush3.msra.mxu0 %v5910_v22  ;;  %v5347_v22 = vld [vmem:[%s11171_s12 + $0x78] sm:$0xff] }
 0x8a9   :  { %5920 = vmatprep.subr.mxu0 %v2417_v5 }
 0x8aa   :  { %5921 = vmatpush3.msra.mxu0 %v2417_v5 }
 0x8ab   :  { %5923 = vmatmul.mubr.msk.f32.vlgmr.msra.gmra.mxu0 %vm1514_vm2, %v5337_v21  ;;  %3365 = vmatprep.subr.mxu0 %v6697_v4 }
 0x8ac   :  { %5925 = vmatprep.mubr.msk.f32.mxu0 %vm1514_vm2, %v5338_v38  ;;  %v5346_v38 = vld [vmem:[%s11171_s12 + $0x70] sm:$0xff] }
 0x8af   :  { %5926 = vmatmul.mubr.msk.f32.gmra.mxu0 %vm1514_vm2, %v5339_v10 }
 0x96b   :  { %v5924_v33 = vpop.f32.mrf.mxu0 }
 0x96c   :  { %v2534_v27 = vmul.f32 %v5924_v33, %v5341_v15 }
 0x96d   :  { %v2514_v23 = vpop.f32.mrf.mxu0 }
 0x96e   :  { %v2538_v32 = vadd.f32 %v5345_v16, %v2534_v27  ;;  %v2533_v6 = vmul.f32 %v5340_v1, %v2514_v23 }
 0x96f   :  { %v5927_v5 = vpop.f32.mrf.mxu0 }
 0x970   :  { %6087 = vtanh.f32 %v2538_v32  ;;  %v2537_v20 = vadd.f32 %v5344_v54, %v2533_v6  ;;  %v2536_v21 = vmul.f32 %v5927_v5, %v5343_v28 }
 0x971   :  { %v2524_v10 = vpop.f32.mrf.mxu0 }
 0x972   :  { %6089 = vtanh.f32 %v2537_v20  ;;  %v2540_v15 = vadd.f32 %v5347_v22, %v2536_v21  ;;  %v2535_v16 = vmul.f32 %v5342_v37, %v2524_v10 }
 0x974   :  { %6091 = vtanh.f32 %v2540_v15  ;;  %v2539_v33 = vadd.f32 %v5346_v38, %v2535_v16 }
 0x976   :  { %6093 = vtanh.f32 %v2539_v33 }
 0x97d   :  { %v6088_v1 = vpop.eup %6087 }
 0x97e   :  { %v2546_v27 = vadd.f32 %v6088_v1, %v9758_v11 }
 0x97f   :  { %v6090_v23 = vpop.eup %6089 }
 0x980   :  { %2550 = vst.msk [vmem:[#allocation2 + $0x8] sm:$0xff] %vm1644_vm3, %v2546_v27  ;;  %v2545_v54 = vadd.f32 %v6090_v23, %v9755_v42 }
 0x981   :  { %v6092_v28 = vpop.eup %6091 }
 0x982   :  { %2549 = vst.msk [vmem:[#allocation2] sm:$0xff] %vm1644_vm3, %v2545_v54  ;;  %v2548_v32 = vadd.f32 %v6092_v28, %v9768_v12 }
 0x983   :  { %v6094_v6 = vpop.eup %6093 }
 0x984   :  { %2552 = vst.msk [vmem:[#allocation2 + $0x18] sm:$0xff] %vm1644_vm3, %v2548_v32  ;;  %v2547_v22 = vadd.f32 %v6094_v6, %v9765_v8 }
 0x986   :  { %2551 = vst.msk [vmem:[#allocation2 + $0x10] sm:$0xff] %vm1644_vm3, %v2547_v22 }
 0x987   :  { %v5358_v5 = vld.sshfl [vmem:[#allocation2 + $0xa] sm:$0x3 pattern:$0x76325410]  ;;  %v2585_v11 = vld [vmem:[#allocation2 + $0x8] sm:$0x3] }
 0x988   :  { %2596 = vrot.lane.b32.xlu1 %v5358_v5, %s6185_s11  ;;  %2586 = vst.msk [vmem:[#allocation3 + $0x4] sm:$0x3] %vm2554_vm4, %v2585_v11  ;;  %v2600_v42 = vld [vmem:[#allocation2 + $0xc] sm:$0x3] }
 0x989   :  { %v5356_v37 = vld.sshfl [vmem:[#allocation2 + $0x2] sm:$0x3 pattern:$0x76325410]  ;;  %v2553_v20 = vld [vmem:[#allocation2] sm:$0x3] }
 0x98a   :  { %2601 = vst.msk [vmem:[#allocation3 + $0x6] sm:$0x3] %vm2554_vm4, %v2600_v42  ;;  %2565 = vrot.lane.b32.xlu0 %v5356_v37, %s6185_s11  ;;  %2555 = vst.msk [vmem:[#allocation3] sm:$0x3] %vm2554_vm4, %v2553_v20  ;;  %v2570_v8 = vld [vmem:[#allocation2 + $0x4] sm:$0x3] }
 0x98b   :  { %v5359_v12 = vld.sshfl [vmem:[#allocation2 + $0xe] sm:$0x3 pattern:$0x76325410]  ;;  %2571 = vst.msk [vmem:[#allocation3 + $0x2] sm:$0x3] %vm2554_vm4, %v2570_v8 }
 0x98c   :  { %v2660_v21 = vld [vmem:[#allocation2 + $0x1c] sm:$0x3]  ;;  %2611 = vrot.lane.b32.xlu1 %v5359_v12, %s6185_s11  ;;  %v2645_v38 = vld [vmem:[#allocation2 + $0x18] sm:$0x3] }
 0x98d   :  { %2661 = vst.msk [vmem:[#allocation3 + $0xe] sm:$0x3] %vm2554_vm4, %v2660_v21  ;;  %v5357_v10 = vld.sshfl [vmem:[#allocation2 + $0x6] sm:$0x3 pattern:$0x76325410] }
 0x98e   :  { %v2630_v15 = vld [vmem:[#allocation2 + $0x14] sm:$0x3]  ;;  %2646 = vst.msk [vmem:[#allocation3 + $0xc] sm:$0x3] %vm2554_vm4, %v2645_v38  ;;  %2581 = vrot.lane.b32.xlu0 %v5357_v10, %s6185_s11  ;;  %v2615_v16 = vld [vmem:[#allocation2 + $0x10] sm:$0x3] }
 0x98f   :  { %2631 = vst.msk [vmem:[#allocation3 + $0xa] sm:$0x3] %vm2554_vm4, %v2630_v15  ;;  %v5361_v33 = vld.sshfl [vmem:[#allocation2 + $0x16] sm:$0x3 pattern:$0x76325410] }
 0x990   :  { %2616 = vst.msk [vmem:[#allocation3 + $0x8] sm:$0x3] %vm2554_vm4, %v2615_v16  ;;  %2641 = vrot.lane.b32.xlu1 %v5361_v33, %s6185_s11  ;;  %v5360_v1 = vld.sshfl [vmem:[#allocation2 + $0x12] sm:$0x3 pattern:$0x76325410] }
 0x991   :  { %v5363_v27 = vld.sshfl [vmem:[#allocation2 + $0x1e] sm:$0x3 pattern:$0x76325410] }
 0x992   :  { %2626 = vrot.lane.b32.xlu0 %v5360_v1, %s6185_s11  ;;  %v5362_v23 = vld.sshfl [vmem:[#allocation2 + $0x1a] sm:$0x3 pattern:$0x76325410] }
 0x994   :  { %2671 = vrot.lane.b32.xlu1 %v5363_v27, %s6185_s11 }
 0x996   :  { %2656 = vrot.lane.b32.xlu0 %v5362_v23, %s6185_s11 }
 0x9fa   :  { %v2597_v54 = vpop.permute.xlu1 %2596 }
 0x9fb   :  { %2599 = vst.msk [vmem:[#allocation3 + $0x4] sm:$0x3] %vm2568_vm5, %v2597_v54 }
 0x9fc   :  { %v2566_v28 = vpop.permute.xlu0 %2565 }
 0x9fd   :  { %2569 = vst.msk [vmem:[#allocation3] sm:$0x3] %vm2568_vm5, %v2566_v28 }
 0x9fe   :  { %v2612_v32 = vpop.permute.xlu1 %2611 }
 0x9ff   :  { %2614 = vst.msk [vmem:[#allocation3 + $0x6] sm:$0x3] %vm2568_vm5, %v2612_v32 }
 0xa00   :  { %v2582_v6 = vpop.permute.xlu0 %2581 }
 0xa01   :  { %2584 = vst.msk [vmem:[#allocation3 + $0x2] sm:$0x3] %vm2568_vm5, %v2582_v6 }
 0xa02   :  { %v2642_v22 = vpop.permute.xlu1 %2641 }
 0xa03   :  { %2644 = vst.msk [vmem:[#allocation3 + $0xa] sm:$0x3] %vm2568_vm5, %v2642_v22 }
 0xa04   :  { %v2627_v5 = vpop.permute.xlu0 %2626 }
 0xa05   :  { %2629 = vst.msk [vmem:[#allocation3 + $0x8] sm:$0x3] %vm2568_vm5, %v2627_v5 }
 0xa06   :  { %v2672_v11 = vpop.permute.xlu1 %2671 }
 0xa07   :  { %2674 = vst.msk [vmem:[#allocation3 + $0xe] sm:$0x3] %vm2568_vm5, %v2672_v11 }
 0xa08   :  { %v2657_v42 = vpop.permute.xlu0 %2656 }
 0xa09   :  { %2659 = vst.msk [vmem:[#allocation3 + $0xc] sm:$0x3] %vm2568_vm5, %v2657_v42 }
 0xa0a   :  { %6179 = dma.done.wait [#allocation5], 81920 }
 0xa0b   :  { %6180 = vsyncadd [#allocation5], 4294885376  ;;  %3366 = vmatpush1.msra.mxu0 %v6692_v59  ;;  %3437 = vmatpush1.msra.mxu1 %v7492_v0  ;;  %v11800_v0 = vld [vmem:[#allocation178_spill] sm:$0xff]  ;;  %v11803_v4 = vld [vmem:[#allocation35_spill] sm:$0xff]  ;;  %v6186_v8 = vmov 1983009808   ;;  %v3327_v21 = vlaneseq }
 0xa0c   :  { %3367 = vmatprep.subr.mxu0 %v6672_v39  ;;  %3438 = vmatprep.subr.mxu1 %v7472_v17  ;;  %v11808_v17 = vld [vmem:[#allocation168_spill] sm:$0xff]  ;;  %v11809_v18 = vld [vmem:[#allocation26_spill] sm:$0xff]  ;;  %v11820_v39 = vld [vmem:[#allocation153_spill] sm:$0xff]  ;;  %v3325_v12 = vunpack.c.l.s4 %v6186_v8  ;;  %vm4295_vm6 = vcmask 1041408   ;;  %s12397_s6 = sld [smem:[#allocation615_spill]]  ;;  %vm4285_vm7 = vcmask 15360  }
 0xa0d   :  { %3368 = vmatpush1.msra.mxu0 %v6667_v34  ;;  %3439 = vmatpush1.msra.mxu1 %v7467_v13  ;;  %v11806_v13 = vld [vmem:[#allocation169_spill] sm:$0xff]  ;;  %v11817_v34 = vld [vmem:[#allocation16_spill] sm:$0xff]  ;;  %v11843_v37 = vld [vmem:[#allocation123_spill] sm:$0xff]  ;;  %v10010_v28 = vshrl.u32 %v3327_v21, 7  ;;  %vm6188_vm8 = vmmov 0   ;;  %s12398_s13 = sld [smem:[#allocation616_spill]] }
 0xa0e   :  { %3369 = vmatprep.subr.mxu0 %v6647_v14  ;;  %3440 = vmatprep.subr.mxu1 %v7447_v7  ;;  %v11804_v7 = vld [vmem:[#allocation173_spill] sm:$0xff]  ;;  %v11807_v14 = vld [vmem:[#allocation30_spill] sm:$0xff]  ;;  %v11838_v59 = vld [vmem:[#allocation268_spill] sm:$0xff]  ;;  %v3326_v54 = vunpack.c.0.s8 %v3325_v12  ;;  %s12399_s30 = sld [smem:[#allocation614_spill]]  ;;  %vm5132_vm9 = vcmask 519168  }
 0xa0f   :  { %3370 = vmatpush1.msra.mxu0 %v6642_v9  ;;  %3441 = vmatpush1.msra.mxu1 %v7442_v3  ;;  %v11802_v3 = vld [vmem:[#allocation174_spill] sm:$0xff]  ;;  %v11805_v9 = vld [vmem:[#allocation31_spill] sm:$0xff]  ;;  %v11848_v16 = vld [vmem:[#allocation257_spill] sm:$0xff]  ;;  %s12400_s12 = sld [smem:[#allocation613_spill]] }
 0xa10   :  { %3371 = vmatprep.subr.mxu0 %v6622_v61  ;;  %3442 = vmatprep.subr.mxu1 %v7422_v2  ;;  %v11801_v2 = vld [vmem:[#allocation36_spill] sm:$0xff]  ;;  %v11840_v61 = vld [vmem:[#allocation267_spill] sm:$0xff]  ;;  %v11844_v20 = vld [vmem:[#allocation262_spill] sm:$0xff] }
 0xa11   :  { %3372 = vmatpush1.msra.mxu0 %v6617_v60  ;;  %3443 = vmatpush1.msra.mxu1 %v7417_v29  ;;  %v11814_v29 = vld [vmem:[#allocation159_spill] sm:$0xff]  ;;  %v11839_v60 = vld [vmem:[#allocation128_spill] sm:$0xff]  ;;  %v11846_v10 = vld [vmem:[#allocation258_spill] sm:$0xff] }
 0xa12   :  { %3373 = vmatprep.subr.mxu0 %v6597_v56  ;;  %3444 = vmatprep.subr.mxu1 %v7397_v49  ;;  %v11829_v49 = vld [vmem:[#allocation139_spill] sm:$0xff]  ;;  %v11835_v56 = vld [vmem:[#allocation133_spill] sm:$0xff]  ;;  %v11847_v15 = vld [vmem:[#allocation118_spill] sm:$0xff] }
 0xa13   :  { %3374 = vmatpush1.msra.mxu0 %v6592_v55  ;;  %3445 = vmatpush1.msra.mxu1 %v7392_v44  ;;  %v11824_v44 = vld [vmem:[#allocation287_spill] sm:$0xff]  ;;  %v11834_v55 = vld [vmem:[#allocation273_spill] sm:$0xff]  ;;  %v11849_v33 = vld [vmem:[#allocation114_spill] sm:$0xff] }
 0xa14   :  { %3375 = vmatprep.subr.mxu0 %v6572_v51  ;;  %3446 = vmatprep.subr.mxu1 %v7372_v24  ;;  %v11811_v24 = vld [vmem:[#allocation25_spill] sm:$0xff]  ;;  %v11831_v51 = vld [vmem:[#allocation138_spill] sm:$0xff]  ;;  %v11845_v38 = vld [vmem:[#allocation119_spill] sm:$0xff] }
 0xa15   :  { %3376 = vmatpush1.msra.mxu0 %v6567_v50  ;;  %3447 = vmatpush1.msra.mxu1 %v7367_v19  ;;  %v11810_v19 = vld [vmem:[#allocation164_spill] sm:$0xff]  ;;  %v11830_v50 = vld [vmem:[#allocation278_spill] sm:$0xff]  ;;  %v11850_v1 = vld [vmem:[#allocation253_spill] sm:$0xff] }
 0xa16   :  { %3377 = vmatprep.subr.mxu0 %v6547_v46  ;;  %3448 = vmatprep.subr.mxu1 %v7347_v63  ;;  %v11826_v46 = vld [vmem:[#allocation283_spill] sm:$0xff]  ;;  %v11851_v27 = vld [vmem:[#allocation113_spill] sm:$0xff]  ;;  %v11852_v23 = vld [vmem:[#allocation252_spill] sm:$0xff] }
 0xa17   :  { %3378 = vmatpush1.msra.mxu0 %v6542_v45  ;;  %3449 = vmatpush1.msra.mxu1 %v7342_v62  ;;  %v11825_v45 = vld [vmem:[#allocation144_spill] sm:$0xff]  ;;  %v11842_v63 = vld [vmem:[#allocation263_spill] sm:$0xff]  ;;  %v11853_v32 = vld [vmem:[#allocation109_spill] sm:$0xff] }
 0xa18   :  { %3379 = vmatprep.subr.mxu0 %v6522_v41  ;;  %3450 = vmatprep.subr.mxu1 %v7322_v58  ;;  %v11822_v41 = vld [vmem:[#allocation288_spill] sm:$0xff]  ;;  %v11837_v58 = vld [vmem:[#allocation129_spill] sm:$0xff]  ;;  %v11856_v5 = vld [vmem:[#allocation247_spill] sm:$0xff] }
 0xa19   :  { %3380 = vmatpush1.msra.mxu0 %v6517_v40  ;;  %3451 = vmatpush1.msra.mxu1 %v7317_v57  ;;  %v11821_v40 = vld [vmem:[#allocation149_spill] sm:$0xff]  ;;  %v11836_v57 = vld [vmem:[#allocation272_spill] sm:$0xff] }
 0xa1a   :  { %3381 = vmatprep.subr.mxu0 %v6497_v36  ;;  %3452 = vmatprep.subr.mxu1 %v7297_v53  ;;  %v11819_v36 = vld [vmem:[#allocation15_spill] sm:$0xff]  ;;  %v11833_v53 = vld [vmem:[#allocation134_spill] sm:$0xff]  ;;  %v11841_v62 = vld [vmem:[#allocation124_spill] sm:$0xff] }
 0xa1b   :  { %3382 = vmatpush1.msra.mxu0 %v6492_v35  ;;  %3453 = vmatpush1.msra.mxu1 %v7292_v52  ;;  %v11818_v35 = vld [vmem:[#allocation154_spill] sm:$0xff]  ;;  %v11832_v52 = vld [vmem:[#allocation277_spill] sm:$0xff]  ;;  %v11854_v6 = vld [vmem:[#allocation248_spill] sm:$0xff] }
 0xa1c   :  { %3383 = vmatprep.subr.mxu0 %v6472_v31  ;;  %3454 = vmatprep.subr.mxu1 %v7272_v48  ;;  %v11816_v31 = vld [vmem:[#allocation158_spill] sm:$0xff]  ;;  %v11855_v22 = vld [vmem:[#allocation108_spill] sm:$0xff]  ;;  %v11897_v8 = vld [vmem:[#allocation353_spill] sm:$0xff] }
 0xa1d   :  { %3384 = vmatpush1.msra.mxu0 %v6467_v30  ;;  %3455 = vmatpush1.msra.mxu1 %v7267_v47  ;;  %v11815_v30 = vld [vmem:[#allocation20_spill] sm:$0xff]  ;;  %v11827_v47 = vld [vmem:[#allocation143_spill] sm:$0xff]  ;;  %v11828_v48 = vld [vmem:[#allocation282_spill] sm:$0xff] }
 0xa1e   :  { %3385 = vmatprep.subr.mxu0 %v6447_v26  ;;  %3456 = vmatprep.subr.mxu1 %v7247_v43  ;;  %v11813_v26 = vld [vmem:[#allocation21_spill] sm:$0xff]  ;;  %v11823_v43 = vld [vmem:[#allocation148_spill] sm:$0xff] }
 0xa1f   :  { %3386 = vmatpush1.msra.mxu0 %v6442_v25  ;;  %3457 = vmatpush1.msra.mxu1 %v11800_v0  ;;  %v11812_v25 = vld [vmem:[#allocation163_spill] sm:$0xff]  ;;  %v2679_v11 = vld [vmem:[#allocation3] sm:$0xff]  ;;  %v11898_v12 = vld [vmem:[#allocation513_spill] sm:$0xff] }
 0xa20   :  { %3387 = vmatprep.subr.mxu0 %v11801_v2  ;;  %3458 = vmatprep.subr.mxu1 %v11802_v3  ;;  %v11857_v42 = vld [vmem:[#allocation104_spill] sm:$0xff]  ;;  %v11858_v0 = vld [vmem:[#allocation243_spill] sm:$0xff]  ;;  %v11860_v3 = vld [vmem:[#allocation242_spill] sm:$0xff] }
 0xa21   :  { %3388 = vmatpush1.msra.mxu0 %v11803_v4  ;;  %3459 = vmatpush1.msra.mxu1 %v11804_v7  ;;  %v11859_v2 = vld [vmem:[#allocation103_spill] sm:$0xff]  ;;  %v10021_v4 = vsub.s32 %v3326_v54, %v10010_v28  ;;  %v11899_v21 = vld [vmem:[#allocation352_spill] sm:$0xff]  ;;  %v11908_v54 = vld [vmem:[#allocation502_spill] sm:$0xff] }
 0xa22   :  { %3389 = vmatprep.subr.mxu0 %v11805_v9  ;;  %3460 = vmatprep.subr.mxu1 %v11806_v13  ;;  %v11861_v7 = vld [vmem:[#allocation99_spill] sm:$0xff]  ;;  %v11862_v9 = vld [vmem:[#allocation238_spill] sm:$0xff]  ;;  %v3323_v13 = vcombine.high %v2679_v11, %v2679_v11 }
 0xa23   :  { %3390 = vmatpush1.msra.mxu0 %v11807_v14  ;;  %3461 = vmatpush1.msra.mxu1 %v11808_v17  ;;  %v11863_v14 = vld [vmem:[#allocation98_spill] sm:$0xff]  ;;  %v11864_v17 = vld [vmem:[#allocation237_spill] sm:$0xff] }
 0xa24   :  { %3391 = vmatprep.subr.mxu0 %v11809_v18  ;;  %3462 = vmatprep.subr.mxu1 %v11810_v19  ;;  %v11865_v18 = vld [vmem:[#allocation94_spill] sm:$0xff]  ;;  %v11866_v19 = vld [vmem:[#allocation233_spill] sm:$0xff] }
 0xa25   :  { %3392 = vmatpush1.msra.mxu0 %v11811_v24  ;;  %3463 = vmatpush1.msra.mxu1 %v11812_v25  ;;  %v11867_v24 = vld [vmem:[#allocation93_spill] sm:$0xff]  ;;  %v11868_v25 = vld [vmem:[#allocation232_spill] sm:$0xff] }
 0xa26   :  { %3393 = vmatprep.subr.mxu0 %v11813_v26  ;;  %3464 = vmatprep.subr.mxu1 %v11814_v29  ;;  %v10032_v26 = vrot.slane %v2679_v11, %v10021_v4  ;;  %v11869_v29 = vld [vmem:[#allocation89_spill] sm:$0xff] }
 0xa27   :  { %3394 = vmatpush1.msra.mxu0 %v11815_v30  ;;  %3465 = vmatpush1.msra.mxu1 %v11816_v31  ;;  %v11870_v30 = vld [vmem:[#allocation228_spill] sm:$0xff]  ;;  %v10037_v31 = vrot.slane %v3323_v13, %v10021_v4  ;;  %v11913_v11 = vld [vmem:[#allocation333_spill] sm:$0xff]  ;;  %v11920_v13 = vld [vmem:[#allocation487_spill] sm:$0xff] }
 0xa28   :  { %3395 = vmatprep.subr.mxu0 %v11817_v34  ;;  %3466 = vmatprep.subr.mxu1 %v11818_v35  ;;  %v11871_v34 = vld [vmem:[#allocation88_spill] sm:$0xff]  ;;  %v11872_v35 = vld [vmem:[#allocation227_spill] sm:$0xff] }
 0xa29   :  { %3396 = vmatpush1.msra.mxu0 %v11819_v36  ;;  %3467 = vmatpush1.msra.mxu1 %v11820_v39  ;;  %v11873_v36 = vld [vmem:[#allocation84_spill] sm:$0xff]  ;;  %v11874_v39 = vld [vmem:[#allocation223_spill] sm:$0xff] }
 0xa2a   :  { %3397 = vmatprep.subr.mxu0 %v11821_v40  ;;  %3468 = vmatprep.subr.mxu1 %v11822_v41  ;;  %v11875_v40 = vld [vmem:[#allocation83_spill] sm:$0xff]  ;;  %v11876_v41 = vld [vmem:[#allocation222_spill] sm:$0xff] }
 0xa2b   :  { %3398 = vmatpush2.msra.mxu0 %v11823_v43  ;;  %3469 = vmatpush2.msra.mxu1 %v11824_v44  ;;  %v10047_v43 = vcombine.high %v10032_v26, %v10032_v26  ;;  %v11877_v44 = vld [vmem:[#allocation79_spill] sm:$0xff] }
 0xa2c   :  { %3399 = vmatprep.subr.mxu0 %v11825_v45  ;;  %3470 = vmatprep.subr.mxu1 %v11826_v46  ;;  %v11878_v45 = vld [vmem:[#allocation218_spill] sm:$0xff]  ;;  %v10053_v46 = vcombine.high %v10037_v31, %v10037_v31 }
 0xa2d   :  { %3400 = vmatpush2.msra.mxu0 %v11827_v47  ;;  %3471 = vmatpush2.msra.mxu1 %v11828_v48  ;;  %v11879_v47 = vld [vmem:[#allocation78_spill] sm:$0xff]  ;;  %v11880_v48 = vld [vmem:[#allocation217_spill] sm:$0xff] }
 0xa2e   :  { %3401 = vmatprep.subr.mxu0 %v11829_v49  ;;  %3472 = vmatprep.subr.mxu1 %v11830_v50  ;;  %v11881_v49 = vld [vmem:[#allocation74_spill] sm:$0xff]  ;;  %v11882_v50 = vld [vmem:[#allocation213_spill] sm:$0xff] }
 0xa2f   :  { %3402 = vmatpush2.msra.mxu0 %v11831_v51  ;;  %3473 = vmatpush2.msra.mxu1 %v11832_v52  ;;  %v11883_v51 = vld [vmem:[#allocation73_spill] sm:$0xff]  ;;  %v11884_v52 = vld [vmem:[#allocation212_spill] sm:$0xff] }
 0xa30   :  { %3403 = vmatprep.subr.mxu0 %v11833_v53  ;;  %3474 = vmatprep.subr.mxu1 %v11834_v55  ;;  %v11885_v53 = vld [vmem:[#allocation368_spill] sm:$0xff] }
 0xa31   :  { %3404 = vmatpush2.msra.mxu0 %v11835_v56  ;;  %3475 = vmatpush2.msra.mxu1 %v11836_v57  ;;  %v11886_v55 = vld [vmem:[#allocation528_spill] sm:$0xff]  ;;  %v11887_v56 = vld [vmem:[#allocation367_spill] sm:$0xff] }
 0xa32   :  { %3405 = vmatprep.subr.mxu0 %v11837_v58  ;;  %3476 = vmatprep.subr.mxu1 %v11838_v59  ;;  %v11888_v57 = vld [vmem:[#allocation527_spill] sm:$0xff] }
 0xa33   :  { %3406 = vmatpush2.msra.mxu0 %v11839_v60  ;;  %3477 = vmatpush2.msra.mxu1 %v11840_v61  ;;  %v11889_v58 = vld [vmem:[#allocation363_spill] sm:$0xff]  ;;  %v11891_v60 = vld [vmem:[#allocation362_spill] sm:$0xff] }
 0xa34   :  { %3407 = vmatprep.subr.mxu0 %v11841_v62  ;;  %3478 = vmatprep.subr.mxu1 %v11842_v63  ;;  %v11890_v59 = vld [vmem:[#allocation523_spill] sm:$0xff]  ;;  %v11892_v61 = vld [vmem:[#allocation522_spill] sm:$0xff] }
 0xa35   :  { %3408 = vmatpush2.msra.mxu0 %v11843_v37  ;;  %3479 = vmatpush2.msra.mxu1 %v11844_v20  ;;  %v11893_v62 = vld [vmem:[#allocation358_spill] sm:$0xff]  ;;  %v11895_v37 = vld [vmem:[#allocation357_spill] sm:$0xff] }
 0xa36   :  { %3409 = vmatprep.subr.mxu0 %v11845_v38  ;;  %3480 = vmatprep.subr.mxu1 %v11846_v10  ;;  %v11894_v63 = vld [vmem:[#allocation518_spill] sm:$0xff]  ;;  %v11896_v20 = vld [vmem:[#allocation517_spill] sm:$0xff]  ;;  %v11900_v38 = vld [vmem:[#allocation512_spill] sm:$0xff] }
 0xa37   :  { %3410 = vmatpush2.msra.mxu0 %v11847_v15  ;;  %3481 = vmatpush2.msra.mxu1 %v11848_v16  ;;  %v11901_v10 = vld [vmem:[#allocation348_spill] sm:$0xff]  ;;  %v11903_v16 = vld [vmem:[#allocation347_spill] sm:$0xff] }
 0xa38   :  { %3411 = vmatprep.subr.mxu0 %v11849_v33  ;;  %3482 = vmatprep.subr.mxu1 %v11850_v1  ;;  %v11902_v15 = vld [vmem:[#allocation508_spill] sm:$0xff]  ;;  %v11904_v33 = vld [vmem:[#allocation507_spill] sm:$0xff] }
 0xa39   :  { %3412 = vmatpush2.msra.mxu0 %v11851_v27  ;;  %3483 = vmatpush2.msra.mxu1 %v11852_v23  ;;  %v11905_v1 = vld [vmem:[#allocation343_spill] sm:$0xff]  ;;  %v11907_v23 = vld [vmem:[#allocation342_spill] sm:$0xff] }
 0xa3a   :  { %3413 = vmatprep.subr.mxu0 %v11853_v32  ;;  %3484 = vmatprep.subr.mxu1 %v11854_v6  ;;  %v11906_v27 = vld [vmem:[#allocation503_spill] sm:$0xff]  ;;  %v11909_v32 = vld [vmem:[#allocation338_spill] sm:$0xff] }
 0xa3b   :  { %3414 = vmatpush2.msra.mxu0 %v11855_v22  ;;  %3485 = vmatpush2.msra.mxu1 %v11856_v5  ;;  %v11910_v6 = vld [vmem:[#allocation498_spill] sm:$0xff]  ;;  %v11911_v22 = vld [vmem:[#allocation337_spill] sm:$0xff] }
 0xa3c   :  { %3415 = vmatprep.subr.mxu0 %v11857_v42  ;;  %3486 = vmatprep.subr.mxu1 %v11858_v0  ;;  %v11912_v5 = vld [vmem:[#allocation497_spill] sm:$0xff]  ;;  %v11915_v0 = vld [vmem:[#allocation332_spill] sm:$0xff] }
 0xa3d   :  { %3416 = vmatpush2.msra.mxu0 %v11859_v2  ;;  %3487 = vmatpush2.msra.mxu1 %v11860_v3  ;;  %v11914_v42 = vld [vmem:[#allocation493_spill] sm:$0xff]  ;;  %v11916_v2 = vld [vmem:[#allocation492_spill] sm:$0xff] }
 0xa3e   :  { %3417 = vmatprep.subr.mxu0 %v11861_v7  ;;  %3488 = vmatprep.subr.mxu1 %v11862_v9  ;;  %v11917_v3 = vld [vmem:[#allocation328_spill] sm:$0xff]  ;;  %v11919_v9 = vld [vmem:[#allocation327_spill] sm:$0xff] }
 0xa3f   :  { %3418 = vmatpush2.msra.mxu0 %v11863_v14  ;;  %3489 = vmatpush2.msra.mxu1 %v11864_v17  ;;  %v11918_v7 = vld [vmem:[#allocation488_spill] sm:$0xff]  ;;  %v11921_v14 = vld [vmem:[#allocation323_spill] sm:$0xff] }
 0xa40   :  { %3419 = vmatprep.subr.mxu0 %v11865_v18  ;;  %3490 = vmatprep.subr.mxu1 %v11866_v19  ;;  %v11922_v17 = vld [vmem:[#allocation483_spill] sm:$0xff]  ;;  %v11923_v18 = vld [vmem:[#allocation322_spill] sm:$0xff] }
 0xa41   :  { %3420 = vmatpush2.msra.mxu0 %v11867_v24  ;;  %3491 = vmatpush2.msra.mxu1 %v11868_v25  ;;  %v11924_v19 = vld [vmem:[#allocation482_spill] sm:$0xff] }
 0xa42   :  { %3421 = vmatprep.subr.mxu0 %v11869_v29  ;;  %3492 = vmatprep.subr.mxu1 %v11870_v30  ;;  %v11925_v24 = vld [vmem:[#allocation318_spill] sm:$0xff]  ;;  %v11927_v29 = vld [vmem:[#allocation317_spill] sm:$0xff] }
 0xa43   :  { %3422 = vmatpush2.msra.mxu0 %v11871_v34  ;;  %3493 = vmatpush2.msra.mxu1 %v11872_v35  ;;  %v11926_v25 = vld [vmem:[#allocation478_spill] sm:$0xff]  ;;  %v11928_v30 = vld [vmem:[#allocation477_spill] sm:$0xff] }
 0xa44   :  { %3423 = vmatprep.subr.mxu0 %v11873_v36  ;;  %3494 = vmatprep.subr.mxu1 %v11874_v39  ;;  %v11929_v34 = vld [vmem:[#allocation313_spill] sm:$0xff]  ;;  %v11931_v36 = vld [vmem:[#allocation312_spill] sm:$0xff] }
 0xa45   :  { %3424 = vmatpush2.msra.mxu0 %v11875_v40  ;;  %3495 = vmatpush2.msra.mxu1 %v11876_v41  ;;  %v11930_v35 = vld [vmem:[#allocation473_spill] sm:$0xff]  ;;  %v11932_v39 = vld [vmem:[#allocation472_spill] sm:$0xff] }
 0xa46   :  { %3425 = vmatprep.subr.mxu0 %v11877_v44  ;;  %3496 = vmatprep.subr.mxu1 %v11878_v45  ;;  %v11933_v40 = vld [vmem:[#allocation308_spill] sm:$0xff]  ;;  %v11935_v44 = vld [vmem:[#allocation307_spill] sm:$0xff] }
 0xa47   :  { %3426 = vmatpush2.msra.mxu0 %v11879_v47  ;;  %3497 = vmatpush2.msra.mxu1 %v11880_v48  ;;  %v11934_v41 = vld [vmem:[#allocation468_spill] sm:$0xff]  ;;  %v11936_v45 = vld [vmem:[#allocation467_spill] sm:$0xff] }
 0xa48   :  { %3427 = vmatprep.subr.mxu0 %v11881_v49  ;;  %3498 = vmatprep.subr.mxu1 %v11882_v50  ;;  %v11937_v47 = vld [vmem:[#allocation303_spill] sm:$0xff]  ;;  %v11939_v49 = vld [vmem:[#allocation302_spill] sm:$0xff] }
 0xa49   :  { %3428 = vmatpush2.msra.mxu0 %v11883_v51  ;;  %3429 = vmatprep.mubr.f32.mxu0 %v10047_v43  ;;  %v11938_v48 = vld [vmem:[#allocation463_spill] sm:$0xff]  ;;  %v11940_v50 = vld [vmem:[#allocation462_spill] sm:$0xff] }
 0xa4a   :  { %3499 = vmatpush2.msra.mxu1 %v11884_v52  ;;  %3500 = vmatprep.mubr.f32.mxu1 %v10053_v46  ;;  %v11941_v51 = vld [vmem:[#allocation298_spill] sm:$0xff] }
 0xa4b   :  { %3430 = vmatmul.mubr.f32.vlgmr.msra.gmra.mxu0 %v10032_v26  ;;  %3501 = vmatmul.mubr.f32.vlgmr.msra.gmra.mxu1 %v10037_v31  ;;  %v11942_v52 = vld [vmem:[#allocation458_spill] sm:$0xff] }
 0xa4c   :  { %3507 = vmatprep.subr.mxu0 %v11885_v53  ;;  %3578 = vmatprep.subr.mxu1 %v11886_v55  ;;  %v11943_v53 = vld [vmem:[#allocation297_spill] sm:$0xff] }
 0xa4d   :  { %3508 = vmatpush1.msra.mxu0 %v11887_v56  ;;  %3579 = vmatpush1.msra.mxu1 %v11888_v57  ;;  %v11944_v55 = vld [vmem:[#allocation457_spill] sm:$0xff] }
 0xa4e   :  { %3509 = vmatprep.subr.mxu0 %v11889_v58  ;;  %3580 = vmatprep.subr.mxu1 %v11890_v59  ;;  %v11945_v56 = vld [vmem:[#allocation293_spill] sm:$0xff]  ;;  %v11947_v58 = vld [vmem:[#allocation292_spill] sm:$0xff] }
 0xa4f   :  { %3510 = vmatpush1.msra.mxu0 %v11891_v60  ;;  %3581 = vmatpush1.msra.mxu1 %v11892_v61  ;;  %v11946_v57 = vld [vmem:[#allocation453_spill] sm:$0xff]  ;;  %v11948_v59 = vld [vmem:[#allocation452_spill] sm:$0xff] }
 0xa50   :  { %3511 = vmatprep.subr.mxu0 %v11893_v62  ;;  %3582 = vmatprep.subr.mxu1 %v11894_v63  ;;  %v11949_v60 = vld [vmem:[#allocation448_spill] sm:$0xff]  ;;  %v11951_v62 = vld [vmem:[#allocation447_spill] sm:$0xff] }
 0xa51   :  { %3512 = vmatpush1.msra.mxu0 %v11895_v37  ;;  %3583 = vmatpush1.msra.mxu1 %v11896_v20  ;;  %v11950_v61 = vld [vmem:[#allocation608_spill] sm:$0xff]  ;;  %v11952_v63 = vld [vmem:[#allocation607_spill] sm:$0xff] }
 0xa52   :  { %3513 = vmatprep.subr.mxu0 %v11897_v8  ;;  %3584 = vmatprep.subr.mxu1 %v11898_v12  ;;  %v11953_v37 = vld [vmem:[#allocation443_spill] sm:$0xff]  ;;  %v11955_v8 = vld [vmem:[#allocation442_spill] sm:$0xff] }
 0xa53   :  { %3514 = vmatpush1.msra.mxu0 %v11899_v21  ;;  %3585 = vmatpush1.msra.mxu1 %v11900_v38  ;;  %v11954_v20 = vld [vmem:[#allocation603_spill] sm:$0xff]  ;;  %v11956_v12 = vld [vmem:[#allocation602_spill] sm:$0xff] }
 0xa54   :  { %3515 = vmatprep.subr.mxu0 %v11901_v10  ;;  %3586 = vmatprep.subr.mxu1 %v11902_v15  ;;  %v11957_v21 = vld [vmem:[#allocation438_spill] sm:$0xff]  ;;  %v11959_v10 = vld [vmem:[#allocation437_spill] sm:$0xff] }
 0xa55   :  { %3516 = vmatpush1.msra.mxu0 %v11903_v16  ;;  %3587 = vmatpush1.msra.mxu1 %v11904_v33  ;;  %v11958_v38 = vld [vmem:[#allocation598_spill] sm:$0xff]  ;;  %v11960_v15 = vld [vmem:[#allocation597_spill] sm:$0xff] }
 0xa56   :  { %3517 = vmatprep.subr.mxu0 %v11905_v1  ;;  %3588 = vmatprep.subr.mxu1 %v11906_v27  ;;  %v11961_v16 = vld [vmem:[#allocation433_spill] sm:$0xff]  ;;  %v11963_v1 = vld [vmem:[#allocation432_spill] sm:$0xff] }
 0xa57   :  { %3518 = vmatpush1.msra.mxu0 %v11907_v23  ;;  %3589 = vmatpush1.msra.mxu1 %v11908_v54  ;;  %v11962_v33 = vld [vmem:[#allocation593_spill] sm:$0xff]  ;;  %v11964_v27 = vld [vmem:[#allocation592_spill] sm:$0xff] }
 0xa58   :  { %3519 = vmatprep.subr.mxu0 %v11909_v32  ;;  %3590 = vmatprep.subr.mxu1 %v11910_v6  ;;  %v11965_v23 = vld [vmem:[#allocation428_spill] sm:$0xff]  ;;  %v11967_v32 = vld [vmem:[#allocation427_spill] sm:$0xff] }
 0xa59   :  { %3520 = vmatpush1.msra.mxu0 %v11911_v22  ;;  %3591 = vmatpush1.msra.mxu1 %v11912_v5  ;;  %v11966_v54 = vld [vmem:[#allocation588_spill] sm:$0xff]  ;;  %v11968_v6 = vld [vmem:[#allocation587_spill] sm:$0xff] }
 0xa5a   :  { %3521 = vmatprep.subr.mxu0 %v11913_v11  ;;  %3592 = vmatprep.subr.mxu1 %v11914_v42  ;;  %v11969_v22 = vld [vmem:[#allocation423_spill] sm:$0xff]  ;;  %v11971_v11 = vld [vmem:[#allocation422_spill] sm:$0xff] }
 0xa5b   :  { %3522 = vmatpush1.msra.mxu0 %v11915_v0  ;;  %3593 = vmatpush1.msra.mxu1 %v11916_v2  ;;  %v11970_v5 = vld [vmem:[#allocation583_spill] sm:$0xff]  ;;  %v11972_v42 = vld [vmem:[#allocation582_spill] sm:$0xff] }
 0xa5c   :  { %3523 = vmatprep.subr.mxu0 %v11917_v3  ;;  %3594 = vmatprep.subr.mxu1 %v11918_v7  ;;  %v11973_v0 = vld [vmem:[#allocation418_spill] sm:$0xff]  ;;  %v11975_v3 = vld [vmem:[#allocation417_spill] sm:$0xff] }
 0xa5d   :  { %3524 = vmatpush1.msra.mxu0 %v11919_v9  ;;  %3595 = vmatpush1.msra.mxu1 %v11920_v13  ;;  %v11974_v2 = vld [vmem:[#allocation578_spill] sm:$0xff]  ;;  %v11976_v7 = vld [vmem:[#allocation577_spill] sm:$0xff] }
 0xa5e   :  { %3525 = vmatprep.subr.mxu0 %v11921_v14  ;;  %3596 = vmatprep.subr.mxu1 %v11922_v17  ;;  %v11977_v9 = vld [vmem:[#allocation413_spill] sm:$0xff]  ;;  %v11979_v14 = vld [vmem:[#allocation412_spill] sm:$0xff] }
 0xa5f   :  { %3526 = vmatpush1.msra.mxu0 %v11923_v18  ;;  %3597 = vmatpush1.msra.mxu1 %v11924_v19  ;;  %v11978_v13 = vld [vmem:[#allocation573_spill] sm:$0xff]  ;;  %v11980_v17 = vld [vmem:[#allocation572_spill] sm:$0xff] }
 0xa60   :  { %3527 = vmatprep.subr.mxu0 %v11925_v24  ;;  %3598 = vmatprep.subr.mxu1 %v11926_v25  ;;  %v11981_v18 = vld [vmem:[#allocation408_spill] sm:$0xff]  ;;  %v11983_v24 = vld [vmem:[#allocation407_spill] sm:$0xff] }
 0xa61   :  { %3528 = vmatpush1.msra.mxu0 %v11927_v29  ;;  %3599 = vmatpush1.msra.mxu1 %v11928_v30  ;;  %v11982_v19 = vld [vmem:[#allocation568_spill] sm:$0xff]  ;;  %v11984_v25 = vld [vmem:[#allocation567_spill] sm:$0xff] }
 0xa62   :  { %3529 = vmatprep.subr.mxu0 %v11929_v34  ;;  %3600 = vmatprep.subr.mxu1 %v11930_v35  ;;  %v11985_v29 = vld [vmem:[#allocation403_spill] sm:$0xff]  ;;  %v2680_v34 = vld [vmem:[#allocation3 + $0x8] sm:$0xff]  ;;  %v11987_v35 = vld [vmem:[#allocation402_spill] sm:$0xff] }
 0xa63   :  { %3530 = vmatpush1.msra.mxu0 %v11931_v36  ;;  %3601 = vmatpush1.msra.mxu1 %v11932_v39  ;;  %v11986_v30 = vld [vmem:[#allocation563_spill] sm:$0xff]  ;;  %v11988_v36 = vld [vmem:[#allocation562_spill] sm:$0xff] }
 0xa64   :  { %3531 = vmatprep.subr.mxu0 %v11933_v40  ;;  %3602 = vmatprep.subr.mxu1 %v11934_v41  ;;  %v11989_v39 = vld [vmem:[#allocation398_spill] sm:$0xff]  ;;  %v11991_v41 = vld [vmem:[#allocation397_spill] sm:$0xff] }
 0xa65   :  { %3532 = vmatpush1.msra.mxu0 %v11935_v44  ;;  %3603 = vmatpush1.msra.mxu1 %v11936_v45  ;;  %v11990_v40 = vld [vmem:[#allocation558_spill] sm:$0xff]  ;;  %v11992_v44 = vld [vmem:[#allocation557_spill] sm:$0xff]  ;;  %v3340_v45 = vcombine.high %v2680_v34, %v2680_v34 }
 0xa66   :  { %3533 = vmatprep.subr.mxu0 %v11937_v47  ;;  %3604 = vmatprep.subr.mxu1 %v11938_v48  ;;  %v11993_v47 = vld [vmem:[#allocation393_spill] sm:$0xff] }
 0xa67   :  { %3534 = vmatpush1.msra.mxu0 %v11939_v49  ;;  %3605 = vmatpush1.msra.mxu1 %v11940_v50  ;;  %v11994_v48 = vld [vmem:[#allocation553_spill] sm:$0xff]  ;;  %v11995_v49 = vld [vmem:[#allocation392_spill] sm:$0xff] }
 0xa68   :  { %3535 = vmatprep.subr.mxu0 %v11941_v51  ;;  %3606 = vmatprep.subr.mxu1 %v11942_v52  ;;  %v11996_v50 = vld [vmem:[#allocation552_spill] sm:$0xff]  ;;  %v10178_v51 = vrot.slane %v2680_v34, %v10021_v4  ;;  %v12040_v34 = vld [vmem:[#allocation191_spill] sm:$0xff] }
 0xa69   :  { %3536 = vmatpush1.msra.mxu0 %v11943_v53  ;;  %3607 = vmatpush1.msra.mxu1 %v11944_v55  ;;  %v11997_v52 = vld [vmem:[#allocation388_spill] sm:$0xff]  ;;  %v11999_v55 = vld [vmem:[#allocation387_spill] sm:$0xff] }
 0xa6a   :  { %3537 = vmatprep.subr.mxu0 %v11945_v56  ;;  %3608 = vmatprep.subr.mxu1 %v11946_v57  ;;  %v11998_v53 = vld [vmem:[#allocation548_spill] sm:$0xff]  ;;  %v12000_v56 = vld [vmem:[#allocation547_spill] sm:$0xff]  ;;  %v10185_v57 = vrot.slane %v3340_v45, %v10021_v4  ;;  %v12008_v4 = vld [vmem:[#allocation537_spill] sm:$0xff] }
 0xa6b   :  { %3538 = vmatpush1.msra.mxu0 %v11947_v58  ;;  %3609 = vmatpush1.msra.mxu1 %v11948_v59  ;;  %v12001_v58 = vld [vmem:[#allocation383_spill] sm:$0xff]  ;;  %v12047_v45 = vld [vmem:[#allocation46_spill] sm:$0xff] }
 0xa6c   :  { %3539 = vmatprep.subr.mxu0 %v11949_v60  ;;  %3610 = vmatprep.subr.mxu1 %v11950_v61  ;;  %v12002_v59 = vld [vmem:[#allocation543_spill] sm:$0xff]  ;;  %v12003_v60 = vld [vmem:[#allocation382_spill] sm:$0xff] }
 0xa6d   :  { %3540 = vmatpush2.msra.mxu0 %v11951_v62  ;;  %3611 = vmatpush2.msra.mxu1 %v11952_v63  ;;  %v12004_v61 = vld [vmem:[#allocation542_spill] sm:$0xff]  ;;  %v10193_v62 = vcombine.high %v10178_v51, %v10178_v51 }
 0xa6e   :  { %3541 = vmatprep.subr.mxu0 %v11953_v37  ;;  %3612 = vmatprep.subr.mxu1 %v11954_v20  ;;  %v12005_v63 = vld [vmem:[#allocation378_spill] sm:$0xff]  ;;  %v12007_v20 = vld [vmem:[#allocation377_spill] sm:$0xff] }
 0xa6f   :  { %3542 = vmatpush2.msra.mxu0 %v11955_v8  ;;  %3613 = vmatpush2.msra.mxu1 %v11956_v12  ;;  %v12006_v37 = vld [vmem:[#allocation538_spill] sm:$0xff]  ;;  %v10201_v8 = vcombine.high %v10185_v57, %v10185_v57  ;;  %v12009_v12 = vld [vmem:[#allocation373_spill] sm:$0xff] }
 0xa70   :  { %3543 = vmatprep.subr.mxu0 %v11957_v21  ;;  %3614 = vmatprep.subr.mxu1 %v11958_v38  ;;  %v12010_v21 = vld [vmem:[#allocation533_spill] sm:$0xff]  ;;  %v12011_v38 = vld [vmem:[#allocation372_spill] sm:$0xff] }
 0xa71   :  { %3544 = vmatpush2.msra.mxu0 %v11959_v10  ;;  %3615 = vmatpush2.msra.mxu1 %v11960_v15  ;;  %v12012_v10 = vld [vmem:[#allocation532_spill] sm:$0xff]  ;;  %v12013_v15 = vld [vmem:[#allocation71_spill] sm:$0xff] }
 0xa72   :  { %3545 = vmatprep.subr.mxu0 %v11961_v16  ;;  %3616 = vmatprep.subr.mxu1 %v11962_v33  ;;  %v12014_v16 = vld [vmem:[#allocation210_spill] sm:$0xff] }
 0xa73   :  { %3546 = vmatpush2.msra.mxu0 %v11963_v1  ;;  %3617 = vmatpush2.msra.mxu1 %v11964_v27  ;;  %v12015_v33 = vld [vmem:[#allocation70_spill] sm:$0xff]  ;;  %v12016_v1 = vld [vmem:[#allocation209_spill] sm:$0xff]  ;;  %v12017_v27 = vld [vmem:[#allocation68_spill] sm:$0xff] }
 0xa74   :  { %3547 = vmatprep.subr.mxu0 %v11965_v23  ;;  %3618 = vmatprep.subr.mxu1 %v11966_v54  ;;  %v12018_v23 = vld [vmem:[#allocation207_spill] sm:$0xff] }
 0xa75   :  { %3548 = vmatpush2.msra.mxu0 %v11967_v32  ;;  %3619 = vmatpush2.msra.mxu1 %v11968_v6  ;;  %v12019_v54 = vld [vmem:[#allocation67_spill] sm:$0xff]  ;;  %v12020_v32 = vld [vmem:[#allocation206_spill] sm:$0xff]  ;;  %v12021_v6 = vld [vmem:[#allocation65_spill] sm:$0xff] }
 0xa76   :  { %3549 = vmatprep.subr.mxu0 %v11969_v22  ;;  %3620 = vmatprep.subr.mxu1 %v11970_v5  ;;  %v12022_v22 = vld [vmem:[#allocation204_spill] sm:$0xff] }
 0xa77   :  { %3550 = vmatpush2.msra.mxu0 %v11971_v11  ;;  %3621 = vmatpush2.msra.mxu1 %v11972_v42  ;;  %v12023_v5 = vld [vmem:[#allocation64_spill] sm:$0xff]  ;;  %v12024_v11 = vld [vmem:[#allocation203_spill] sm:$0xff]  ;;  %v12025_v42 = vld [vmem:[#allocation62_spill] sm:$0xff] }
 0xa78   :  { %3551 = vmatprep.subr.mxu0 %v11973_v0  ;;  %3622 = vmatprep.subr.mxu1 %v11974_v2  ;;  %v12026_v0 = vld [vmem:[#allocation201_spill] sm:$0xff] }
 0xa79   :  { %3552 = vmatpush2.msra.mxu0 %v11975_v3  ;;  %3623 = vmatpush2.msra.mxu1 %v11976_v7  ;;  %v12027_v2 = vld [vmem:[#allocation61_spill] sm:$0xff]  ;;  %v12028_v3 = vld [vmem:[#allocation200_spill] sm:$0xff]  ;;  %v12029_v7 = vld [vmem:[#allocation59_spill] sm:$0xff] }
 0xa7a   :  { %3553 = vmatprep.subr.mxu0 %v11977_v9  ;;  %3624 = vmatprep.subr.mxu1 %v11978_v13  ;;  %v12030_v9 = vld [vmem:[#allocation198_spill] sm:$0xff] }
 0xa7b   :  { %3554 = vmatpush2.msra.mxu0 %v11979_v14  ;;  %3625 = vmatpush2.msra.mxu1 %v11980_v17  ;;  %v12031_v13 = vld [vmem:[#allocation58_spill] sm:$0xff]  ;;  %v12032_v14 = vld [vmem:[#allocation197_spill] sm:$0xff]  ;;  %v12033_v17 = vld [vmem:[#allocation56_spill] sm:$0xff] }
 0xa7c   :  { %3555 = vmatprep.subr.mxu0 %v11981_v18  ;;  %3626 = vmatprep.subr.mxu1 %v11982_v19  ;;  %v12034_v18 = vld [vmem:[#allocation195_spill] sm:$0xff] }
 0xa7d   :  { %3556 = vmatpush2.msra.mxu0 %v11983_v24  ;;  %3627 = vmatpush2.msra.mxu1 %v11984_v25  ;;  %v12035_v19 = vld [vmem:[#allocation55_spill] sm:$0xff]  ;;  %v12036_v24 = vld [vmem:[#allocation194_spill] sm:$0xff]  ;;  %v12037_v25 = vld [vmem:[#allocation53_spill] sm:$0xff] }
 0xa7e   :  { %3557 = vmatprep.subr.mxu0 %v11985_v29  ;;  %3628 = vmatprep.subr.mxu1 %v11986_v30  ;;  %v12038_v29 = vld [vmem:[#allocation192_spill] sm:$0xff] }
 0xa7f   :  { %3558 = vmatpush2.msra.mxu0 %v11987_v35  ;;  %3629 = vmatpush2.msra.mxu1 %v11988_v36  ;;  %v12039_v30 = vld [vmem:[#allocation52_spill] sm:$0xff]  ;;  %v12041_v35 = vld [vmem:[#allocation50_spill] sm:$0xff]  ;;  %v12042_v36 = vld [vmem:[#allocation189_spill] sm:$0xff] }
 0xa80   :  { %3559 = vmatprep.subr.mxu0 %v11989_v39  ;;  %3630 = vmatprep.subr.mxu1 %v11990_v40  ;;  %v12043_v39 = vld [vmem:[#allocation49_spill] sm:$0xff]  ;;  %v12044_v40 = vld [vmem:[#allocation188_spill] sm:$0xff] }
 0xa81   :  { %3560 = vmatpush2.msra.mxu0 %v11991_v41  ;;  %3631 = vmatpush2.msra.mxu1 %v11992_v44  ;;  %v12045_v41 = vld [vmem:[#allocation47_spill] sm:$0xff]  ;;  %v12046_v44 = vld [vmem:[#allocation186_spill] sm:$0xff] }
 0xa82   :  { %3561 = vmatprep.subr.mxu0 %v11993_v47  ;;  %3632 = vmatprep.subr.mxu1 %v11994_v48  ;;  %v12048_v47 = vld [vmem:[#allocation185_spill] sm:$0xff]  ;;  %v12049_v48 = vld [vmem:[#allocation44_spill] sm:$0xff] }
 0xa83   :  { %3562 = vmatpush2.msra.mxu0 %v11995_v49  ;;  %3633 = vmatpush2.msra.mxu1 %v11996_v50  ;;  %v12050_v49 = vld [vmem:[#allocation183_spill] sm:$0xff] }
 0xa84   :  { %3563 = vmatprep.subr.mxu0 %v11997_v52  ;;  %3634 = vmatprep.subr.mxu1 %v11998_v53  ;;  %v12051_v50 = vld [vmem:[#allocation43_spill] sm:$0xff]  ;;  %v12052_v52 = vld [vmem:[#allocation182_spill] sm:$0xff]  ;;  %v12053_v53 = vld [vmem:[#allocation41_spill] sm:$0xff] }
 0xa85   :  { %3564 = vmatpush2.msra.mxu0 %v11999_v55  ;;  %3635 = vmatpush2.msra.mxu1 %v12000_v56  ;;  %v12054_v55 = vld [vmem:[#allocation180_spill] sm:$0xff] }
 0xa86   :  { %3565 = vmatprep.subr.mxu0 %v12001_v58  ;;  %3636 = vmatprep.subr.mxu1 %v12002_v59  ;;  %v12055_v56 = vld [vmem:[#allocation40_spill] sm:$0xff]  ;;  %v12056_v58 = vld [vmem:[#allocation179_spill] sm:$0xff]  ;;  %v12057_v59 = vld [vmem:[#allocation38_spill] sm:$0xff] }
 0xa87   :  { %3566 = vmatpush2.msra.mxu0 %v12003_v60  ;;  %3637 = vmatpush2.msra.mxu1 %v12004_v61  ;;  %v12058_v60 = vld [vmem:[#allocation176_spill] sm:$0xff]  ;;  %v12059_v61 = vld [vmem:[#allocation37_spill] sm:$0xff] }
 0xa88   :  { %3567 = vmatprep.subr.mxu0 %v12005_v63  ;;  %3638 = vmatprep.subr.mxu1 %v12006_v37  ;;  %v12060_v63 = vld [vmem:[#allocation175_spill] sm:$0xff]  ;;  %v12061_v37 = vld [vmem:[#allocation33_spill] sm:$0xff] }
 0xa89   :  { %3568 = vmatpush2.msra.mxu0 %v12007_v20  ;;  %3639 = vmatpush2.msra.mxu1 %v12008_v4  ;;  %v12062_v20 = vld [vmem:[#allocation171_spill] sm:$0xff]  ;;  %v12063_v4 = vld [vmem:[#allocation32_spill] sm:$0xff] }
 0xa8a   :  { %3569 = vmatprep.subr.mxu0 %v12009_v12  ;;  %3640 = vmatprep.subr.mxu1 %v12010_v21  ;;  %v12064_v12 = vld [vmem:[#allocation170_spill] sm:$0xff]  ;;  %v12065_v21 = vld [vmem:[#allocation28_spill] sm:$0xff] }
 0xa8b   :  { %3570 = vmatpush2.msra.mxu0 %v12011_v38  ;;  %3571 = vmatprep.mubr.f32.mxu0 %v10193_v62  ;;  %v12066_v38 = vld [vmem:[#allocation166_spill] sm:$0xff] }
 0xa8c   :  { %3641 = vmatpush2.msra.mxu1 %v12012_v10  ;;  %3572 = vmatmul.mubr.f32.vlgmr.msra.gmra.mxu0 %v10178_v51  ;;  %v12067_v10 = vld [vmem:[#allocation27_spill] sm:$0xff] }
 0xa8d   :  { %3642 = vmatprep.mubr.f32.mxu1 %v10201_v8  ;;  %3649 = vmatprep.subr.mxu0 %v12013_v15  ;;  %v12068_v15 = vld [vmem:[#allocation165_spill] sm:$0xff] }
 0xa8e   :  { %3720 = vmatprep.subr.mxu1 %v12014_v16  ;;  %3643 = vmatmul.mubr.f32.vlgmr.msra.gmra.mxu1 %v10185_v57  ;;  %v12069_v16 = vld [vmem:[#allocation23_spill] sm:$0xff] }
 0xa8f   :  { %3650 = vmatpush1.msra.mxu0 %v12015_v33  ;;  %3721 = vmatpush1.msra.mxu1 %v12016_v1  ;;  %v12070_v33 = vld [vmem:[#allocation161_spill] sm:$0xff]  ;;  %v12071_v1 = vld [vmem:[#allocation22_spill] sm:$0xff] }
 0xa90   :  { %3651 = vmatprep.subr.mxu0 %v12017_v27  ;;  %3722 = vmatprep.subr.mxu1 %v12018_v23  ;;  %v12072_v27 = vld [vmem:[#allocation160_spill] sm:$0xff]  ;;  %v12073_v23 = vld [vmem:[#allocation18_spill] sm:$0xff] }
 0xa91   :  { %3652 = vmatpush1.msra.mxu0 %v12019_v54  ;;  %3723 = vmatpush1.msra.mxu1 %v12020_v32  ;;  %v12074_v54 = vld [vmem:[#allocation156_spill] sm:$0xff]  ;;  %v12075_v32 = vld [vmem:[#allocation17_spill] sm:$0xff] }
 0xa92   :  { %3653 = vmatprep.subr.mxu0 %v12021_v6  ;;  %3724 = vmatprep.subr.mxu1 %v12022_v22  ;;  %v12076_v6 = vld [vmem:[#allocation155_spill] sm:$0xff] }
 0xa93   :  { %3654 = vmatpush1.msra.mxu0 %v12023_v5  ;;  %3725 = vmatpush1.msra.mxu1 %v12024_v11  ;;  %v12077_v22 = vld [vmem:[#allocation151_spill] sm:$0xff]  ;;  %v12078_v5 = vld [vmem:[#allocation290_spill] sm:$0xff] }
 0xa94   :  { %3655 = vmatprep.subr.mxu0 %v12025_v42  ;;  %3726 = vmatprep.subr.mxu1 %v12026_v0  ;;  %v12079_v11 = vld [vmem:[#allocation150_spill] sm:$0xff]  ;;  %v12080_v42 = vld [vmem:[#allocation289_spill] sm:$0xff] }
 0xa95   :  { %3656 = vmatpush1.msra.mxu0 %v12027_v2  ;;  %3727 = vmatpush1.msra.mxu1 %v12028_v3  ;;  %v12081_v0 = vld [vmem:[#allocation146_spill] sm:$0xff]  ;;  %v12082_v2 = vld [vmem:[#allocation285_spill] sm:$0xff] }
 0xa96   :  { %3657 = vmatprep.subr.mxu0 %v12029_v7  ;;  %3728 = vmatprep.subr.mxu1 %v12030_v9  ;;  %v12083_v3 = vld [vmem:[#allocation145_spill] sm:$0xff]  ;;  %v12084_v7 = vld [vmem:[#allocation284_spill] sm:$0xff] }
 0xa97   :  { %3658 = vmatpush1.msra.mxu0 %v12031_v13  ;;  %3729 = vmatpush1.msra.mxu1 %v12032_v14  ;;  %v12085_v9 = vld [vmem:[#allocation141_spill] sm:$0xff]  ;;  %v12086_v13 = vld [vmem:[#allocation280_spill] sm:$0xff] }
 0xa98   :  { %3659 = vmatprep.subr.mxu0 %v12033_v17  ;;  %3730 = vmatprep.subr.mxu1 %v12034_v18  ;;  %v12087_v14 = vld [vmem:[#allocation140_spill] sm:$0xff]  ;;  %v12088_v17 = vld [vmem:[#allocation279_spill] sm:$0xff] }
 0xa99   :  { %3660 = vmatpush1.msra.mxu0 %v12035_v19  ;;  %3731 = vmatpush1.msra.mxu1 %v12036_v24  ;;  %v12089_v18 = vld [vmem:[#allocation136_spill] sm:$0xff]  ;;  %v12090_v19 = vld [vmem:[#allocation275_spill] sm:$0xff] }
 0xa9a   :  { %3661 = vmatprep.subr.mxu0 %v12037_v25  ;;  %3732 = vmatprep.subr.mxu1 %v12038_v29  ;;  %v12091_v24 = vld [vmem:[#allocation135_spill] sm:$0xff]  ;;  %v12092_v25 = vld [vmem:[#allocation274_spill] sm:$0xff] }
 0xa9b   :  { %3662 = vmatpush1.msra.mxu0 %v12039_v30  ;;  %3733 = vmatpush1.msra.mxu1 %v12040_v34  ;;  %v12093_v29 = vld [vmem:[#allocation131_spill] sm:$0xff]  ;;  %v12094_v30 = vld [vmem:[#allocation270_spill] sm:$0xff] }
 0xa9c   :  { %3663 = vmatprep.subr.mxu0 %v12041_v35  ;;  %3734 = vmatprep.subr.mxu1 %v12042_v36  ;;  %v12095_v34 = vld [vmem:[#allocation130_spill] sm:$0xff]  ;;  %v12096_v35 = vld [vmem:[#allocation269_spill] sm:$0xff] }
 0xa9d   :  { %3664 = vmatpush1.msra.mxu0 %v12043_v39  ;;  %3735 = vmatpush1.msra.mxu1 %v12044_v40  ;;  %v12097_v36 = vld [vmem:[#allocation126_spill] sm:$0xff]  ;;  %v12098_v39 = vld [vmem:[#allocation265_spill] sm:$0xff] }
 0xa9e   :  { %3665 = vmatprep.subr.mxu0 %v12045_v41  ;;  %3736 = vmatprep.subr.mxu1 %v12046_v44  ;;  %v12099_v40 = vld [vmem:[#allocation125_spill] sm:$0xff]  ;;  %v12100_v41 = vld [vmem:[#allocation264_spill] sm:$0xff] }
 0xa9f   :  { %3666 = vmatpush1.msra.mxu0 %v12047_v45  ;;  %3737 = vmatpush1.msra.mxu1 %v12048_v47  ;;  %v12101_v44 = vld [vmem:[#allocation121_spill] sm:$0xff]  ;;  %v12102_v45 = vld [vmem:[#allocation260_spill] sm:$0xff] }
 0xaa0   :  { %3667 = vmatprep.subr.mxu0 %v12049_v48  ;;  %3738 = vmatprep.subr.mxu1 %v12050_v49  ;;  %v12103_v47 = vld [vmem:[#allocation120_spill] sm:$0xff]  ;;  %v12104_v48 = vld [vmem:[#allocation259_spill] sm:$0xff] }
 0xaa1   :  { %3668 = vmatpush1.msra.mxu0 %v12051_v50  ;;  %3739 = vmatpush1.msra.mxu1 %v12052_v52  ;;  %v12105_v49 = vld [vmem:[#allocation116_spill] sm:$0xff]  ;;  %v12106_v50 = vld [vmem:[#allocation255_spill] sm:$0xff] }
 0xaa2   :  { %3669 = vmatprep.subr.mxu0 %v12053_v53  ;;  %3740 = vmatprep.subr.mxu1 %v12054_v55  ;;  %v12107_v52 = vld [vmem:[#allocation115_spill] sm:$0xff]  ;;  %v12108_v53 = vld [vmem:[#allocation254_spill] sm:$0xff] }
 0xaa3   :  { %3670 = vmatpush1.msra.mxu0 %v12055_v56  ;;  %3741 = vmatpush1.msra.mxu1 %v12056_v58  ;;  %v12109_v55 = vld [vmem:[#allocation111_spill] sm:$0xff]  ;;  %v12110_v56 = vld [vmem:[#allocation250_spill] sm:$0xff] }
 0xaa4   :  { %3671 = vmatprep.subr.mxu0 %v12057_v59  ;;  %3742 = vmatprep.subr.mxu1 %v12058_v60  ;;  %v12111_v58 = vld [vmem:[#allocation110_spill] sm:$0xff]  ;;  %v12112_v59 = vld [vmem:[#allocation249_spill] sm:$0xff] }
 0xaa5   :  { %3672 = vmatpush1.msra.mxu0 %v12059_v61  ;;  %3743 = vmatpush1.msra.mxu1 %v12060_v63  ;;  %v12113_v60 = vld [vmem:[#allocation106_spill] sm:$0xff]  ;;  %v12114_v61 = vld [vmem:[#allocation245_spill] sm:$0xff] }
 0xaa6   :  { %3673 = vmatprep.subr.mxu0 %v12061_v37  ;;  %3744 = vmatprep.subr.mxu1 %v12062_v20  ;;  %v12115_v63 = vld [vmem:[#allocation105_spill] sm:$0xff]  ;;  %v12116_v37 = vld [vmem:[#allocation244_spill] sm:$0xff] }
 0xaa7   :  { %3674 = vmatpush1.msra.mxu0 %v12063_v4  ;;  %3745 = vmatpush1.msra.mxu1 %v12064_v12  ;;  %v12117_v20 = vld [vmem:[#allocation101_spill] sm:$0xff]  ;;  %v12118_v4 = vld [vmem:[#allocation240_spill] sm:$0xff] }
 0xaa8   :  { %3675 = vmatprep.subr.mxu0 %v12065_v21  ;;  %3746 = vmatprep.subr.mxu1 %v12066_v38  ;;  %v12119_v12 = vld [vmem:[#allocation100_spill] sm:$0xff]  ;;  %v12120_v21 = vld [vmem:[#allocation239_spill] sm:$0xff] }
 0xaa9   :  { %3676 = vmatpush1.msra.mxu0 %v12067_v10  ;;  %3747 = vmatpush1.msra.mxu1 %v12068_v15  ;;  %v12121_v38 = vld [vmem:[#allocation96_spill] sm:$0xff]  ;;  %v12122_v10 = vld [vmem:[#allocation235_spill] sm:$0xff] }
 0xaaa   :  { %3677 = vmatprep.subr.mxu0 %v12069_v16  ;;  %3748 = vmatprep.subr.mxu1 %v12070_v33  ;;  %v12123_v15 = vld [vmem:[#allocation95_spill] sm:$0xff]  ;;  %v12124_v16 = vld [vmem:[#allocation234_spill] sm:$0xff] }
 0xaab   :  { %3678 = vmatpush1.msra.mxu0 %v12071_v1  ;;  %3749 = vmatpush1.msra.mxu1 %v12072_v27  ;;  %v12125_v33 = vld [vmem:[#allocation91_spill] sm:$0xff]  ;;  %v12126_v1 = vld [vmem:[#allocation230_spill] sm:$0xff] }
 0xaac   :  { %3679 = vmatprep.subr.mxu0 %v12073_v23  ;;  %3750 = vmatprep.subr.mxu1 %v12074_v54  ;;  %v12127_v27 = vld [vmem:[#allocation90_spill] sm:$0xff]  ;;  %v12128_v23 = vld [vmem:[#allocation229_spill] sm:$0xff] }
 0xaad   :  { %3680 = vmatpush1.msra.mxu0 %v12075_v32  ;;  %3751 = vmatpush1.msra.mxu1 %v12076_v6  ;;  %v12129_v54 = vld [vmem:[#allocation86_spill] sm:$0xff]  ;;  %v12130_v32 = vld [vmem:[#allocation225_spill] sm:$0xff] }
 0xaae   :  { %3681 = vmatprep.subr.mxu0 %v12077_v22  ;;  %3752 = vmatprep.subr.mxu1 %v12078_v5  ;;  %v12131_v6 = vld [vmem:[#allocation85_spill] sm:$0xff]  ;;  %v12132_v22 = vld [vmem:[#allocation224_spill] sm:$0xff] }
 0xaaf   :  { %3682 = vmatpush2.msra.mxu0 %v12079_v11  ;;  %3753 = vmatpush2.msra.mxu1 %v12080_v42  ;;  %v12133_v5 = vld [vmem:[#allocation81_spill] sm:$0xff]  ;;  %v12134_v11 = vld [vmem:[#allocation220_spill] sm:$0xff] }
 0xab0   :  { %3683 = vmatprep.subr.mxu0 %v12081_v0  ;;  %3754 = vmatprep.subr.mxu1 %v12082_v2  ;;  %v12135_v42 = vld [vmem:[#allocation80_spill] sm:$0xff]  ;;  %v12136_v0 = vld [vmem:[#allocation219_spill] sm:$0xff] }
 0xab1   :  { %3684 = vmatpush2.msra.mxu0 %v12083_v3  ;;  %3755 = vmatpush2.msra.mxu1 %v12084_v7  ;;  %v12137_v2 = vld [vmem:[#allocation76_spill] sm:$0xff]  ;;  %v12138_v3 = vld [vmem:[#allocation215_spill] sm:$0xff] }
 0xab2   :  { %3685 = vmatprep.subr.mxu0 %v12085_v9  ;;  %3756 = vmatprep.subr.mxu1 %v12086_v13  ;;  %v12139_v7 = vld [vmem:[#allocation75_spill] sm:$0xff]  ;;  %v12140_v9 = vld [vmem:[#allocation214_spill] sm:$0xff] }
 0xab3   :  { %3686 = vmatpush2.msra.mxu0 %v12087_v14  ;;  %3757 = vmatpush2.msra.mxu1 %v12088_v17  ;;  %v12141_v13 = vld [vmem:[#allocation370_spill] sm:$0xff]  ;;  %v12143_v17 = vld [vmem:[#allocation369_spill] sm:$0xff] }
 0xab4   :  { %3687 = vmatprep.subr.mxu0 %v12089_v18  ;;  %3758 = vmatprep.subr.mxu1 %v12090_v19  ;;  %v12142_v14 = vld [vmem:[#allocation530_spill] sm:$0xff]  ;;  %v12144_v18 = vld [vmem:[#allocation529_spill] sm:$0xff] }
 0xab5   :  { %3688 = vmatpush2.msra.mxu0 %v12091_v24  ;;  %3759 = vmatpush2.msra.mxu1 %v12092_v25  ;;  %v12145_v19 = vld [vmem:[#allocation365_spill] sm:$0xff]  ;;  %v12147_v25 = vld [vmem:[#allocation364_spill] sm:$0xff] }
 0xab6   :  { %3689 = vmatprep.subr.mxu0 %v12093_v29  ;;  %3760 = vmatprep.subr.mxu1 %v12094_v30  ;;  %v12146_v24 = vld [vmem:[#allocation525_spill] sm:$0xff]  ;;  %v12148_v29 = vld [vmem:[#allocation524_spill] sm:$0xff] }
 0xab7   :  { %3690 = vmatpush2.msra.mxu0 %v12095_v34  ;;  %3761 = vmatpush2.msra.mxu1 %v12096_v35  ;;  %v12149_v30 = vld [vmem:[#allocation360_spill] sm:$0xff]  ;;  %v12151_v35 = vld [vmem:[#allocation359_spill] sm:$0xff] }
 0xab8   :  { %3691 = vmatprep.subr.mxu0 %v12097_v36  ;;  %3762 = vmatprep.subr.mxu1 %v12098_v39  ;;  %v12150_v34 = vld [vmem:[#allocation520_spill] sm:$0xff]  ;;  %v12152_v36 = vld [vmem:[#allocation519_spill] sm:$0xff] }
 0xab9   :  { %3692 = vmatpush2.msra.mxu0 %v12099_v40  ;;  %3763 = vmatpush2.msra.mxu1 %v12100_v41  ;;  %v12153_v39 = vld [vmem:[#allocation355_spill] sm:$0xff]  ;;  %v12155_v41 = vld [vmem:[#allocation354_spill] sm:$0xff] }
 0xaba   :  { %3693 = vmatprep.subr.mxu0 %v12101_v44  ;;  %3764 = vmatprep.subr.mxu1 %v12102_v45  ;;  %v12154_v40 = vld [vmem:[#allocation515_spill] sm:$0xff]  ;;  %v12156_v44 = vld [vmem:[#allocation514_spill] sm:$0xff] }
 0xabb   :  { %3694 = vmatpush2.msra.mxu0 %v12103_v47  ;;  %3765 = vmatpush2.msra.mxu1 %v12104_v48  ;;  %v12157_v45 = vld [vmem:[#allocation350_spill] sm:$0xff]  ;;  %v12159_v48 = vld [vmem:[#allocation349_spill] sm:$0xff] }
 0xabc   :  { %3695 = vmatprep.subr.mxu0 %v12105_v49  ;;  %3766 = vmatprep.subr.mxu1 %v12106_v50  ;;  %v12158_v47 = vld [vmem:[#allocation510_spill] sm:$0xff]  ;;  %v12160_v49 = vld [vmem:[#allocation509_spill] sm:$0xff] }
 0xabd   :  { %3696 = vmatpush2.msra.mxu0 %v12107_v52  ;;  %3767 = vmatpush2.msra.mxu1 %v12108_v53  ;;  %v12161_v50 = vld [vmem:[#allocation345_spill] sm:$0xff]  ;;  %v12163_v53 = vld [vmem:[#allocation344_spill] sm:$0xff] }
 0xabe   :  { %3697 = vmatprep.subr.mxu0 %v12109_v55  ;;  %3768 = vmatprep.subr.mxu1 %v12110_v56  ;;  %v12162_v52 = vld [vmem:[#allocation505_spill] sm:$0xff]  ;;  %v12164_v55 = vld [vmem:[#allocation504_spill] sm:$0xff] }
 0xabf   :  { %3698 = vmatpush2.msra.mxu0 %v12111_v58  ;;  %3769 = vmatpush2.msra.mxu1 %v12112_v59  ;;  %v12165_v56 = vld [vmem:[#allocation340_spill] sm:$0xff]  ;;  %v12167_v59 = vld [vmem:[#allocation339_spill] sm:$0xff] }
 0xac0   :  { %3699 = vmatprep.subr.mxu0 %v12113_v60  ;;  %3770 = vmatprep.subr.mxu1 %v12114_v61  ;;  %v12166_v58 = vld [vmem:[#allocation500_spill] sm:$0xff]  ;;  %v12168_v60 = vld [vmem:[#allocation499_spill] sm:$0xff] }
 0xac1   :  { %3700 = vmatpush2.msra.mxu0 %v12115_v63  ;;  %3771 = vmatpush2.msra.mxu1 %v12116_v37  ;;  %v12169_v61 = vld [vmem:[#allocation335_spill] sm:$0xff]  ;;  %v12171_v37 = vld [vmem:[#allocation334_spill] sm:$0xff] }
 0xac2   :  { %3701 = vmatprep.subr.mxu0 %v12117_v20  ;;  %3772 = vmatprep.subr.mxu1 %v12118_v4  ;;  %v12170_v63 = vld [vmem:[#allocation495_spill] sm:$0xff]  ;;  %v12172_v20 = vld [vmem:[#allocation494_spill] sm:$0xff] }
 0xac3   :  { %3702 = vmatpush2.msra.mxu0 %v12119_v12  ;;  %3773 = vmatpush2.msra.mxu1 %v12120_v21  ;;  %v12173_v4 = vld [vmem:[#allocation330_spill] sm:$0xff]  ;;  %v12175_v21 = vld [vmem:[#allocation329_spill] sm:$0xff] }
 0xac4   :  { %3703 = vmatprep.subr.mxu0 %v12121_v38  ;;  %3774 = vmatprep.subr.mxu1 %v12122_v10  ;;  %v12174_v12 = vld [vmem:[#allocation490_spill] sm:$0xff]  ;;  %v12176_v38 = vld [vmem:[#allocation489_spill] sm:$0xff] }
 0xac5   :  { %3704 = vmatpush2.msra.mxu0 %v12123_v15  ;;  %3775 = vmatpush2.msra.mxu1 %v12124_v16  ;;  %v12177_v10 = vld [vmem:[#allocation325_spill] sm:$0xff]  ;;  %v12179_v16 = vld [vmem:[#allocation324_spill] sm:$0xff] }
 0xac6   :  { %3705 = vmatprep.subr.mxu0 %v12125_v33  ;;  %3776 = vmatprep.subr.mxu1 %v12126_v1  ;;  %v12178_v15 = vld [vmem:[#allocation485_spill] sm:$0xff]  ;;  %v12180_v33 = vld [vmem:[#allocation484_spill] sm:$0xff] }
 0xac7   :  { %3706 = vmatpush2.msra.mxu0 %v12127_v27  ;;  %3777 = vmatpush2.msra.mxu1 %v12128_v23  ;;  %v12181_v1 = vld [vmem:[#allocation320_spill] sm:$0xff]  ;;  %v12183_v23 = vld [vmem:[#allocation319_spill] sm:$0xff] }
 0xac8   :  { %3707 = vmatprep.subr.mxu0 %v12129_v54  ;;  %3778 = vmatprep.subr.mxu1 %v12130_v32  ;;  %v12182_v27 = vld [vmem:[#allocation480_spill] sm:$0xff]  ;;  %v12184_v54 = vld [vmem:[#allocation479_spill] sm:$0xff] }
 0xac9   :  { %3708 = vmatpush2.msra.mxu0 %v12131_v6  ;;  %3779 = vmatpush2.msra.mxu1 %v12132_v22  ;;  %v12185_v32 = vld [vmem:[#allocation315_spill] sm:$0xff]  ;;  %v12187_v22 = vld [vmem:[#allocation314_spill] sm:$0xff] }
 0xaca   :  { %3709 = vmatprep.subr.mxu0 %v12133_v5  ;;  %3780 = vmatprep.subr.mxu1 %v12134_v11  ;;  %v12186_v6 = vld [vmem:[#allocation475_spill] sm:$0xff]  ;;  %v12188_v5 = vld [vmem:[#allocation474_spill] sm:$0xff] }
 0xacb   :  { %3710 = vmatpush2.msra.mxu0 %v12135_v42  ;;  %3781 = vmatpush2.msra.mxu1 %v12136_v0  ;;  %v12189_v11 = vld [vmem:[#allocation310_spill] sm:$0xff]  ;;  %v12191_v0 = vld [vmem:[#allocation309_spill] sm:$0xff] }
 0xacc   :  { %3711 = vmatprep.subr.mxu0 %v12137_v2  ;;  %3782 = vmatprep.subr.mxu1 %v12138_v3  ;;  %v12190_v42 = vld [vmem:[#allocation470_spill] sm:$0xff]  ;;  %v12192_v2 = vld [vmem:[#allocation469_spill] sm:$0xff] }
 0xacd   :  { %3712 = vmatpush2.msra.mxu0 %v12139_v7  ;;  %3713 = vmatprep.mubr.f32.mxu0 %v10047_v43  ;;  %v12193_v3 = vld [vmem:[#allocation305_spill] sm:$0xff] }
 0xace   :  { %3783 = vmatpush2.msra.mxu1 %v12140_v9  ;;  %3784 = vmatprep.mubr.f32.mxu1 %v10053_v46  ;;  %v12194_v7 = vld [vmem:[#allocation465_spill] sm:$0xff]  ;;  %v12195_v9 = vld [vmem:[#allocation304_spill] sm:$0xff] }
 0xacf   :  { %3714 = vmatmul.mubr.f32.vlgmr.msra.gmra.mxu0 %v10032_v26  ;;  %3785 = vmatmul.mubr.f32.vlgmr.msra.gmra.mxu1 %v10037_v31 }
 0xad0   :  { %3791 = vmatprep.subr.mxu0 %v12141_v13  ;;  %3862 = vmatprep.subr.mxu1 %v12142_v14  ;;  %v12196_v13 = vld [vmem:[#allocation464_spill] sm:$0xff] }
 0xad1   :  { %3792 = vmatpush1.msra.mxu0 %v12143_v17  ;;  %3863 = vmatpush1.msra.mxu1 %v12144_v18  ;;  %v12197_v14 = vld [vmem:[#allocation300_spill] sm:$0xff]  ;;  %v12199_v18 = vld [vmem:[#allocation299_spill] sm:$0xff] }
 0xad2   :  { %3793 = vmatprep.subr.mxu0 %v12145_v19  ;;  %3864 = vmatprep.subr.mxu1 %v12146_v24  ;;  %v12198_v17 = vld [vmem:[#allocation460_spill] sm:$0xff]  ;;  %v12200_v19 = vld [vmem:[#allocation459_spill] sm:$0xff] }
 0xad3   :  { %3794 = vmatpush1.msra.mxu0 %v12147_v25  ;;  %3865 = vmatpush1.msra.mxu1 %v12148_v29  ;;  %v12201_v24 = vld [vmem:[#allocation295_spill] sm:$0xff]  ;;  %v12203_v29 = vld [vmem:[#allocation294_spill] sm:$0xff] }
 0xad4   :  { %3795 = vmatprep.subr.mxu0 %v12149_v30  ;;  %3866 = vmatprep.subr.mxu1 %v12150_v34  ;;  %v12202_v25 = vld [vmem:[#allocation455_spill] sm:$0xff]  ;;  %v12204_v30 = vld [vmem:[#allocation454_spill] sm:$0xff] }
 0xad5   :  { %3796 = vmatpush1.msra.mxu0 %v12151_v35  ;;  %3867 = vmatpush1.msra.mxu1 %v12152_v36  ;;  %v12205_v34 = vld [vmem:[#allocation450_spill] sm:$0xff]  ;;  %v12207_v36 = vld [vmem:[#allocation449_spill] sm:$0xff] }
 0xad6   :  { %3797 = vmatprep.subr.mxu0 %v12153_v39  ;;  %3868 = vmatprep.subr.mxu1 %v12154_v40  ;;  %v12206_v35 = vld [vmem:[#allocation610_spill] sm:$0xff]  ;;  %v12208_v39 = vld [vmem:[#allocation609_spill] sm:$0xff] }
 0xad7   :  { %3798 = vmatpush1.msra.mxu0 %v12155_v41  ;;  %3869 = vmatpush1.msra.mxu1 %v12156_v44  ;;  %v12209_v40 = vld [vmem:[#allocation445_spill] sm:$0xff]  ;;  %v12211_v44 = vld [vmem:[#allocation444_spill] sm:$0xff] }
 0xad8   :  { %3799 = vmatprep.subr.mxu0 %v12157_v45  ;;  %3870 = vmatprep.subr.mxu1 %v12158_v47  ;;  %v12210_v41 = vld [vmem:[#allocation605_spill] sm:$0xff]  ;;  %v12212_v45 = vld [vmem:[#allocation604_spill] sm:$0xff] }
 0xad9   :  { %3800 = vmatpush1.msra.mxu0 %v12159_v48  ;;  %3871 = vmatpush1.msra.mxu1 %v12160_v49  ;;  %v12213_v47 = vld [vmem:[#allocation440_spill] sm:$0xff]  ;;  %v12215_v49 = vld [vmem:[#allocation439_spill] sm:$0xff] }
 0xada   :  { %3801 = vmatprep.subr.mxu0 %v12161_v50  ;;  %3872 = vmatprep.subr.mxu1 %v12162_v52  ;;  %v12214_v48 = vld [vmem:[#allocation600_spill] sm:$0xff]  ;;  %v12216_v50 = vld [vmem:[#allocation599_spill] sm:$0xff] }
 0xadb   :  { %3802 = vmatpush1.msra.mxu0 %v12163_v53  ;;  %3873 = vmatpush1.msra.mxu1 %v12164_v55  ;;  %v12217_v52 = vld [vmem:[#allocation435_spill] sm:$0xff]  ;;  %v12219_v55 = vld [vmem:[#allocation434_spill] sm:$0xff] }
 0xadc   :  { %3803 = vmatprep.subr.mxu0 %v12165_v56  ;;  %3874 = vmatprep.subr.mxu1 %v12166_v58  ;;  %v12218_v53 = vld [vmem:[#allocation595_spill] sm:$0xff]  ;;  %v12220_v56 = vld [vmem:[#allocation594_spill] sm:$0xff] }
 0xadd   :  { %3804 = vmatpush1.msra.mxu0 %v12167_v59  ;;  %3875 = vmatpush1.msra.mxu1 %v12168_v60  ;;  %v12221_v58 = vld [vmem:[#allocation430_spill] sm:$0xff]  ;;  %v12223_v60 = vld [vmem:[#allocation429_spill] sm:$0xff] }
 0xade   :  { %3805 = vmatprep.subr.mxu0 %v12169_v61  ;;  %3876 = vmatprep.subr.mxu1 %v12170_v63  ;;  %v12222_v59 = vld [vmem:[#allocation590_spill] sm:$0xff]  ;;  %v12224_v61 = vld [vmem:[#allocation589_spill] sm:$0xff] }
 0xadf   :  { %3806 = vmatpush1.msra.mxu0 %v12171_v37  ;;  %3877 = vmatpush1.msra.mxu1 %v12172_v20  ;;  %v12225_v63 = vld [vmem:[#allocation425_spill] sm:$0xff]  ;;  %v12227_v20 = vld [vmem:[#allocation424_spill] sm:$0xff] }
 0xae0   :  { %3807 = vmatprep.subr.mxu0 %v12173_v4  ;;  %3878 = vmatprep.subr.mxu1 %v12174_v12  ;;  %v12226_v37 = vld [vmem:[#allocation585_spill] sm:$0xff]  ;;  %v12228_v4 = vld [vmem:[#allocation584_spill] sm:$0xff] }
 0xae1   :  { %3808 = vmatpush1.msra.mxu0 %v12175_v21  ;;  %3879 = vmatpush1.msra.mxu1 %v12176_v38  ;;  %v12229_v12 = vld [vmem:[#allocation420_spill] sm:$0xff]  ;;  %v12231_v38 = vld [vmem:[#allocation419_spill] sm:$0xff] }
 0xae2   :  { %3809 = vmatprep.subr.mxu0 %v12177_v10  ;;  %3880 = vmatprep.subr.mxu1 %v12178_v15  ;;  %v12230_v21 = vld [vmem:[#allocation580_spill] sm:$0xff]  ;;  %v12232_v10 = vld [vmem:[#allocation579_spill] sm:$0xff] }
 0xae3   :  { %3810 = vmatpush1.msra.mxu0 %v12179_v16  ;;  %3881 = vmatpush1.msra.mxu1 %v12180_v33  ;;  %v12233_v15 = vld [vmem:[#allocation415_spill] sm:$0xff]  ;;  %v12235_v33 = vld [vmem:[#allocation414_spill] sm:$0xff] }
 0xae4   :  { %3811 = vmatprep.subr.mxu0 %v12181_v1  ;;  %3882 = vmatprep.subr.mxu1 %v12182_v27  ;;  %v12234_v16 = vld [vmem:[#allocation575_spill] sm:$0xff]  ;;  %v12236_v1 = vld [vmem:[#allocation574_spill] sm:$0xff] }
 0xae5   :  { %3812 = vmatpush1.msra.mxu0 %v12183_v23  ;;  %3883 = vmatpush1.msra.mxu1 %v12184_v54  ;;  %v12237_v27 = vld [vmem:[#allocation410_spill] sm:$0xff]  ;;  %v12239_v54 = vld [vmem:[#allocation409_spill] sm:$0xff] }
 0xae6   :  { %3813 = vmatprep.subr.mxu0 %v12185_v32  ;;  %3884 = vmatprep.subr.mxu1 %v12186_v6  ;;  %v12238_v23 = vld [vmem:[#allocation570_spill] sm:$0xff]  ;;  %v12240_v32 = vld [vmem:[#allocation569_spill] sm:$0xff] }
 0xae7   :  { %3814 = vmatpush1.msra.mxu0 %v12187_v22  ;;  %3885 = vmatpush1.msra.mxu1 %v12188_v5  ;;  %v12241_v6 = vld [vmem:[#allocation405_spill] sm:$0xff]  ;;  %v12243_v5 = vld [vmem:[#allocation404_spill] sm:$0xff] }
 0xae8   :  { %3815 = vmatprep.subr.mxu0 %v12189_v11  ;;  %3886 = vmatprep.subr.mxu1 %v12190_v42  ;;  %v12242_v22 = vld [vmem:[#allocation565_spill] sm:$0xff]  ;;  %v12244_v11 = vld [vmem:[#allocation564_spill] sm:$0xff] }
 0xae9   :  { %3816 = vmatpush1.msra.mxu0 %v12191_v0  ;;  %3887 = vmatpush1.msra.mxu1 %v12192_v2  ;;  %v12245_v42 = vld [vmem:[#allocation400_spill] sm:$0xff]  ;;  %v12247_v2 = vld [vmem:[#allocation399_spill] sm:$0xff] }
 0xaea   :  { %3817 = vmatprep.subr.mxu0 %v12193_v3  ;;  %3888 = vmatprep.subr.mxu1 %v12194_v7  ;;  %v12246_v0 = vld [vmem:[#allocation560_spill] sm:$0xff]  ;;  %v12248_v3 = vld [vmem:[#allocation559_spill] sm:$0xff] }
 0xaeb   :  { %3818 = vmatpush1.msra.mxu0 %v12195_v9  ;;  %3889 = vmatpush1.msra.mxu1 %v12196_v13  ;;  %v12249_v7 = vld [vmem:[#allocation395_spill] sm:$0xff]  ;;  %v12251_v13 = vld [vmem:[#allocation394_spill] sm:$0xff] }
 0xaec   :  { %3819 = vmatprep.subr.mxu0 %v12197_v14  ;;  %3890 = vmatprep.subr.mxu1 %v12198_v17  ;;  %v12250_v9 = vld [vmem:[#allocation555_spill] sm:$0xff]  ;;  %v12252_v14 = vld [vmem:[#allocation554_spill] sm:$0xff] }
 0xaed   :  { %3820 = vmatpush1.msra.mxu0 %v12199_v18  ;;  %3891 = vmatpush1.msra.mxu1 %v12200_v19  ;;  %v12253_v17 = vld [vmem:[#allocation390_spill] sm:$0xff]  ;;  %v12255_v19 = vld [vmem:[#allocation389_spill] sm:$0xff] }
 0xaee   :  { %3821 = vmatprep.subr.mxu0 %v12201_v24  ;;  %3892 = vmatprep.subr.mxu1 %v12202_v25  ;;  %v12254_v18 = vld [vmem:[#allocation550_spill] sm:$0xff]  ;;  %v12256_v24 = vld [vmem:[#allocation549_spill] sm:$0xff] }
 0xaef   :  { %3822 = vmatpush1.msra.mxu0 %v12203_v29  ;;  %3893 = vmatpush1.msra.mxu1 %v12204_v30  ;;  %v12257_v25 = vld [vmem:[#allocation385_spill] sm:$0xff]  ;;  %v12259_v30 = vld [vmem:[#allocation384_spill] sm:$0xff] }
 0xaf0   :  { %3823 = vmatprep.subr.mxu0 %v12205_v34  ;;  %3894 = vmatprep.subr.mxu1 %v12206_v35  ;;  %v12258_v29 = vld [vmem:[#allocation545_spill] sm:$0xff]  ;;  %v12260_v34 = vld [vmem:[#allocation544_spill] sm:$0xff] }
 0xaf1   :  { %3824 = vmatpush2.msra.mxu0 %v12207_v36  ;;  %3895 = vmatpush2.msra.mxu1 %v12208_v39  ;;  %v12261_v35 = vld [vmem:[#allocation380_spill] sm:$0xff]  ;;  %v12263_v39 = vld [vmem:[#allocation379_spill] sm:$0xff] }
 0xaf2   :  { %3825 = vmatprep.subr.mxu0 %v12209_v40  ;;  %3896 = vmatprep.subr.mxu1 %v12210_v41  ;;  %v12262_v36 = vld [vmem:[#allocation540_spill] sm:$0xff]  ;;  %v12264_v40 = vld [vmem:[#allocation539_spill] sm:$0xff] }
 0xaf3   :  { %3826 = vmatpush2.msra.mxu0 %v12211_v44  ;;  %3897 = vmatpush2.msra.mxu1 %v12212_v45  ;;  %v12265_v41 = vld [vmem:[#allocation375_spill] sm:$0xff]  ;;  %v12267_v45 = vld [vmem:[#allocation374_spill] sm:$0xff] }
 0xaf4   :  { %3827 = vmatprep.subr.mxu0 %v12213_v47  ;;  %3898 = vmatprep.subr.mxu1 %v12214_v48  ;;  %v12266_v44 = vld [vmem:[#allocation535_spill] sm:$0xff]  ;;  %v12268_v47 = vld [vmem:[#allocation534_spill] sm:$0xff]  ;;  %v12269_v48 = vld [vmem:[#allocation152_spill] sm:$0xff] }
 0xaf5   :  { %3828 = vmatpush2.msra.mxu0 %v12215_v49  ;;  %3899 = vmatpush2.msra.mxu1 %v12216_v50  ;;  %v12270_v49 = vld [vmem:[#allocation291_spill] sm:$0xff]  ;;  %v12271_v50 = vld [vmem:[#allocation72_spill] sm:$0xff] }
 0xaf6   :  { %3829 = vmatprep.subr.mxu0 %v12217_v52  ;;  %3900 = vmatprep.subr.mxu1 %v12218_v53  ;;  %v12272_v52 = vld [vmem:[#allocation211_spill] sm:$0xff] }
 0xaf7   :  { %3830 = vmatpush2.msra.mxu0 %v12219_v55  ;;  %3901 = vmatpush2.msra.mxu1 %v12220_v56  ;;  %v12273_v53 = vld [vmem:[#allocation147_spill] sm:$0xff]  ;;  %v12274_v55 = vld [vmem:[#allocation286_spill] sm:$0xff]  ;;  %v12275_v56 = vld [vmem:[#allocation69_spill] sm:$0xff] }
 0xaf8   :  { %3831 = vmatprep.subr.mxu0 %v12221_v58  ;;  %3902 = vmatprep.subr.mxu1 %v12222_v59  ;;  %v12276_v58 = vld [vmem:[#allocation208_spill] sm:$0xff]  ;;  %v12277_v59 = vld [vmem:[#allocation142_spill] sm:$0xff] }
 0xaf9   :  { %3832 = vmatpush2.msra.mxu0 %v12223_v60  ;;  %3903 = vmatpush2.msra.mxu1 %v12224_v61  ;;  %v12278_v60 = vld [vmem:[#allocation281_spill] sm:$0xff]  ;;  %v12279_v61 = vld [vmem:[#allocation66_spill] sm:$0xff] }
 0xafa   :  { %3833 = vmatprep.subr.mxu0 %v12225_v63  ;;  %3904 = vmatprep.subr.mxu1 %v12226_v37  ;;  %v12280_v63 = vld [vmem:[#allocation205_spill] sm:$0xff] }
 0xafb   :  { %3834 = vmatpush2.msra.mxu0 %v12227_v20  ;;  %3905 = vmatpush2.msra.mxu1 %v12228_v4  ;;  %v12281_v37 = vld [vmem:[#allocation137_spill] sm:$0xff]  ;;  %v12282_v20 = vld [vmem:[#allocation276_spill] sm:$0xff]  ;;  %v12283_v4 = vld [vmem:[#allocation63_spill] sm:$0xff] }
 0xafc   :  { %3835 = vmatprep.subr.mxu0 %v12229_v12  ;;  %3906 = vmatprep.subr.mxu1 %v12230_v21  ;;  %v12284_v12 = vld [vmem:[#allocation202_spill] sm:$0xff]  ;;  %v12285_v21 = vld [vmem:[#allocation132_spill] sm:$0xff] }
 0xafd   :  { %3836 = vmatpush2.msra.mxu0 %v12231_v38  ;;  %3907 = vmatpush2.msra.mxu1 %v12232_v10  ;;  %v12286_v38 = vld [vmem:[#allocation271_spill] sm:$0xff]  ;;  %v12287_v10 = vld [vmem:[#allocation60_spill] sm:$0xff] }
 0xafe   :  { %3837 = vmatprep.subr.mxu0 %v12233_v15  ;;  %3908 = vmatprep.subr.mxu1 %v12234_v16  ;;  %v12288_v15 = vld [vmem:[#allocation199_spill] sm:$0xff] }
 0xaff   :  { %3838 = vmatpush2.msra.mxu0 %v12235_v33  ;;  %3909 = vmatpush2.msra.mxu1 %v12236_v1  ;;  %v12289_v16 = vld [vmem:[#allocation127_spill] sm:$0xff]  ;;  %v12290_v33 = vld [vmem:[#allocation266_spill] sm:$0xff]  ;;  %v12291_v1 = vld [vmem:[#allocation57_spill] sm:$0xff] }
 0xb00   :  { %3839 = vmatprep.subr.mxu0 %v12237_v27  ;;  %3910 = vmatprep.subr.mxu1 %v12238_v23  ;;  %v12292_v27 = vld [vmem:[#allocation196_spill] sm:$0xff]  ;;  %v12293_v23 = vld [vmem:[#allocation122_spill] sm:$0xff] }
 0xb01   :  { %3840 = vmatpush2.msra.mxu0 %v12239_v54  ;;  %3911 = vmatpush2.msra.mxu1 %v12240_v32  ;;  %v12294_v54 = vld [vmem:[#allocation261_spill] sm:$0xff]  ;;  %v12295_v32 = vld [vmem:[#allocation54_spill] sm:$0xff] }
 0xb02   :  { %3841 = vmatprep.subr.mxu0 %v12241_v6  ;;  %3912 = vmatprep.subr.mxu1 %v12242_v22  ;;  %v12296_v6 = vld [vmem:[#allocation193_spill] sm:$0xff] }
 0xb03   :  { %3842 = vmatpush2.msra.mxu0 %v12243_v5  ;;  %3913 = vmatpush2.msra.mxu1 %v12244_v11  ;;  %v12297_v22 = vld [vmem:[#allocation117_spill] sm:$0xff]  ;;  %v12298_v5 = vld [vmem:[#allocation256_spill] sm:$0xff]  ;;  %v12299_v11 = vld [vmem:[#allocation51_spill] sm:$0xff] }
 0xb04   :  { %3843 = vmatprep.subr.mxu0 %v12245_v42  ;;  %3914 = vmatprep.subr.mxu1 %v12246_v0  ;;  %v12300_v42 = vld [vmem:[#allocation190_spill] sm:$0xff]  ;;  %v12301_v0 = vld [vmem:[#allocation112_spill] sm:$0xff] }
 0xb05   :  { %3844 = vmatpush2.msra.mxu0 %v12247_v2  ;;  %3915 = vmatpush2.msra.mxu1 %v12248_v3  ;;  %v12302_v2 = vld [vmem:[#allocation251_spill] sm:$0xff]  ;;  %v12303_v3 = vld [vmem:[#allocation48_spill] sm:$0xff] }
 0xb06   :  { %3845 = vmatprep.subr.mxu0 %v12249_v7  ;;  %3916 = vmatprep.subr.mxu1 %v12250_v9  ;;  %v12304_v7 = vld [vmem:[#allocation187_spill] sm:$0xff] }
 0xb07   :  { %3846 = vmatpush2.msra.mxu0 %v12251_v13  ;;  %3917 = vmatpush2.msra.mxu1 %v12252_v14  ;;  %v12305_v9 = vld [vmem:[#allocation107_spill] sm:$0xff]  ;;  %v12306_v13 = vld [vmem:[#allocation246_spill] sm:$0xff]  ;;  %v12307_v14 = vld [vmem:[#allocation45_spill] sm:$0xff] }
 0xb08   :  { %3847 = vmatprep.subr.mxu0 %v12253_v17  ;;  %3918 = vmatprep.subr.mxu1 %v12254_v18  ;;  %v12308_v17 = vld [vmem:[#allocation184_spill] sm:$0xff]  ;;  %v12309_v18 = vld [vmem:[#allocation102_spill] sm:$0xff] }
 0xb09   :  { %3848 = vmatpush2.msra.mxu0 %v12255_v19  ;;  %3919 = vmatpush2.msra.mxu1 %v12256_v24  ;;  %v12310_v19 = vld [vmem:[#allocation241_spill] sm:$0xff]  ;;  %v12311_v24 = vld [vmem:[#allocation42_spill] sm:$0xff] }
 0xb0a   :  { %3849 = vmatprep.subr.mxu0 %v12257_v25  ;;  %3920 = vmatprep.subr.mxu1 %v12258_v29  ;;  %v12312_v25 = vld [vmem:[#allocation181_spill] sm:$0xff] }
 0xb0b   :  { %3850 = vmatpush2.msra.mxu0 %v12259_v30  ;;  %3921 = vmatpush2.msra.mxu1 %v12260_v34  ;;  %v12313_v29 = vld [vmem:[#allocation97_spill] sm:$0xff]  ;;  %v12314_v30 = vld [vmem:[#allocation236_spill] sm:$0xff]  ;;  %v12315_v34 = vld [vmem:[#allocation39_spill] sm:$0xff] }
 0xb0c   :  { %3851 = vmatprep.subr.mxu0 %v12261_v35  ;;  %3922 = vmatprep.subr.mxu1 %v12262_v36  ;;  %v12316_v35 = vld [vmem:[#allocation177_spill] sm:$0xff]  ;;  %v12317_v36 = vld [vmem:[#allocation92_spill] sm:$0xff] }
 0xb0d   :  { %3852 = vmatpush2.msra.mxu0 %v12263_v39  ;;  %3923 = vmatpush2.msra.mxu1 %v12264_v40  ;;  %v12318_v39 = vld [vmem:[#allocation231_spill] sm:$0xff]  ;;  %v12319_v40 = vld [vmem:[#allocation34_spill] sm:$0xff] }
 0xb0e   :  { %3853 = vmatprep.subr.mxu0 %v12265_v41  ;;  %3924 = vmatprep.subr.mxu1 %v12266_v44  ;;  %v12320_v41 = vld [vmem:[#allocation172_spill] sm:$0xff]  ;;  %v12321_v44 = vld [vmem:[#allocation87_spill] sm:$0xff] }
 0xb0f   :  { %3854 = vmatpush2.msra.mxu0 %v12267_v45  ;;  %3855 = vmatprep.mubr.f32.mxu0 %v10193_v62  ;;  %v12322_v45 = vld [vmem:[#allocation226_spill] sm:$0xff] }
 0xb10   :  { %3925 = vmatpush2.msra.mxu1 %v12268_v47  ;;  %3856 = vmatmul.mubr.f32.vlgmr.msra.gmra.mxu0 %v10178_v51  ;;  %v12323_v47 = vld [vmem:[#allocation29_spill] sm:$0xff] }
 0xb11   :  { %3926 = vmatprep.mubr.f32.mxu1 %v10201_v8  ;;  %5481 = vmatprep.subr.mxu0 %v12269_v48  ;;  %v12324_v48 = vld [vmem:[#allocation167_spill] sm:$0xff] }
 0xb12   :  { %5516 = vmatprep.subr.mxu1 %v12270_v49  ;;  %3927 = vmatmul.mubr.f32.vlgmr.msra.gmra.mxu1 %v10185_v57  ;;  %v12325_v49 = vld [vmem:[#allocation82_spill] sm:$0xff] }
 0xb13   :  { %5482 = vmatpush3.msra.mxu0 %v12271_v50  ;;  %5517 = vmatpush3.msra.mxu1 %v12272_v52  ;;  %v12326_v50 = vld [vmem:[#allocation221_spill] sm:$0xff]  ;;  %v12327_v52 = vld [vmem:[#allocation24_spill] sm:$0xff] }
 0xb14   :  { %5483 = vmatprep.subr.mxu0 %v12273_v53  ;;  %5518 = vmatprep.subr.mxu1 %v12274_v55  ;;  %v12328_v53 = vld [vmem:[#allocation162_spill] sm:$0xff]  ;;  %v12329_v55 = vld [vmem:[#allocation77_spill] sm:$0xff] }
 0xb15   :  { %5484 = vmatpush3.msra.mxu0 %v12275_v56  ;;  %5519 = vmatpush3.msra.mxu1 %v12276_v58  ;;  %v12330_v56 = vld [vmem:[#allocation216_spill] sm:$0xff]  ;;  %v12331_v58 = vld [vmem:[#allocation19_spill] sm:$0xff] }
 0xb16   :  { %5485 = vmatprep.subr.mxu0 %v12277_v59  ;;  %5520 = vmatprep.subr.mxu1 %v12278_v60  ;;  %v12332_v59 = vld [vmem:[#allocation157_spill] sm:$0xff]  ;;  %v12333_v60 = vld [vmem:[#allocation451_spill] sm:$0xff] }
 0xb17   :  { %5486 = vmatpush3.msra.mxu0 %v12279_v61  ;;  %5521 = vmatpush3.msra.mxu1 %v12280_v63  ;;  %v12334_v61 = vld [vmem:[#allocation611_spill] sm:$0xff] }
 0xb18   :  { %5487 = vmatprep.subr.mxu0 %v12281_v37  ;;  %5522 = vmatprep.subr.mxu1 %v12282_v20  ;;  %v12335_v63 = vld [vmem:[#allocation371_spill] sm:$0xff]  ;;  %v12337_v20 = vld [vmem:[#allocation446_spill] sm:$0xff] }
 0xb19   :  { %5488 = vmatpush3.msra.mxu0 %v12283_v4  ;;  %5523 = vmatpush3.msra.mxu1 %v12284_v12  ;;  %v12336_v37 = vld [vmem:[#allocation531_spill] sm:$0xff]  ;;  %v12338_v4 = vld [vmem:[#allocation606_spill] sm:$0xff] }
 0xb1a   :  { %5489 = vmatprep.subr.mxu0 %v12285_v21  ;;  %5524 = vmatprep.subr.mxu1 %v12286_v38  ;;  %v12340_v12 = vld [vmem:[#allocation526_spill] sm:$0xff]  ;;  %v12344_v21 = vld [vmem:[#allocation521_spill] sm:$0xff]  ;;  %v12345_v38 = vld [vmem:[#allocation436_spill] sm:$0xff] }
 0xb1b   :  { %5490 = vmatpush3.msra.mxu0 %v12287_v10  ;;  %5525 = vmatpush3.msra.mxu1 %v12288_v15  ;;  %v12346_v10 = vld [vmem:[#allocation596_spill] sm:$0xff] }
 0xb1c   :  { %5491 = vmatprep.subr.mxu0 %v12289_v16  ;;  %5526 = vmatprep.subr.mxu1 %v12290_v33  ;;  %v12347_v15 = vld [vmem:[#allocation356_spill] sm:$0xff]  ;;  %v12349_v33 = vld [vmem:[#allocation431_spill] sm:$0xff] }
 0xb1d   :  { %5492 = vmatpush3.msra.mxu0 %v12291_v1  ;;  %5527 = vmatpush3.msra.mxu1 %v12292_v27  ;;  %v12348_v16 = vld [vmem:[#allocation516_spill] sm:$0xff]  ;;  %v12350_v1 = vld [vmem:[#allocation591_spill] sm:$0xff] }
 0xb1e   :  { %5493 = vmatprep.subr.mxu0 %v12293_v23  ;;  %5528 = vmatprep.subr.mxu1 %v12294_v54  ;;  %v12351_v27 = vld [vmem:[#allocation351_spill] sm:$0xff]  ;;  %v12353_v54 = vld [vmem:[#allocation426_spill] sm:$0xff] }
 0xb1f   :  { %5494 = vmatpush3.msra.mxu0 %v12295_v32  ;;  %5529 = vmatpush3.msra.mxu1 %v12296_v6  ;;  %v12352_v23 = vld [vmem:[#allocation511_spill] sm:$0xff]  ;;  %v12354_v32 = vld [vmem:[#allocation586_spill] sm:$0xff] }
 0xb20   :  { %5495 = vmatprep.subr.mxu0 %v12297_v22  ;;  %5530 = vmatprep.subr.mxu1 %v12298_v5  ;;  %v12355_v6 = vld [vmem:[#allocation346_spill] sm:$0xff]  ;;  %v12357_v5 = vld [vmem:[#allocation421_spill] sm:$0xff] }
 0xb21   :  { %5496 = vmatpush3.msra.mxu0 %v12299_v11  ;;  %5531 = vmatpush3.msra.mxu1 %v12300_v42  ;;  %v12356_v22 = vld [vmem:[#allocation506_spill] sm:$0xff]  ;;  %v12358_v11 = vld [vmem:[#allocation581_spill] sm:$0xff] }
 0xb22   :  { %5497 = vmatprep.subr.mxu0 %v12301_v0  ;;  %5532 = vmatprep.subr.mxu1 %v12302_v2  ;;  %v12359_v42 = vld [vmem:[#allocation341_spill] sm:$0xff]  ;;  %v12361_v2 = vld [vmem:[#allocation416_spill] sm:$0xff] }
 0xb23   :  { %5498 = vmatpush3.msra.mxu0 %v12303_v3  ;;  %5533 = vmatpush3.msra.mxu1 %v12304_v7  ;;  %v12360_v0 = vld [vmem:[#allocation501_spill] sm:$0xff]  ;;  %v12362_v3 = vld [vmem:[#allocation576_spill] sm:$0xff] }
 0xb24   :  { %5499 = vmatprep.subr.mxu0 %v12305_v9  ;;  %5534 = vmatprep.subr.mxu1 %v12306_v13  ;;  %v12363_v7 = vld [vmem:[#allocation336_spill] sm:$0xff]  ;;  %v12365_v13 = vld [vmem:[#allocation411_spill] sm:$0xff] }
 0xb25   :  { %5500 = vmatpush3.msra.mxu0 %v12307_v14  ;;  %5535 = vmatpush3.msra.mxu1 %v12308_v17  ;;  %v12364_v9 = vld [vmem:[#allocation496_spill] sm:$0xff]  ;;  %v12366_v14 = vld [vmem:[#allocation571_spill] sm:$0xff] }
 0xb26   :  { %5501 = vmatprep.subr.mxu0 %v12309_v18  ;;  %5536 = vmatprep.subr.mxu1 %v12310_v19  ;;  %v12367_v17 = vld [vmem:[#allocation331_spill] sm:$0xff]  ;;  %v3431_v19 = vpop.f32.mrf.mxu0 }
 0xb27   :  { %5502 = vmatpush3.msra.mxu0 %v12311_v24  ;;  %5537 = vmatpush3.msra.mxu1 %v12312_v25  ;;  %v12368_v18 = vld [vmem:[#allocation491_spill] sm:$0xff]  ;;  %v3502_v24 = vpop.f32.mrf.mxu1  ;;  %v12369_v25 = vld [vmem:[#allocation406_spill] sm:$0xff] }
 0xb28   :  { %5503 = vmatprep.subr.mxu0 %v12313_v29  ;;  %5538 = vmatprep.subr.mxu1 %v12314_v30  ;;  %v12370_v29 = vld [vmem:[#allocation566_spill] sm:$0xff] }
 0xb29   :  { %5504 = vmatpush3.msra.mxu0 %v12315_v34  ;;  %5539 = vmatpush3.msra.mxu1 %v12316_v35  ;;  %v12371_v30 = vld [vmem:[#allocation326_spill] sm:$0xff]  ;;  %v12373_v35 = vld [vmem:[#allocation401_spill] sm:$0xff] }
 0xb2a   :  { %5505 = vmatprep.subr.mxu0 %v12317_v36  ;;  %5540 = vmatprep.subr.mxu1 %v12318_v39  ;;  %v12372_v34 = vld [vmem:[#allocation486_spill] sm:$0xff]  ;;  %v12374_v36 = vld [vmem:[#allocation561_spill] sm:$0xff] }
 0xb2b   :  { %5506 = vmatpush3.msra.mxu0 %v12319_v40  ;;  %5541 = vmatpush3.msra.mxu1 %v12320_v41  ;;  %v12375_v39 = vld [vmem:[#allocation321_spill] sm:$0xff]  ;;  %v4217_v41 = vsub.s32 0, %v10010_v28 }
 0xb2c   :  { %5507 = vmatprep.subr.mxu0 %v12321_v44  ;;  %5542 = vmatprep.subr.mxu1 %v12322_v45  ;;  %v12376_v40 = vld [vmem:[#allocation481_spill] sm:$0xff]  ;;  %v3433_v44 = vpop.f32.mrf.mxu0  ;;  %v3504_v45 = vpop.f32.mrf.mxu1 }
 0xb2d   :  { %5508 = vmatpush3.msra.mxu0 %v12323_v47  ;;  %5543 = vmatpush3.msra.mxu1 %v12324_v48  ;;  %v12377_v47 = vld [vmem:[#allocation396_spill] sm:$0xff] }
 0xb2e   :  { %5509 = vmatprep.subr.mxu0 %v12325_v49  ;;  %5544 = vmatprep.subr.mxu1 %v12326_v50  ;;  %v12378_v48 = vld [vmem:[#allocation556_spill] sm:$0xff]  ;;  %v3503_v50 = vadd.f32 %v3502_v24, %v3431_v19 }
 0xb2f   :  { %5510 = vmatpush3.msra.mxu0 %v12327_v52  ;;  %5545 = vmatpush3.msra.mxu1 %v12328_v53  ;;  %v10593_v49 = vld [vmem:[%s11173_s14] sm:$0x1f] }
 0xb30   :  { %5511 = vmatprep.subr.mxu0 %v12329_v55  ;;  %5546 = vmatprep.subr.mxu1 %v12330_v56  ;;  %v12379_v52 = vld [vmem:[#allocation316_spill] sm:$0xff]  ;;  %v4221_v55 = vsub.s32 1, %v10010_v28  ;;  %v12381_v56 = vld [vmem:[#allocation391_spill] sm:$0xff] }
 0xb31   :  { %5512 = vmatpush3.msra.mxu0 %v12331_v58  ;;  %3997 = vmatprep.mubr.f32.mxu0 %v10047_v43  ;;  %v12339_v43 = vld [vmem:[#allocation366_spill] sm:$0xff]  ;;  %v12380_v53 = vld [vmem:[#allocation476_spill] sm:$0xff]  ;;  %v12382_v58 = vld [vmem:[#allocation551_spill] sm:$0xff] }
 0xb32   :  { %5547 = vmatpush3.msra.mxu1 %v12332_v59  ;;  %4067 = vmatprep.mubr.f32.mxu1 %v10053_v46  ;;  %v12341_v46 = vld [vmem:[#allocation441_spill] sm:$0xff] }
 0xb33   :  { %3998 = vmatmul.mubr.f32.vlgmr.msra.gmra.mxu0 %v10032_v26  ;;  %4068 = vmatmul.mubr.f32.vlgmr.msra.gmra.mxu1 %v10037_v31  ;;  %v12342_v26 = vld [vmem:[#allocation601_spill] sm:$0xff] }
 0xb34   :  { %5551 = vmatprep.subr.mxu0 %v12333_v60  ;;  %5586 = vmatprep.subr.mxu1 %v12334_v61  ;;  %v12343_v31 = vld [vmem:[#allocation361_spill] sm:$0xff]  ;;  %v3505_v60 = vadd.f32 %v3504_v45, %v3433_v44  ;;  %v12383_v61 = vld [vmem:[#allocation311_spill] sm:$0xff] }
 0xb35   :  { %5552 = vmatpush3.msra.mxu0 %v12335_v63  ;;  %5587 = vmatpush3.msra.mxu1 %v12336_v37  ;;  %v12384_v63 = vld [vmem:[#allocation471_spill] sm:$0xff] }
 0xb36   :  { %5553 = vmatprep.subr.mxu0 %v12337_v20  ;;  %5588 = vmatprep.subr.mxu1 %v12338_v4  ;;  %v4218_v20 = vrot.slane %v10593_v49, %v4217_v41  ;;  %v10606_v4 = vld [vmem:[%s11174_s15] sm:$0x1f] }
 0xb37   :  { %5554 = vmatpush3.msra.mxu0 %v12339_v43  ;;  %5589 = vmatpush3.msra.mxu1 %v12340_v12  ;;  %v12385_v43 = vld [vmem:[#allocation386_spill] sm:$0xff] }
 0xb38   :  { %5555 = vmatprep.subr.mxu0 %v12341_v46  ;;  %5590 = vmatprep.subr.mxu1 %v12342_v26  ;;  %v12386_v12 = vld [vmem:[#allocation546_spill] sm:$0xff] }
 0xb39   :  { %5556 = vmatpush3.msra.mxu0 %v12343_v31  ;;  %5591 = vmatpush3.msra.mxu1 %v12344_v21  ;;  %v12387_v31 = vld [vmem:[#allocation306_spill] sm:$0xff] }
 0xb3a   :  { %5557 = vmatprep.subr.mxu0 %v12345_v38  ;;  %5592 = vmatprep.subr.mxu1 %v12346_v10  ;;  %v12388_v21 = vld [vmem:[#allocation466_spill] sm:$0xff] }
 0xb3b   :  { %5558 = vmatpush3.msra.mxu0 %v12347_v15  ;;  %5593 = vmatpush3.msra.mxu1 %v12348_v16  ;;  %v4222_v15 = vrot.slane %v10593_v49, %v4221_v55  ;;  %v12389_v16 = vld [vmem:[#allocation381_spill] sm:$0xff] }
 0xb3c   :  { %5559 = vmatprep.subr.mxu0 %v12349_v33  ;;  %5594 = vmatprep.subr.mxu1 %v12350_v1  ;;  %v12390_v33 = vld [vmem:[#allocation541_spill] sm:$0xff]  ;;  %v4250_v1 = vrot.slane %v10606_v4, %v4217_v41 }
 0xb3d   :  { %5560 = vmatpush3.msra.mxu0 %v12351_v27  ;;  %5595 = vmatpush3.msra.mxu1 %v12352_v23  ;;  %v12391_v23 = vld [vmem:[#allocation301_spill] sm:$0xff] }
 0xb3e   :  { %5561 = vmatprep.subr.mxu0 %v12353_v54  ;;  %5596 = vmatprep.subr.mxu1 %v12354_v32  ;;  %v12392_v54 = vld [vmem:[#allocation461_spill] sm:$0xff] }
 0xb3f   :  { %5562 = vmatpush3.msra.mxu0 %v12355_v6  ;;  %5597 = vmatpush3.msra.mxu1 %v12356_v22  ;;  %v4254_v22 = vrot.slane %v10606_v4, %v4221_v55 }
 0xb40   :  { %5563 = vmatprep.subr.mxu0 %v12357_v5  ;;  %5598 = vmatprep.subr.mxu1 %v12358_v11  ;;  %v12393_v5 = vld [vmem:[#allocation376_spill] sm:$0xff] }
 0xb41   :  { %5564 = vmatpush3.msra.mxu0 %v12359_v42  ;;  %5599 = vmatpush3.msra.mxu1 %v12360_v0  ;;  %v12394_v11 = vld [vmem:[#allocation536_spill] sm:$0xff] }
 0xb42   :  { %5565 = vmatprep.subr.mxu0 %v12361_v2  ;;  %5600 = vmatprep.subr.mxu1 %v12362_v3  ;;  %v12395_v42 = vld [vmem:[#allocation296_spill] sm:$0xff] }
 0xb43   :  { %5566 = vmatpush3.msra.mxu0 %v12363_v7  ;;  %5601 = vmatpush3.msra.mxu1 %v12364_v9  ;;  %v12396_v2 = vld [vmem:[#allocation456_spill] sm:$0xff] }
 0xb44   :  { %5567 = vmatprep.subr.mxu0 %v12365_v13  ;;  %5602 = vmatprep.subr.mxu1 %v12366_v14 }
 0xb45   :  { %5568 = vmatpush3.msra.mxu0 %v12367_v17  ;;  %5603 = vmatpush3.msra.mxu1 %v12368_v18  ;;  %v4225_v18 = vsub.s32 2, %v10010_v28 }
 0xb46   :  { %5569 = vmatprep.subr.mxu0 %v12369_v25  ;;  %5604 = vmatprep.subr.mxu1 %v12370_v29  ;;  %v4229_v29 = vsub.s32 3, %v10010_v28 }
 0xb47   :  { %5570 = vmatpush3.msra.mxu0 %v12371_v30  ;;  %5605 = vmatpush3.msra.mxu1 %v12372_v34 }
 0xb48   :  { %5571 = vmatprep.subr.mxu0 %v12373_v35  ;;  %5606 = vmatprep.subr.mxu1 %v12374_v36  ;;  %v4226_v36 = vrot.slane %v10593_v49, %v4225_v18  ;;  %v4230_v45 = vrot.slane %v10593_v49, %v4229_v29 }
 0xb49   :  { %5572 = vmatpush3.msra.mxu0 %v12375_v39  ;;  %5607 = vmatpush3.msra.mxu1 %v12376_v40 }
 0xb4a   :  { %5573 = vmatprep.subr.mxu0 %v12377_v47  ;;  %5608 = vmatprep.subr.mxu1 %v12378_v48  ;;  %v4258_v47 = vrot.slane %v10606_v4, %v4225_v18 }
 0xb4b   :  { %5574 = vmatpush3.msra.mxu0 %v12379_v52  ;;  %5609 = vmatpush3.msra.mxu1 %v12380_v53  ;;  %v4262_v53 = vrot.slane %v10606_v4, %v4229_v29 }
 0xb4c   :  { %5575 = vmatprep.subr.mxu0 %v12381_v56  ;;  %5610 = vmatprep.subr.mxu1 %v12382_v58  ;;  %v3573_v59 = vpop.f32.mrf.mxu0 }
 0xb4d   :  { %5576 = vmatpush3.msra.mxu0 %v12383_v61  ;;  %5611 = vmatpush3.msra.mxu1 %v12384_v63  ;;  %v3574_v37 = vadd.f32 %v3573_v59, %v3503_v50  ;;  %v4602_v63 = vld [vmem:[%s12398_s13 + $0x78] sm:$0xff] }
 0xb4e   :  { %5577 = vmatprep.subr.mxu0 %v12385_v43  ;;  %5612 = vmatprep.subr.mxu1 %v12386_v12  ;;  %v3644_v46 = vpop.f32.mrf.mxu1  ;;  %v3575_v26 = vpop.f32.mrf.mxu0  ;;  %v4616_v43 = vld [vmem:[%s12398_s13 + $0xe8] sm:$0xff] }
 0xb4f   :  { %5578 = vmatpush3.msra.mxu0 %v12387_v31  ;;  %5613 = vmatpush3.msra.mxu1 %v12388_v21  ;;  %v3645_v38 = vadd.f32 %v3644_v46, %v3574_v37  ;;  %v3576_v10 = vadd.f32 %v3575_v26, %v3505_v60  ;;  %v4618_v60 = vld [vmem:[%s12398_s13 + $0xf8] sm:$0xff]  ;;  %v4617_v37 = vld [vmem:[%s12398_s13 + $0xf0] sm:$0xff]  ;;  %v4600_v12 = vld [vmem:[%s12398_s13 + $0x68] sm:$0xff] }
 0xb50   :  { %5579 = vmatprep.subr.mxu0 %v12389_v16  ;;  %5614 = vmatprep.subr.mxu1 %v12390_v33  ;;  %v3646_v27 = vpop.f32.mrf.mxu1  ;;  %v4615_v46 = vld [vmem:[%s12398_s13 + $0xe0] sm:$0xff]  ;;  %v4614_v31 = vld [vmem:[%s12398_s13 + $0xd8] sm:$0xff]  ;;  %v4596_v16 = vld [vmem:[%s12398_s13 + $0x48] sm:$0xff] }
 0xb51   :  { %5580 = vmatpush3.msra.mxu0 %v12391_v23  ;;  %5615 = vmatpush3.msra.mxu1 %v12392_v54  ;;  %v4240_v32 = vmul.f32 %v4218_v20, %v3645_v38  ;;  %v3647_v6 = vadd.f32 %v3646_v27, %v3576_v10  ;;  %v4601_v20 = vld [vmem:[%s12398_s13 + $0x70] sm:$0xff]  ;;  %v4599_v26 = vld [vmem:[%s12398_s13 + $0x60] sm:$0xff]  ;;  %v4598_v21 = vld [vmem:[%s12398_s13 + $0x58] sm:$0xff] }
 0xb52   :  { %5581 = vmatprep.subr.mxu0 %v12393_v5  ;;  %5616 = vmatprep.subr.mxu1 %v12394_v11  ;;  %v4613_v38 = vld [vmem:[%s12398_s13 + $0xd0] sm:$0xff]  ;;  %v4611_v33 = vld [vmem:[%s12398_s13 + $0xc0] sm:$0xff]  ;;  %v4610_v27 = vld [vmem:[%s12398_s13 + $0xb8] sm:$0xff] }
 0xb53   :  { %5582 = vmatpush3.msra.mxu0 %v12395_v42  ;;  %4137 = vmatprep.mubr.f32.mxu0 %v10193_v62  ;;  %v4241_v0 = vmul.f32 %v4222_v15, %v3647_v6  ;;  %v4272_v3 = vadd.f32 %v4250_v1, %v4240_v32  ;;  %v10632_v62 = vld [vmem:[%s12397_s6] sm:$0xff]  ;;  %v4597_v10 = vld [vmem:[%s12398_s13 + $0x50] sm:$0xff]  ;;  %v4612_v15 = vld [vmem:[%s12398_s13 + $0xc8] sm:$0xff] }
 0xb54   :  { %5617 = vmatpush3.msra.mxu1 %v12396_v2  ;;  %4207 = vmatprep.mubr.f32.mxu1 %v10201_v8  ;;  %v6187_v8 = vmov 0.0   ;;  %v4595_v1 = vld [vmem:[%s12398_s13 + $0x40] sm:$0xff]  ;;  %v4594_v23 = vld [vmem:[%s12398_s13 + $0x38] sm:$0xff]  ;;  %v4609_v54 = vld [vmem:[%s12398_s13 + $0xb0] sm:$0xff] }
 0xb55   :  { %4138 = vmatmul.mubr.f32.vlgmr.msra.gmra.mxu0 %v10178_v51  ;;  %4208 = vmatmul.mubr.f32.vlgmr.msra.gmra.mxu1 %v10185_v57  ;;  %v4273_v7 = vadd.f32 %v4254_v22, %v4241_v0  ;;  %v10643_v51 = vld [vmem:[%s12397_s6 + $0x8] sm:$0xff]  ;;  %v10651_v57 = vld [vmem:[%s12397_s6 + $0x10] sm:$0xf]  ;;  %v4607_v5 = vld [vmem:[%s12398_s13 + $0xa0] sm:$0xff] }
 0xb56   :  { %4375 = vmatprep.mubr.f32.mxu0 %v6187_v8  ;;  %4458 = vmatprep.mubr.f32.mxu1 %v6187_v8  ;;  %v4593_v32 = vld [vmem:[%s12398_s13 + $0x30] sm:$0xff]  ;;  %v4608_v6 = vld [vmem:[%s12398_s13 + $0xa8] sm:$0xff]  ;;  %v4591_v11 = vld [vmem:[%s12398_s13 + $0x20] sm:$0xff] }
 0xb57   :  { %6097 = vtanh.f32 %v4273_v7  ;;  %v4592_v22 = vld [vmem:[%s12398_s13 + $0x28] sm:$0xff]  ;;  %v4606_v42 = vld [vmem:[%s12398_s13 + $0x98] sm:$0xff]  ;;  %v4605_v2 = vld [vmem:[%s12398_s13 + $0x90] sm:$0xff] }
 0xb58   :  { %6099 = vtanh.f32 %v4272_v3  ;;  %v4590_v0 = vld [vmem:[%s12398_s13 + $0x18] sm:$0xff]  ;;  %v4589_v3 = vld [vmem:[%s12398_s13 + $0x10] sm:$0xff]  ;;  %v4604_v7 = vld [vmem:[%s12398_s13 + $0x88] sm:$0xff] }
 0xb64   :  { %v6098_v9 = vpop.eup %6097 }
 0xb65   :  { %v6100_v13 = vpop.eup %6099  ;;  %5364 = vmatprep.subr.msk.mxu0 %vm4295_vm6, %v6098_v9  ;;  %v4588_v9 = vld [vmem:[%s12398_s13 + $0x8] sm:$0xff] }
 0xb66   :  { %5365 = vmatpush1.msk.msra.mxu0 %vm4295_vm6, %v6100_v13  ;;  %v4603_v13 = vld [vmem:[%s12398_s13 + $0x80] sm:$0xff] }
 0xb67   :  { %5366 = vmatmul.mubr.msk.f32.vlgmr.msra.gmra.mxu0 %vm4285_vm7, %v10632_v62  ;;  %5928 = vmatprep.subr.mxu0 %v6187_v8 }
 0xb68   :  { %4381 = vmatprep.mubr.f32.mxu0 %v6187_v8 }
 0xb6b   :  { %5367 = vmatmul.mubr.msk.f32.gmra.mxu0 %vm4285_vm7, %v10643_v51 }
 0xb6c   :  { %4387 = vmatprep.mubr.f32.mxu0 %v6187_v8 }
 0xb6f   :  { %5368 = vmatmul.mubr.msk.f32.gmra.mxu0 %vm4285_vm7, %v10651_v57 }
 0xb70   :  { %5930 = vmatprep.mubr.msk.f32.mxu0 %vm6188_vm8, %v6187_v8 }
 0xb8f   :  { %v3715_v14 = vpop.f32.mrf.mxu0  ;;  %v3786_v17 = vpop.f32.mrf.mxu1 }
 0xb90   :  { %v3787_v25 = vadd.f32 %v3786_v17, %v3715_v14  ;;  %v4587_v14 = vld [vmem:[%s12398_s13] sm:$0xff] }
 0xb91   :  { %v3717_v19 = vpop.f32.mrf.mxu0  ;;  %v3788_v24 = vpop.f32.mrf.mxu1 }
 0xb92   :  { %v3789_v34 = vadd.f32 %v3788_v24, %v3717_v19 }
 0xbd0   :  { %v3857_v30 = vpop.f32.mrf.mxu0 }
 0xbd1   :  { %v3858_v35 = vadd.f32 %v3857_v30, %v3787_v25 }
 0xbd2   :  { %v3928_v39 = vpop.f32.mrf.mxu1  ;;  %v3859_v40 = vpop.f32.mrf.mxu0 }
 0xbd3   :  { %v3929_v41 = vadd.f32 %v3928_v39, %v3858_v35  ;;  %v3860_v44 = vadd.f32 %v3859_v40, %v3789_v34  ;;  %v4233_v35 = vsub.s32 4, %v10010_v28  ;;  %v4634_v28 = vld [vmem:[%s12398_s13 + $0x178] sm:$0xff] }
 0xbd4   :  { %v3930_v48 = vpop.f32.mrf.mxu1 }
 0xbd5   :  { %v4242_v50 = vmul.f32 %v4226_v36, %v3929_v41  ;;  %v3931_v52 = vadd.f32 %v3930_v48, %v3860_v44 }
 0xbd7   :  { %v4243_v55 = vmul.f32 %v4230_v45, %v3931_v52  ;;  %v4274_v56 = vadd.f32 %v4258_v47, %v4242_v50  ;;  %v4234_v47 = vrot.slane %v10593_v49, %v4233_v35  ;;  %v4266_v50 = vrot.slane %v10606_v4, %v4233_v35  ;;  %v4649_v49 = vld [vmem:[%s12398_s13 + $0x1f0] sm:$0xff]  ;;  %v4654_v35 = vld [vmem:[%s12398_s13 + $0x218] sm:$0xff] }
 0xbd8   :  { %v4633_v4 = vld [vmem:[%s12398_s13 + $0x170] sm:$0xff] }
 0xbd9   :  { %v4275_v58 = vadd.f32 %v4262_v53, %v4243_v55  ;;  %v4650_v55 = vld [vmem:[%s12398_s13 + $0x1f8] sm:$0xff] }
 0xbdb   :  { %6101 = vtanh.f32 %v4275_v58  ;;  %v4648_v58 = vld [vmem:[%s12398_s13 + $0x1e8] sm:$0xff] }
 0xbdc   :  { %6103 = vtanh.f32 %v4274_v56 }
 0xbe8   :  { %v6102_v59 = vpop.eup %6101 }
 0xbe9   :  { %v6104_v61 = vpop.eup %6103  ;;  %5369 = vmatprep.subr.msk.mxu1 %vm4295_vm6, %v6102_v59  ;;  %v4632_v59 = vld [vmem:[%s12398_s13 + $0x168] sm:$0xff] }
 0xbea   :  { %5370 = vmatpush1.msk.msra.mxu1 %vm4295_vm6, %v6104_v61  ;;  %v4646_v61 = vld [vmem:[%s12398_s13 + $0x1d8] sm:$0xff] }
 0xbeb   :  { %5371 = vmatmul.mubr.msk.f32.vlgmr.msra.gmra.mxu1 %vm4285_vm7, %v10632_v62  ;;  %5625 = vmatprep.subr.mxu1 %v4618_v60  ;;  %v4631_v60 = vld [vmem:[%s12398_s13 + $0x160] sm:$0xff] }
 0xbec   :  { %4464 = vmatprep.mubr.f32.mxu1 %v6187_v8  ;;  %5626 = vmatpush3.msra.mxu1 %v4602_v63  ;;  %v4630_v63 = vld [vmem:[%s12398_s13 + $0x158] sm:$0xff] }
 0xbed   :  { %5627 = vmatprep.subr.mxu1 %v4617_v37  ;;  %v4629_v37 = vld [vmem:[%s12398_s13 + $0x150] sm:$0xff] }
 0xbee   :  { %5628 = vmatpush3.msra.mxu1 %v4601_v20  ;;  %v4557_v20 = vld [vmem:[%s12399_s30] sm:$0xff] }
 0xbef   :  { %5372 = vmatmul.mubr.msk.f32.gmra.mxu1 %vm4285_vm7, %v10643_v51  ;;  %5629 = vmatprep.subr.mxu1 %v4616_v43  ;;  %v4644_v43 = vld [vmem:[%s12398_s13 + $0x1c8] sm:$0xff] }
 0xbf0   :  { %4470 = vmatprep.mubr.f32.mxu1 %v6187_v8  ;;  %5630 = vmatpush3.msra.mxu1 %v4600_v12 }
 0xbf1   :  { %5631 = vmatprep.subr.mxu1 %v4615_v46  ;;  %v4558_v46 = vld [vmem:[%s12399_s30 + $0x8] sm:$0xff] }
 0xbf2   :  { %5632 = vmatpush3.msra.mxu1 %v4599_v26  ;;  %v4643_v26 = vld [vmem:[%s12398_s13 + $0x1c0] sm:$0xff] }
 0xbf3   :  { %5373 = vmatmul.mubr.msk.f32.gmra.mxu1 %vm4285_vm7, %v10651_v57  ;;  %5633 = vmatprep.subr.mxu1 %v4614_v31  ;;  %v5513_v17 = vpop.f32.mrf.mxu0  ;;  %v5548_v18 = vpop.f32.mrf.mxu1 }
 0xbf4   :  { %5634 = vmatpush3.msra.mxu1 %v4598_v21 }
 0xbf5   :  { %5635 = vmatprep.subr.mxu1 %v4613_v38  ;;  %v5514_v19 = vpop.f32.mrf.mxu0  ;;  %v5549_v24 = vpop.f32.mrf.mxu1  ;;  %v4627_v38 = vld [vmem:[%s12398_s13 + $0x140] sm:$0xff] }
 0xbf6   :  { %5636 = vmatpush3.msra.mxu1 %v4597_v10  ;;  %v5515_v25 = vadd.f32 %v5514_v19, %v5513_v17  ;;  %v5550_v29 = vadd.f32 %v5549_v24, %v5548_v18  ;;  %v4620_v17 = vld [vmem:[%s12398_s13 + $0x108] sm:$0xff]  ;;  %v4635_v18 = vld [vmem:[%s12398_s13 + $0x180] sm:$0xff] }
 0xbf7   :  { %5637 = vmatprep.subr.mxu1 %v4612_v15  ;;  %v4642_v15 = vld [vmem:[%s12398_s13 + $0x1b8] sm:$0xff]  ;;  %v4659_v19 = vld [vmem:[%s12398_s13 + $0x240] sm:$0xff] }
 0xbf8   :  { %5638 = vmatpush3.msra.mxu1 %v4596_v16  ;;  %v4070_v40 = vadd.f32 %v5550_v29, %v5515_v25  ;;  %v4666_v16 = vld [vmem:[%s12398_s13 + $0x278] sm:$0xff]  ;;  %v4619_v24 = vld [vmem:[%s12398_s13 + $0x100] sm:$0xff]  ;;  %v4657_v29 = vld [vmem:[%s12398_s13 + $0x230] sm:$0xff] }
 0xbf9   :  { %5639 = vmatprep.subr.mxu1 %v4611_v33  ;;  %v4626_v33 = vld [vmem:[%s12398_s13 + $0x138] sm:$0xff] }
 0xbfa   :  { %5640 = vmatpush3.msra.mxu1 %v4595_v1  ;;  %v4641_v1 = vld [vmem:[%s12398_s13 + $0x1b0] sm:$0xff]  ;;  %v4658_v25 = vld [vmem:[%s12398_s13 + $0x238] sm:$0xff] }
 0xbfb   :  { %5641 = vmatprep.subr.mxu1 %v4610_v27  ;;  %v4665_v27 = vld [vmem:[%s12398_s13 + $0x270] sm:$0xff] }
 0xbfc   :  { %5642 = vmatpush3.msra.mxu1 %v4594_v23  ;;  %v4625_v23 = vld [vmem:[%s12398_s13 + $0x130] sm:$0xff] }
 0xbfd   :  { %5643 = vmatprep.subr.mxu1 %v4609_v54  ;;  %v4640_v54 = vld [vmem:[%s12398_s13 + $0x1a8] sm:$0xff] }
 0xbfe   :  { %5644 = vmatpush3.msra.mxu1 %v4593_v32  ;;  %v4664_v32 = vld [vmem:[%s12398_s13 + $0x268] sm:$0xff] }
 0xbff   :  { %5645 = vmatprep.subr.mxu1 %v4608_v6  ;;  %v4624_v6 = vld [vmem:[%s12398_s13 + $0x128] sm:$0xff] }
 0xc00   :  { %5646 = vmatpush3.msra.mxu1 %v4592_v22  ;;  %v4639_v22 = vld [vmem:[%s12398_s13 + $0x1a0] sm:$0xff] }
 0xc01   :  { %5647 = vmatprep.subr.mxu1 %v4607_v5  ;;  %v4663_v5 = vld [vmem:[%s12398_s13 + $0x260] sm:$0xff] }
 0xc02   :  { %5648 = vmatpush3.msra.mxu1 %v4591_v11  ;;  %v4623_v11 = vld [vmem:[%s12398_s13 + $0x120] sm:$0xff] }
 0xc03   :  { %5649 = vmatprep.subr.mxu1 %v4606_v42  ;;  %v4638_v42 = vld [vmem:[%s12398_s13 + $0x198] sm:$0xff] }
 0xc04   :  { %5650 = vmatpush3.msra.mxu1 %v4590_v0  ;;  %v4662_v0 = vld [vmem:[%s12398_s13 + $0x258] sm:$0xff] }
 0xc05   :  { %5651 = vmatprep.subr.mxu1 %v4605_v2  ;;  %v4622_v2 = vld [vmem:[%s12398_s13 + $0x118] sm:$0xff] }
 0xc06   :  { %5652 = vmatpush3.msra.mxu1 %v4589_v3  ;;  %v4637_v3 = vld [vmem:[%s12398_s13 + $0x190] sm:$0xff] }
 0xc07   :  { %5653 = vmatprep.subr.mxu1 %v4604_v7  ;;  %v4661_v7 = vld [vmem:[%s12398_s13 + $0x250] sm:$0xff] }
 0xc08   :  { %5654 = vmatpush3.msra.mxu1 %v4588_v9  ;;  %v4621_v9 = vld [vmem:[%s12398_s13 + $0x110] sm:$0xff] }
 0xc09   :  { %5655 = vmatprep.subr.mxu1 %v4603_v13  ;;  %v4636_v13 = vld [vmem:[%s12398_s13 + $0x188] sm:$0xff] }
 0xc0a   :  { %5656 = vmatpush3.msra.mxu1 %v4587_v14  ;;  %v4660_v14 = vld [vmem:[%s12398_s13 + $0x248] sm:$0xff] }
 0xc0b   :  { %5939 = vmatprep.subr.mxu1 %v6187_v8 }
 0xc15   :  { %v5583_v30 = vpop.f32.mrf.mxu0  ;;  %v5618_v34 = vpop.f32.mrf.mxu1 }
 0xc17   :  { %v5584_v36 = vpop.f32.mrf.mxu0  ;;  %v5619_v39 = vpop.f32.mrf.mxu1 }
 0xc18   :  { %v5585_v41 = vadd.f32 %v5584_v36, %v5583_v30  ;;  %v5620_v45 = vadd.f32 %v5619_v39, %v5618_v34  ;;  %v4656_v30 = vld [vmem:[%s12398_s13 + $0x228] sm:$0xff]  ;;  %v4655_v34 = vld [vmem:[%s12398_s13 + $0x220] sm:$0xff]  ;;  %v4653_v36 = vld [vmem:[%s12398_s13 + $0x210] sm:$0xff] }
 0xc19   :  { %v4562_v39 = vld [vmem:[%s12399_s30 + $0x28] sm:$0xff] }
 0xc1a   :  { %v4140_v44 = vadd.f32 %v5585_v41, %v4070_v40  ;;  %v4563_v41 = vld [vmem:[%s12399_s30 + $0x30] sm:$0xff] }
 0xc1c   :  { %v4210_v48 = vadd.f32 %v5620_v45, %v4140_v44 }
 0xc1e   :  { %v4244_v52 = vmul.f32 %v4234_v47, %v4210_v48  ;;  %v4567_v48 = vld [vmem:[%s12399_s30 + $0x50] sm:$0xf] }
 0xc20   :  { %v4276_v53 = vadd.f32 %v4266_v50, %v4244_v52  ;;  %v4568_v52 = vld [vmem:[%s12399_s30 + $0x58] sm:$0xf] }
 0xc22   :  { %6105 = vtanh.f32 %v4276_v53 }
 0xc27   :  { %v4377_v12 = vpop.f32.mrf.mxu0 }
 0xc28   :  { %v4572_v31 = vmul.f32 %v4557_v20, %v4377_v12 }
 0xc29   :  { %v4379_v21 = vpop.f32.mrf.mxu0 }
 0xc2a   :  { %v4573_v10 = vmul.f32 %v4558_v46, %v4379_v21  ;;  %v4569_v46 = vld [vmem:[%s12399_s30 + $0x60] sm:$0xf] }
 0xc2b   :  { %v4383_v40 = vpop.f32.mrf.mxu0 }
 0xc2c   :  { %4731 = vmatprep.mubr.f32.mxu1 %v4573_v10  ;;  %v4577_v44 = vmul.f32 %v4562_v39, %v4383_v40  ;;  %v4561_v10 = vld [vmem:[%s12399_s30 + $0x20] sm:$0xff] }
 0xc2d   :  { %4732 = vmatmul.mubr.f32.vlgmr.msra.gmra.mxu1 %v4572_v31  ;;  %v4385_v45 = vpop.f32.mrf.mxu0 }
 0xc2e   :  { %5940 = vmatpush3.msra.mxu1 %v4666_v16  ;;  %v4578_v47 = vmul.f32 %v4563_v41, %v4385_v45 }
 0xc2f   :  { %v6106_v56 = vpop.eup %6105  ;;  %5941 = vmatprep.subr.mxu1 %v6187_v8  ;;  %v4389_v50 = vpop.f32.mrf.mxu0 }
 0xc30   :  { %5929 = vmatpush3.msk.msra.mxu0 %vm4295_vm6, %v6106_v56  ;;  %5942 = vmatpush3.msra.mxu1 %v4665_v27  ;;  %v4582_v53 = vmul.f32 %v4567_v48, %v4389_v50  ;;  %v4914_v27 = vld [vmem:[%s11175_s16 + $0x38] sm:$0xff] }
 0xc31   :  { %5931 = vmatmul.mubr.msk.f32.vlgmr.msra.gmra.mxu0 %vm4285_vm7, %v10632_v62  ;;  %5666 = vmatprep.subr.mxu0 %v4650_v55  ;;  %v4647_v62 = vld [vmem:[%s12398_s13 + $0x1e0] sm:$0xff]  ;;  %v4391_v55 = vpop.f32.mrf.mxu0 }
 0xc32   :  { %5933 = vmatprep.mubr.msk.f32.mxu0 %vm6188_vm8, %v6187_v8  ;;  %5667 = vmatpush3.msra.mxu0 %v4634_v28  ;;  %v4583_v56 = vmul.f32 %v4568_v52, %v4391_v55  ;;  %v4652_v28 = vld [vmem:[%s12398_s13 + $0x208] sm:$0xff]  ;;  %v5042_v52 = vld [vmem:[%s11178_s19 + $0x78] sm:$0xff] }
 0xc33   :  { %5668 = vmatprep.subr.mxu0 %v4649_v49  ;;  %5943 = vmatprep.subr.mxu1 %v6187_v8  ;;  %v4651_v49 = vld [vmem:[%s12398_s13 + $0x200] sm:$0xff] }
 0xc34   :  { %5669 = vmatpush3.msra.mxu0 %v4633_v4  ;;  %5944 = vmatpush3.msra.mxu1 %v4664_v32  ;;  %v4559_v4 = vld [vmem:[%s12399_s30 + $0x10] sm:$0xff] }
 0xc35   :  { %5934 = vmatmul.mubr.msk.f32.gmra.mxu0 %vm4285_vm7, %v10643_v51  ;;  %5670 = vmatprep.subr.mxu0 %v4648_v58  ;;  %v4645_v51 = vld [vmem:[%s12398_s13 + $0x1d0] sm:$0xff] }
 0xc36   :  { %5936 = vmatprep.mubr.msk.f32.mxu0 %vm6188_vm8, %v6187_v8  ;;  %5671 = vmatpush3.msra.mxu0 %v4632_v59  ;;  %v4560_v59 = vld [vmem:[%s12399_s30 + $0x18] sm:$0xff] }
 0xc37   :  { %5672 = vmatprep.subr.mxu0 %v4647_v62  ;;  %5945 = vmatprep.subr.mxu1 %v6187_v8 }
 0xc38   :  { %5673 = vmatpush3.msra.mxu0 %v4631_v60  ;;  %5946 = vmatpush3.msra.mxu1 %v4663_v5  ;;  %v4571_v5 = vld [vmem:[%s12399_s30 + $0x70] sm:$0xf] }
 0xc39   :  { %5937 = vmatmul.mubr.msk.f32.gmra.mxu0 %vm4285_vm7, %v10651_v57  ;;  %5674 = vmatprep.subr.mxu0 %v4646_v61  ;;  %v4628_v57 = vld [vmem:[%s12398_s13 + $0x148] sm:$0xff] }
 0xc3a   :  { %5675 = vmatpush3.msra.mxu0 %v4630_v63  ;;  %5947 = vmatprep.subr.mxu1 %v6187_v8  ;;  %v4564_v63 = vld [vmem:[%s12399_s30 + $0x38] sm:$0xff] }
 0xc3b   :  { %5676 = vmatprep.subr.mxu0 %v4645_v51  ;;  %5948 = vmatpush3.msra.mxu1 %v4662_v0 }
 0xc3c   :  { %5677 = vmatpush3.msra.mxu0 %v4629_v37  ;;  %5949 = vmatprep.subr.mxu1 %v6187_v8  ;;  %v4565_v37 = vld [vmem:[%s12399_s30 + $0x40] sm:$0xff] }
 0xc3d   :  { %5678 = vmatprep.subr.mxu0 %v4644_v43  ;;  %5950 = vmatpush3.msra.mxu1 %v4661_v7  ;;  %v4909_v7 = vld [vmem:[%s11175_s16 + $0x10] sm:$0xff] }
 0xc3e   :  { %5679 = vmatpush3.msra.mxu0 %v4628_v57  ;;  %5951 = vmatprep.subr.mxu1 %v6187_v8 }
 0xc3f   :  { %5680 = vmatprep.subr.mxu0 %v4643_v26  ;;  %5952 = vmatpush3.msra.mxu1 %v4660_v14  ;;  %v4570_v26 = vld [vmem:[%s12399_s30 + $0x68] sm:$0xf] }
 0xc40   :  { %5681 = vmatpush3.msra.mxu0 %v4627_v38  ;;  %5953 = vmatprep.subr.mxu1 %v6187_v8 }
 0xc41   :  { %5682 = vmatprep.subr.mxu0 %v4642_v15  ;;  %5954 = vmatpush3.msra.mxu1 %v4659_v19 }
 0xc42   :  { %5683 = vmatpush3.msra.mxu0 %v4626_v33  ;;  %5955 = vmatprep.subr.mxu1 %v6187_v8 }
 0xc43   :  { %5684 = vmatprep.subr.mxu0 %v4641_v1  ;;  %5956 = vmatpush3.msra.mxu1 %v4658_v25  ;;  %v4566_v1 = vld [vmem:[%s12399_s30 + $0x48] sm:$0xff] }
 0xc44   :  { %5685 = vmatpush3.msra.mxu0 %v4625_v23  ;;  %5957 = vmatprep.subr.mxu1 %v6187_v8  ;;  %v4913_v23 = vld [vmem:[%s11175_s16 + $0x30] sm:$0xff] }
 0xc45   :  { %5686 = vmatprep.subr.mxu0 %v4640_v54  ;;  %5958 = vmatpush3.msra.mxu1 %v4657_v29 }
 0xc46   :  { %5687 = vmatpush3.msra.mxu0 %v4624_v6  ;;  %5959 = vmatprep.subr.mxu1 %v6187_v8  ;;  %v4912_v6 = vld [vmem:[%s11175_s16 + $0x28] sm:$0xff] }
 0xc47   :  { %5688 = vmatprep.subr.mxu0 %v4639_v22  ;;  %5960 = vmatpush3.msra.mxu1 %v4656_v30 }
 0xc48   :  { %5689 = vmatpush3.msra.mxu0 %v4623_v11  ;;  %5961 = vmatprep.subr.mxu1 %v6187_v8  ;;  %v4911_v11 = vld [vmem:[%s11175_s16 + $0x20] sm:$0xff] }
 0xc49   :  { %5690 = vmatprep.subr.mxu0 %v4638_v42  ;;  %5962 = vmatpush3.msra.mxu1 %v4655_v34 }
 0xc4a   :  { %5691 = vmatpush3.msra.mxu0 %v4622_v2  ;;  %5963 = vmatprep.subr.mxu1 %v6187_v8  ;;  %v4910_v2 = vld [vmem:[%s11175_s16 + $0x18] sm:$0xff] }
 0xc4b   :  { %5692 = vmatprep.subr.mxu0 %v4637_v3  ;;  %5964 = vmatpush3.msra.mxu1 %v4654_v35 }
 0xc4c   :  { %5693 = vmatpush3.msra.mxu0 %v4621_v9  ;;  %5965 = vmatprep.subr.mxu1 %v6187_v8  ;;  %v4908_v9 = vld [vmem:[%s11175_s16 + $0x8] sm:$0xff] }
 0xc4d   :  { %5694 = vmatprep.subr.mxu0 %v4636_v13  ;;  %5966 = vmatpush3.msra.mxu1 %v4653_v36  ;;  %v4907_v13 = vld [vmem:[%s11175_s16] sm:$0xff] }
 0xc4e   :  { %5695 = vmatpush3.msra.mxu0 %v4620_v17  ;;  %5967 = vmatprep.subr.mxu1 %v6187_v8 }
 0xc4f   :  { %5696 = vmatprep.subr.mxu0 %v4635_v18  ;;  %4736 = vmatprep.mubr.f32.mxu1 %v4578_v47 }
 0xc50   :  { %5697 = vmatpush3.msra.mxu0 %v4619_v24  ;;  %4737 = vmatmul.mubr.f32.gmra.mxu1 %v4577_v44 }
 0xc51   :  { %5980 = vmatprep.subr.mxu0 %v6187_v8  ;;  %4741 = vmatprep.mubr.f32.mxu1 %v4583_v56 }
 0xc52   :  { %5968 = vmatpush3.msra.mxu1 %v4652_v28 }
 0xc53   :  { %5969 = vmatprep.subr.mxu1 %v6187_v8 }
 0xc54   :  { %4742 = vmatmul.mubr.f32.gmra.mxu1 %v4582_v53 }
 0xc55   :  { %5971 = vmatprep.mubr.msk.f32.mxu1 %vm6188_vm8, %v6187_v8  ;;  %5970 = vmatpush3.msra.mxu1 %v4651_v49  ;;  %v5041_v49 = vld [vmem:[%s11178_s19 + $0x70] sm:$0xff] }
 0xcab   :  { %v4460_v58 = vpop.f32.mrf.mxu1 }
 0xcac   :  { %v4574_v62 = vmul.f32 %v4559_v4, %v4460_v58 }
 0xcad   :  { %v4462_v60 = vpop.f32.mrf.mxu1 }
 0xcae   :  { %v4575_v61 = vmul.f32 %v4560_v59, %v4462_v60  ;;  %v5040_v59 = vld [vmem:[%s11178_s19 + $0x68] sm:$0xff] }
 0xcaf   :  { %v4466_v51 = vpop.f32.mrf.mxu1 }
 0xcb0   :  { %4811 = vmatprep.mubr.f32.mxu0 %v4575_v61  ;;  %v4579_v20 = vmul.f32 %v4564_v63, %v4466_v51  ;;  %v5039_v61 = vld [vmem:[%s11178_s19 + $0x60] sm:$0xff] }
 0xcb1   :  { %4812 = vmatmul.mubr.f32.vlgmr.msra.gmra.mxu0 %v4574_v62  ;;  %v4468_v43 = vpop.f32.mrf.mxu1 }
 0xcb2   :  { %v4580_v12 = vmul.f32 %v4565_v37, %v4468_v43  ;;  %5981 = vmatpush3.msra.mxu0 %v4914_v27  ;;  %v5038_v37 = vld [vmem:[%s11178_s19 + $0x58] sm:$0xff]  ;;  %v5037_v43 = vld [vmem:[%s11178_s19 + $0x50] sm:$0xff]  ;;  %v5159_v27 = vld [vmem:[%s12400_s12 + $0x8] sm:$0xff] }
 0xcb3   :  { %v4472_v57 = vpop.f32.mrf.mxu1  ;;  %5982 = vmatprep.subr.mxu0 %v6187_v8 }
 0xcb4   :  { %4816 = vmatprep.mubr.f32.mxu0 %v4580_v12  ;;  %v4584_v31 = vmul.f32 %v4569_v46, %v4472_v57  ;;  %5983 = vmatpush3.msra.mxu0 %v4913_v23  ;;  %v5036_v12 = vld [vmem:[%s11178_s19 + $0x48] sm:$0xff]  ;;  %v5035_v46 = vld [vmem:[%s11178_s19 + $0x40] sm:$0xff]  ;;  %v5034_v57 = vld [vmem:[%s11178_s19 + $0x38] sm:$0xff] }
 0xcb5   :  { %v4474_v21 = vpop.f32.mrf.mxu1  ;;  %4817 = vmatmul.mubr.f32.gmra.mxu0 %v4579_v20  ;;  %5984 = vmatprep.subr.mxu0 %v6187_v8  ;;  %v5381_v23 = vld [vmem:[%s11176_s17] ss:$0 sm:$0xff] }
 0xcb6   :  { %v4585_v38 = vmul.f32 %v4570_v26, %v4474_v21  ;;  %5985 = vmatpush3.msra.mxu0 %v4912_v6  ;;  %v5033_v26 = vld [vmem:[%s11178_s19 + $0x30] sm:$0xff]  ;;  %v5031_v21 = vld [vmem:[%s11178_s19 + $0x20] sm:$0xff] }
 0xcb7   :  { %5986 = vmatprep.subr.mxu0 %v6187_v8 }
 0xcb8   :  { %4821 = vmatprep.mubr.f32.mxu0 %v4585_v38  ;;  %5987 = vmatpush3.msra.mxu0 %v4911_v11  ;;  %v5030_v38 = vld [vmem:[%s11178_s19 + $0x18] sm:$0xff] }
 0xcb9   :  { %4822 = vmatmul.mubr.f32.gmra.mxu0 %v4584_v31  ;;  %5988 = vmatprep.subr.mxu0 %v6187_v8  ;;  %v5032_v31 = vld [vmem:[%s11178_s19 + $0x28] sm:$0xff] }
 0xcba   :  { %5996 = vmatprep.mubr.msk.f32.mxu0 %vm6188_vm8, %v6187_v8  ;;  %5989 = vmatpush3.msra.mxu0 %v4910_v2 }
 0xcbb   :  { %5990 = vmatprep.subr.mxu0 %v6187_v8 }
 0xcbc   :  { %5991 = vmatpush3.msra.mxu0 %v4909_v7 }
 0xcbd   :  { %5992 = vmatprep.subr.mxu0 %v6187_v8 }
 0xcbe   :  { %5993 = vmatpush3.msra.mxu0 %v4908_v9 }
 0xcbf   :  { %5994 = vmatprep.subr.mxu0 %v6187_v8 }
 0xcc0   :  { %5995 = vmatpush3.msra.mxu0 %v4907_v13 }
 0xcc1   :  { %6005 = vmatprep.subr.mxu0 %v6187_v8 }
 0xced   :  { %v5657_v14 = vpop.f32.mrf.mxu1 }
 0xcef   :  { %v5658_v18 = vpop.f32.mrf.mxu1 }
 0xcf0   :  { %v5659_v35 = vadd.f32 %v5658_v18, %v5657_v14 }
 0xcf1   :  { %v4543_v15 = vpop.f32.mrf.mxu0 }
 0xcf2   :  { %v4576_v16 = vmul.f32 %v4561_v10, %v4543_v15  ;;  %v5029_v10 = vld [vmem:[%s11178_s19 + $0x10] sm:$0xff]  ;;  %v5028_v15 = vld [vmem:[%s11178_s19 + $0x8] sm:$0xff] }
 0xcf3   :  { %v5932_v33 = vpop.f32.mrf.mxu0 }
 0xcf4   :  { %5972 = vmatmul.mubr.f32.vlgmr.msra.gmra.mxu1 %v4576_v16  ;;  %v5027_v16 = vld [vmem:[%s11178_s19] sm:$0xff] }
 0xcf5   :  { %v4548_v54 = vpop.f32.mrf.mxu0  ;;  %5974 = vmatprep.mubr.msk.f32.mxu1 %vm6188_vm8, %v6187_v8  ;;  %v5158_v33 = vld [vmem:[%s12400_s12] sm:$0xff] }
 0xcf6   :  { %v4581_v32 = vmul.f32 %v4566_v1, %v4548_v54  ;;  %v5160_v1 = vld [vmem:[%s12400_s12 + $0x10] sm:$0xf]  ;;  %5164 = vrot.lane.b32.xlu0 %v5158_v33, %s6185_s11 }
 0xcf7   :  { %v5935_v22 = vpop.f32.mrf.mxu0  ;;  %5168 = vrot.lane.b32.xlu1 %v5160_v1, %s6185_s11 }
 0xcf8   :  { %5975 = vmatmul.mubr.f32.gmra.mxu1 %v4581_v32  ;;  %v5382_v32 = vld [vmem:[%s11177_s18] ss:$0 sm:$0xff] }
 0xcf9   :  { %v4553_v42 = vpop.f32.mrf.mxu0  ;;  %5977 = vmatprep.mubr.msk.f32.mxu1 %vm6188_vm8, %v6187_v8 }
 0xcfa   :  { %v4586_v0 = vmul.f32 %v4571_v5, %v4553_v42  ;;  %5166 = vrot.lane.b32.xlu0 %v5159_v27, %s6185_s11 }
 0xcfb   :  { %v5938_v3 = vpop.f32.mrf.mxu0 }
 0xcfc   :  { %5978 = vmatmul.mubr.f32.gmra.mxu1 %v4586_v0 }
 0xd10   :  { %v5660_v24 = vpop.f32.mrf.mxu1 }
 0xd12   :  { %v5661_v29 = vpop.f32.mrf.mxu1 }
 0xd13   :  { %v5662_v41 = vadd.f32 %v5661_v29, %v5660_v24 }
 0xd14   :  { %v5663_v34 = vpop.f32.mrf.mxu1 }
 0xd16   :  { %v5664_v40 = vpop.f32.mrf.mxu1 }
 0xd17   :  { %v5665_v55 = vadd.f32 %v5664_v40, %v5663_v34 }
 0xd71   :  { %v5698_v17 = vpop.f32.mrf.mxu0 }
 0xd73   :  { %v5699_v19 = vpop.f32.mrf.mxu0 }
 0xd74   :  { %v5700_v36 = vadd.f32 %v5699_v19, %v5698_v17  ;;  %v5383_v19 = vld [vmem:[%s11179_s20] ss:$0 sm:$0xff]  ;;  %s6189_s20 = smov [#allocation8]  }
 0xd75   :  { %v5701_v25 = vpop.f32.mrf.mxu0  ;;  %s5211_s6 = sshll.u32 %s6189_s20, 4  ;;  %s5212_s6 = int_to_ptr.vmem [resolvable:$true] %s5211_s6 }
 0xd76   :  { %v4814_v45 = vadd.f32 %v5700_v36, %v5659_v35  ;;  %s6119_s9 = scalar_lea.vmem %s5212_s6, 384  ;;  %p6124_p1 = scmp.lt.s32.totalorder %s5212_s6, %s5212_s6 }
 0xd77   :  { %v5702_v30 = vpop.f32.mrf.mxu0  ;;  %p6120_p0 = scmp.ne.s32.totalorder %s5212_s6, %s6119_s9  ;;  %p6125_p2 = scmp.lt.s32.totalorder %s6119_s9, %s6119_s9 }
 0xd78   :  { %v5703_v44 = vadd.f32 %v5702_v30, %v5701_v25 }
 0xd79   :  { %v5704_v39 = vpop.f32.mrf.mxu0  ;;  %p6126_p3 = por %p6125_p2, %p6124_p1 }
 0xd7a   :  { %v4819_v28 = vadd.f32 %v5703_v44, %v5662_v41 }
 0xd7b   :  { %v5705_v48 = vpop.f32.mrf.mxu0  ;;  %p6127_p4 = pnand %p6126_p3, %p6120_p0 }
 0xd7c   :  { %v5706_v56 = vadd.f32 %v5705_v48, %v5704_v39 }
 0xd7e   :  { %v4824_v60 = vadd.f32 %v5706_v56, %v5665_v55 }
 0xdb4   :  { %v4893_v47 = vpop.f32.mrf.mxu1 }
 0xdb5   :  { %v4894_v50 = vadd.f32 %v4893_v47, %v4814_v45 }
 0xdb6   :  { %v5973_v53 = vpop.f32.mrf.mxu1 }
 0xdb7   :  { %5997 = vmatmul.mubr.msk.f32.vlgmr.msra.gmra.mxu0 %vm1644_vm3, %v4894_v50  ;;  %v5165_v50 = vpop.permute.xlu0 %5164  ;;  %v5169_v53 = vpop.permute.xlu1 %5168 }
 0xdb8   :  { %v4898_v4 = vpop.f32.mrf.mxu1  ;;  %5999 = vmatprep.mubr.msk.f32.mxu0 %vm6188_vm8, %v6187_v8  ;;  %6006 = vmatpush3.msra.mxu0 %v5042_v52 }
 0xdb9   :  { %v4899_v58 = vadd.f32 %v4898_v4, %v4819_v28  ;;  %6007 = vmatprep.subr.mxu0 %v6187_v8 }
 0xdba   :  { %v5976_v62 = vpop.f32.mrf.mxu1  ;;  %6008 = vmatpush3.msra.mxu0 %v5041_v49 }
 0xdbb   :  { %6000 = vmatmul.mubr.msk.f32.gmra.mxu0 %vm1644_vm3, %v4899_v58  ;;  %6009 = vmatprep.subr.mxu0 %v6187_v8 }
 0xdbc   :  { %v4903_v63 = vpop.f32.mrf.mxu1  ;;  %6002 = vmatprep.mubr.msk.f32.mxu0 %vm6188_vm8, %v6187_v8  ;;  %6010 = vmatpush3.msra.mxu0 %v5040_v59 }
 0xdbd   :  { %v4904_v51 = vadd.f32 %v4903_v63, %v4824_v60  ;;  %6011 = vmatprep.subr.mxu0 %v6187_v8 }
 0xdbe   :  { %v5979_v20 = vpop.f32.mrf.mxu1  ;;  %6012 = vmatpush3.msra.mxu0 %v5039_v61 }
 0xdbf   :  { %6003 = vmatmul.mubr.msk.f32.gmra.mxu0 %vm1644_vm3, %v4904_v51  ;;  %6013 = vmatprep.subr.mxu0 %v6187_v8 }
 0xdc0   :  { %6014 = vmatpush3.msra.mxu0 %v5038_v37  ;;  %6037 = vmatprep.mubr.msk.f32.mxu0 %vm6188_vm8, %v6187_v8 }
 0xdc1   :  { %6015 = vmatprep.subr.mxu0 %v6187_v8 }
 0xdc2   :  { %6016 = vmatpush3.msra.mxu0 %v5037_v43 }
 0xdc3   :  { %6017 = vmatprep.subr.mxu0 %v6187_v8 }
 0xdc4   :  { %6018 = vmatpush3.msra.mxu0 %v5036_v12 }
 0xdc5   :  { %6019 = vmatprep.subr.mxu0 %v6187_v8 }
 0xdc6   :  { %6020 = vmatpush3.msra.mxu0 %v5035_v46 }
 0xdc7   :  { %6021 = vmatprep.subr.mxu0 %v6187_v8 }
 0xdc8   :  { %6022 = vmatpush3.msra.mxu0 %v5034_v57 }
 0xdc9   :  { %6023 = vmatprep.subr.mxu0 %v6187_v8 }
 0xdca   :  { %6024 = vmatpush3.msra.mxu0 %v5033_v26 }
 0xdcb   :  { %6025 = vmatprep.subr.mxu0 %v6187_v8 }
 0xdcc   :  { %6026 = vmatpush3.msra.mxu0 %v5032_v31 }
 0xdcd   :  { %6027 = vmatprep.subr.mxu0 %v6187_v8 }
 0xdce   :  { %6028 = vmatpush3.msra.mxu0 %v5031_v21 }
 0xdcf   :  { %6029 = vmatprep.subr.mxu0 %v6187_v8 }
 0xdd0   :  { %6030 = vmatpush3.msra.mxu0 %v5030_v38 }
 0xdd1   :  { %6031 = vmatprep.subr.mxu0 %v6187_v8 }
 0xdd2   :  { %6032 = vmatpush3.msra.mxu0 %v5029_v10 }
 0xdd3   :  { %6033 = vmatprep.subr.mxu0 %v6187_v8 }
 0xdd4   :  { %6034 = vmatpush3.msra.mxu0 %v5028_v15 }
 0xdd5   :  { %6035 = vmatprep.subr.mxu0 %v6187_v8 }
 0xdd6   :  { %6036 = vmatpush3.msra.mxu0 %v5027_v16 }
 0xe77   :  { %v4990_v54 = vpop.f32.mrf.mxu0 }
 0xe78   :  { %v5011_v6 = vmul.f32 %v5381_v23, %v4990_v54 }
 0xe79   :  { %v5998_v22 = vpop.f32.mrf.mxu0 }
 0xe7a   :  { %v5021_v5 = vadd.f32 %v5382_v32, %v5011_v6 }
 0xe7b   :  { %v4995_v11 = vpop.f32.mrf.mxu0 }
 0xe7c   :  { %6107 = vtanh.f32 %v5021_v5  ;;  %v5012_v42 = vmul.f32 %v5381_v23, %v4995_v11 }
 0xe7d   :  { %v6001_v0 = vpop.f32.mrf.mxu0 }
 0xe7e   :  { %v5022_v2 = vadd.f32 %v5382_v32, %v5012_v42 }
 0xe7f   :  { %v5000_v3 = vpop.f32.mrf.mxu0 }
 0xe80   :  { %6109 = vtanh.f32 %v5022_v2  ;;  %v5013_v7 = vmul.f32 %v5381_v23, %v5000_v3 }
 0xe81   :  { %v6004_v9 = vpop.f32.mrf.mxu0 }
 0xe82   :  { %v5023_v13 = vadd.f32 %v5382_v32, %v5013_v7 }
 0xe84   :  { %6111 = vtanh.f32 %v5023_v13 }
 0xe89   :  { %v6108_v14 = vpop.eup %6107 }
 0xe8a   :  { %6038 = vmatmul.mubr.f32.vlgmr.msra.gmra.mxu0 %v6108_v14 }
 0xe8b   :  { %6040 = vmatprep.mubr.msk.f32.mxu0 %vm6188_vm8, %v6187_v8 }
 0xe8d   :  { %v6110_v17 = vpop.eup %6109 }
 0xe8e   :  { %6041 = vmatmul.mubr.f32.gmra.mxu0 %v6110_v17 }
 0xe8f   :  { %6043 = vmatprep.mubr.msk.f32.mxu0 %vm6188_vm8, %v6187_v8 }
 0xe91   :  { %v6112_v18 = vpop.eup %6111 }
 0xe92   :  { %6044 = vmatmul.mubr.f32.gmra.mxu0 %v6112_v18 }
 0xf4a   :  { %v5116_v24 = vpop.f32.mrf.mxu0 }
 0xf4b   :  { %v5117_v25 = vadd.f32 %v5383_v19, %v5116_v24 }
 0xf4c   :  { %v6039_v29 = vpop.f32.mrf.mxu0 }
 0xf4d   :  { %5130 = vst.msk [vmem:[#allocation8] sm:$0xff] %vm1644_vm3, %v5117_v25  ;;  %5137 = vrot.lane.b32.xlu1 %v5117_v25, %s6185_s11  ;;  %v5149_v40 = vmul.f32 0.5, %v5117_v25 }
 0xf4e   :  { %v5121_v30 = vpop.f32.mrf.mxu0 }
 0xf4f   :  { %v5122_v34 = vadd.f32 %v5383_v19, %v5121_v30  ;;  %v5152_v41 = vmul.f32 1.442695, %v5149_v40 }
 0xf50   :  { %v6042_v35 = vpop.f32.mrf.mxu0 }
 0xf51   :  { %5131 = vst.msk [vmem:[#allocation8 + $0x8] sm:$0xff] %vm1644_vm3, %v5122_v34  ;;  %5139 = vrot.lane.b32.xlu0 %v5122_v34, %s6185_s11  ;;  %v5150_v44 = vmul.f32 0.5, %v5122_v34  ;;  %6113 = vpow2.f32 %v5152_v41 }
 0xf52   :  { %v5126_v8 = vpop.f32.mrf.mxu0 }
 0xf53   :  { %v5127_v36 = vadd.f32 %v5383_v19, %v5126_v8  ;;  %v5154_v45 = vmul.f32 1.442695, %v5150_v44 }
 0xf54   :  { %v6045_v39 = vpop.f32.mrf.mxu0 }
 0xf55   :  { %5141 = vrot.lane.b32.xlu1 %v5127_v36, %s6185_s11  ;;  %5133 = vst.msk [vmem:[#allocation8 + $0x10] sm:$0xf] %vm5132_vm9, %v5127_v36  ;;  %v5151_v47 = vmul.f32 0.5, %v5127_v36  ;;  %6115 = vpow2.f32 %v5154_v45 }
 0xf57   :  { %v5156_v48 = vmul.f32 1.442695, %v5151_v47 }
 0xf59   :  { %6117 = vpow2.f32 %v5156_v48 }
 0xf5e   :  { %v6114_v52 = vpop.eup %6113 }
 0xf5f   :  { %v5173_v55 = vmul.f32 %v6114_v52, %v5165_v50 }
 0xf60   :  { %6130 = shalt.err (!%p6127_p4)
}
 0xf61   :  { %s6190_s27 = smov 128   ;;  %s6191_s7 = smov 8   ;;  %v5167_v28 = vpop.permute.xlu0 %5166 }
 0xf62   :  { %5217 = dma.vmem_to_hbm [thread:$0]  %s5212_s6, 384, %s11181_s22, [#allocation9], %s6190_s27, %s6190_s27, %s6191_s7   ;;  %v6116_v56 = vpop.eup %6115 }
 0xf63   :  { %v5174_v58 = vmul.f32 %v6116_v56, %v5167_v28  ;;  %s6192_s29 = smov [#allocation10]  }
 0xf64   :  { %s5223_s3 = sshll.u32 %s6192_s29, 4  ;;  %s5224_s3 = int_to_ptr.vmem [resolvable:$true] %s5223_s3 }
 0xf65   :  { %s6139_s22 = scalar_lea.vmem %s5224_s3, 384  ;;  %p6144_p6 = scmp.lt.s32.totalorder %s5224_s3, %s5224_s3 }
 0xf66   :  { %v6118_v59 = vpop.eup %6117  ;;  %p6140_p5 = scmp.ne.s32.totalorder %s5224_s3, %s6139_s22  ;;  %p6145_p7 = scmp.lt.s32.totalorder %s6139_s22, %s6139_s22 }
 0xf67   :  { %v5175_v61 = vmul.f32 %v6118_v59, %v5169_v53 }
 0xf68   :  { %p6146_p8 = por %p6145_p7, %p6144_p6 }
 0xf6a   :  { %p6147_p9 = pnand %p6146_p8, %p6140_p5 }
 0xfbf   :  { %v5138_v49 = vpop.permute.xlu1 %5137 }
 0xfc0   :  { %5146 = vst.msk [vmem:[#allocation10] sm:$0xff] %vm1644_vm3, %v5138_v49  ;;  %v5176_v4 = vadd.f32 %v5173_v55, %v5138_v49 }
 0xfc2   :  { %5182 = vrot.lane.b32.xlu0 %v5176_v4, %s6185_s11 }
 0xfc3   :  { %v5140_v62 = vpop.permute.xlu0 %5139 }
 0xfc4   :  { %5147 = vst.msk [vmem:[#allocation10 + $0x8] sm:$0xff] %vm1644_vm3, %v5140_v62  ;;  %v5177_v60 = vadd.f32 %v5174_v58, %v5140_v62 }
 0xfc6   :  { %5184 = vrot.lane.b32.xlu1 %v5177_v60, %s6185_s11 }
 0xfc7   :  { %v5142_v63 = vpop.permute.xlu1 %5141 }
 0xfc8   :  { %5148 = vst.msk [vmem:[#allocation10 + $0x10] sm:$0xf] %vm5132_vm9, %v5142_v63  ;;  %v5178_v51 = vadd.f32 %v5175_v61, %v5142_v63 }
 0xfc9   :  { %6150 = shalt.err (!%p6147_p9)
}
 0xfca   :  { %5229 = dma.vmem_to_hbm [thread:$0]  %s5224_s3, 384, %s11182_s23, [#allocation9], %s6190_s27, %s6190_s27, %s6191_s7  }
 0xfcb   :  { %5186 = vrot.lane.b32.xlu0 %v5178_v51, %s6185_s11  ;;  %s6193_s4 = smov [#allocation6]  }
 0xfcc   :  { %s5199_s8 = sshll.u32 %s6193_s4, 4  ;;  %s5200_s8 = int_to_ptr.vmem [resolvable:$true] %s5199_s8 }
 0xfcd   :  { %s6159_s24 = scalar_lea.vmem %s5200_s8, 384  ;;  %p6164_p11 = scmp.lt.s32.totalorder %s5200_s8, %s5200_s8 }
 0xfce   :  { %p6160_p10 = scmp.ne.s32.totalorder %s5200_s8, %s6159_s24  ;;  %p6165_p12 = scmp.lt.s32.totalorder %s6159_s24, %s6159_s24 }
 0xfd0   :  { %p6166_p13 = por %p6165_p12, %p6164_p11 }
 0xfd2   :  { %p6167_p0 = pnand %p6166_p13, %p6160_p10 }
0x1034   :  { %v5183_v37 = vpop.permute.xlu0 %5182 }
0x1035   :  { %5191 = vst.msk [vmem:[#allocation6] sm:$0xff] %vm1644_vm3, %v5183_v37 }
0x1038   :  { %v5185_v20 = vpop.permute.xlu1 %5184 }
0x1039   :  { %5192 = vst.msk [vmem:[#allocation6 + $0x8] sm:$0xff] %vm1644_vm3, %v5185_v20 }
0x103d   :  { %v5187_v43 = vpop.permute.xlu0 %5186 }
0x103e   :  { %5193 = vst.msk [vmem:[#allocation6 + $0x10] sm:$0xf] %vm5132_vm9, %v5187_v43 }
0x103f   :  { %6170 = shalt.err (!%p6167_p0)
}
0x1040   :  { %5205 = dma.vmem_to_hbm [thread:$0]  %s5200_s8, 384, %s11180_s21, [#allocation7], %s6190_s27, %s6190_s27, %s6191_s7  }
0x1041   :  { %6181 = dma.done.wait [#allocation7], 384  }
0x1042   :  { %6182 = vsyncadd [#allocation7], 4294966912 }
0x1043   :  { %6183 = dma.done.wait [#allocation9], 768  }
0x1044   :  { %6184 = vsyncadd [#allocation9], 4294966528 }
0x1045   :  { %5239 = vsyncpa [#allocation7], 1 }
0x1046   :  { %5240 = vsyncpa [#allocation9], 1 }
0x1047   :  { %5241 = vsyncmov [#allocation5] }
0x104a   :  { %s5242_s25 = vpop.sfrf %5241 }
0x104b   :  { %p5384_p1 = scmp.ne.s32.totalorder %s5242_s25, 0 }
0x104d   :  { %5246 = shalt.err (%p5384_p1)  }

</bundles_post_ra>
